<compile_context>
chip_gen: v7x
topology: tpu7x:2x2x1
jax: 0.10.0
libtpu: 0.0.40
codegen_flags: <defaults>
</compile_context>

<pallas_src>
import jax
import jax.numpy as jnp
from jax.experimental import pallas as pl
from jax.experimental.pallas import tpu as pltpu

FEATURES_MULTIPLIER = 8   # global `features_multiplier` in the original script
OUT_FEATURES = 16         # `out_features` constructor argument
BN_EPS = 1e-5
NEG_SLOPE = 0.01

MP = 8                    # padded batch rows (batch <= 8)
LANE = 128


def _round_up(v, m):
    return ((v + m - 1) // m) * m


def _lrelu(v):
    return jnp.where(v >= 0.0, v, NEG_SLOPE * v)


# ------------------------------ Pallas kernels -------------------------------

def _conv_gemm_kernel(x_ref, w_ref, b_ref, o_ref):
    """ReLU(x @ w + b) -- im2col conv, BatchNorm folded into w/b."""
    acc = jnp.dot(x_ref[...], w_ref[...], preferred_element_type=jnp.float32)
    o_ref[...] = jnp.maximum(acc + b_ref[...], 0.0).astype(o_ref.dtype)


def conv_gemm(patches, w, b):
    m, _ = patches.shape
    _, n = w.shape
    return pl.pallas_call(
        _conv_gemm_kernel,
        out_shape=jax.ShapeDtypeStruct((m, n), jnp.bfloat16),
    )(patches, w, b)


def _fused_linear_kernel(
        conv_ref, x_ref, epsq_ref, epsr_ref,
        # encoder dual tower (encoderLin cols 0:128 | encoderLinAlt cols 128:256)
        w1e_ref, w1ex_ref, b1e_ref,
        ew2_ref, eb2_ref, ew3_ref, eb3_ref, ew4_ref, eb4_ref, ew5_ref, eb5_ref,
        l10w_ref, l10b_ref,
        # decoder tower
        w1d_ref, w1dz_ref, b1d_ref,
        dw2_ref, db2_ref, dw3_ref, db3_ref, dw4_ref, db4_ref, dw5_ref, db5_ref,
        l10dw_ref, l10db_ref,
        # outputs
        muq_ref, mur1_ref, mur2_ref, lvr2_ref, rec_ref):
    """Whole linear stage in one kernel: encoderLin + encoderLinAlt (dual tower),
    shared layer10 head, reparameterized z, decoderLin, layer10dec heads and the
    reparameterized reconstruction.  BatchNorm is pre-folded; Dropout is identity
    (eval).  Activations stay f32; matmuls run bf16 on the MXU with f32 acc."""
    conv = conv_ref[...]                                         # (8, 7296) bf16

    # ---- layer 1, both encoder towers (K split: conv part + x tail) ----------
    h1 = (jnp.dot(conv, w1e_ref[...], preferred_element_type=jnp.float32)
          + jnp.dot(x_ref[...], w1ex_ref[...], preferred_element_type=jnp.float32)
          + b1e_ref[...])
    h1 = _lrelu(h1)                                              # (8, 256) f32

    # ---- layers 2..5, each tower --------------------------------------------
    fc_parts = []
    for t in range(2):
        h = h1[:, t * LANE:(t + 1) * LANE]
        for wr, br in ((ew2_ref, eb2_ref), (ew3_ref, eb3_ref),
                       (ew4_ref, eb4_ref), (ew5_ref, eb5_ref)):
            h = _lrelu(jnp.dot(h.astype(jnp.bfloat16), wr[t],
                               preferred_element_type=jnp.float32) + br[t])
        fc_parts.append(h)                                       # (8, 128) f32

    # ---- shared layer10 head: both towers in one (16,128)x(128,128) MXU push -
    fc_both = jnp.concatenate(fc_parts, axis=0).astype(jnp.bfloat16)   # (16,128)
    head = (jnp.dot(fc_both, l10w_ref[...], preferred_element_type=jnp.float32)
            + l10b_ref[...])
    hq = head[:MP]                                               # mu_q == logvar_q
    hr = head[MP:]                                               # mu_r1 == logvar_r1
    muq_ref[...] = hq
    mur1_ref[...] = hr

    # ---- reparameterize z (layer10 applied twice to identical activations,
    #      so mu and logvar are numerically identical in the source model) -----
    z = hq + epsq_ref[...] * jnp.exp(0.5 * hq)                   # (8, 128) f32

    # ---- decoderLin on [conv_flat, z] (K split again) ------------------------
    h = _lrelu(jnp.dot(conv, w1d_ref[...], preferred_element_type=jnp.float32)
               + jnp.dot(z.astype(jnp.bfloat16), w1dz_ref[...],
                         preferred_element_type=jnp.float32)
               + b1d_ref[...])
    for wr, br in ((dw2_ref, db2_ref), (dw3_ref, db3_ref),
                   (dw4_ref, db4_ref), (dw5_ref, db5_ref)):
        h = _lrelu(jnp.dot(h.astype(jnp.bfloat16), wr[...],
                           preferred_element_type=jnp.float32) + br[...])

    # ---- layer10dec heads + reparameterized reconstruction -------------------
    hd = (jnp.dot(h.astype(jnp.bfloat16), l10dw_ref[...],
                  preferred_element_type=jnp.float32) + l10db_ref[...])
    mu2 = 1.0 / (1.0 + jnp.exp(-hd))                             # sigmoid
    lv2 = -_lrelu(hd)
    mur2_ref[...] = mu2
    lvr2_ref[...] = lv2
    rec_ref[...] = mu2 + epsr_ref[...] * jnp.exp(0.5 * lv2)


def fused_linear(conv_pad, x_pad, eps_q, eps_r, pp):
    e, d = pp["enc"], pp["dec"]
    out_shape = tuple(jax.ShapeDtypeStruct((MP, LANE), jnp.float32)
                      for _ in range(5))
    return pl.pallas_call(
        _fused_linear_kernel,
        out_shape=out_shape,
        compiler_params=pltpu.CompilerParams(vmem_limit_bytes=48 * 1024 * 1024),
    )(conv_pad, x_pad, eps_q, eps_r,
      e["w1e"], e["w1ex"], e["b1e"],
      e["w2"], e["b2"], e["w3"], e["b3"], e["w4"], e["b4"], e["w5"], e["b5"],
      pp["l10_w"], pp["l10_b"],
      d["w1d"], d["w1dz"], d["b1d"],
      d["w2"], d["b2"], d["w3"], d["b3"], d["w4"], d["b4"], d["w5"], d["b5"],
      pp["l10dec_w"], pp["l10dec_b"])


# ------------------------------ JAX glue --------------------------------------

def im2col_nhwc(x, kh, kw, pad):
    """(B,H,W,C) -> (B*OH*OW, kh*kw*C) patch matrix, feature order (kh, kw, C)."""
    # TODO(synk): patch extraction stays in XLA glue; an in-kernel gather would
    # need cross-lane reshapes that Mosaic handles poorly for these tiny sizes.
    B, H, W, C = x.shape
    xp = jnp.pad(x, ((0, 0), (pad, pad), (pad, pad), (0, 0)))
    OH = H + 2 * pad - kh + 1
    OW = W + 2 * pad - kw + 1
    cols = [xp[:, i:i + OH, j:j + OW, :] for i in range(kh) for j in range(kw)]
    patches = jnp.stack(cols, axis=3)                  # (B, OH, OW, kh*kw, C)
    return patches.reshape(B * OH * OW, kh * kw * C), OH, OW


def cvae_forward(pp, x, y, eps_q, eps_rec):
    B = x.shape[0]
    assert B <= MP

    # ---- encoder2d: two Conv2d(+Dropout=id, +folded BN, +ReLU), bf16 im2col + GEMM
    y_bf = jnp.transpose(y, (0, 2, 3, 1)).astype(jnp.bfloat16)   # NHWC, bf16
    p1, OH1, OW1 = im2col_nhwc(y_bf, 8, 8, 3)
    rows1 = B * OH1 * OW1
    Mc1 = _round_up(rows1, 16)                                   # bf16: 16 rows / tile
    p1 = jnp.pad(p1, ((0, Mc1 - rows1), (0, pp["conv1_w"].shape[0] - p1.shape[1])))
    h1 = conv_gemm(p1, pp["conv1_w"], pp["conv1_b"])
    h1 = h1[:rows1, :16].reshape(B, OH1, OW1, 16)

    p2, OH2, OW2 = im2col_nhwc(h1, 7, 7, 3)
    rows2 = B * OH2 * OW2
    Mc2 = _round_up(rows2, 16)
    p2 = jnp.pad(p2, ((0, Mc2 - rows2), (0, pp["conv2_w"].shape[0] - p2.shape[1])))
    h2 = conv_gemm(p2, pp["conv2_w"], pp["conv2_b"])
    h2 = h2[:rows2, :32].reshape(B, OH2, OW2, 32)
    # TODO(synk): conv1->conv2 could be fused into one kernel (49 shifted matmuls
    # with h1 resident in VMEM) to avoid the second im2col materialization.

    # channel-major flatten, exactly like torch's conv_out.view(B, -1) on NCHW
    conv_flat = jnp.transpose(h2, (0, 3, 1, 2)).reshape(B, -1)   # (B, 7200) bf16
    kc = pp["enc"]["w1e"].shape[0]                               # 7296
    conv_pad = jnp.pad(conv_flat, ((0, MP - B), (0, kc - conv_flat.shape[1])))

    # small 128-lane tails: x / eps (no (8,7296) xy / zy materialization)
    x_pad = jnp.zeros((MP, LANE), jnp.bfloat16).at[:B, :x.shape[1]].set(
        x.astype(jnp.bfloat16))
    eq = jnp.zeros((MP, LANE), jnp.float32).at[:B, :eps_q.shape[1]].set(eps_q)
    er = jnp.zeros((MP, LANE), jnp.float32).at[:B, :eps_rec.shape[1]].set(eps_rec)

    # ---- whole linear stage (both encoder towers, layer10, z, decoder, heads) ----
    mu_q, mu_r1, mu_r2, logvar_r2, recon = fused_linear(conv_pad, x_pad, eq, er, pp)

    n = 3
    mu_q, mu_r1 = mu_q[:B, :n], mu_r1[:B, :n]
    mu_r2, logvar_r2, recon = mu_r2[:B, :n], logvar_r2[:B, :n], recon[:B, :n]
    # layer10 is applied twice to identical activations in the source model,
    # so mu and logvar are numerically identical.
    return recon, mu_q, mu_q, mu_r1, mu_r1, mu_r2, logvar_r2


# --------------------- parameter prep (outside the jit) -----------------------

def prepare_params(params):
    """Fold BN, reorder conv weights for NHWC im2col, split layer-1 weights into
    conv-part / tail, pad and cast to bf16 once."""

    def bn_scale_shift(bn):
        inv = bn["gamma"] / jnp.sqrt(bn["var"] + BN_EPS)
        return inv, bn["beta"] - bn["mean"] * inv

    def fold(w, b, bn):
        s, sh = bn_scale_shift(bn)
        return w * s[None, :], b * s + sh

    def pack_w(w, kp=None, np_=None):
        k, n = w.shape
        kp = kp or _round_up(k, LANE)
        np_ = np_ or _round_up(n, LANE)
        return (jnp.zeros((kp, np_), jnp.float32).at[:k, :n].set(w)
                .astype(jnp.bfloat16))

    def pack_b(b, np_=None):
        n = b.shape[0]
        np_ = np_ or _round_up(n, LANE)
        return jnp.zeros((1, np_), jnp.float32).at[0, :n].set(b)

    def prep_conv(W, b, bn):
        cout = W.shape[0]
        s, sh = bn_scale_shift(bn)
        wmat = jnp.transpose(W, (2, 3, 1, 0)).reshape(-1, cout)   # (kh*kw*Cin, Cout)
        return pack_w(wmat * s[None, :]), pack_b(b * s + sh)

    c1w, c1b = prep_conv(params["conv1_w"], params["conv1_b"], params["bn1"])
    c2w, c2b = prep_conv(params["conv2_w"], params["conv2_b"], params["bn2"])

    enc, alt, dec = params["encoderLin"], params["encoderLinAlt"], params["decoderLin"]
    nconv = alt["w1"].shape[0]          # flattened conv features (7200)
    kc = _round_up(nconv, LANE)         # 7296

    e_w1, e_b1 = fold(enc["w1"], enc["b1"], enc["bn_a"])
    a_w1, a_b1 = fold(alt["w1"], alt["b1"], alt["bn_a"])
    d_w1, d_b1 = fold(dec["w1"], dec["b1"], dec["bn_a"])
    e_w5, e_b5 = fold(enc["w5"], enc["b5"], enc["bn_b"])
    a_w5, a_b5 = fold(alt["w5"], alt["b5"], alt["bn_b"])
    d_w5, d_b5 = fold(dec["w5"], dec["b5"], dec["bn_b"])

    # encoder dual tower: layer-1 conv-part weights concatenated along N,
    # x-tail weights only feed the encoderLin half (alt tower sees no x)
    w1e = pack_w(jnp.concatenate([e_w1[:nconv], a_w1[:nconv]], axis=1), kp=kc)
    w1ex = (jnp.zeros((LANE, 2 * LANE), jnp.float32)
            .at[:e_w1.shape[0] - nconv, :LANE].set(e_w1[nconv:])
            .astype(jnp.bfloat16))
    b1e = jnp.concatenate([pack_b(e_b1), pack_b(a_b1)], axis=1)   # (1, 256)

    def stack_w(we, wa):
        return jnp.stack([pack_w(we), pack_w(wa)])

    def stack_b(be, ba):
        return jnp.stack([pack_b(be), pack_b(ba)])

    enc_dual = {
        "w1e": w1e, "w1ex": w1ex, "b1e": b1e,
        "w2": stack_w(enc["w2"], alt["w2"]), "b2": stack_b(enc["b2"], alt["b2"]),
        "w3": stack_w(enc["w3"], alt["w3"]), "b3": stack_b(enc["b3"], alt["b3"]),
        "w4": stack_w(enc["w4"], alt["w4"]), "b4": stack_b(enc["b4"], alt["b4"]),
        "w5": stack_w(e_w5, a_w5), "b5": stack_b(e_b5, a_b5),
    }

    dec_p = {
        "w1d": pack_w(d_w1[:nconv], kp=kc),                       # (7296, 128)
        "w1dz": (jnp.zeros((LANE, LANE), jnp.float32)
                 .at[:d_w1.shape[0] - nconv, :].set(d_w1[nconv:])
                 .astype(jnp.bfloat16)),
        "b1d": pack_b(d_b1),
        "w2": pack_w(dec["w2"]), "b2": pack_b(dec["b2"]),
        "w3": pack_w(dec["w3"]), "b3": pack_b(dec["b3"]),
        "w4": pack_w(dec["w4"]), "b4": pack_b(dec["b4"]),
        "w5": pack_w(d_w5), "b5": pack_b(d_b5),
    }

    return {
        "conv1_w": c1w, "conv1_b": c1b, "conv2_w": c2w, "conv2_b": c2b,
        "enc": enc_dual, "dec": dec_p,
        "l10_w": pack_w(params["layer10_w"]), "l10_b": pack_b(params["layer10_b"]),
        "l10dec_w": pack_w(params["layer10dec_w"]),
        "l10dec_b": pack_b(params["layer10dec_b"]),
    }


# ---------------------------- deterministic params ----------------------------

def init_params(key, in_features):
    fm, of = FEATURES_MULTIPLIER, OUT_FEATURES
    keys = iter(jax.random.split(key, 200))

    def W(*shape, scale=0.05):
        return scale * jax.random.normal(next(keys), shape, dtype=jnp.float32)

    def bn(n):
        return {
            "gamma": 1.0 + 0.05 * jax.random.normal(next(keys), (n,), dtype=jnp.float32),
            "beta": 0.05 * jax.random.normal(next(keys), (n,), dtype=jnp.float32),
            "mean": 0.05 * jax.random.normal(next(keys), (n,), dtype=jnp.float32),
            "var": 1.0 + 0.05 * jnp.abs(jax.random.normal(next(keys), (n,), dtype=jnp.float32)),
        }

    def enc_tower(in_f):
        return {
            "w1": W(in_f, of * fm), "b1": W(of * fm), "bn_a": bn(of * fm),
            "w2": W(of * fm, 32 * fm), "b2": W(32 * fm),
            "w3": W(32 * fm, 64 * fm), "b3": W(64 * fm),
            "w4": W(64 * fm, 32 * fm), "b4": W(32 * fm),
            "w5": W(32 * fm, 16 * fm), "b5": W(16 * fm), "bn_b": bn(16 * fm),
        }

    def dec_tower(in_f):
        return {
            "w1": W(in_f, 16 * fm), "b1": W(16 * fm), "bn_a": bn(16 * fm),
            "w2": W(16 * fm, 32 * fm), "b2": W(32 * fm),
            "w3": W(32 * fm, 64 * fm), "b3": W(64 * fm),
            "w4": W(64 * fm, 32 * fm), "b4": W(32 * fm),
            "w5": W(32 * fm, of * fm), "b5": W(of * fm), "bn_b": bn(of * fm),
        }

    return {
        "conv1_w": W(16, 4, 8, 8), "conv1_b": W(16), "bn1": bn(16),
        "conv2_w": W(32, 16, 7, 7), "conv2_b": W(32), "bn2": bn(32),
        "encoderLin": enc_tower(in_features),
        "encoderLinAlt": enc_tower(in_features - 3),
        "layer10_w": W(16 * fm, 3), "layer10_b": W(3),
        "decoderLin": dec_tower(in_features),
        "layer10dec_w": W(of * fm, 3), "layer10dec_b": W(3),
    }


# ------------------------------------ main ------------------------------------

if __name__ == "__main__":
    key = jax.random.PRNGKey(0)
    k_x, k_y, k_p, k_e1, k_e2 = jax.random.split(key, 5)

    B, C, H, Wd = 2, 4, 16, 16
    y = jax.random.normal(k_y, (B, C, H, Wd), dtype=jnp.float32)   # image condition (NCHW)
    x = jax.random.normal(k_x, (B, 3), dtype=jnp.float32)          # 3-feature target

    # conv output (B, 32, 15, 15) -> 7200 flat ; + 3 x-features -> in_features = 7203
    in_features = 32 * (H - 1) * (Wd - 1) + x.shape[1]
    params = init_params(k_p, in_features)
    pp = prepare_params(params)        # pre-folded / pre-padded / bf16, done once

    eps_q = jax.random.normal(k_e1, (B, 3), dtype=jnp.float32)
    eps_rec = jax.random.normal(k_e2, (B, 3), dtype=jnp.float32)

    fwd = jax.jit(cvae_forward)
    outs = jax.block_until_ready(fwd(pp, x, y, eps_q, eps_rec))

    recon, mu, logvar, mur1, logvarr1, mur2, logvarr2 = outs
    assert recon.shape == (B, 3) and mu.shape == (B, 3) and mur2.shape == (B, 3)
    assert all(bool(jnp.all(jnp.isfinite(o))) for o in outs)
    print("KERNEL_OK")
</pallas_src>

<mosaic_0001>
module attributes {stable_mosaic.version = 11 : i64} {
  func.func @_conv_gemm_kernel(%arg0: memref<464x256xbf16, #tpu.memory_space<vmem>>, %arg1: memref<256x128xbf16, #tpu.memory_space<vmem>>, %arg2: memref<1x128xf32, #tpu.memory_space<vmem>>, %arg3: memref<464x128xbf16, #tpu.memory_space<vmem>>) attributes {dimension_semantics = [], scalar_prefetch = 0 : i64, scratch_operands = 0 : i64, tpu.core_type = #tpu.core_type<tc>} {
    %c0 = arith.constant 0 : index
    %c0_0 = arith.constant 0 : index
    %0 = vector.load %arg0[%c0, %c0_0] : memref<464x256xbf16, #tpu.memory_space<vmem>>, vector<464x256xbf16>
    %c0_1 = arith.constant 0 : index
    %c0_2 = arith.constant 0 : index
    %1 = vector.load %arg1[%c0_1, %c0_2] : memref<256x128xbf16, #tpu.memory_space<vmem>>, vector<256x128xbf16>
    %cst = arith.constant dense<0.000000e+00> : vector<464x128xf32>
    %2 = tpu.matmul %0, %1, %cst {dimension_numbers = #tpu.dot_dimension_numbers<[1], [0], [0], [1], [0, 0, 1, 1], [], []>} : vector<464x256xbf16>, vector<256x128xbf16>, vector<464x128xf32> -> vector<464x128xf32>
    %c0_3 = arith.constant 0 : index
    %c0_4 = arith.constant 0 : index
    %3 = vector.load %arg2[%c0_3, %c0_4] : memref<1x128xf32, #tpu.memory_space<vmem>>, vector<1x128xf32>
    %4 = vector.broadcast %3 : vector<1x128xf32> to vector<464x128xf32>
    %5 = arith.addf %2, %4 : vector<464x128xf32>
    %cst_5 = arith.constant 0.000000e+00 : f32
    %6 = vector.broadcast %cst_5 : f32 to vector<464x128xf32>
    %7 = arith.maximumf %5, %6 : vector<464x128xf32>
    %8 = arith.truncf %7 : vector<464x128xf32> to vector<464x128xbf16>
    %c0_6 = arith.constant 0 : index
    %c0_7 = arith.constant 0 : index
    %9 = vector.load %arg3[%c0_6, %c0_7] : memref<464x128xbf16, #tpu.memory_space<vmem>>, vector<464x128xbf16>
    tpu.vector_store %arg3[%c0_6, %c0_7], %8 {strides = array<i32>} : memref<464x128xbf16, #tpu.memory_space<vmem>>, vector<464x128xbf16>,
    return
  }
}

module attributes {stable_mosaic.version = 11 : i64} {
  func.func @_conv_gemm_kernel(%arg0: memref<464x896xbf16, #tpu.memory_space<vmem>>, %arg1: memref<896x128xbf16, #tpu.memory_space<vmem>>, %arg2: memref<1x128xf32, #tpu.memory_space<vmem>>, %arg3: memref<464x128xbf16, #tpu.memory_space<vmem>>) attributes {dimension_semantics = [], scalar_prefetch = 0 : i64, scratch_operands = 0 : i64, tpu.core_type = #tpu.core_type<tc>} {
    %c0 = arith.constant 0 : index
    %c0_0 = arith.constant 0 : index
    %0 = vector.load %arg0[%c0, %c0_0] : memref<464x896xbf16, #tpu.memory_space<vmem>>, vector<464x896xbf16>
    %c0_1 = arith.constant 0 : index
    %c0_2 = arith.constant 0 : index
    %1 = vector.load %arg1[%c0_1, %c0_2] : memref<896x128xbf16, #tpu.memory_space<vmem>>, vector<896x128xbf16>
    %cst = arith.constant dense<0.000000e+00> : vector<464x128xf32>
    %2 = tpu.matmul %0, %1, %cst {dimension_numbers = #tpu.dot_dimension_numbers<[1], [0], [0], [1], [0, 0, 1, 1], [], []>} : vector<464x896xbf16>, vector<896x128xbf16>, vector<464x128xf32> -> vector<464x128xf32>
    %c0_3 = arith.constant 0 : index
    %c0_4 = arith.constant 0 : index
    %3 = vector.load %arg2[%c0_3, %c0_4] : memref<1x128xf32, #tpu.memory_space<vmem>>, vector<1x128xf32>
    %4 = vector.broadcast %3 : vector<1x128xf32> to vector<464x128xf32>
    %5 = arith.addf %2, %4 : vector<464x128xf32>
    %cst_5 = arith.constant 0.000000e+00 : f32
    %6 = vector.broadcast %cst_5 : f32 to vector<464x128xf32>
    %7 = arith.maximumf %5, %6 : vector<464x128xf32>
    %8 = arith.truncf %7 : vector<464x128xf32> to vector<464x128xbf16>
    %c0_6 = arith.constant 0 : index
    %c0_7 = arith.constant 0 : index
    %9 = vector.load %arg3[%c0_6, %c0_7] : memref<464x128xbf16, #tpu.memory_space<vmem>>, vector<464x128xbf16>
    tpu.vector_store %arg3[%c0_6, %c0_7], %8 {strides = array<i32>} : memref<464x128xbf16, #tpu.memory_space<vmem>>, vector<464x128xbf16>,
    return
  }
}

module attributes {stable_mosaic.version = 11 : i64} {
  func.func @_fused_linear_kernel(%arg0: memref<8x7296xbf16, #tpu.memory_space<vmem>>, %arg1: memref<8x128xbf16, #tpu.memory_space<vmem>>, %arg2: memref<8x128xf32, #tpu.memory_space<vmem>>, %arg3: memref<8x128xf32, #tpu.memory_space<vmem>>, %arg4: memref<7296x256xbf16, #tpu.memory_space<vmem>>, %arg5: memref<128x256xbf16, #tpu.memory_space<vmem>>, %arg6: memref<1x256xf32, #tpu.memory_space<vmem>>, %arg7: memref<2x128x256xbf16, #tpu.memory_space<vmem>>, %arg8: memref<2x1x256xf32, #tpu.memory_space<vmem>>, %arg9: memref<2x256x512xbf16, #tpu.memory_space<vmem>>, %arg10: memref<2x1x512xf32, #tpu.memory_space<vmem>>, %arg11: memref<2x512x256xbf16, #tpu.memory_space<vmem>>, %arg12: memref<2x1x256xf32, #tpu.memory_space<vmem>>, %arg13: memref<2x256x128xbf16, #tpu.memory_space<vmem>>, %arg14: memref<2x1x128xf32, #tpu.memory_space<vmem>>, %arg15: memref<128x128xbf16, #tpu.memory_space<vmem>>, %arg16: memref<1x128xf32, #tpu.memory_space<vmem>>, %arg17: memref<7296x128xbf16, #tpu.memory_space<vmem>>, %arg18: memref<128x128xbf16, #tpu.memory_space<vmem>>, %arg19: memref<1x128xf32, #tpu.memory_space<vmem>>, %arg20: memref<128x256xbf16, #tpu.memory_space<vmem>>, %arg21: memref<1x256xf32, #tpu.memory_space<vmem>>, %arg22: memref<256x512xbf16, #tpu.memory_space<vmem>>, %arg23: memref<1x512xf32, #tpu.memory_space<vmem>>, %arg24: memref<512x256xbf16, #tpu.memory_space<vmem>>, %arg25: memref<1x256xf32, #tpu.memory_space<vmem>>, %arg26: memref<256x128xbf16, #tpu.memory_space<vmem>>, %arg27: memref<1x128xf32, #tpu.memory_space<vmem>>, %arg28: memref<128x128xbf16, #tpu.memory_space<vmem>>, %arg29: memref<1x128xf32, #tpu.memory_space<vmem>>, %arg30: memref<8x128xf32, #tpu.memory_space<vmem>>, %arg31: memref<8x128xf32, #tpu.memory_space<vmem>>, %arg32: memref<8x128xf32, #tpu.memory_space<vmem>>, %arg33: memref<8x128xf32, #tpu.memory_space<vmem>>, %arg34: memref<8x128xf32, #tpu.memory_space<vmem>>) attributes {dimension_semantics = [], scalar_prefetch = 0 : i64, scratch_operands = 0 : i64, tpu.core_type = #tpu.core_type<tc>} {
    %c0 = arith.constant 0 : index
    %c0_0 = arith.constant 0 : index
    %0 = vector.load %arg0[%c0, %c0_0] : memref<8x7296xbf16, #tpu.memory_space<vmem>>, vector<8x7296xbf16>
    %c0_1 = arith.constant 0 : index
    %c0_2 = arith.constant 0 : index
    %1 = vector.load %arg4[%c0_1, %c0_2] : memref<7296x256xbf16, #tpu.memory_space<vmem>>, vector<7296x256xbf16>
    %cst = arith.constant dense<0.000000e+00> : vector<8x256xf32>
    %2 = tpu.matmul %0, %1, %cst {dimension_numbers = #tpu.dot_dimension_numbers<[1], [0], [0], [1], [0, 0, 1, 1], [], []>} : vector<8x7296xbf16>, vector<7296x256xbf16>, vector<8x256xf32> -> vector<8x256xf32>
    %c0_3 = arith.constant 0 : index
    %c0_4 = arith.constant 0 : index
    %3 = vector.load %arg1[%c0_3, %c0_4] : memref<8x128xbf16, #tpu.memory_space<vmem>>, vector<8x128xbf16>
    %c0_5 = arith.constant 0 : index
    %c0_6 = arith.constant 0 : index
    %4 = vector.load %arg5[%c0_5, %c0_6] : memref<128x256xbf16, #tpu.memory_space<vmem>>, vector<128x256xbf16>
    %cst_7 = arith.constant dense<0.000000e+00> : vector<8x256xf32>
    %5 = tpu.matmul %3, %4, %cst_7 {dimension_numbers = #tpu.dot_dimension_numbers<[1], [0], [0], [1], [0, 0, 1, 1], [], []>} : vector<8x128xbf16>, vector<128x256xbf16>, vector<8x256xf32> -> vector<8x256xf32>
    %6 = arith.addf %2, %5 : vector<8x256xf32>
    %c0_8 = arith.constant 0 : index
    %c0_9 = arith.constant 0 : index
    %7 = vector.load %arg6[%c0_8, %c0_9] : memref<1x256xf32, #tpu.memory_space<vmem>>, vector<1x256xf32>
    %8 = vector.broadcast %7 : vector<1x256xf32> to vector<8x256xf32>
    %9 = arith.addf %6, %8 : vector<8x256xf32>
    %cst_10 = arith.constant 0.000000e+00 : f32
    %10 = vector.broadcast %cst_10 : f32 to vector<8x256xf32>
    %11 = arith.cmpf oge, %9, %10 : vector<8x256xf32>
    %cst_11 = arith.constant 0.00999999977 : f32
    %12 = vector.broadcast %cst_11 : f32 to vector<8x256xf32>
    %13 = arith.mulf %12, %9 : vector<8x256xf32>
    %14 = arith.select %11, %9, %13 : vector<8x256xi1>, vector<8x256xf32>
    %15 = vector.extract_strided_slice %14 {offsets = [0, 0], sizes = [8, 128], strides = [1, 1]} : vector<8x256xf32> to vector<8x128xf32>
    %16 = arith.truncf %15 : vector<8x128xf32> to vector<8x128xbf16>
    %c0_12 = arith.constant 0 : index
    %c0_13 = arith.constant 0 : index
    %c0_14 = arith.constant 0 : index
    %17 = vector.load %arg7[%c0_12, %c0_13, %c0_14] : memref<2x128x256xbf16, #tpu.memory_space<vmem>>, vector<1x128x256xbf16>
    %18 = vector.shape_cast %17 : vector<1x128x256xbf16> to vector<128x256xbf16>
    %cst_15 = arith.constant dense<0.000000e+00> : vector<8x256xf32>
    %19 = tpu.matmul %16, %18, %cst_15 {dimension_numbers = #tpu.dot_dimension_numbers<[1], [0], [0], [1], [0, 0, 1, 1], [], []>} : vector<8x128xbf16>, vector<128x256xbf16>, vector<8x256xf32> -> vector<8x256xf32>
    %c0_16 = arith.constant 0 : index
    %c0_17 = arith.constant 0 : index
    %c0_18 = arith.constant 0 : index
    %20 = vector.load %arg8[%c0_16, %c0_17, %c0_18] : memref<2x1x256xf32, #tpu.memory_space<vmem>>, vector<1x1x256xf32>
    %21 = vector.shape_cast %20 : vector<1x1x256xf32> to vector<1x256xf32>
    %22 = vector.broadcast %21 : vector<1x256xf32> to vector<8x256xf32>
    %23 = arith.addf %19, %22 : vector<8x256xf32>
    %cst_19 = arith.constant 0.000000e+00 : f32
    %24 = vector.broadcast %cst_19 : f32 to vector<8x256xf32>
    %25 = arith.cmpf oge, %23, %24 : vector<8x256xf32>
    %cst_20 = arith.constant 0.00999999977 : f32
    %26 = vector.broadcast %cst_20 : f32 to vector<8x256xf32>
    %27 = arith.mulf %26, %23 : vector<8x256xf32>
    %28 = arith.select %25, %23, %27 : vector<8x256xi1>, vector<8x256xf32>
    %29 = arith.truncf %28 : vector<8x256xf32> to vector<8x256xbf16>
    %c0_21 = arith.constant 0 : index
    %c0_22 = arith.constant 0 : index
    %c0_23 = arith.constant 0 : index
    %30 = vector.load %arg9[%c0_21, %c0_22, %c0_23] : memref<2x256x512xbf16, #tpu.memory_space<vmem>>, vector<1x256x512xbf16>
    %31 = vector.shape_cast %30 : vector<1x256x512xbf16> to vector<256x512xbf16>
    %cst_24 = arith.constant dense<0.000000e+00> : vector<8x512xf32>
    %32 = tpu.matmul %29, %31, %cst_24 {dimension_numbers = #tpu.dot_dimension_numbers<[1], [0], [0], [1], [0, 0, 1, 1], [], []>} : vector<8x256xbf16>, vector<256x512xbf16>, vector<8x512xf32> -> vector<8x512xf32>
    %c0_25 = arith.constant 0 : index
    %c0_26 = arith.constant 0 : index
    %c0_27 = arith.constant 0 : index
    %33 = vector.load %arg10[%c0_25, %c0_26, %c0_27] : memref<2x1x512xf32, #tpu.memory_space<vmem>>, vector<1x1x512xf32>
    %34 = vector.shape_cast %33 : vector<1x1x512xf32> to vector<1x512xf32>
    %35 = vector.broadcast %34 : vector<1x512xf32> to vector<8x512xf32>
    %36 = arith.addf %32, %35 : vector<8x512xf32>
    %cst_28 = arith.constant 0.000000e+00 : f32
    %37 = vector.broadcast %cst_28 : f32 to vector<8x512xf32>
    %38 = arith.cmpf oge, %36, %37 : vector<8x512xf32>
    %cst_29 = arith.constant 0.00999999977 : f32
    %39 = vector.broadcast %cst_29 : f32 to vector<8x512xf32>
    %40 = arith.mulf %39, %36 : vector<8x512xf32>
    %41 = arith.select %38, %36, %40 : vector<8x512xi1>, vector<8x512xf32>
    %42 = arith.truncf %41 : vector<8x512xf32> to vector<8x512xbf16>
    %c0_30 = arith.constant 0 : index
    %c0_31 = arith.constant 0 : index
    %c0_32 = arith.constant 0 : index
    %43 = vector.load %arg11[%c0_30, %c0_31, %c0_32] : memref<2x512x256xbf16, #tpu.memory_space<vmem>>, vector<1x512x256xbf16>
    %44 = vector.shape_cast %43 : vector<1x512x256xbf16> to vector<512x256xbf16>
    %cst_33 = arith.constant dense<0.000000e+00> : vector<8x256xf32>
    %45 = tpu.matmul %42, %44, %cst_33 {dimension_numbers = #tpu.dot_dimension_numbers<[1], [0], [0], [1], [0, 0, 1, 1], [], []>} : vector<8x512xbf16>, vector<512x256xbf16>, vector<8x256xf32> -> vector<8x256xf32>
    %c0_34 = arith.constant 0 : index
    %c0_35 = arith.constant 0 : index
    %c0_36 = arith.constant 0 : index
    %46 = vector.load %arg12[%c0_34, %c0_35, %c0_36] : memref<2x1x256xf32, #tpu.memory_space<vmem>>, vector<1x1x256xf32>
    %47 = vector.shape_cast %46 : vector<1x1x256xf32> to vector<1x256xf32>
    %48 = vector.broadcast %47 : vector<1x256xf32> to vector<8x256xf32>
    %49 = arith.addf %45, %48 : vector<8x256xf32>
    %cst_37 = arith.constant 0.000000e+00 : f32
    %50 = vector.broadcast %cst_37 : f32 to vector<8x256xf32>
    %51 = arith.cmpf oge, %49, %50 : vector<8x256xf32>
    %cst_38 = arith.constant 0.00999999977 : f32
    %52 = vector.broadcast %cst_38 : f32 to vector<8x256xf32>
    %53 = arith.mulf %52, %49 : vector<8x256xf32>
    %54 = arith.select %51, %49, %53 : vector<8x256xi1>, vector<8x256xf32>
    %55 = arith.truncf %54 : vector<8x256xf32> to vector<8x256xbf16>
    %c0_39 = arith.constant 0 : index
    %c0_40 = arith.constant 0 : index
    %c0_41 = arith.constant 0 : index
    %56 = vector.load %arg13[%c0_39, %c0_40, %c0_41] : memref<2x256x128xbf16, #tpu.memory_space<vmem>>, vector<1x256x128xbf16>
    %57 = vector.shape_cast %56 : vector<1x256x128xbf16> to vector<256x128xbf16>
    %cst_42 = arith.constant dense<0.000000e+00> : vector<8x128xf32>
    %58 = tpu.matmul %55, %57, %cst_42 {dimension_numbers = #tpu.dot_dimension_numbers<[1], [0], [0], [1], [0, 0, 1, 1], [], []>} : vector<8x256xbf16>, vector<256x128xbf16>, vector<8x128xf32> -> vector<8x128xf32>
    %c0_43 = arith.constant 0 : index
    %c0_44 = arith.constant 0 : index
    %c0_45 = arith.constant 0 : index
    %59 = vector.load %arg14[%c0_43, %c0_44, %c0_45] : memref<2x1x128xf32, #tpu.memory_space<vmem>>, vector<1x1x128xf32>
    %60 = vector.shape_cast %59 : vector<1x1x128xf32> to vector<1x128xf32>
    %61 = vector.broadcast %60 : vector<1x128xf32> to vector<8x128xf32>
    %62 = arith.addf %58, %61 : vector<8x128xf32>
    %cst_46 = arith.constant 0.000000e+00 : f32
    %63 = vector.broadcast %cst_46 : f32 to vector<8x128xf32>
    %64 = arith.cmpf oge, %62, %63 : vector<8x128xf32>
    %cst_47 = arith.constant 0.00999999977 : f32
    %65 = vector.broadcast %cst_47 : f32 to vector<8x128xf32>
    %66 = arith.mulf %65, %62 : vector<8x128xf32>
    %67 = arith.select %64, %62, %66 : vector<8x128xi1>, vector<8x128xf32>
    %68 = vector.extract_strided_slice %14 {offsets = [0, 128], sizes = [8, 128], strides = [1, 1]} : vector<8x256xf32> to vector<8x128xf32>
    %69 = arith.truncf %68 : vector<8x128xf32> to vector<8x128xbf16>
    %c1 = arith.constant 1 : index
    %c0_48 = arith.constant 0 : index
    %c0_49 = arith.constant 0 : index
    %70 = vector.load %arg7[%c1, %c0_48, %c0_49] : memref<2x128x256xbf16, #tpu.memory_space<vmem>>, vector<1x128x256xbf16>
    %71 = vector.shape_cast %70 : vector<1x128x256xbf16> to vector<128x256xbf16>
    %cst_50 = arith.constant dense<0.000000e+00> : vector<8x256xf32>
    %72 = tpu.matmul %69, %71, %cst_50 {dimension_numbers = #tpu.dot_dimension_numbers<[1], [0], [0], [1], [0, 0, 1, 1], [], []>} : vector<8x128xbf16>, vector<128x256xbf16>, vector<8x256xf32> -> vector<8x256xf32>
    %c1_51 = arith.constant 1 : index
    %c0_52 = arith.constant 0 : index
    %c0_53 = arith.constant 0 : index
    %73 = vector.load %arg8[%c1_51, %c0_52, %c0_53] : memref<2x1x256xf32, #tpu.memory_space<vmem>>, vector<1x1x256xf32>
    %74 = vector.shape_cast %73 : vector<1x1x256xf32> to vector<1x256xf32>
    %75 = vector.broadcast %74 : vector<1x256xf32> to vector<8x256xf32>
    %76 = arith.addf %72, %75 : vector<8x256xf32>
    %cst_54 = arith.constant 0.000000e+00 : f32
    %77 = vector.broadcast %cst_54 : f32 to vector<8x256xf32>
    %78 = arith.cmpf oge, %76, %77 : vector<8x256xf32>
    %cst_55 = arith.constant 0.00999999977 : f32
    %79 = vector.broadcast %cst_55 : f32 to vector<8x256xf32>
    %80 = arith.mulf %79, %76 : vector<8x256xf32>
    %81 = arith.select %78, %76, %80 : vector<8x256xi1>, vector<8x256xf32>
    %82 = arith.truncf %81 : vector<8x256xf32> to vector<8x256xbf16>
    %c1_56 = arith.constant 1 : index
    %c0_57 = arith.constant 0 : index
    %c0_58 = arith.constant 0 : index
    %83 = vector.load %arg9[%c1_56, %c0_57, %c0_58] : memref<2x256x512xbf16, #tpu.memory_space<vmem>>, vector<1x256x512xbf16>
    %84 = vector.shape_cast %83 : vector<1x256x512xbf16> to vector<256x512xbf16>
    %cst_59 = arith.constant dense<0.000000e+00> : vector<8x512xf32>
    %85 = tpu.matmul %82, %84, %cst_59 {dimension_numbers = #tpu.dot_dimension_numbers<[1], [0], [0], [1], [0, 0, 1, 1], [], []>} : vector<8x256xbf16>, vector<256x512xbf16>, vector<8x512xf32> -> vector<8x512xf32>
    %c1_60 = arith.constant 1 : index
    %c0_61 = arith.constant 0 : index
    %c0_62 = arith.constant 0 : index
    %86 = vector.load %arg10[%c1_60, %c0_61, %c0_62] : memref<2x1x512xf32, #tpu.memory_space<vmem>>, vector<1x1x512xf32>
    %87 = vector.shape_cast %86 : vector<1x1x512xf32> to vector<1x512xf32>
    %88 = vector.broadcast %87 : vector<1x512xf32> to vector<8x512xf32>
    %89 = arith.addf %85, %88 : vector<8x512xf32>
    %cst_63 = arith.constant 0.000000e+00 : f32
    %90 = vector.broadcast %cst_63 : f32 to vector<8x512xf32>
    %91 = arith.cmpf oge, %89, %90 : vector<8x512xf32>
    %cst_64 = arith.constant 0.00999999977 : f32
    %92 = vector.broadcast %cst_64 : f32 to vector<8x512xf32>
    %93 = arith.mulf %92, %89 : vector<8x512xf32>
    %94 = arith.select %91, %89, %93 : vector<8x512xi1>, vector<8x512xf32>
    %95 = arith.truncf %94 : vector<8x512xf32> to vector<8x512xbf16>
    %c1_65 = arith.constant 1 : index
    %c0_66 = arith.constant 0 : index
    %c0_67 = arith.constant 0 : index
    %96 = vector.load %arg11[%c1_65, %c0_66, %c0_67] : memref<2x512x256xbf16, #tpu.memory_space<vmem>>, vector<1x512x256xbf16>
    %97 = vector.shape_cast %96 : vector<1x512x256xbf16> to vector<512x256xbf16>
    %cst_68 = arith.constant dense<0.000000e+00> : vector<8x256xf32>
    %98 = tpu.matmul %95, %97, %cst_68 {dimension_numbers = #tpu.dot_dimension_numbers<[1], [0], [0], [1], [0, 0, 1, 1], [], []>} : vector<8x512xbf16>, vector<512x256xbf16>, vector<8x256xf32> -> vector<8x256xf32>
    %c1_69 = arith.constant 1 : index
    %c0_70 = arith.constant 0 : index
    %c0_71 = arith.constant 0 : index
    %99 = vector.load %arg12[%c1_69, %c0_70, %c0_71] : memref<2x1x256xf32, #tpu.memory_space<vmem>>, vector<1x1x256xf32>
    %100 = vector.shape_cast %99 : vector<1x1x256xf32> to vector<1x256xf32>
    %101 = vector.broadcast %100 : vector<1x256xf32> to vector<8x256xf32>
    %102 = arith.addf %98, %101 : vector<8x256xf32>
    %cst_72 = arith.constant 0.000000e+00 : f32
    %103 = vector.broadcast %cst_72 : f32 to vector<8x256xf32>
    %104 = arith.cmpf oge, %102, %103 : vector<8x256xf32>
    %cst_73 = arith.constant 0.00999999977 : f32
    %105 = vector.broadcast %cst_73 : f32 to vector<8x256xf32>
    %106 = arith.mulf %105, %102 : vector<8x256xf32>
    %107 = arith.select %104, %102, %106 : vector<8x256xi1>, vector<8x256xf32>
    %108 = arith.truncf %107 : vector<8x256xf32> to vector<8x256xbf16>
    %c1_74 = arith.constant 1 : index
    %c0_75 = arith.constant 0 : index
    %c0_76 = arith.constant 0 : index
    %109 = vector.load %arg13[%c1_74, %c0_75, %c0_76] : memref<2x256x128xbf16, #tpu.memory_space<vmem>>, vector<1x256x128xbf16>
    %110 = vector.shape_cast %109 : vector<1x256x128xbf16> to vector<256x128xbf16>
    %cst_77 = arith.constant dense<0.000000e+00> : vector<8x128xf32>
    %111 = tpu.matmul %108, %110, %cst_77 {dimension_numbers = #tpu.dot_dimension_numbers<[1], [0], [0], [1], [0, 0, 1, 1], [], []>} : vector<8x256xbf16>, vector<256x128xbf16>, vector<8x128xf32> -> vector<8x128xf32>
    %c1_78 = arith.constant 1 : index
    %c0_79 = arith.constant 0 : index
    %c0_80 = arith.constant 0 : index
    %112 = vector.load %arg14[%c1_78, %c0_79, %c0_80] : memref<2x1x128xf32, #tpu.memory_space<vmem>>, vector<1x1x128xf32>
    %113 = vector.shape_cast %112 : vector<1x1x128xf32> to vector<1x128xf32>
    %114 = vector.broadcast %113 : vector<1x128xf32> to vector<8x128xf32>
    %115 = arith.addf %111, %114 : vector<8x128xf32>
    %cst_81 = arith.constant 0.000000e+00 : f32
    %116 = vector.broadcast %cst_81 : f32 to vector<8x128xf32>
    %117 = arith.cmpf oge, %115, %116 : vector<8x128xf32>
    %cst_82 = arith.constant 0.00999999977 : f32
    %118 = vector.broadcast %cst_82 : f32 to vector<8x128xf32>
    %119 = arith.mulf %118, %115 : vector<8x128xf32>
    %120 = arith.select %117, %115, %119 : vector<8x128xi1>, vector<8x128xf32>
    %121 = tpu.concatenate %67, %120 in 0 : vector<8x128xf32>, vector<8x128xf32> -> vector<16x128xf32>
    %122 = arith.truncf %121 : vector<16x128xf32> to vector<16x128xbf16>
    %c0_83 = arith.constant 0 : index
    %c0_84 = arith.constant 0 : index
    %123 = vector.load %arg15[%c0_83, %c0_84] : memref<128x128xbf16, #tpu.memory_space<vmem>>, vector<128x128xbf16>
    %cst_85 = arith.constant dense<0.000000e+00> : vector<16x128xf32>
    %124 = tpu.matmul %122, %123, %cst_85 {dimension_numbers = #tpu.dot_dimension_numbers<[1], [0], [0], [1], [0, 0, 1, 1], [], []>} : vector<16x128xbf16>, vector<128x128xbf16>, vector<16x128xf32> -> vector<16x128xf32>
    %c0_86 = arith.constant 0 : index
    %c0_87 = arith.constant 0 : index
    %125 = vector.load %arg16[%c0_86, %c0_87] : memref<1x128xf32, #tpu.memory_space<vmem>>, vector<1x128xf32>
    %126 = vector.broadcast %125 : vector<1x128xf32> to vector<16x128xf32>
    %127 = arith.addf %124, %126 : vector<16x128xf32>
    %128 = vector.extract_strided_slice %127 {offsets = [0, 0], sizes = [8, 128], strides = [1, 1]} : vector<16x128xf32> to vector<8x128xf32>
    %129 = vector.extract_strided_slice %127 {offsets = [8, 0], sizes = [8, 128], strides = [1, 1]} : vector<16x128xf32> to vector<8x128xf32>
    %c0_88 = arith.constant 0 : index
    %c0_89 = arith.constant 0 : index
    %130 = vector.load %arg30[%c0_88, %c0_89] : memref<8x128xf32, #tpu.memory_space<vmem>>, vector<8x128xf32>
    tpu.vector_store %arg30[%c0_88, %c0_89], %128 {strides = array<i32>} : memref<8x128xf32, #tpu.memory_space<vmem>>, vector<8x128xf32>,
    %c0_90 = arith.constant 0 : index
    %c0_91 = arith.constant 0 : index
    %131 = vector.load %arg31[%c0_90, %c0_91] : memref<8x128xf32, #tpu.memory_space<vmem>>, vector<8x128xf32>
    tpu.vector_store %arg31[%c0_90, %c0_91], %129 {strides = array<i32>} : memref<8x128xf32, #tpu.memory_space<vmem>>, vector<8x128xf32>,
    %c0_92 = arith.constant 0 : index
    %c0_93 = arith.constant 0 : index
    %132 = vector.load %arg2[%c0_92, %c0_93] : memref<8x128xf32, #tpu.memory_space<vmem>>, vector<8x128xf32>
    %cst_94 = arith.constant 5.000000e-01 : f32
    %133 = vector.broadcast %cst_94 : f32 to vector<8x128xf32>
    %134 = arith.mulf %133, %128 : vector<8x128xf32>
    %135 = math.exp %134 : vector<8x128xf32>
    %136 = arith.mulf %132, %135 : vector<8x128xf32>
    %137 = arith.addf %128, %136 : vector<8x128xf32>
    %c0_95 = arith.constant 0 : index
    %c0_96 = arith.constant 0 : index
    %138 = vector.load %arg17[%c0_95, %c0_96] : memref<7296x128xbf16, #tpu.memory_space<vmem>>, vector<7296x128xbf16>
    %cst_97 = arith.constant dense<0.000000e+00> : vector<8x128xf32>
    %139 = tpu.matmul %0, %138, %cst_97 {dimension_numbers = #tpu.dot_dimension_numbers<[1], [0], [0], [1], [0, 0, 1, 1], [], []>} : vector<8x7296xbf16>, vector<7296x128xbf16>, vector<8x128xf32> -> vector<8x128xf32>
    %140 = arith.truncf %137 : vector<8x128xf32> to vector<8x128xbf16>
    %c0_98 = arith.constant 0 : index
    %c0_99 = arith.constant 0 : index
    %141 = vector.load %arg18[%c0_98, %c0_99] : memref<128x128xbf16, #tpu.memory_space<vmem>>, vector<128x128xbf16>
    %cst_100 = arith.constant dense<0.000000e+00> : vector<8x128xf32>
    %142 = tpu.matmul %140, %141, %cst_100 {dimension_numbers = #tpu.dot_dimension_numbers<[1], [0], [0], [1], [0, 0, 1, 1], [], []>} : vector<8x128xbf16>, vector<128x128xbf16>, vector<8x128xf32> -> vector<8x128xf32>
    %143 = arith.addf %139, %142 : vector<8x128xf32>
    %c0_101 = arith.constant 0 : index
    %c0_102 = arith.constant 0 : index
    %144 = vector.load %arg19[%c0_101, %c0_102] : memref<1x128xf32, #tpu.memory_space<vmem>>, vector<1x128xf32>
    %145 = vector.broadcast %144 : vector<1x128xf32> to vector<8x128xf32>
    %146 = arith.addf %143, %145 : vector<8x128xf32>
    %cst_103 = arith.constant 0.000000e+00 : f32
    %147 = vector.broadcast %cst_103 : f32 to vector<8x128xf32>
    %148 = arith.cmpf oge, %146, %147 : vector<8x128xf32>
    %cst_104 = arith.constant 0.00999999977 : f32
    %149 = vector.broadcast %cst_104 : f32 to vector<8x128xf32>
    %150 = arith.mulf %149, %146 : vector<8x128xf32>
    %151 = arith.select %148, %146, %150 : vector<8x128xi1>, vector<8x128xf32>
    %152 = arith.truncf %151 : vector<8x128xf32> to vector<8x128xbf16>
    %c0_105 = arith.constant 0 : index
    %c0_106 = arith.constant 0 : index
    %153 = vector.load %arg20[%c0_105, %c0_106] : memref<128x256xbf16, #tpu.memory_space<vmem>>, vector<128x256xbf16>
    %cst_107 = arith.constant dense<0.000000e+00> : vector<8x256xf32>
    %154 = tpu.matmul %152, %153, %cst_107 {dimension_numbers = #tpu.dot_dimension_numbers<[1], [0], [0], [1], [0, 0, 1, 1], [], []>} : vector<8x128xbf16>, vector<128x256xbf16>, vector<8x256xf32> -> vector<8x256xf32>
    %c0_108 = arith.constant 0 : index
    %c0_109 = arith.constant 0 : index
    %155 = vector.load %arg21[%c0_108, %c0_109] : memref<1x256xf32, #tpu.memory_space<vmem>>, vector<1x256xf32>
    %156 = vector.broadcast %155 : vector<1x256xf32> to vector<8x256xf32>
    %157 = arith.addf %154, %156 : vector<8x256xf32>
    %cst_110 = arith.constant 0.000000e+00 : f32
    %158 = vector.broadcast %cst_110 : f32 to vector<8x256xf32>
    %159 = arith.cmpf oge, %157, %158 : vector<8x256xf32>
    %cst_111 = arith.constant 0.00999999977 : f32
    %160 = vector.broadcast %cst_111 : f32 to vector<8x256xf32>
    %161 = arith.mulf %160, %157 : vector<8x256xf32>
    %162 = arith.select %159, %157, %161 : vector<8x256xi1>, vector<8x256xf32>
    %163 = arith.truncf %162 : vector<8x256xf32> to vector<8x256xbf16>
    %c0_112 = arith.constant 0 : index
    %c0_113 = arith.constant 0 : index
    %164 = vector.load %arg22[%c0_112, %c0_113] : memref<256x512xbf16, #tpu.memory_space<vmem>>, vector<256x512xbf16>
    %cst_114 = arith.constant dense<0.000000e+00> : vector<8x512xf32>
    %165 = tpu.matmul %163, %164, %cst_114 {dimension_numbers = #tpu.dot_dimension_numbers<[1], [0], [0], [1], [0, 0, 1, 1], [], []>} : vector<8x256xbf16>, vector<256x512xbf16>, vector<8x512xf32> -> vector<8x512xf32>
    %c0_115 = arith.constant 0 : index
    %c0_116 = arith.constant 0 : index
    %166 = vector.load %arg23[%c0_115, %c0_116] : memref<1x512xf32, #tpu.memory_space<vmem>>, vector<1x512xf32>
    %167 = vector.broadcast %166 : vector<1x512xf32> to vector<8x512xf32>
    %168 = arith.addf %165, %167 : vector<8x512xf32>
    %cst_117 = arith.constant 0.000000e+00 : f32
    %169 = vector.broadcast %cst_117 : f32 to vector<8x512xf32>
    %170 = arith.cmpf oge, %168, %169 : vector<8x512xf32>
    %cst_118 = arith.constant 0.00999999977 : f32
    %171 = vector.broadcast %cst_118 : f32 to vector<8x512xf32>
    %172 = arith.mulf %171, %168 : vector<8x512xf32>
    %173 = arith.select %170, %168, %172 : vector<8x512xi1>, vector<8x512xf32>
    %174 = arith.truncf %173 : vector<8x512xf32> to vector<8x512xbf16>
    %c0_119 = arith.constant 0 : index
    %c0_120 = arith.constant 0 : index
    %175 = vector.load %arg24[%c0_119, %c0_120] : memref<512x256xbf16, #tpu.memory_space<vmem>>, vector<512x256xbf16>
    %cst_121 = arith.constant dense<0.000000e+00> : vector<8x256xf32>
    %176 = tpu.matmul %174, %175, %cst_121 {dimension_numbers = #tpu.dot_dimension_numbers<[1], [0], [0], [1], [0, 0, 1, 1], [], []>} : vector<8x512xbf16>, vector<512x256xbf16>, vector<8x256xf32> -> vector<8x256xf32>
    %c0_122 = arith.constant 0 : index
    %c0_123 = arith.constant 0 : index
    %177 = vector.load %arg25[%c0_122, %c0_123] : memref<1x256xf32, #tpu.memory_space<vmem>>, vector<1x256xf32>
    %178 = vector.broadcast %177 : vector<1x256xf32> to vector<8x256xf32>
    %179 = arith.addf %176, %178 : vector<8x256xf32>
    %cst_124 = arith.constant 0.000000e+00 : f32
    %180 = vector.broadcast %cst_124 : f32 to vector<8x256xf32>
    %181 = arith.cmpf oge, %179, %180 : vector<8x256xf32>
    %cst_125 = arith.constant 0.00999999977 : f32
    %182 = vector.broadcast %cst_125 : f32 to vector<8x256xf32>
    %183 = arith.mulf %182, %179 : vector<8x256xf32>
    %184 = arith.select %181, %179, %183 : vector<8x256xi1>, vector<8x256xf32>
    %185 = arith.truncf %184 : vector<8x256xf32> to vector<8x256xbf16>
    %c0_126 = arith.constant 0 : index
    %c0_127 = arith.constant 0 : index
    %186 = vector.load %arg26[%c0_126, %c0_127] : memref<256x128xbf16, #tpu.memory_space<vmem>>, vector<256x128xbf16>
    %cst_128 = arith.constant dense<0.000000e+00> : vector<8x128xf32>
    %187 = tpu.matmul %185, %186, %cst_128 {dimension_numbers = #tpu.dot_dimension_numbers<[1], [0], [0], [1], [0, 0, 1, 1], [], []>} : vector<8x256xbf16>, vector<256x128xbf16>, vector<8x128xf32> -> vector<8x128xf32>
    %c0_129 = arith.constant 0 : index
    %c0_130 = arith.constant 0 : index
    %188 = vector.load %arg27[%c0_129, %c0_130] : memref<1x128xf32, #tpu.memory_space<vmem>>, vector<1x128xf32>
    %189 = vector.broadcast %188 : vector<1x128xf32> to vector<8x128xf32>
    %190 = arith.addf %187, %189 : vector<8x128xf32>
    %cst_131 = arith.constant 0.000000e+00 : f32
    %191 = vector.broadcast %cst_131 : f32 to vector<8x128xf32>
    %192 = arith.cmpf oge, %190, %191 : vector<8x128xf32>
    %cst_132 = arith.constant 0.00999999977 : f32
    %193 = vector.broadcast %cst_132 : f32 to vector<8x128xf32>
    %194 = arith.mulf %193, %190 : vector<8x128xf32>
    %195 = arith.select %192, %190, %194 : vector<8x128xi1>, vector<8x128xf32>
    %196 = arith.truncf %195 : vector<8x128xf32> to vector<8x128xbf16>
    %c0_133 = arith.constant 0 : index
    %c0_134 = arith.constant 0 : index
    %197 = vector.load %arg28[%c0_133, %c0_134] : memref<128x128xbf16, #tpu.memory_space<vmem>>, vector<128x128xbf16>
    %cst_135 = arith.constant dense<0.000000e+00> : vector<8x128xf32>
    %198 = tpu.matmul %196, %197, %cst_135 {dimension_numbers = #tpu.dot_dimension_numbers<[1], [0], [0], [1], [0, 0, 1, 1], [], []>} : vector<8x128xbf16>, vector<128x128xbf16>, vector<8x128xf32> -> vector<8x128xf32>
    %c0_136 = arith.constant 0 : index
    %c0_137 = arith.constant 0 : index
    %199 = vector.load %arg29[%c0_136, %c0_137] : memref<1x128xf32, #tpu.memory_space<vmem>>, vector<1x128xf32>
    %200 = vector.broadcast %199 : vector<1x128xf32> to vector<8x128xf32>
    %201 = arith.addf %198, %200 : vector<8x128xf32>
    %cst_138 = arith.constant 0.000000e+00 : f32
    %202 = vector.broadcast %cst_138 : f32 to vector<8x128xf32>
    %203 = arith.subf %202, %201 : vector<8x128xf32>
    %204 = math.exp %203 : vector<8x128xf32>
    %cst_139 = arith.constant 1.000000e+00 : f32
    %205 = vector.broadcast %cst_139 : f32 to vector<8x128xf32>
    %206 = arith.addf %205, %204 : vector<8x128xf32>
    %cst_140 = arith.constant 1.000000e+00 : f32
    %207 = vector.broadcast %cst_140 : f32 to vector<8x128xf32>
    %208 = arith.divf %207, %206 : vector<8x128xf32>
    %cst_141 = arith.constant 0.000000e+00 : f32
    %209 = vector.broadcast %cst_141 : f32 to vector<8x128xf32>
    %210 = arith.cmpf oge, %201, %209 : vector<8x128xf32>
    %cst_142 = arith.constant 0.00999999977 : f32
    %211 = vector.broadcast %cst_142 : f32 to vector<8x128xf32>
    %212 = arith.mulf %211, %201 : vector<8x128xf32>
    %213 = arith.select %210, %201, %212 : vector<8x128xi1>, vector<8x128xf32>
    %cst_143 = arith.constant 0.000000e+00 : f32
    %214 = vector.broadcast %cst_143 : f32 to vector<8x128xf32>
    %215 = arith.subf %214, %213 : vector<8x128xf32>
    %c0_144 = arith.constant 0 : index
    %c0_145 = arith.constant 0 : index
    %216 = vector.load %arg32[%c0_144, %c0_145] : memref<8x128xf32, #tpu.memory_space<vmem>>, vector<8x128xf32>
    tpu.vector_store %arg32[%c0_144, %c0_145], %208 {strides = array<i32>} : memref<8x128xf32, #tpu.memory_space<vmem>>, vector<8x128xf32>,
    %c0_146 = arith.constant 0 : index
    %c0_147 = arith.constant 0 : index
    %217 = vector.load %arg33[%c0_146, %c0_147] : memref<8x128xf32, #tpu.memory_space<vmem>>, vector<8x128xf32>
    tpu.vector_store %arg33[%c0_146, %c0_147], %215 {strides = array<i32>} : memref<8x128xf32, #tpu.memory_space<vmem>>, vector<8x128xf32>,
    %c0_148 = arith.constant 0 : index
    %c0_149 = arith.constant 0 : index
    %218 = vector.load %arg3[%c0_148, %c0_149] : memref<8x128xf32, #tpu.memory_space<vmem>>, vector<8x128xf32>
    %cst_150 = arith.constant 5.000000e-01 : f32
    %219 = vector.broadcast %cst_150 : f32 to vector<8x128xf32>
    %220 = arith.mulf %219, %215 : vector<8x128xf32>
    %221 = math.exp %220 : vector<8x128xf32>
    %222 = arith.mulf %218, %221 : vector<8x128xf32>
    %223 = arith.addf %208, %222 : vector<8x128xf32>
    %c0_151 = arith.constant 0 : index
    %c0_152 = arith.constant 0 : index
    %224 = vector.load %arg34[%c0_151, %c0_152] : memref<8x128xf32, #tpu.memory_space<vmem>>, vector<8x128xf32>
    tpu.vector_store %arg34[%c0_151, %c0_152], %223 {strides = array<i32>} : memref<8x128xf32, #tpu.memory_space<vmem>>, vector<8x128xf32>,
    return
  }
}

</mosaic_0001>

<bundles_post_ra>
// kernel: cvae_forward.3
= control target key start
LH: loop header
LB: loop body
LE: loop exit
PB: predicated region body
PF: predicated region fallthrough
CT: control target
= control target key end

     0   :  { %v1615_v0 = vmov 0   ;;  %s2040_s1 = inlined_call_operand.vmem [shape: bf16[256,128], index: 1, kind: input, shape index: {}]   ;;  %s2041_s0 = inlined_call_operand.vmem [shape: bf16[464,256], index: 0, kind: input, shape index: {}]   ;;  %s2042_s2 = inlined_call_operand.vmem [shape: f32[1,128], index: 2, kind: input, shape index: {}]   ;;  %s2043_s3 = inlined_call_operand.vmem [shape: bf16[464,128], index: 3, kind: output, shape index: {}]  }
   0x1   :  { %498 = vmatprep.subr.bf16.mxu0 %v1615_v0  ;;  %v1512_v1 = vld [vmem:[%s2040_s1] sm:$0xff]   ;;  %1479 = vmatprep.subr.bf16.mxu1 %v1615_v0  ;;  %v1513_v2 = vld [vmem:[%s2040_s1 + $0x8] sm:$0xff]   ;;  %v1514_v3 = vld [vmem:[%s2040_s1 + $0x10] sm:$0xff]  }
   0x2   :  { %499 = vmatpush1.bf16.msra.mxu0 %v1512_v1  ;;  %1495 = vmatpush1.bf16.msra.mxu1 %v1512_v1  ;;  %v1515_v4 = vld [vmem:[%s2040_s1 + $0x18] sm:$0xff]   ;;  %v1516_v5 = vld [vmem:[%s2040_s1 + $0x20] sm:$0xff]   ;;  %v1517_v7 = vld [vmem:[%s2040_s1 + $0x28] sm:$0xff]  }
   0x3   :  { %500 = vmatprep.subr.bf16.mxu0 %v1615_v0  ;;  %1480 = vmatprep.subr.bf16.mxu1 %v1615_v0  ;;  %v1530_v6 = vld [vmem:[%s2041_s0 + $0x4] ss:$8 sps:$4 sm:$0xff]   ;;  %v1533_v8 = vld [vmem:[%s2041_s0 + $0xf4] ss:$8 sps:$4 sm:$0xff]   ;;  %v1528_v19 = vld [vmem:[%s2041_s0] ss:$8 sps:$4 sm:$0xff]  }
   0x4   :  { %530 = vmatprep.mubr.bf16.mxu0 %v1530_v6  ;;  %650 = vmatprep.mubr.bf16.mxu1 %v1533_v8  ;;  %v1518_v9 = vld [vmem:[%s2040_s1 + $0x30] sm:$0xff]   ;;  %v1519_v10 = vld [vmem:[%s2040_s1 + $0x38] sm:$0xff]   ;;  %v1520_v11 = vld [vmem:[%s2040_s1 + $0x40] sm:$0xff]  }
   0x5   :  { %v1521_v12 = vld [vmem:[%s2040_s1 + $0x48] sm:$0xff]   ;;  %v1522_v13 = vld [vmem:[%s2040_s1 + $0x50] sm:$0xff]   ;;  %v1523_v14 = vld [vmem:[%s2040_s1 + $0x58] sm:$0xff]  }
   0x6   :  { %501 = vmatpush1.bf16.msra.mxu0 %v1513_v2  ;;  %1496 = vmatpush1.bf16.msra.mxu1 %v1513_v2  ;;  %v1524_v15 = vld [vmem:[%s2040_s1 + $0x60] sm:$0xff]   ;;  %v1525_v16 = vld [vmem:[%s2040_s1 + $0x68] sm:$0xff]   ;;  %v1526_v17 = vld [vmem:[%s2040_s1 + $0x70] sm:$0xff]  }
   0x7   :  { %502 = vmatprep.subr.bf16.mxu0 %v1615_v0  ;;  %1481 = vmatprep.subr.bf16.mxu1 %v1615_v0  ;;  %v1527_v18 = vld [vmem:[%s2040_s1 + $0x78] sm:$0xff]   ;;  %v1537_v22 = vld [vmem:[%s2041_s0 + $0x104] ss:$8 sps:$4 sm:$0xff]   ;;  %v1539_v24 = vld [vmem:[%s2041_s0 + $0x100] ss:$8 sps:$4 sm:$0xff]  }
   0x8   :  { %v1531_v20 = vld [vmem:[%s2041_s0 + $0xf0] ss:$8 sps:$4 sm:$0xff]   ;;  %v1534_v21 = vld [vmem:[%s2041_s0 + $0x14] ss:$8 sps:$4 sm:$0xff]   ;;  %v1540_v25 = vld [vmem:[%s2041_s0 + $0x24] ss:$8 sps:$4 sm:$0xff]  }
   0x9   :  { %v1536_v23 = vld [vmem:[%s2041_s0 + $0x10] ss:$8 sps:$4 sm:$0xff]   ;;  %v1543_v26 = vld [vmem:[%s2041_s0 + $0x114] ss:$8 sps:$4 sm:$0xff]   ;;  %v1542_v27 = vld [vmem:[%s2041_s0 + $0x20] ss:$8 sps:$4 sm:$0xff]  }
   0xa   :  { %503 = vmatpush1.bf16.msra.mxu0 %v1514_v3  ;;  %1497 = vmatpush1.bf16.msra.mxu1 %v1514_v3  ;;  %v1545_v28 = vld [vmem:[%s2041_s0 + $0x110] ss:$8 sps:$4 sm:$0xff]   ;;  %v1546_v29 = vld [vmem:[%s2041_s0 + $0x34] ss:$8 sps:$4 sm:$0xff]   ;;  %v1549_v30 = vld [vmem:[%s2041_s0 + $0x124] ss:$8 sps:$4 sm:$0xff]  }
   0xb   :  { %504 = vmatprep.subr.bf16.mxu0 %v1615_v0  ;;  %1482 = vmatprep.subr.bf16.mxu1 %v1615_v0  ;;  %v1548_v31 = vld [vmem:[%s2041_s0 + $0x30] ss:$8 sps:$4 sm:$0xff]   ;;  %v1551_v32 = vld [vmem:[%s2041_s0 + $0x120] ss:$8 sps:$4 sm:$0xff]   ;;  %v1552_v33 = vld [vmem:[%s2041_s0 + $0x44] ss:$8 sps:$4 sm:$0xff]  }
   0xc   :  { %v1555_v34 = vld [vmem:[%s2041_s0 + $0x134] ss:$8 sps:$4 sm:$0xff]   ;;  %v1554_v35 = vld [vmem:[%s2041_s0 + $0x40] ss:$8 sps:$4 sm:$0xff]   ;;  %v1557_v36 = vld [vmem:[%s2041_s0 + $0x130] ss:$8 sps:$4 sm:$0xff]  }
   0xd   :  { %v1558_v37 = vld [vmem:[%s2041_s0 + $0x54] ss:$8 sps:$4 sm:$0xff]   ;;  %v1561_v38 = vld [vmem:[%s2041_s0 + $0x144] ss:$8 sps:$4 sm:$0xff]   ;;  %v1560_v39 = vld [vmem:[%s2041_s0 + $0x50] ss:$8 sps:$4 sm:$0xff]  }
   0xe   :  { %505 = vmatpush1.bf16.msra.mxu0 %v1515_v4  ;;  %1498 = vmatpush1.bf16.msra.mxu1 %v1515_v4  ;;  %v1563_v40 = vld [vmem:[%s2041_s0 + $0x140] ss:$8 sps:$4 sm:$0xff]   ;;  %v1564_v41 = vld [vmem:[%s2041_s0 + $0x64] ss:$8 sps:$4 sm:$0xff]   ;;  %v1567_v42 = vld [vmem:[%s2041_s0 + $0x154] ss:$8 sps:$4 sm:$0xff]  }
   0xf   :  { %506 = vmatprep.subr.bf16.mxu0 %v1615_v0  ;;  %1483 = vmatprep.subr.bf16.mxu1 %v1615_v0  ;;  %v1566_v43 = vld [vmem:[%s2041_s0 + $0x60] ss:$8 sps:$4 sm:$0xff]   ;;  %v1569_v44 = vld [vmem:[%s2041_s0 + $0x150] ss:$8 sps:$4 sm:$0xff]   ;;  %v1570_v45 = vld [vmem:[%s2041_s0 + $0x74] ss:$8 sps:$4 sm:$0xff]  }
  0x10   :  { %v1573_v46 = vld [vmem:[%s2041_s0 + $0x164] ss:$8 sps:$4 sm:$0xff]   ;;  %v1572_v47 = vld [vmem:[%s2041_s0 + $0x70] ss:$8 sps:$4 sm:$0xff]   ;;  %v1575_v48 = vld [vmem:[%s2041_s0 + $0x160] ss:$8 sps:$4 sm:$0xff]  }
  0x11   :  { %v1576_v49 = vld [vmem:[%s2041_s0 + $0x84] ss:$8 sps:$4 sm:$0xff]   ;;  %v1579_v50 = vld [vmem:[%s2041_s0 + $0x174] ss:$8 sps:$4 sm:$0xff]   ;;  %v1578_v51 = vld [vmem:[%s2041_s0 + $0x80] ss:$8 sps:$4 sm:$0xff]  }
  0x12   :  { %507 = vmatpush1.bf16.msra.mxu0 %v1516_v5  ;;  %1499 = vmatpush1.bf16.msra.mxu1 %v1516_v5  ;;  %v1581_v52 = vld [vmem:[%s2041_s0 + $0x170] ss:$8 sps:$4 sm:$0xff]   ;;  %v1582_v53 = vld [vmem:[%s2041_s0 + $0x94] ss:$8 sps:$4 sm:$0xff]   ;;  %v1585_v54 = vld [vmem:[%s2041_s0 + $0x184] ss:$8 sps:$4 sm:$0xff]  }
  0x13   :  { %508 = vmatprep.subr.bf16.mxu0 %v1615_v0  ;;  %1484 = vmatprep.subr.bf16.mxu1 %v1615_v0  ;;  %v1584_v55 = vld [vmem:[%s2041_s0 + $0x90] ss:$8 sps:$4 sm:$0xff]   ;;  %v1587_v56 = vld [vmem:[%s2041_s0 + $0x180] ss:$8 sps:$4 sm:$0xff]   ;;  %v1588_v57 = vld [vmem:[%s2041_s0 + $0xa4] ss:$8 sps:$4 sm:$0xff]  }
  0x14   :  { %v1591_v58 = vld [vmem:[%s2041_s0 + $0x194] ss:$8 sps:$4 sm:$0xff]   ;;  %v1590_v59 = vld [vmem:[%s2041_s0 + $0xa0] ss:$8 sps:$4 sm:$0xff]   ;;  %v1593_v60 = vld [vmem:[%s2041_s0 + $0x190] ss:$8 sps:$4 sm:$0xff]  }
  0x15   :  { %v1594_v61 = vld [vmem:[%s2041_s0 + $0xb4] ss:$8 sps:$4 sm:$0xff]   ;;  %v1597_v62 = vld [vmem:[%s2041_s0 + $0x1a4] ss:$8 sps:$4 sm:$0xff]   ;;  %v1596_v63 = vld [vmem:[%s2041_s0 + $0xb0] ss:$8 sps:$4 sm:$0xff]  }
  0x16   :  { %509 = vmatpush1.bf16.msra.mxu0 %v1517_v7  ;;  %1500 = vmatpush1.bf16.msra.mxu1 %v1517_v7  ;;  %v1600_v1 = vld [vmem:[%s2041_s0 + $0xc4] ss:$8 sps:$4 sm:$0xff]   ;;  %v1603_v2 = vld [vmem:[%s2041_s0 + $0x1b4] ss:$8 sps:$4 sm:$0xff]   ;;  %v1602_v3 = vld [vmem:[%s2041_s0 + $0xc0] ss:$8 sps:$4 sm:$0xff]  }
  0x17   :  { %510 = vmatprep.subr.bf16.mxu0 %v1615_v0  ;;  %1485 = vmatprep.subr.bf16.mxu1 %v1615_v0  ;;  %v1605_v4 = vld [vmem:[%s2041_s0 + $0x1b0] ss:$8 sps:$4 sm:$0xff]   ;;  %v1606_v5 = vld [vmem:[%s2041_s0 + $0xd4] ss:$8 sps:$4 sm:$0xff]   ;;  %v1609_v6 = vld [vmem:[%s2041_s0 + $0x1c4] ss:$8 sps:$4 sm:$0xff]  }
  0x18   :  { %v1608_v7 = vld [vmem:[%s2041_s0 + $0xd0] ss:$8 sps:$4 sm:$0xff]   ;;  %v1611_v8 = vld [vmem:[%s2041_s0 + $0x1c0] ss:$8 sps:$4 sm:$0xff]  }
  0x1a   :  { %511 = vmatpush1.bf16.msra.mxu0 %v1518_v9  ;;  %1501 = vmatpush1.bf16.msra.mxu1 %v1518_v9  ;;  %v1612_v9 = vld [vmem:[%s2041_s0 + $0xe4] ss:$8 sps:$4 sm:$0xff]  }
  0x1b   :  { %512 = vmatprep.subr.bf16.mxu0 %v1615_v0  ;;  %1486 = vmatprep.subr.bf16.mxu1 %v1615_v0 }
  0x1e   :  { %513 = vmatpush1.bf16.msra.mxu0 %v1519_v10  ;;  %1502 = vmatpush1.bf16.msra.mxu1 %v1519_v10  ;;  %v1614_v10 = vld [vmem:[%s2041_s0 + $0xe0] ss:$8 sps:$4 sm:$0xff]  }
  0x1f   :  { %514 = vmatprep.subr.bf16.mxu0 %v1615_v0  ;;  %1487 = vmatprep.subr.bf16.mxu1 %v1615_v0 }
  0x22   :  { %515 = vmatpush1.bf16.msra.mxu0 %v1520_v11  ;;  %1503 = vmatpush1.bf16.msra.mxu1 %v1520_v11  ;;  %v1893_v11 = vld [vmem:[%s2042_s2] ss:$0 sm:$0xff] }
  0x23   :  { %516 = vmatprep.subr.bf16.mxu0 %v1615_v0  ;;  %1488 = vmatprep.subr.bf16.mxu1 %v1615_v0 }
  0x26   :  { %517 = vmatpush1.bf16.msra.mxu0 %v1521_v12  ;;  %1504 = vmatpush1.bf16.msra.mxu1 %v1521_v12 }
  0x27   :  { %518 = vmatprep.subr.bf16.mxu0 %v1615_v0  ;;  %1489 = vmatprep.subr.bf16.mxu1 %v1615_v0 }
  0x2a   :  { %519 = vmatpush1.bf16.msra.mxu0 %v1522_v13  ;;  %1505 = vmatpush1.bf16.msra.mxu1 %v1522_v13 }
  0x2b   :  { %520 = vmatprep.subr.bf16.mxu0 %v1615_v0  ;;  %1490 = vmatprep.subr.bf16.mxu1 %v1615_v0 }
  0x2e   :  { %521 = vmatpush1.bf16.msra.mxu0 %v1523_v14  ;;  %1506 = vmatpush1.bf16.msra.mxu1 %v1523_v14 }
  0x2f   :  { %522 = vmatprep.subr.bf16.mxu0 %v1615_v0  ;;  %1491 = vmatprep.subr.bf16.mxu1 %v1615_v0 }
  0x32   :  { %523 = vmatpush1.bf16.msra.mxu0 %v1524_v15  ;;  %1507 = vmatpush1.bf16.msra.mxu1 %v1524_v15 }
  0x33   :  { %524 = vmatprep.subr.bf16.mxu0 %v1615_v0  ;;  %1492 = vmatprep.subr.bf16.mxu1 %v1615_v0 }
  0x36   :  { %525 = vmatpush1.bf16.msra.mxu0 %v1525_v16  ;;  %1508 = vmatpush1.bf16.msra.mxu1 %v1525_v16 }
  0x37   :  { %526 = vmatprep.subr.bf16.mxu0 %v1615_v0  ;;  %1493 = vmatprep.subr.bf16.mxu1 %v1615_v0 }
  0x3a   :  { %527 = vmatpush1.bf16.msra.mxu0 %v1526_v17  ;;  %1509 = vmatpush1.bf16.msra.mxu1 %v1526_v17 }
  0x3b   :  { %528 = vmatprep.subr.bf16.mxu0 %v1615_v0  ;;  %1494 = vmatprep.subr.bf16.mxu1 %v1615_v0  ;;  %v1599_v0 = vld [vmem:[%s2041_s0 + $0x1a0] ss:$8 sps:$4 sm:$0xff]  }
  0x3e   :  { %529 = vmatpush1.bf16.msra.mxu0 %v1527_v18  ;;  %1510 = vmatpush1.bf16.msra.mxu1 %v1527_v18 }
  0x41   :  { %531 = vmatmul.mubr.bf16.vlgmr.msra.gmra.mrb[0].mxu0 %v1528_v19  ;;  %651 = vmatmul.mubr.bf16.vlgmr.msra.gmra.mrb[0].mxu1 %v1531_v20 }
  0x42   :  { %538 = vmatprep.mubr.bf16.mxu0 %v1534_v21  ;;  %658 = vmatprep.mubr.bf16.mxu1 %v1537_v22 }
  0x49   :  { %539 = vmatmul.mubr.bf16.gmra.mrb[4].mxu0 %v1536_v23  ;;  %659 = vmatmul.mubr.bf16.gmra.mrb[4].mxu1 %v1539_v24 }
  0x4a   :  { %546 = vmatprep.mubr.bf16.mxu0 %v1540_v25  ;;  %666 = vmatprep.mubr.bf16.mxu1 %v1543_v26 }
  0x51   :  { %547 = vmatmul.mubr.bf16.gmra.mrb[8].mxu0 %v1542_v27  ;;  %667 = vmatmul.mubr.bf16.gmra.mrb[8].mxu1 %v1545_v28 }
  0x52   :  { %554 = vmatprep.mubr.bf16.mxu0 %v1546_v29  ;;  %674 = vmatprep.mubr.bf16.mxu1 %v1549_v30 }
  0x59   :  { %555 = vmatmul.mubr.bf16.gmra.mrb[12].mxu0 %v1548_v31  ;;  %675 = vmatmul.mubr.bf16.gmra.mrb[12].mxu1 %v1551_v32 }
  0x5a   :  { %562 = vmatprep.mubr.bf16.mxu0 %v1552_v33  ;;  %682 = vmatprep.mubr.bf16.mxu1 %v1555_v34 }
  0x61   :  { %563 = vmatmul.mubr.bf16.gmra.mrb[16].mxu0 %v1554_v35  ;;  %683 = vmatmul.mubr.bf16.gmra.mrb[16].mxu1 %v1557_v36 }
  0x62   :  { %570 = vmatprep.mubr.bf16.mxu0 %v1558_v37  ;;  %690 = vmatprep.mubr.bf16.mxu1 %v1561_v38 }
  0x69   :  { %571 = vmatmul.mubr.bf16.gmra.mrb[20].mxu0 %v1560_v39  ;;  %691 = vmatmul.mubr.bf16.gmra.mrb[20].mxu1 %v1563_v40 }
  0x6a   :  { %578 = vmatprep.mubr.bf16.mxu0 %v1564_v41  ;;  %698 = vmatprep.mubr.bf16.mxu1 %v1567_v42 }
  0x71   :  { %579 = vmatmul.mubr.bf16.gmra.mrb[24].mxu0 %v1566_v43  ;;  %699 = vmatmul.mubr.bf16.gmra.mrb[24].mxu1 %v1569_v44 }
  0x72   :  { %586 = vmatprep.mubr.bf16.mxu0 %v1570_v45  ;;  %706 = vmatprep.mubr.bf16.mxu1 %v1573_v46 }
  0x79   :  { %587 = vmatmul.mubr.bf16.gmra.mrb[28].mxu0 %v1572_v47  ;;  %707 = vmatmul.mubr.bf16.gmra.mrb[28].mxu1 %v1575_v48 }
  0x7a   :  { %594 = vmatprep.mubr.bf16.mxu0 %v1576_v49  ;;  %714 = vmatprep.mubr.bf16.mxu1 %v1579_v50 }
  0x81   :  { %595 = vmatmul.mubr.bf16.gmra.mrb[32].mxu0 %v1578_v51  ;;  %715 = vmatmul.mubr.bf16.gmra.mrb[32].mxu1 %v1581_v52 }
  0x82   :  { %602 = vmatprep.mubr.bf16.mxu0 %v1582_v53  ;;  %722 = vmatprep.mubr.bf16.mxu1 %v1585_v54 }
  0x89   :  { %603 = vmatmul.mubr.bf16.gmra.mrb[36].mxu0 %v1584_v55  ;;  %723 = vmatmul.mubr.bf16.gmra.mrb[36].mxu1 %v1587_v56 }
  0x8a   :  { %610 = vmatprep.mubr.bf16.mxu0 %v1588_v57  ;;  %730 = vmatprep.mubr.bf16.mxu1 %v1591_v58 }
  0x91   :  { %611 = vmatmul.mubr.bf16.gmra.mrb[40].mxu0 %v1590_v59  ;;  %731 = vmatmul.mubr.bf16.gmra.mrb[40].mxu1 %v1593_v60 }
  0x92   :  { %618 = vmatprep.mubr.bf16.mxu0 %v1594_v61  ;;  %738 = vmatprep.mubr.bf16.mxu1 %v1597_v62 }
  0x99   :  { %619 = vmatmul.mubr.bf16.gmra.mrb[44].mxu0 %v1596_v63  ;;  %739 = vmatmul.mubr.bf16.gmra.mrb[44].mxu1 %v1599_v0 }
  0x9a   :  { %626 = vmatprep.mubr.bf16.mxu0 %v1600_v1  ;;  %746 = vmatprep.mubr.bf16.mxu1 %v1603_v2 }
  0xa1   :  { %627 = vmatmul.mubr.bf16.gmra.mrb[48].mxu0 %v1602_v3  ;;  %747 = vmatmul.mubr.bf16.gmra.mrb[48].mxu1 %v1605_v4 }
  0xa2   :  { %634 = vmatprep.mubr.bf16.mxu0 %v1606_v5  ;;  %754 = vmatprep.mubr.bf16.mxu1 %v1609_v6 }
  0xa9   :  { %635 = vmatmul.mubr.bf16.gmra.mrb[52].mxu0 %v1608_v7  ;;  %755 = vmatmul.mubr.bf16.gmra.mrb[52].mxu1 %v1611_v8 }
  0xaa   :  { %642 = vmatprep.mubr.bf16.mxu0 %v1612_v9 }
  0xb1   :  { %643 = vmatmul.mubr.bf16.gmra.mrb[56].mxu0 %v1614_v10 }
 0x114   :  { %v532_v12 = vpop.f32.mrb[0].mxu0  ;;  %v652_v13 = vpop.f32.mrb[0].mxu1 }
 0x115   :  { %v533_v14 = vadd.f32 %v1893_v11, %v532_v12  ;;  %v534_v15 = vpop.f32.mrb[1].mxu0  ;;  %v653_v16 = vadd.f32 %v1893_v11, %v652_v13  ;;  %v654_v17 = vpop.f32.mrb[1].mxu1 }
 0x116   :  { %v535_v18 = vpop.f32.mrb[2].mxu0  ;;  %v655_v19 = vpop.f32.mrb[2].mxu1 }
 0x117   :  { %v536_v20 = vadd.f32 %v1893_v11, %v535_v18  ;;  %v537_v21 = vpop.f32.mrb[3].mxu0  ;;  %v793_v22 = vmax.f32 %v653_v16, 0.0  ;;  %v656_v23 = vadd.f32 %v1893_v11, %v655_v19  ;;  %v657_v24 = vpop.f32.mrb[3].mxu1  ;;  %v763_v25 = vmax.f32 %v533_v14, 0.0 }
 0x119   :  { %v764_v26 = vmax.f32 %v536_v20, 0.0  ;;  %v794_v27 = vmax.f32 %v656_v23, 0.0 }
 0x11b   :  { %v1309_v28 = vpack.c.bf16 %v764_v26, %v763_v25  ;;  %v1384_v29 = vpack.c.bf16 %v794_v27, %v793_v22 }
 0x11c   :  { %v540_v30 = vpop.f32.mrb[4].mxu0  ;;  %v660_v31 = vpop.f32.mrb[4].mxu1 }
 0x11d   :  { %1310 = vst [vmem:[%s2043_s3] sm:$0xff] %v1309_v28   ;;  %1465 = vst [vmem:[%s2043_s3 + $0x78] sm:$0xff] %v1384_v29   ;;  %v541_v32 = vadd.f32 %v1893_v11, %v540_v30  ;;  %v542_v33 = vpop.f32.mrb[5].mxu0  ;;  %v661_v34 = vadd.f32 %v1893_v11, %v660_v31  ;;  %v662_v35 = vpop.f32.mrb[5].mxu1 }
 0x11e   :  { %v543_v36 = vpop.f32.mrb[6].mxu0  ;;  %v663_v37 = vpop.f32.mrb[6].mxu1 }
 0x11f   :  { %v544_v38 = vadd.f32 %v1893_v11, %v543_v36  ;;  %v545_v39 = vpop.f32.mrb[7].mxu0  ;;  %v795_v40 = vmax.f32 %v661_v34, 0.0  ;;  %v664_v41 = vadd.f32 %v1893_v11, %v663_v37  ;;  %v665_v42 = vpop.f32.mrb[7].mxu1  ;;  %v765_v43 = vmax.f32 %v541_v32, 0.0 }
 0x121   :  { %v766_v44 = vmax.f32 %v544_v38, 0.0  ;;  %v796_v45 = vmax.f32 %v664_v41, 0.0 }
 0x123   :  { %v1314_v46 = vpack.c.bf16 %v766_v44, %v765_v43  ;;  %v1389_v47 = vpack.c.bf16 %v796_v45, %v795_v40 }
 0x124   :  { %v548_v48 = vpop.f32.mrb[8].mxu0  ;;  %v668_v49 = vpop.f32.mrb[8].mxu1 }
 0x125   :  { %1451 = vst [vmem:[%s2043_s3 + $0x8] sm:$0xff] %v1314_v46   ;;  %1466 = vst [vmem:[%s2043_s3 + $0x80] sm:$0xff] %v1389_v47   ;;  %v549_v50 = vadd.f32 %v1893_v11, %v548_v48  ;;  %v550_v51 = vpop.f32.mrb[9].mxu0  ;;  %v669_v52 = vadd.f32 %v1893_v11, %v668_v49  ;;  %v670_v53 = vpop.f32.mrb[9].mxu1 }
 0x126   :  { %v551_v54 = vpop.f32.mrb[10].mxu0  ;;  %v671_v55 = vpop.f32.mrb[10].mxu1 }
 0x127   :  { %v552_v56 = vadd.f32 %v1893_v11, %v551_v54  ;;  %v553_v57 = vpop.f32.mrb[11].mxu0  ;;  %v797_v58 = vmax.f32 %v669_v52, 0.0  ;;  %v672_v59 = vadd.f32 %v1893_v11, %v671_v55  ;;  %v673_v60 = vpop.f32.mrb[11].mxu1  ;;  %v767_v61 = vmax.f32 %v549_v50, 0.0 }
 0x129   :  { %v768_v62 = vmax.f32 %v552_v56, 0.0  ;;  %v798_v63 = vmax.f32 %v672_v59, 0.0 }
 0x12b   :  { %v1319_v0 = vpack.c.bf16 %v768_v62, %v767_v61  ;;  %v1394_v1 = vpack.c.bf16 %v798_v63, %v797_v58 }
 0x12c   :  { %v556_v2 = vpop.f32.mrb[12].mxu0  ;;  %v676_v3 = vpop.f32.mrb[12].mxu1 }
 0x12d   :  { %1452 = vst [vmem:[%s2043_s3 + $0x10] sm:$0xff] %v1319_v0   ;;  %1467 = vst [vmem:[%s2043_s3 + $0x88] sm:$0xff] %v1394_v1   ;;  %v557_v4 = vadd.f32 %v1893_v11, %v556_v2  ;;  %v558_v5 = vpop.f32.mrb[13].mxu0  ;;  %v677_v6 = vadd.f32 %v1893_v11, %v676_v3  ;;  %v678_v7 = vpop.f32.mrb[13].mxu1 }
 0x12e   :  { %v559_v8 = vpop.f32.mrb[14].mxu0  ;;  %v679_v9 = vpop.f32.mrb[14].mxu1 }
 0x12f   :  { %v560_v10 = vadd.f32 %v1893_v11, %v559_v8  ;;  %v561_v12 = vpop.f32.mrb[15].mxu0  ;;  %v799_v13 = vmax.f32 %v677_v6, 0.0  ;;  %v680_v14 = vadd.f32 %v1893_v11, %v679_v9  ;;  %v681_v15 = vpop.f32.mrb[15].mxu1  ;;  %v769_v16 = vmax.f32 %v557_v4, 0.0 }
 0x131   :  { %v770_v17 = vmax.f32 %v560_v10, 0.0  ;;  %v800_v18 = vmax.f32 %v680_v14, 0.0 }
 0x133   :  { %v1324_v19 = vpack.c.bf16 %v770_v17, %v769_v16  ;;  %v1399_v20 = vpack.c.bf16 %v800_v18, %v799_v13 }
 0x134   :  { %v564_v21 = vpop.f32.mrb[16].mxu0  ;;  %v684_v22 = vpop.f32.mrb[16].mxu1 }
 0x135   :  { %1453 = vst [vmem:[%s2043_s3 + $0x18] sm:$0xff] %v1324_v19   ;;  %1468 = vst [vmem:[%s2043_s3 + $0x90] sm:$0xff] %v1399_v20   ;;  %v565_v23 = vadd.f32 %v1893_v11, %v564_v21  ;;  %v566_v24 = vpop.f32.mrb[17].mxu0  ;;  %v685_v25 = vadd.f32 %v1893_v11, %v684_v22  ;;  %v686_v26 = vpop.f32.mrb[17].mxu1 }
 0x136   :  { %v567_v27 = vpop.f32.mrb[18].mxu0  ;;  %v687_v28 = vpop.f32.mrb[18].mxu1 }
 0x137   :  { %v568_v29 = vadd.f32 %v1893_v11, %v567_v27  ;;  %v569_v30 = vpop.f32.mrb[19].mxu0  ;;  %v801_v31 = vmax.f32 %v685_v25, 0.0  ;;  %v688_v32 = vadd.f32 %v1893_v11, %v687_v28  ;;  %v689_v33 = vpop.f32.mrb[19].mxu1  ;;  %v771_v34 = vmax.f32 %v565_v23, 0.0 }
 0x139   :  { %v772_v35 = vmax.f32 %v568_v29, 0.0  ;;  %v802_v36 = vmax.f32 %v688_v32, 0.0 }
 0x13b   :  { %v1329_v37 = vpack.c.bf16 %v772_v35, %v771_v34  ;;  %v1404_v38 = vpack.c.bf16 %v802_v36, %v801_v31 }
 0x13c   :  { %v572_v39 = vpop.f32.mrb[20].mxu0  ;;  %v692_v40 = vpop.f32.mrb[20].mxu1 }
 0x13d   :  { %1454 = vst [vmem:[%s2043_s3 + $0x20] sm:$0xff] %v1329_v37   ;;  %1469 = vst [vmem:[%s2043_s3 + $0x98] sm:$0xff] %v1404_v38   ;;  %v573_v41 = vadd.f32 %v1893_v11, %v572_v39  ;;  %v574_v42 = vpop.f32.mrb[21].mxu0  ;;  %v693_v43 = vadd.f32 %v1893_v11, %v692_v40  ;;  %v694_v44 = vpop.f32.mrb[21].mxu1 }
 0x13e   :  { %v575_v45 = vpop.f32.mrb[22].mxu0  ;;  %v695_v46 = vpop.f32.mrb[22].mxu1 }
 0x13f   :  { %v576_v47 = vadd.f32 %v1893_v11, %v575_v45  ;;  %v577_v48 = vpop.f32.mrb[23].mxu0  ;;  %v803_v49 = vmax.f32 %v693_v43, 0.0  ;;  %v696_v50 = vadd.f32 %v1893_v11, %v695_v46  ;;  %v697_v51 = vpop.f32.mrb[23].mxu1  ;;  %v773_v52 = vmax.f32 %v573_v41, 0.0 }
 0x141   :  { %v774_v53 = vmax.f32 %v576_v47, 0.0  ;;  %v804_v54 = vmax.f32 %v696_v50, 0.0 }
 0x143   :  { %v1334_v55 = vpack.c.bf16 %v774_v53, %v773_v52  ;;  %v1409_v56 = vpack.c.bf16 %v804_v54, %v803_v49 }
 0x144   :  { %v580_v57 = vpop.f32.mrb[24].mxu0  ;;  %v700_v58 = vpop.f32.mrb[24].mxu1 }
 0x145   :  { %1455 = vst [vmem:[%s2043_s3 + $0x28] sm:$0xff] %v1334_v55   ;;  %1470 = vst [vmem:[%s2043_s3 + $0xa0] sm:$0xff] %v1409_v56   ;;  %v581_v59 = vadd.f32 %v1893_v11, %v580_v57  ;;  %v582_v60 = vpop.f32.mrb[25].mxu0  ;;  %v701_v61 = vadd.f32 %v1893_v11, %v700_v58  ;;  %v702_v62 = vpop.f32.mrb[25].mxu1 }
 0x146   :  { %v583_v63 = vpop.f32.mrb[26].mxu0  ;;  %v703_v0 = vpop.f32.mrb[26].mxu1 }
 0x147   :  { %v584_v1 = vadd.f32 %v1893_v11, %v583_v63  ;;  %v585_v2 = vpop.f32.mrb[27].mxu0  ;;  %v805_v3 = vmax.f32 %v701_v61, 0.0  ;;  %v704_v4 = vadd.f32 %v1893_v11, %v703_v0  ;;  %v705_v5 = vpop.f32.mrb[27].mxu1  ;;  %v775_v6 = vmax.f32 %v581_v59, 0.0 }
 0x149   :  { %v776_v7 = vmax.f32 %v584_v1, 0.0  ;;  %v806_v8 = vmax.f32 %v704_v4, 0.0 }
 0x14b   :  { %v1339_v9 = vpack.c.bf16 %v776_v7, %v775_v6  ;;  %v1414_v10 = vpack.c.bf16 %v806_v8, %v805_v3 }
 0x14c   :  { %v588_v12 = vpop.f32.mrb[28].mxu0  ;;  %v708_v13 = vpop.f32.mrb[28].mxu1 }
 0x14d   :  { %1456 = vst [vmem:[%s2043_s3 + $0x30] sm:$0xff] %v1339_v9   ;;  %1471 = vst [vmem:[%s2043_s3 + $0xa8] sm:$0xff] %v1414_v10   ;;  %v589_v14 = vadd.f32 %v1893_v11, %v588_v12  ;;  %v590_v15 = vpop.f32.mrb[29].mxu0  ;;  %v709_v16 = vadd.f32 %v1893_v11, %v708_v13  ;;  %v710_v17 = vpop.f32.mrb[29].mxu1 }
 0x14e   :  { %v591_v18 = vpop.f32.mrb[30].mxu0  ;;  %v711_v19 = vpop.f32.mrb[30].mxu1 }
 0x14f   :  { %v592_v20 = vadd.f32 %v1893_v11, %v591_v18  ;;  %v593_v21 = vpop.f32.mrb[31].mxu0  ;;  %v807_v22 = vmax.f32 %v709_v16, 0.0  ;;  %v712_v23 = vadd.f32 %v1893_v11, %v711_v19  ;;  %v713_v24 = vpop.f32.mrb[31].mxu1  ;;  %v777_v25 = vmax.f32 %v589_v14, 0.0 }
 0x151   :  { %v778_v26 = vmax.f32 %v592_v20, 0.0  ;;  %v808_v27 = vmax.f32 %v712_v23, 0.0 }
 0x153   :  { %v1344_v28 = vpack.c.bf16 %v778_v26, %v777_v25  ;;  %v1419_v29 = vpack.c.bf16 %v808_v27, %v807_v22 }
 0x154   :  { %v596_v30 = vpop.f32.mrb[32].mxu0  ;;  %v716_v31 = vpop.f32.mrb[32].mxu1 }
 0x155   :  { %1457 = vst [vmem:[%s2043_s3 + $0x38] sm:$0xff] %v1344_v28   ;;  %1472 = vst [vmem:[%s2043_s3 + $0xb0] sm:$0xff] %v1419_v29   ;;  %v597_v32 = vadd.f32 %v1893_v11, %v596_v30  ;;  %v598_v33 = vpop.f32.mrb[33].mxu0  ;;  %v717_v34 = vadd.f32 %v1893_v11, %v716_v31  ;;  %v718_v35 = vpop.f32.mrb[33].mxu1 }
 0x156   :  { %v599_v36 = vpop.f32.mrb[34].mxu0  ;;  %v719_v37 = vpop.f32.mrb[34].mxu1 }
 0x157   :  { %v600_v38 = vadd.f32 %v1893_v11, %v599_v36  ;;  %v601_v39 = vpop.f32.mrb[35].mxu0  ;;  %v809_v40 = vmax.f32 %v717_v34, 0.0  ;;  %v720_v41 = vadd.f32 %v1893_v11, %v719_v37  ;;  %v721_v42 = vpop.f32.mrb[35].mxu1  ;;  %v779_v43 = vmax.f32 %v597_v32, 0.0 }
 0x159   :  { %v780_v44 = vmax.f32 %v600_v38, 0.0  ;;  %v810_v45 = vmax.f32 %v720_v41, 0.0 }
 0x15b   :  { %v1349_v46 = vpack.c.bf16 %v780_v44, %v779_v43  ;;  %v1424_v47 = vpack.c.bf16 %v810_v45, %v809_v40 }
 0x15c   :  { %v604_v48 = vpop.f32.mrb[36].mxu0  ;;  %v724_v49 = vpop.f32.mrb[36].mxu1 }
 0x15d   :  { %1458 = vst [vmem:[%s2043_s3 + $0x40] sm:$0xff] %v1349_v46   ;;  %1473 = vst [vmem:[%s2043_s3 + $0xb8] sm:$0xff] %v1424_v47   ;;  %v605_v50 = vadd.f32 %v1893_v11, %v604_v48  ;;  %v606_v51 = vpop.f32.mrb[37].mxu0  ;;  %v725_v52 = vadd.f32 %v1893_v11, %v724_v49  ;;  %v726_v53 = vpop.f32.mrb[37].mxu1 }
 0x15e   :  { %v607_v54 = vpop.f32.mrb[38].mxu0  ;;  %v727_v55 = vpop.f32.mrb[38].mxu1 }
 0x15f   :  { %v608_v56 = vadd.f32 %v1893_v11, %v607_v54  ;;  %v609_v57 = vpop.f32.mrb[39].mxu0  ;;  %v811_v58 = vmax.f32 %v725_v52, 0.0  ;;  %v728_v59 = vadd.f32 %v1893_v11, %v727_v55  ;;  %v729_v60 = vpop.f32.mrb[39].mxu1  ;;  %v781_v61 = vmax.f32 %v605_v50, 0.0 }
 0x161   :  { %v782_v62 = vmax.f32 %v608_v56, 0.0  ;;  %v812_v63 = vmax.f32 %v728_v59, 0.0 }
 0x163   :  { %v1354_v0 = vpack.c.bf16 %v782_v62, %v781_v61  ;;  %v1429_v1 = vpack.c.bf16 %v812_v63, %v811_v58 }
 0x164   :  { %v612_v2 = vpop.f32.mrb[40].mxu0  ;;  %v732_v3 = vpop.f32.mrb[40].mxu1 }
 0x165   :  { %1459 = vst [vmem:[%s2043_s3 + $0x48] sm:$0xff] %v1354_v0   ;;  %1474 = vst [vmem:[%s2043_s3 + $0xc0] sm:$0xff] %v1429_v1   ;;  %v613_v4 = vadd.f32 %v1893_v11, %v612_v2  ;;  %v614_v5 = vpop.f32.mrb[41].mxu0  ;;  %v733_v6 = vadd.f32 %v1893_v11, %v732_v3  ;;  %v734_v7 = vpop.f32.mrb[41].mxu1 }
 0x166   :  { %v615_v8 = vpop.f32.mrb[42].mxu0  ;;  %v735_v9 = vpop.f32.mrb[42].mxu1 }
 0x167   :  { %v616_v10 = vadd.f32 %v1893_v11, %v615_v8  ;;  %v617_v12 = vpop.f32.mrb[43].mxu0  ;;  %v813_v13 = vmax.f32 %v733_v6, 0.0  ;;  %v736_v14 = vadd.f32 %v1893_v11, %v735_v9  ;;  %v737_v15 = vpop.f32.mrb[43].mxu1  ;;  %v783_v16 = vmax.f32 %v613_v4, 0.0 }
 0x169   :  { %v784_v17 = vmax.f32 %v616_v10, 0.0  ;;  %v814_v18 = vmax.f32 %v736_v14, 0.0 }
 0x16b   :  { %v1359_v19 = vpack.c.bf16 %v784_v17, %v783_v16  ;;  %v1434_v20 = vpack.c.bf16 %v814_v18, %v813_v13 }
 0x16c   :  { %v620_v21 = vpop.f32.mrb[44].mxu0  ;;  %v740_v22 = vpop.f32.mrb[44].mxu1 }
 0x16d   :  { %1460 = vst [vmem:[%s2043_s3 + $0x50] sm:$0xff] %v1359_v19   ;;  %1475 = vst [vmem:[%s2043_s3 + $0xc8] sm:$0xff] %v1434_v20   ;;  %v621_v23 = vadd.f32 %v1893_v11, %v620_v21  ;;  %v622_v24 = vpop.f32.mrb[45].mxu0  ;;  %v741_v25 = vadd.f32 %v1893_v11, %v740_v22  ;;  %v742_v26 = vpop.f32.mrb[45].mxu1 }
 0x16e   :  { %v623_v27 = vpop.f32.mrb[46].mxu0  ;;  %v743_v28 = vpop.f32.mrb[46].mxu1 }
 0x16f   :  { %v624_v29 = vadd.f32 %v1893_v11, %v623_v27  ;;  %v625_v30 = vpop.f32.mrb[47].mxu0  ;;  %v815_v31 = vmax.f32 %v741_v25, 0.0  ;;  %v744_v32 = vadd.f32 %v1893_v11, %v743_v28  ;;  %v745_v33 = vpop.f32.mrb[47].mxu1  ;;  %v785_v34 = vmax.f32 %v621_v23, 0.0 }
 0x171   :  { %v786_v35 = vmax.f32 %v624_v29, 0.0  ;;  %v816_v36 = vmax.f32 %v744_v32, 0.0 }
 0x173   :  { %v1364_v37 = vpack.c.bf16 %v786_v35, %v785_v34  ;;  %v1439_v38 = vpack.c.bf16 %v816_v36, %v815_v31 }
 0x174   :  { %v628_v39 = vpop.f32.mrb[48].mxu0  ;;  %v748_v40 = vpop.f32.mrb[48].mxu1 }
 0x175   :  { %1461 = vst [vmem:[%s2043_s3 + $0x58] sm:$0xff] %v1364_v37   ;;  %1476 = vst [vmem:[%s2043_s3 + $0xd0] sm:$0xff] %v1439_v38   ;;  %v629_v41 = vadd.f32 %v1893_v11, %v628_v39  ;;  %v630_v42 = vpop.f32.mrb[49].mxu0  ;;  %v749_v43 = vadd.f32 %v1893_v11, %v748_v40  ;;  %v750_v44 = vpop.f32.mrb[49].mxu1 }
 0x176   :  { %v631_v45 = vpop.f32.mrb[50].mxu0  ;;  %v751_v46 = vpop.f32.mrb[50].mxu1 }
 0x177   :  { %v632_v47 = vadd.f32 %v1893_v11, %v631_v45  ;;  %v633_v48 = vpop.f32.mrb[51].mxu0  ;;  %v817_v49 = vmax.f32 %v749_v43, 0.0  ;;  %v752_v50 = vadd.f32 %v1893_v11, %v751_v46  ;;  %v753_v51 = vpop.f32.mrb[51].mxu1  ;;  %v787_v52 = vmax.f32 %v629_v41, 0.0 }
 0x179   :  { %v788_v53 = vmax.f32 %v632_v47, 0.0  ;;  %v818_v54 = vmax.f32 %v752_v50, 0.0 }
 0x17b   :  { %v1369_v55 = vpack.c.bf16 %v788_v53, %v787_v52  ;;  %v1444_v56 = vpack.c.bf16 %v818_v54, %v817_v49 }
 0x17c   :  { %v636_v57 = vpop.f32.mrb[52].mxu0  ;;  %v756_v58 = vpop.f32.mrb[52].mxu1 }
 0x17d   :  { %1462 = vst [vmem:[%s2043_s3 + $0x60] sm:$0xff] %v1369_v55   ;;  %1477 = vst [vmem:[%s2043_s3 + $0xd8] sm:$0xff] %v1444_v56   ;;  %v637_v59 = vadd.f32 %v1893_v11, %v636_v57  ;;  %v638_v60 = vpop.f32.mrb[53].mxu0  ;;  %v757_v61 = vadd.f32 %v1893_v11, %v756_v58  ;;  %v758_v62 = vpop.f32.mrb[53].mxu1 }
 0x17e   :  { %v639_v63 = vpop.f32.mrb[54].mxu0  ;;  %v759_v0 = vpop.f32.mrb[54].mxu1 }
 0x17f   :  { %v640_v1 = vadd.f32 %v1893_v11, %v639_v63  ;;  %v641_v2 = vpop.f32.mrb[55].mxu0  ;;  %v819_v3 = vmax.f32 %v757_v61, 0.0  ;;  %v760_v4 = vadd.f32 %v1893_v11, %v759_v0  ;;  %v761_v5 = vpop.f32.mrb[55].mxu1  ;;  %v789_v6 = vmax.f32 %v637_v59, 0.0 }
 0x181   :  { %v790_v7 = vmax.f32 %v640_v1, 0.0  ;;  %v820_v8 = vmax.f32 %v760_v4, 0.0 }
 0x183   :  { %v1374_v9 = vpack.c.bf16 %v790_v7, %v789_v6  ;;  %v1449_v10 = vpack.c.bf16 %v820_v8, %v819_v3 }
 0x184   :  { %v644_v12 = vpop.f32.mrb[56].mxu0 }
 0x185   :  { %1463 = vst [vmem:[%s2043_s3 + $0x68] sm:$0xff] %v1374_v9   ;;  %1478 = vst [vmem:[%s2043_s3 + $0xe0] sm:$0xff] %v1449_v10   ;;  %v645_v13 = vadd.f32 %v1893_v11, %v644_v12  ;;  %v646_v14 = vpop.f32.mrb[57].mxu0 }
 0x186   :  { %v647_v15 = vpop.f32.mrb[58].mxu0 }
 0x187   :  { %v648_v16 = vadd.f32 %v1893_v11, %v647_v15  ;;  %v649_v17 = vpop.f32.mrb[59].mxu0  ;;  %v791_v18 = vmax.f32 %v645_v13, 0.0 }
 0x189   :  { %v792_v19 = vmax.f32 %v648_v16, 0.0 }
 0x18b   :  { %v1379_v20 = vpack.c.bf16 %v792_v19, %v791_v18 }
 0x18d   :  { %1464 = vst [vmem:[%s2043_s3 + $0x70] sm:$0xff] %v1379_v20  }

// kernel: cvae_forward.4
= control target key start
LH: loop header
LB: loop body
LE: loop exit
PB: predicated region body
PF: predicated region fallthrough
CT: control target
= control target key end

     0   :  { %v4573_v0 = vmov 0   ;;  %v4574_v40 = vmov 0.0   ;;  %vm4575_vm0 = vmmov 0   ;;  %s5637_s1 = inlined_call_operand.vmem [shape: bf16[896,128], index: 1, kind: input, shape index: {}]   ;;  %s5638_s0 = inlined_call_operand.vmem [shape: bf16[464,896], index: 0, kind: input, shape index: {}]   ;;  %s5639_s2 = inlined_call_operand.vmem [shape: f32[1,128], index: 2, kind: input, shape index: {}]   ;;  %s5640_s3 = inlined_call_operand.vmem [shape: bf16[464,128], index: 3, kind: output, shape index: {}]  }
   0x1   :  { %1746 = vmatprep.subr.bf16.mxu1 %v4573_v0  ;;  %2276 = vmatprep.subr.bf16.mxu0 %v4573_v0  ;;  %v4227_v1 = vld [vmem:[%s5637_s1] sm:$0xff]   ;;  %v4229_v3 = vld [vmem:[%s5637_s1 + $0x8] sm:$0xff]   ;;  %v4231_v5 = vld [vmem:[%s5637_s1 + $0x10] sm:$0xff]  }
   0x2   :  { %v4228_v2 = vld [vmem:[%s5637_s1 + $0x100] sm:$0xff]   ;;  %1747 = vmatpush1.bf16.msra.mxu1 %v4227_v1  ;;  %v4230_v4 = vld [vmem:[%s5637_s1 + $0x108] sm:$0xff]   ;;  %v4232_v6 = vld [vmem:[%s5637_s1 + $0x110] sm:$0xff]  }
   0x3   :  { %2277 = vmatpush1.bf16.msra.mxu0 %v4228_v2  ;;  %1748 = vmatprep.subr.bf16.mxu1 %v4573_v0  ;;  %v4233_v7 = vld [vmem:[%s5637_s1 + $0x18] sm:$0xff]   ;;  %v4235_v9 = vld [vmem:[%s5637_s1 + $0x20] sm:$0xff]   ;;  %v4237_v11 = vld [vmem:[%s5637_s1 + $0x28] sm:$0xff]  }
   0x4   :  { %2278 = vmatprep.subr.bf16.mxu0 %v4573_v0  ;;  %v4234_v8 = vld [vmem:[%s5637_s1 + $0x118] sm:$0xff]   ;;  %v4236_v10 = vld [vmem:[%s5637_s1 + $0x120] sm:$0xff]   ;;  %v4238_v12 = vld [vmem:[%s5637_s1 + $0x128] sm:$0xff]  }
   0x5   :  { %v4239_v13 = vld [vmem:[%s5637_s1 + $0x30] sm:$0xff]   ;;  %v4241_v15 = vld [vmem:[%s5637_s1 + $0x38] sm:$0xff]   ;;  %v4243_v17 = vld [vmem:[%s5637_s1 + $0x40] sm:$0xff]  }
   0x6   :  { %1749 = vmatpush1.bf16.msra.mxu1 %v4229_v3  ;;  %v4240_v14 = vld [vmem:[%s5637_s1 + $0x130] sm:$0xff]   ;;  %v4242_v16 = vld [vmem:[%s5637_s1 + $0x138] sm:$0xff]   ;;  %v4244_v18 = vld [vmem:[%s5637_s1 + $0x140] sm:$0xff]  }
   0x7   :  { %2279 = vmatpush1.bf16.msra.mxu0 %v4230_v4  ;;  %1750 = vmatprep.subr.bf16.mxu1 %v4573_v0  ;;  %v4261_v19 = vld [vmem:[%s5638_s0 + $0x4] ss:$28 sps:$4 sm:$0xff]   ;;  %v4245_v20 = vld [vmem:[%s5637_s1 + $0x48] sm:$0xff]   ;;  %v4264_v21 = vld [vmem:[%s5638_s0 + $0x14] ss:$28 sps:$4 sm:$0xff]  }
   0x8   :  { %2280 = vmatprep.subr.bf16.mxu0 %v4573_v0  ;;  %v4246_v22 = vld [vmem:[%s5637_s1 + $0x148] sm:$0xff]   ;;  %1778 = vmatprep.mubr.bf16.mxu1 %v4261_v19  ;;  %v4247_v23 = vld [vmem:[%s5637_s1 + $0x50] sm:$0xff]   ;;  %v4249_v25 = vld [vmem:[%s5637_s1 + $0x58] sm:$0xff]  }
   0x9   :  { %2308 = vmatprep.mubr.bf16.mxu0 %v4264_v21  ;;  %v4248_v24 = vld [vmem:[%s5637_s1 + $0x150] sm:$0xff]   ;;  %v4250_v26 = vld [vmem:[%s5637_s1 + $0x158] sm:$0xff]   ;;  %v4251_v27 = vld [vmem:[%s5637_s1 + $0x60] sm:$0xff]  }
   0xa   :  { %1751 = vmatpush1.bf16.msra.mxu1 %v4231_v5  ;;  %v4252_v28 = vld [vmem:[%s5637_s1 + $0x160] sm:$0xff]   ;;  %v4253_v29 = vld [vmem:[%s5637_s1 + $0x68] sm:$0xff]   ;;  %v4255_v31 = vld [vmem:[%s5637_s1 + $0x70] sm:$0xff]  }
   0xb   :  { %2281 = vmatpush1.bf16.msra.mxu0 %v4232_v6  ;;  %1752 = vmatprep.subr.bf16.mxu1 %v4573_v0  ;;  %v4254_v30 = vld [vmem:[%s5637_s1 + $0x168] sm:$0xff]   ;;  %v4256_v32 = vld [vmem:[%s5637_s1 + $0x170] sm:$0xff]   ;;  %v4257_v33 = vld [vmem:[%s5637_s1 + $0x78] sm:$0xff]  }
   0xc   :  { %2282 = vmatprep.subr.bf16.mxu0 %v4573_v0  ;;  %v4258_v34 = vld [vmem:[%s5637_s1 + $0x178] sm:$0xff]   ;;  %v4262_v36 = vld [vmem:[%s5638_s0 + $0x10] ss:$28 sps:$4 sm:$0xff]   ;;  %v4265_v37 = vld [vmem:[%s5637_s1 + $0x80] sm:$0xff]  }
   0xd   :  { %v4259_v35 = vld [vmem:[%s5638_s0] ss:$28 sps:$4 sm:$0xff]   ;;  %v4269_v41 = vld [vmem:[%s5638_s0 + $0x4c] ss:$28 sps:$4 sm:$0xff]   ;;  %v4271_v44 = vld [vmem:[%s5638_s0 + $0x38] ss:$28 sps:$4 sm:$0xff]  }
   0xe   :  { %1753 = vmatpush1.bf16.msra.mxu1 %v4233_v7  ;;  %v4266_v38 = vld [vmem:[%s5637_s1 + $0x180] sm:$0xff]   ;;  %v4267_v39 = vld [vmem:[%s5638_s0 + $0x3c] ss:$28 sps:$4 sm:$0xff]   ;;  %v4278_v42 = vld [vmem:[%s5637_s1 + $0x88] sm:$0xff]  }
   0xf   :  { %2283 = vmatpush1.bf16.msra.mxu0 %v4234_v8  ;;  %1754 = vmatprep.subr.bf16.mxu1 %v4573_v0  ;;  %v4293_v43 = vld [vmem:[%s5637_s1 + $0x188] sm:$0xff]   ;;  %v4273_v46 = vld [vmem:[%s5638_s0 + $0x74] ss:$28 sps:$4 sm:$0xff]   ;;  %v4275_v47 = vld [vmem:[%s5638_s0 + $0x84] ss:$28 sps:$4 sm:$0xff]  }
  0x10   :  { %2284 = vmatprep.subr.bf16.mxu0 %v4573_v0  ;;  %v4272_v45 = vld [vmem:[%s5638_s0 + $0x48] ss:$28 sps:$4 sm:$0xff]   ;;  %v4286_v48 = vld [vmem:[%s5637_s1 + $0x90] sm:$0xff]   ;;  %v4300_v51 = vld [vmem:[%s5637_s1 + $0x98] sm:$0xff]  }
  0x11   :  { %v4314_v49 = vld [vmem:[%s5637_s1 + $0x190] sm:$0xff]   ;;  %v4341_v52 = vld [vmem:[%s5637_s1 + $0x198] sm:$0xff]   ;;  %v4280_v54 = vld [vmem:[%s5638_s0 + $0xac] ss:$28 sps:$4 sm:$0xff]  }
  0x12   :  { %1755 = vmatpush1.bf16.msra.mxu1 %v4235_v9  ;;  %v4277_v50 = vld [vmem:[%s5638_s0 + $0x70] ss:$28 sps:$4 sm:$0xff]   ;;  %v4279_v53 = vld [vmem:[%s5638_s0 + $0x80] ss:$28 sps:$4 sm:$0xff]   ;;  %v4284_v57 = vld [vmem:[%s5638_s0 + $0xa8] ss:$28 sps:$4 sm:$0xff]  }
  0x13   :  { %2285 = vmatpush1.bf16.msra.mxu0 %v4236_v10  ;;  %1756 = vmatprep.subr.bf16.mxu1 %v4573_v0  ;;  %v4282_v55 = vld [vmem:[%s5638_s0 + $0xbc] ss:$28 sps:$4 sm:$0xff]   ;;  %v4313_v56 = vld [vmem:[%s5637_s1 + $0xa0] sm:$0xff]   ;;  %v4327_v58 = vld [vmem:[%s5637_s1 + $0xa8] sm:$0xff]  }
  0x14   :  { %2286 = vmatprep.subr.bf16.mxu0 %v4573_v0  ;;  %v4285_v59 = vld [vmem:[%s5638_s0 + $0xb8] ss:$28 sps:$4 sm:$0xff]   ;;  %v4287_v60 = vld [vmem:[%s5638_s0 + $0xe4] ss:$28 sps:$4 sm:$0xff]   ;;  %v4292_v3 = vld [vmem:[%s5638_s0 + $0xf0] ss:$28 sps:$4 sm:$0xff]  }
  0x15   :  { %v4289_v61 = vld [vmem:[%s5638_s0 + $0xf4] ss:$28 sps:$4 sm:$0xff]   ;;  %v4366_v63 = vld [vmem:[%s5637_s1 + $0x1a0] sm:$0xff]   ;;  %v4350_v1 = vld [vmem:[%s5637_s1 + $0xb8] sm:$0xff]  }
  0x16   :  { %1757 = vmatpush1.bf16.msra.mxu1 %v4237_v11  ;;  %v4339_v62 = vld [vmem:[%s5637_s1 + $0xb0] sm:$0xff]   ;;  %v4291_v2 = vld [vmem:[%s5638_s0 + $0xe0] ss:$28 sps:$4 sm:$0xff]   ;;  %v4296_v5 = vld [vmem:[%s5638_s0 + $0x12c] ss:$28 sps:$4 sm:$0xff]  }
  0x17   :  { %2287 = vmatpush1.bf16.msra.mxu0 %v4238_v12  ;;  %1758 = vmatprep.subr.bf16.mxu1 %v4573_v0  ;;  %v4294_v4 = vld [vmem:[%s5638_s0 + $0x11c] ss:$28 sps:$4 sm:$0xff]   ;;  %v4361_v6 = vld [vmem:[%s5637_s1 + $0xc0] sm:$0xff]   ;;  %v4375_v7 = vld [vmem:[%s5637_s1 + $0xc8] sm:$0xff]  }
  0x18   :  { %2288 = vmatprep.subr.bf16.mxu0 %v4573_v0  ;;  %v4389_v8 = vld [vmem:[%s5637_s1 + $0x1a8] sm:$0xff]   ;;  %v4298_v9 = vld [vmem:[%s5638_s0 + $0x118] ss:$28 sps:$4 sm:$0xff]   ;;  %v4303_v12 = vld [vmem:[%s5638_s0 + $0x164] ss:$28 sps:$4 sm:$0xff]  }
  0x19   :  { %v4299_v10 = vld [vmem:[%s5638_s0 + $0x128] ss:$28 sps:$4 sm:$0xff]   ;;  %v4301_v11 = vld [vmem:[%s5638_s0 + $0x154] ss:$28 sps:$4 sm:$0xff]  }
  0x1a   :  { %1759 = vmatpush1.bf16.msra.mxu1 %v4239_v13  ;;  %v4388_v13 = vld [vmem:[%s5637_s1 + $0xd0] sm:$0xff]   ;;  %v4411_v19 = vld [vmem:[%s5637_s1 + $0xe0] sm:$0xff]  }
  0x1b   :  { %2289 = vmatpush1.bf16.msra.mxu0 %v4240_v14  ;;  %1760 = vmatprep.subr.bf16.mxu1 %v4573_v0  ;;  %v4402_v14 = vld [vmem:[%s5637_s1 + $0xd8] sm:$0xff]   ;;  %v4311_v21 = vld [vmem:[%s5638_s0 + $0x188] ss:$28 sps:$4 sm:$0xff]  }
  0x1c   :  { %2290 = vmatprep.subr.bf16.mxu0 %v4573_v0 }
  0x1e   :  { %1761 = vmatpush1.bf16.msra.mxu1 %v4241_v15  ;;  %v4305_v15 = vld [vmem:[%s5638_s0 + $0x150] ss:$28 sps:$4 sm:$0xff]  }
  0x1f   :  { %2291 = vmatpush1.bf16.msra.mxu0 %v4242_v16  ;;  %1762 = vmatprep.subr.bf16.mxu1 %v4573_v0  ;;  %v4306_v16 = vld [vmem:[%s5638_s0 + $0x160] ss:$28 sps:$4 sm:$0xff]  }
  0x20   :  { %2292 = vmatprep.subr.bf16.mxu0 %v4573_v0 }
  0x22   :  { %1763 = vmatpush1.bf16.msra.mxu1 %v4243_v17  ;;  %v4307_v17 = vld [vmem:[%s5638_s0 + $0x18c] ss:$28 sps:$4 sm:$0xff]  }
  0x23   :  { %2293 = vmatpush1.bf16.msra.mxu0 %v4244_v18  ;;  %1764 = vmatprep.subr.bf16.mxu1 %v4573_v0  ;;  %v4309_v18 = vld [vmem:[%s5638_s0 + $0x19c] ss:$28 sps:$4 sm:$0xff]  }
  0x24   :  { %2294 = vmatprep.subr.bf16.mxu0 %v4573_v0 }
  0x26   :  { %1765 = vmatpush1.bf16.msra.mxu1 %v4245_v20  ;;  %v4416_v20 = vld [vmem:[%s5637_s1 + $0x1b0] sm:$0xff]  }
  0x27   :  { %2295 = vmatpush1.bf16.msra.mxu0 %v4246_v22  ;;  %1766 = vmatprep.subr.bf16.mxu1 %v4573_v0  ;;  %v4312_v22 = vld [vmem:[%s5638_s0 + $0x198] ss:$28 sps:$4 sm:$0xff]  }
  0x28   :  { %2296 = vmatprep.subr.bf16.mxu0 %v4573_v0 }
  0x2a   :  { %1767 = vmatpush1.bf16.msra.mxu1 %v4247_v23  ;;  %v4315_v23 = vld [vmem:[%s5638_s0 + $0x1c4] ss:$28 sps:$4 sm:$0xff]  }
  0x2b   :  { %2297 = vmatpush1.bf16.msra.mxu0 %v4248_v24  ;;  %1768 = vmatprep.subr.bf16.mxu1 %v4573_v0  ;;  %v4317_v24 = vld [vmem:[%s5638_s0 + $0x1d4] ss:$28 sps:$4 sm:$0xff]  }
  0x2c   :  { %2298 = vmatprep.subr.bf16.mxu0 %v4573_v0 }
  0x2e   :  { %1769 = vmatpush1.bf16.msra.mxu1 %v4249_v25  ;;  %v4423_v25 = vld [vmem:[%s5637_s1 + $0xe8] sm:$0xff]  }
  0x2f   :  { %2299 = vmatpush1.bf16.msra.mxu0 %v4250_v26  ;;  %1770 = vmatprep.subr.bf16.mxu1 %v4573_v0  ;;  %v4319_v26 = vld [vmem:[%s5638_s0 + $0x1c0] ss:$28 sps:$4 sm:$0xff]  }
  0x30   :  { %2300 = vmatprep.subr.bf16.mxu0 %v4573_v0 }
  0x32   :  { %1771 = vmatpush1.bf16.msra.mxu1 %v4251_v27  ;;  %v4320_v27 = vld [vmem:[%s5638_s0 + $0x1d0] ss:$28 sps:$4 sm:$0xff]  }
  0x33   :  { %2301 = vmatpush1.bf16.msra.mxu0 %v4252_v28  ;;  %1772 = vmatprep.subr.bf16.mxu1 %v4573_v0  ;;  %v4321_v28 = vld [vmem:[%s5638_s0 + $0x1fc] ss:$28 sps:$4 sm:$0xff]  }
  0x34   :  { %2302 = vmatprep.subr.bf16.mxu0 %v4573_v0 }
  0x36   :  { %1773 = vmatpush1.bf16.msra.mxu1 %v4253_v29  ;;  %v4323_v29 = vld [vmem:[%s5638_s0 + $0x20c] ss:$28 sps:$4 sm:$0xff]  }
  0x37   :  { %2303 = vmatpush1.bf16.msra.mxu0 %v4254_v30  ;;  %1774 = vmatprep.subr.bf16.mxu1 %v4573_v0  ;;  %v4325_v30 = vld [vmem:[%s5638_s0 + $0x1f8] ss:$28 sps:$4 sm:$0xff]  }
  0x38   :  { %2304 = vmatprep.subr.bf16.mxu0 %v4573_v0 }
  0x3a   :  { %1775 = vmatpush1.bf16.msra.mxu1 %v4255_v31  ;;  %v4326_v31 = vld [vmem:[%s5638_s0 + $0x208] ss:$28 sps:$4 sm:$0xff]  }
  0x3b   :  { %2305 = vmatpush1.bf16.msra.mxu0 %v4256_v32  ;;  %1776 = vmatprep.subr.bf16.mxu1 %v4573_v0  ;;  %v4328_v32 = vld [vmem:[%s5638_s0 + $0x234] ss:$28 sps:$4 sm:$0xff]  }
  0x3c   :  { %2306 = vmatprep.subr.bf16.mxu0 %v4573_v0 }
  0x3e   :  { %1777 = vmatpush1.bf16.msra.mxu1 %v4257_v33  ;;  %v4330_v33 = vld [vmem:[%s5638_s0 + $0x244] ss:$28 sps:$4 sm:$0xff]  }
  0x3f   :  { %2307 = vmatpush1.bf16.msra.mxu0 %v4258_v34  ;;  %2011 = vmatprep.subr.bf16.mxu1 %v4573_v0  ;;  %v4436_v34 = vld [vmem:[%s5637_s1 + $0xf0] sm:$0xff]  }
  0x40   :  { %3744 = vmatprep.subr.bf16.mxu0 %v4574_v40 }
  0x41   :  { %1779 = vmatmul.mubr.bf16.vlgmr.msra.gmra.mrb[0].mxu1 %v4259_v35  ;;  %v4437_v35 = vld [vmem:[%s5637_s1 + $0x1b8] sm:$0xff]  }
  0x42   :  { %2309 = vmatmul.mubr.bf16.vlgmr.msra.gmra.mrb[0].mxu0 %v4262_v36  ;;  %2012 = vmatpush1.bf16.msra.mxu1 %v4265_v37  ;;  %v4332_v36 = vld [vmem:[%s5638_s0 + $0x230] ss:$28 sps:$4 sm:$0xff]   ;;  %v4333_v37 = vld [vmem:[%s5638_s0 + $0x240] ss:$28 sps:$4 sm:$0xff]  }
  0x43   :  { %3745 = vmatpush3.bf16.msra.mxu0 %v4266_v38  ;;  %1786 = vmatprep.mubr.bf16.mxu1 %v4267_v39  ;;  %v4334_v38 = vld [vmem:[%s5638_s0 + $0x26c] ss:$28 sps:$4 sm:$0xff]   ;;  %v4336_v39 = vld [vmem:[%s5638_s0 + $0x27c] ss:$28 sps:$4 sm:$0xff]  }
  0x44   :  { %2316 = vmatprep.mubr.bf16.mxu0 %v4269_v41  ;;  %2013 = vmatprep.subr.bf16.mxu1 %v4573_v0  ;;  %v4338_v41 = vld [vmem:[%s5638_s0 + $0x268] ss:$28 sps:$4 sm:$0xff]  }
  0x45   :  { %3746 = vmatprep.subr.bf16.mxu0 %v4574_v40 }
  0x46   :  { %2014 = vmatpush1.bf16.msra.mxu1 %v4278_v42  ;;  %v4340_v42 = vld [vmem:[%s5638_s0 + $0x278] ss:$28 sps:$4 sm:$0xff]  }
  0x47   :  { %2015 = vmatprep.subr.bf16.mxu1 %v4573_v0  ;;  %3747 = vmatpush3.bf16.msra.mxu0 %v4293_v43  ;;  %v4342_v43 = vld [vmem:[%s5638_s0 + $0x2a4] ss:$28 sps:$4 sm:$0xff]  }
  0x48   :  { %3748 = vmatprep.subr.bf16.mxu0 %v4574_v40 }
  0x49   :  { %1787 = vmatmul.mubr.bf16.gmra.mrb[4].mxu1 %v4271_v44  ;;  %v4450_v44 = vld [vmem:[%s5637_s1 + $0xf8] sm:$0xff]  }
  0x4a   :  { %2317 = vmatmul.mubr.bf16.gmra.mrb[4].mxu0 %v4272_v45  ;;  %1794 = vmatprep.mubr.bf16.mxu1 %v4273_v46  ;;  %v4346_v45 = vld [vmem:[%s5638_s0 + $0x2a0] ss:$28 sps:$4 sm:$0xff]   ;;  %v4347_v46 = vld [vmem:[%s5638_s0 + $0x2b0] ss:$28 sps:$4 sm:$0xff]  }
  0x4b   :  { %2324 = vmatprep.mubr.bf16.mxu0 %v4275_v47  ;;  %2016 = vmatpush1.bf16.msra.mxu1 %v4286_v48  ;;  %v4348_v47 = vld [vmem:[%s5638_s0 + $0x2dc] ss:$28 sps:$4 sm:$0xff]   ;;  %v4351_v48 = vld [vmem:[%s5638_s0 + $0x2ec] ss:$28 sps:$4 sm:$0xff]  }
  0x4c   :  { %2017 = vmatprep.subr.bf16.mxu1 %v4573_v0  ;;  %3749 = vmatpush3.bf16.msra.mxu0 %v4314_v49  ;;  %v4353_v49 = vld [vmem:[%s5638_s0 + $0x2d8] ss:$28 sps:$4 sm:$0xff]  }
  0x4d   :  { %3750 = vmatprep.subr.bf16.mxu0 %v4574_v40 }
  0x4f   :  { %2018 = vmatpush1.bf16.msra.mxu1 %v4300_v51  ;;  %v4355_v51 = vld [vmem:[%s5638_s0 + $0x314] ss:$28 sps:$4 sm:$0xff]  }
  0x50   :  { %2019 = vmatprep.subr.bf16.mxu1 %v4573_v0  ;;  %3751 = vmatpush3.bf16.msra.mxu0 %v4341_v52  ;;  %v4357_v52 = vld [vmem:[%s5638_s0 + $0x324] ss:$28 sps:$4 sm:$0xff]  }
  0x51   :  { %1795 = vmatmul.mubr.bf16.gmra.mrb[8].mxu1 %v4277_v50  ;;  %3752 = vmatprep.subr.bf16.mxu0 %v4574_v40  ;;  %v4354_v50 = vld [vmem:[%s5638_s0 + $0x2e8] ss:$28 sps:$4 sm:$0xff]  }
  0x52   :  { %2325 = vmatmul.mubr.bf16.gmra.mrb[8].mxu0 %v4279_v53  ;;  %1802 = vmatprep.mubr.bf16.mxu1 %v4280_v54  ;;  %v4359_v53 = vld [vmem:[%s5638_s0 + $0x310] ss:$28 sps:$4 sm:$0xff]   ;;  %v4360_v54 = vld [vmem:[%s5638_s0 + $0x320] ss:$28 sps:$4 sm:$0xff]  }
  0x53   :  { %2332 = vmatprep.mubr.bf16.mxu0 %v4282_v55  ;;  %2020 = vmatpush1.bf16.msra.mxu1 %v4313_v56  ;;  %v4362_v55 = vld [vmem:[%s5638_s0 + $0x34c] ss:$28 sps:$4 sm:$0xff]   ;;  %v4364_v56 = vld [vmem:[%s5638_s0 + $0x35c] ss:$28 sps:$4 sm:$0xff]  }
  0x54   :  { %2021 = vmatprep.subr.bf16.mxu1 %v4573_v0  ;;  %3753 = vmatpush3.bf16.msra.mxu0 %v4366_v63  ;;  %v4376_v63 = vld [vmem:[%s5638_s0 + $0x3bc] ss:$28 sps:$4 sm:$0xff]  }
  0x55   :  { %3754 = vmatprep.subr.bf16.mxu0 %v4574_v40 }
  0x57   :  { %2022 = vmatpush1.bf16.msra.mxu1 %v4327_v58  ;;  %v4368_v58 = vld [vmem:[%s5638_s0 + $0x358] ss:$28 sps:$4 sm:$0xff]  }
  0x58   :  { %2023 = vmatprep.subr.bf16.mxu1 %v4573_v0  ;;  %3755 = vmatpush3.bf16.msra.mxu0 %v4389_v8  ;;  %v4390_v8 = vld [vmem:[%s5638_s0 + $0x42c] ss:$28 sps:$4 sm:$0xff]  }
  0x59   :  { %1803 = vmatmul.mubr.bf16.gmra.mrb[12].mxu1 %v4284_v57  ;;  %3756 = vmatprep.subr.bf16.mxu0 %v4574_v40  ;;  %v4367_v57 = vld [vmem:[%s5638_s0 + $0x348] ss:$28 sps:$4 sm:$0xff]  }
  0x5a   :  { %2333 = vmatmul.mubr.bf16.gmra.mrb[12].mxu0 %v4285_v59  ;;  %1810 = vmatprep.mubr.bf16.mxu1 %v4287_v60  ;;  %v4369_v59 = vld [vmem:[%s5638_s0 + $0x384] ss:$28 sps:$4 sm:$0xff]   ;;  %v4371_v60 = vld [vmem:[%s5638_s0 + $0x394] ss:$28 sps:$4 sm:$0xff]  }
  0x5b   :  { %2340 = vmatprep.mubr.bf16.mxu0 %v4289_v61  ;;  %2024 = vmatpush1.bf16.msra.mxu1 %v4339_v62  ;;  %v4373_v61 = vld [vmem:[%s5638_s0 + $0x380] ss:$28 sps:$4 sm:$0xff]   ;;  %v4374_v62 = vld [vmem:[%s5638_s0 + $0x390] ss:$28 sps:$4 sm:$0xff]  }
  0x5c   :  { %2025 = vmatprep.subr.bf16.mxu1 %v4573_v0  ;;  %3757 = vmatpush3.bf16.msra.mxu0 %v4416_v20  ;;  %v4409_v20 = vld [vmem:[%s5638_s0 + $0x4d4] ss:$28 sps:$4 sm:$0xff]  }
  0x5d   :  { %3758 = vmatprep.subr.bf16.mxu0 %v4574_v40 }
  0x5f   :  { %2026 = vmatpush1.bf16.msra.mxu1 %v4350_v1  ;;  %v4378_v1 = vld [vmem:[%s5638_s0 + $0x3cc] ss:$28 sps:$4 sm:$0xff]  }
  0x60   :  { %2027 = vmatprep.subr.bf16.mxu1 %v4573_v0  ;;  %3759 = vmatpush3.bf16.msra.mxu0 %v4437_v35  ;;  %v4435_v35 = vld [vmem:[%s5638_s0 + $0x588] ss:$28 sps:$4 sm:$0xff]  }
  0x61   :  { %1811 = vmatmul.mubr.bf16.gmra.mrb[16].mxu1 %v4291_v2  ;;  %v4380_v2 = vld [vmem:[%s5638_s0 + $0x3b8] ss:$28 sps:$4 sm:$0xff]  }
  0x62   :  { %2341 = vmatmul.mubr.bf16.gmra.mrb[16].mxu0 %v4292_v3  ;;  %1818 = vmatprep.mubr.bf16.mxu1 %v4294_v4  ;;  %v4381_v3 = vld [vmem:[%s5638_s0 + $0x3c8] ss:$28 sps:$4 sm:$0xff]   ;;  %v4382_v4 = vld [vmem:[%s5638_s0 + $0x3f4] ss:$28 sps:$4 sm:$0xff]  }
  0x63   :  { %2348 = vmatprep.mubr.bf16.mxu0 %v4296_v5  ;;  %2028 = vmatpush1.bf16.msra.mxu1 %v4361_v6  ;;  %v4384_v5 = vld [vmem:[%s5638_s0 + $0x404] ss:$28 sps:$4 sm:$0xff]   ;;  %v4386_v6 = vld [vmem:[%s5638_s0 + $0x3f0] ss:$28 sps:$4 sm:$0xff]  }
  0x64   :  { %2029 = vmatprep.subr.bf16.mxu1 %v4573_v0 }
  0x67   :  { %2030 = vmatpush1.bf16.msra.mxu1 %v4375_v7  ;;  %v4387_v7 = vld [vmem:[%s5638_s0 + $0x400] ss:$28 sps:$4 sm:$0xff]  }
  0x68   :  { %2031 = vmatprep.subr.bf16.mxu1 %v4573_v0 }
  0x69   :  { %1819 = vmatmul.mubr.bf16.gmra.mrb[20].mxu1 %v4298_v9  ;;  %v4392_v9 = vld [vmem:[%s5638_s0 + $0x43c] ss:$28 sps:$4 sm:$0xff]  }
  0x6a   :  { %2349 = vmatmul.mubr.bf16.gmra.mrb[20].mxu0 %v4299_v10  ;;  %1826 = vmatprep.mubr.bf16.mxu1 %v4301_v11  ;;  %v4394_v10 = vld [vmem:[%s5638_s0 + $0x428] ss:$28 sps:$4 sm:$0xff]   ;;  %v4395_v11 = vld [vmem:[%s5638_s0 + $0x438] ss:$28 sps:$4 sm:$0xff]  }
  0x6b   :  { %2356 = vmatprep.mubr.bf16.mxu0 %v4303_v12  ;;  %2032 = vmatpush1.bf16.msra.mxu1 %v4388_v13  ;;  %v4396_v12 = vld [vmem:[%s5638_s0 + $0x464] ss:$28 sps:$4 sm:$0xff]   ;;  %v4398_v13 = vld [vmem:[%s5638_s0 + $0x474] ss:$28 sps:$4 sm:$0xff]  }
  0x6c   :  { %2033 = vmatprep.subr.bf16.mxu1 %v4573_v0 }
  0x6f   :  { %2034 = vmatpush1.bf16.msra.mxu1 %v4402_v14  ;;  %v4400_v14 = vld [vmem:[%s5638_s0 + $0x460] ss:$28 sps:$4 sm:$0xff]  }
  0x70   :  { %2035 = vmatprep.subr.bf16.mxu1 %v4573_v0 }
  0x71   :  { %1827 = vmatmul.mubr.bf16.gmra.mrb[24].mxu1 %v4305_v15  ;;  %v4401_v15 = vld [vmem:[%s5638_s0 + $0x470] ss:$28 sps:$4 sm:$0xff]  }
  0x72   :  { %2357 = vmatmul.mubr.bf16.gmra.mrb[24].mxu0 %v4306_v16  ;;  %1834 = vmatprep.mubr.bf16.mxu1 %v4307_v17  ;;  %v4403_v16 = vld [vmem:[%s5638_s0 + $0x49c] ss:$28 sps:$4 sm:$0xff]   ;;  %v4405_v17 = vld [vmem:[%s5638_s0 + $0x4ac] ss:$28 sps:$4 sm:$0xff]  }
  0x73   :  { %2364 = vmatprep.mubr.bf16.mxu0 %v4309_v18  ;;  %2036 = vmatpush1.bf16.msra.mxu1 %v4411_v19  ;;  %v4407_v18 = vld [vmem:[%s5638_s0 + $0x498] ss:$28 sps:$4 sm:$0xff]   ;;  %v4408_v19 = vld [vmem:[%s5638_s0 + $0x4a8] ss:$28 sps:$4 sm:$0xff]  }
  0x74   :  { %2037 = vmatprep.subr.bf16.mxu1 %v4573_v0 }
  0x77   :  { %2038 = vmatpush1.bf16.msra.mxu1 %v4423_v25  ;;  %v4419_v25 = vld [vmem:[%s5638_s0 + $0x51c] ss:$28 sps:$4 sm:$0xff]  }
  0x78   :  { %2039 = vmatprep.subr.bf16.mxu1 %v4573_v0 }
  0x79   :  { %1835 = vmatmul.mubr.bf16.gmra.mrb[28].mxu1 %v4311_v21  ;;  %v4412_v21 = vld [vmem:[%s5638_s0 + $0x4e4] ss:$28 sps:$4 sm:$0xff]  }
  0x7a   :  { %2365 = vmatmul.mubr.bf16.gmra.mrb[28].mxu0 %v4312_v22  ;;  %1842 = vmatprep.mubr.bf16.mxu1 %v4315_v23  ;;  %v4414_v22 = vld [vmem:[%s5638_s0 + $0x4d0] ss:$28 sps:$4 sm:$0xff]   ;;  %v4415_v23 = vld [vmem:[%s5638_s0 + $0x4e0] ss:$28 sps:$4 sm:$0xff]  }
  0x7b   :  { %2372 = vmatprep.mubr.bf16.mxu0 %v4317_v24  ;;  %2040 = vmatpush1.bf16.msra.mxu1 %v4436_v34  ;;  %v4417_v24 = vld [vmem:[%s5638_s0 + $0x50c] ss:$28 sps:$4 sm:$0xff]   ;;  %v4434_v34 = vld [vmem:[%s5638_s0 + $0x578] ss:$28 sps:$4 sm:$0xff]  }
  0x7c   :  { %2041 = vmatprep.subr.bf16.mxu1 %v4573_v0  ;;  %v4344_v0 = vld [vmem:[%s5638_s0 + $0x2b4] ss:$28 sps:$4 sm:$0xff]  }
  0x7f   :  { %2042 = vmatpush1.bf16.msra.mxu1 %v4450_v44  ;;  %v4451_v44 = vld [vmem:[%s5638_s0 + $0x624] ss:$28 sps:$4 sm:$0xff]  }
  0x81   :  { %1843 = vmatmul.mubr.bf16.gmra.mrb[32].mxu1 %v4319_v26  ;;  %v4421_v26 = vld [vmem:[%s5638_s0 + $0x508] ss:$28 sps:$4 sm:$0xff]  }
  0x82   :  { %2373 = vmatmul.mubr.bf16.gmra.mrb[32].mxu0 %v4320_v27  ;;  %1850 = vmatprep.mubr.bf16.mxu1 %v4321_v28  ;;  %v4422_v27 = vld [vmem:[%s5638_s0 + $0x518] ss:$28 sps:$4 sm:$0xff]   ;;  %v4424_v28 = vld [vmem:[%s5638_s0 + $0x544] ss:$28 sps:$4 sm:$0xff]  }
  0x83   :  { %2380 = vmatprep.mubr.bf16.mxu0 %v4323_v29  ;;  %v4426_v29 = vld [vmem:[%s5638_s0 + $0x554] ss:$28 sps:$4 sm:$0xff]  }
  0x89   :  { %1851 = vmatmul.mubr.bf16.gmra.mrb[36].mxu1 %v4325_v30  ;;  %v4428_v30 = vld [vmem:[%s5638_s0 + $0x540] ss:$28 sps:$4 sm:$0xff]  }
  0x8a   :  { %2381 = vmatmul.mubr.bf16.gmra.mrb[36].mxu0 %v4326_v31  ;;  %1858 = vmatprep.mubr.bf16.mxu1 %v4328_v32  ;;  %v4429_v31 = vld [vmem:[%s5638_s0 + $0x550] ss:$28 sps:$4 sm:$0xff]   ;;  %v4430_v32 = vld [vmem:[%s5638_s0 + $0x57c] ss:$28 sps:$4 sm:$0xff]  }
  0x8b   :  { %2388 = vmatprep.mubr.bf16.mxu0 %v4330_v33  ;;  %v4432_v33 = vld [vmem:[%s5638_s0 + $0x58c] ss:$28 sps:$4 sm:$0xff]  }
  0x91   :  { %1859 = vmatmul.mubr.bf16.gmra.mrb[40].mxu1 %v4332_v36  ;;  %v4438_v36 = vld [vmem:[%s5638_s0 + $0x5b4] ss:$28 sps:$4 sm:$0xff]  }
  0x92   :  { %2389 = vmatmul.mubr.bf16.gmra.mrb[40].mxu0 %v4333_v37  ;;  %1866 = vmatprep.mubr.bf16.mxu1 %v4334_v38  ;;  %v4440_v37 = vld [vmem:[%s5638_s0 + $0x5c4] ss:$28 sps:$4 sm:$0xff]   ;;  %v4442_v38 = vld [vmem:[%s5638_s0 + $0x5b0] ss:$28 sps:$4 sm:$0xff]  }
  0x93   :  { %2396 = vmatprep.mubr.bf16.mxu0 %v4336_v39  ;;  %v4443_v39 = vld [vmem:[%s5638_s0 + $0x5c0] ss:$28 sps:$4 sm:$0xff]  }
  0x99   :  { %1867 = vmatmul.mubr.bf16.gmra.mrb[44].mxu1 %v4338_v41  ;;  %v4444_v41 = vld [vmem:[%s5638_s0 + $0x5ec] ss:$28 sps:$4 sm:$0xff]  }
  0x9a   :  { %2397 = vmatmul.mubr.bf16.gmra.mrb[44].mxu0 %v4340_v42  ;;  %1874 = vmatprep.mubr.bf16.mxu1 %v4342_v43  ;;  %v4446_v42 = vld [vmem:[%s5638_s0 + $0x5fc] ss:$28 sps:$4 sm:$0xff]   ;;  %v4448_v43 = vld [vmem:[%s5638_s0 + $0x5e8] ss:$28 sps:$4 sm:$0xff]  }
  0x9b   :  { %2404 = vmatprep.mubr.bf16.mxu0 %v4344_v0  ;;  %v4449_v0 = vld [vmem:[%s5638_s0 + $0x5f8] ss:$28 sps:$4 sm:$0xff]  }
  0xa1   :  { %1875 = vmatmul.mubr.bf16.gmra.mrb[48].mxu1 %v4346_v45  ;;  %v4453_v45 = vld [vmem:[%s5638_s0 + $0x634] ss:$28 sps:$4 sm:$0xff]  }
  0xa2   :  { %2405 = vmatmul.mubr.bf16.gmra.mrb[48].mxu0 %v4347_v46  ;;  %1882 = vmatprep.mubr.bf16.mxu1 %v4348_v47  ;;  %v4455_v46 = vld [vmem:[%s5638_s0 + $0x620] ss:$28 sps:$4 sm:$0xff]   ;;  %v4456_v47 = vld [vmem:[%s5638_s0 + $0x630] ss:$28 sps:$4 sm:$0xff]  }
  0xa3   :  { %2412 = vmatprep.mubr.bf16.mxu0 %v4351_v48  ;;  %v4459_v48 = vld [vmem:[%s5638_s0 + $0xc] ss:$28 sps:$4 sm:$0xff]  }
  0xa9   :  { %1883 = vmatmul.mubr.bf16.gmra.mrb[52].mxu1 %v4353_v49  ;;  %v4457_v49 = vld [vmem:[%s5638_s0 + $0x8] ss:$28 sps:$4 sm:$0xff]  }
  0xaa   :  { %2413 = vmatmul.mubr.bf16.gmra.mrb[52].mxu0 %v4354_v50  ;;  %1890 = vmatprep.mubr.bf16.mxu1 %v4355_v51  ;;  %v4460_v50 = vld [vmem:[%s5638_s0 + $0x18] ss:$28 sps:$4 sm:$0xff]   ;;  %v4461_v51 = vld [vmem:[%s5638_s0 + $0x44] ss:$28 sps:$4 sm:$0xff]  }
  0xab   :  { %2420 = vmatprep.mubr.bf16.mxu0 %v4357_v52  ;;  %v4463_v52 = vld [vmem:[%s5638_s0 + $0x40] ss:$28 sps:$4 sm:$0xff]  }
  0xb1   :  { %1891 = vmatmul.mubr.bf16.gmra.mrb[56].mxu1 %v4359_v53  ;;  %v4464_v53 = vld [vmem:[%s5638_s0 + $0x50] ss:$28 sps:$4 sm:$0xff]  }
  0xb2   :  { %2421 = vmatmul.mubr.bf16.gmra.mrb[56].mxu0 %v4360_v54  ;;  %1898 = vmatprep.mubr.bf16.mxu1 %v4362_v55  ;;  %v4465_v54 = vld [vmem:[%s5638_s0 + $0x7c] ss:$28 sps:$4 sm:$0xff]  }
  0xb3   :  { %2428 = vmatprep.mubr.bf16.mxu0 %v4364_v56  ;;  %v4467_v55 = vld [vmem:[%s5638_s0 + $0x78] ss:$28 sps:$4 sm:$0xff]   ;;  %v4468_v56 = vld [vmem:[%s5638_s0 + $0x88] ss:$28 sps:$4 sm:$0xff]  }
  0xb9   :  { %1899 = vmatmul.mubr.bf16.gmra.mrb[60].mxu1 %v4367_v57  ;;  %v4469_v57 = vld [vmem:[%s5638_s0 + $0xb4] ss:$28 sps:$4 sm:$0xff]  }
  0xba   :  { %2429 = vmatmul.mubr.bf16.gmra.mrb[60].mxu0 %v4368_v58  ;;  %1906 = vmatprep.mubr.bf16.mxu1 %v4369_v59  ;;  %v4471_v58 = vld [vmem:[%s5638_s0 + $0xb0] ss:$28 sps:$4 sm:$0xff]   ;;  %v4472_v59 = vld [vmem:[%s5638_s0 + $0xc0] ss:$28 sps:$4 sm:$0xff]  }
  0xbb   :  { %2436 = vmatprep.mubr.bf16.mxu0 %v4371_v60  ;;  %v4473_v60 = vld [vmem:[%s5638_s0 + $0xec] ss:$28 sps:$4 sm:$0xff]  }
  0xc1   :  { %1907 = vmatmul.mubr.bf16.gmra.mrb[64].mxu1 %v4373_v61  ;;  %v4475_v61 = vld [vmem:[%s5638_s0 + $0xe8] ss:$28 sps:$4 sm:$0xff]  }
  0xc2   :  { %2437 = vmatmul.mubr.bf16.gmra.mrb[64].mxu0 %v4374_v62  ;;  %1914 = vmatprep.mubr.bf16.mxu1 %v4376_v63  ;;  %v4476_v62 = vld [vmem:[%s5638_s0 + $0xf8] ss:$28 sps:$4 sm:$0xff]   ;;  %v4477_v63 = vld [vmem:[%s5638_s0 + $0x124] ss:$28 sps:$4 sm:$0xff]  }
  0xc3   :  { %2444 = vmatprep.mubr.bf16.mxu0 %v4378_v1  ;;  %v4479_v1 = vld [vmem:[%s5638_s0 + $0x120] ss:$28 sps:$4 sm:$0xff]  }
  0xc9   :  { %1915 = vmatmul.mubr.bf16.gmra.mrb[68].mxu1 %v4380_v2  ;;  %v4480_v2 = vld [vmem:[%s5638_s0 + $0x130] ss:$28 sps:$4 sm:$0xff]  }
  0xca   :  { %2445 = vmatmul.mubr.bf16.gmra.mrb[68].mxu0 %v4381_v3  ;;  %1922 = vmatprep.mubr.bf16.mxu1 %v4382_v4  ;;  %v4481_v3 = vld [vmem:[%s5638_s0 + $0x15c] ss:$28 sps:$4 sm:$0xff]  }
  0xcb   :  { %2452 = vmatprep.mubr.bf16.mxu0 %v4384_v5  ;;  %v4483_v4 = vld [vmem:[%s5638_s0 + $0x158] ss:$28 sps:$4 sm:$0xff]   ;;  %v4484_v5 = vld [vmem:[%s5638_s0 + $0x168] ss:$28 sps:$4 sm:$0xff]  }
  0xd1   :  { %1923 = vmatmul.mubr.bf16.gmra.mrb[72].mxu1 %v4386_v6  ;;  %v4485_v6 = vld [vmem:[%s5638_s0 + $0x194] ss:$28 sps:$4 sm:$0xff]  }
  0xd2   :  { %2453 = vmatmul.mubr.bf16.gmra.mrb[72].mxu0 %v4387_v7  ;;  %1930 = vmatprep.mubr.bf16.mxu1 %v4390_v8  ;;  %v4487_v7 = vld [vmem:[%s5638_s0 + $0x190] ss:$28 sps:$4 sm:$0xff]   ;;  %v4488_v8 = vld [vmem:[%s5638_s0 + $0x1a0] ss:$28 sps:$4 sm:$0xff]  }
  0xd3   :  { %2460 = vmatprep.mubr.bf16.mxu0 %v4392_v9  ;;  %v4489_v9 = vld [vmem:[%s5638_s0 + $0x1cc] ss:$28 sps:$4 sm:$0xff]  }
  0xd9   :  { %1931 = vmatmul.mubr.bf16.gmra.mrb[76].mxu1 %v4394_v10  ;;  %v4491_v10 = vld [vmem:[%s5638_s0 + $0x1c8] ss:$28 sps:$4 sm:$0xff]  }
  0xda   :  { %2461 = vmatmul.mubr.bf16.gmra.mrb[76].mxu0 %v4395_v11  ;;  %1938 = vmatprep.mubr.bf16.mxu1 %v4396_v12  ;;  %v4492_v11 = vld [vmem:[%s5638_s0 + $0x1d8] ss:$28 sps:$4 sm:$0xff]   ;;  %v4493_v12 = vld [vmem:[%s5638_s0 + $0x204] ss:$28 sps:$4 sm:$0xff]  }
  0xdb   :  { %2468 = vmatprep.mubr.bf16.mxu0 %v4398_v13  ;;  %v4495_v13 = vld [vmem:[%s5638_s0 + $0x200] ss:$28 sps:$4 sm:$0xff]  }
  0xe1   :  { %1939 = vmatmul.mubr.bf16.gmra.mrb[80].mxu1 %v4400_v14  ;;  %v4496_v14 = vld [vmem:[%s5638_s0 + $0x210] ss:$28 sps:$4 sm:$0xff]  }
  0xe2   :  { %2469 = vmatmul.mubr.bf16.gmra.mrb[80].mxu0 %v4401_v15  ;;  %1946 = vmatprep.mubr.bf16.mxu1 %v4403_v16  ;;  %v4497_v15 = vld [vmem:[%s5638_s0 + $0x23c] ss:$28 sps:$4 sm:$0xff]  }
  0xe3   :  { %2476 = vmatprep.mubr.bf16.mxu0 %v4405_v17  ;;  %v4499_v16 = vld [vmem:[%s5638_s0 + $0x238] ss:$28 sps:$4 sm:$0xff]   ;;  %v4500_v17 = vld [vmem:[%s5638_s0 + $0x248] ss:$28 sps:$4 sm:$0xff]  }
  0xe9   :  { %1947 = vmatmul.mubr.bf16.gmra.mrb[84].mxu1 %v4407_v18  ;;  %v4501_v18 = vld [vmem:[%s5638_s0 + $0x274] ss:$28 sps:$4 sm:$0xff]  }
  0xea   :  { %2477 = vmatmul.mubr.bf16.gmra.mrb[84].mxu0 %v4408_v19  ;;  %1954 = vmatprep.mubr.bf16.mxu1 %v4409_v20  ;;  %v4503_v19 = vld [vmem:[%s5638_s0 + $0x270] ss:$28 sps:$4 sm:$0xff]   ;;  %v4504_v20 = vld [vmem:[%s5638_s0 + $0x280] ss:$28 sps:$4 sm:$0xff]  }
  0xeb   :  { %2484 = vmatprep.mubr.bf16.mxu0 %v4412_v21  ;;  %v4505_v21 = vld [vmem:[%s5638_s0 + $0x2ac] ss:$28 sps:$4 sm:$0xff]  }
  0xf1   :  { %1955 = vmatmul.mubr.bf16.gmra.mrb[88].mxu1 %v4414_v22  ;;  %v4507_v22 = vld [vmem:[%s5638_s0 + $0x2a8] ss:$28 sps:$4 sm:$0xff]  }
  0xf2   :  { %2485 = vmatmul.mubr.bf16.gmra.mrb[88].mxu0 %v4415_v23  ;;  %1962 = vmatprep.mubr.bf16.mxu1 %v4417_v24  ;;  %v4508_v23 = vld [vmem:[%s5638_s0 + $0x2b8] ss:$28 sps:$4 sm:$0xff]   ;;  %v4509_v24 = vld [vmem:[%s5638_s0 + $0x2e4] ss:$28 sps:$4 sm:$0xff]  }
  0xf3   :  { %2492 = vmatprep.mubr.bf16.mxu0 %v4419_v25  ;;  %v4511_v25 = vld [vmem:[%s5638_s0 + $0x2e0] ss:$28 sps:$4 sm:$0xff]  }
  0xf9   :  { %1963 = vmatmul.mubr.bf16.gmra.mrb[92].mxu1 %v4421_v26  ;;  %v4512_v26 = vld [vmem:[%s5638_s0 + $0x2f0] ss:$28 sps:$4 sm:$0xff]  }
  0xfa   :  { %2493 = vmatmul.mubr.bf16.gmra.mrb[92].mxu0 %v4422_v27  ;;  %1970 = vmatprep.mubr.bf16.mxu1 %v4424_v28  ;;  %v4513_v27 = vld [vmem:[%s5638_s0 + $0x31c] ss:$28 sps:$4 sm:$0xff]  }
  0xfb   :  { %2500 = vmatprep.mubr.bf16.mxu0 %v4426_v29  ;;  %v4515_v28 = vld [vmem:[%s5638_s0 + $0x318] ss:$28 sps:$4 sm:$0xff]   ;;  %v4516_v29 = vld [vmem:[%s5638_s0 + $0x328] ss:$28 sps:$4 sm:$0xff]  }
 0x101   :  { %1971 = vmatmul.mubr.bf16.gmra.mrb[96].mxu1 %v4428_v30  ;;  %v4517_v30 = vld [vmem:[%s5638_s0 + $0x354] ss:$28 sps:$4 sm:$0xff]  }
 0x102   :  { %2501 = vmatmul.mubr.bf16.gmra.mrb[96].mxu0 %v4429_v31  ;;  %1978 = vmatprep.mubr.bf16.mxu1 %v4430_v32  ;;  %v4519_v31 = vld [vmem:[%s5638_s0 + $0x350] ss:$28 sps:$4 sm:$0xff]   ;;  %v4520_v32 = vld [vmem:[%s5638_s0 + $0x360] ss:$28 sps:$4 sm:$0xff]  }
 0x103   :  { %2508 = vmatprep.mubr.bf16.mxu0 %v4432_v33  ;;  %v4521_v33 = vld [vmem:[%s5638_s0 + $0x38c] ss:$28 sps:$4 sm:$0xff]  }
 0x109   :  { %1979 = vmatmul.mubr.bf16.gmra.mrb[100].mxu1 %v4434_v34  ;;  %v4523_v34 = vld [vmem:[%s5638_s0 + $0x388] ss:$28 sps:$4 sm:$0xff]  }
 0x10a   :  { %2509 = vmatmul.mubr.bf16.gmra.mrb[100].mxu0 %v4435_v35  ;;  %1986 = vmatprep.mubr.bf16.mxu1 %v4438_v36  ;;  %v4524_v35 = vld [vmem:[%s5638_s0 + $0x398] ss:$28 sps:$4 sm:$0xff]   ;;  %v4525_v36 = vld [vmem:[%s5638_s0 + $0x3c4] ss:$28 sps:$4 sm:$0xff]  }
 0x10b   :  { %2516 = vmatprep.mubr.bf16.mxu0 %v4440_v37  ;;  %v4527_v37 = vld [vmem:[%s5638_s0 + $0x3c0] ss:$28 sps:$4 sm:$0xff]  }
 0x111   :  { %1987 = vmatmul.mubr.bf16.gmra.mrb[104].mxu1 %v4442_v38  ;;  %v4528_v38 = vld [vmem:[%s5638_s0 + $0x3d0] ss:$28 sps:$4 sm:$0xff]  }
 0x112   :  { %2517 = vmatmul.mubr.bf16.gmra.mrb[104].mxu0 %v4443_v39  ;;  %1994 = vmatprep.mubr.bf16.mxu1 %v4444_v41  ;;  %v4529_v39 = vld [vmem:[%s5638_s0 + $0x3fc] ss:$28 sps:$4 sm:$0xff]  }
 0x113   :  { %2524 = vmatprep.mubr.bf16.mxu0 %v4446_v42  ;;  %v4531_v41 = vld [vmem:[%s5638_s0 + $0x3f8] ss:$28 sps:$4 sm:$0xff]   ;;  %v4532_v42 = vld [vmem:[%s5638_s0 + $0x408] ss:$28 sps:$4 sm:$0xff]  }
 0x119   :  { %1995 = vmatmul.mubr.bf16.gmra.mrb[108].mxu1 %v4448_v43  ;;  %v4533_v43 = vld [vmem:[%s5638_s0 + $0x434] ss:$28 sps:$4 sm:$0xff]  }
 0x11a   :  { %2525 = vmatmul.mubr.bf16.gmra.mrb[108].mxu0 %v4449_v0  ;;  %2002 = vmatprep.mubr.bf16.mxu1 %v4451_v44  ;;  %v4535_v0 = vld [vmem:[%s5638_s0 + $0x430] ss:$28 sps:$4 sm:$0xff]   ;;  %v4536_v44 = vld [vmem:[%s5638_s0 + $0x440] ss:$28 sps:$4 sm:$0xff]  }
 0x11b   :  { %2532 = vmatprep.mubr.bf16.mxu0 %v4453_v45  ;;  %v4537_v45 = vld [vmem:[%s5638_s0 + $0x46c] ss:$28 sps:$4 sm:$0xff]  }
 0x121   :  { %2003 = vmatmul.mubr.bf16.gmra.mrb[112].mxu1 %v4455_v46  ;;  %v4539_v46 = vld [vmem:[%s5638_s0 + $0x468] ss:$28 sps:$4 sm:$0xff]  }
 0x122   :  { %2533 = vmatmul.mubr.bf16.gmra.mrb[112].mxu0 %v4456_v47  ;;  %2043 = vmatprep.mubr.bf16.mxu1 %v4459_v48  ;;  %v4540_v47 = vld [vmem:[%s5638_s0 + $0x478] ss:$28 sps:$4 sm:$0xff]   ;;  %v4541_v48 = vld [vmem:[%s5638_s0 + $0x4a4] ss:$28 sps:$4 sm:$0xff]  }
 0x123   :  { %3760 = vmatprep.mubr.msk.bf16.mxu0 %vm4575_vm0, %v4574_v40 }
 0x129   :  { %2044 = vmatmul.mubr.bf16.vlgmr.msra.gmra.mrb[0].mxu1 %v4457_v49  ;;  %v4543_v49 = vld [vmem:[%s5638_s0 + $0x4a0] ss:$28 sps:$4 sm:$0xff]  }
 0x12a   :  { %3761 = vmatmul.mubr.bf16.vlgmr.msra.gmra.mrb[0].mxu0 %v4460_v50  ;;  %2051 = vmatprep.mubr.bf16.mxu1 %v4461_v51  ;;  %v4544_v50 = vld [vmem:[%s5638_s0 + $0x4b0] ss:$28 sps:$4 sm:$0xff]   ;;  %v4545_v51 = vld [vmem:[%s5638_s0 + $0x4dc] ss:$28 sps:$4 sm:$0xff]  }
 0x12b   :  { %3764 = vmatprep.mubr.msk.bf16.mxu0 %vm4575_vm0, %v4574_v40 }
 0x131   :  { %2052 = vmatmul.mubr.bf16.gmra.mrb[4].mxu1 %v4463_v52  ;;  %v4547_v52 = vld [vmem:[%s5638_s0 + $0x4d8] ss:$28 sps:$4 sm:$0xff]  }
 0x132   :  { %3765 = vmatmul.mubr.bf16.gmra.mrb[4].mxu0 %v4464_v53  ;;  %2059 = vmatprep.mubr.bf16.mxu1 %v4465_v54  ;;  %v4548_v53 = vld [vmem:[%s5638_s0 + $0x4e8] ss:$28 sps:$4 sm:$0xff]   ;;  %v4549_v54 = vld [vmem:[%s5638_s0 + $0x514] ss:$28 sps:$4 sm:$0xff]  }
 0x133   :  { %3768 = vmatprep.mubr.msk.bf16.mxu0 %vm4575_vm0, %v4574_v40 }
 0x139   :  { %2060 = vmatmul.mubr.bf16.gmra.mrb[8].mxu1 %v4467_v55  ;;  %v4551_v55 = vld [vmem:[%s5638_s0 + $0x510] ss:$28 sps:$4 sm:$0xff]  }
 0x13a   :  { %3769 = vmatmul.mubr.bf16.gmra.mrb[8].mxu0 %v4468_v56  ;;  %2067 = vmatprep.mubr.bf16.mxu1 %v4469_v57  ;;  %v4552_v56 = vld [vmem:[%s5638_s0 + $0x520] ss:$28 sps:$4 sm:$0xff]   ;;  %v4553_v57 = vld [vmem:[%s5638_s0 + $0x54c] ss:$28 sps:$4 sm:$0xff]  }
 0x13b   :  { %3772 = vmatprep.mubr.msk.bf16.mxu0 %vm4575_vm0, %v4574_v40 }
 0x141   :  { %2068 = vmatmul.mubr.bf16.gmra.mrb[12].mxu1 %v4471_v58  ;;  %v4555_v58 = vld [vmem:[%s5638_s0 + $0x548] ss:$28 sps:$4 sm:$0xff]  }
 0x142   :  { %3773 = vmatmul.mubr.bf16.gmra.mrb[12].mxu0 %v4472_v59  ;;  %2075 = vmatprep.mubr.bf16.mxu1 %v4473_v60  ;;  %v4556_v59 = vld [vmem:[%s5638_s0 + $0x558] ss:$28 sps:$4 sm:$0xff]   ;;  %v4557_v60 = vld [vmem:[%s5638_s0 + $0x584] ss:$28 sps:$4 sm:$0xff]  }
 0x143   :  { %3776 = vmatprep.mubr.msk.bf16.mxu0 %vm4575_vm0, %v4574_v40 }
 0x149   :  { %2076 = vmatmul.mubr.bf16.gmra.mrb[16].mxu1 %v4475_v61  ;;  %v4559_v61 = vld [vmem:[%s5638_s0 + $0x580] ss:$28 sps:$4 sm:$0xff]  }
 0x14a   :  { %3777 = vmatmul.mubr.bf16.gmra.mrb[16].mxu0 %v4476_v62  ;;  %2083 = vmatprep.mubr.bf16.mxu1 %v4477_v63  ;;  %v4560_v62 = vld [vmem:[%s5638_s0 + $0x590] ss:$28 sps:$4 sm:$0xff]   ;;  %v4561_v63 = vld [vmem:[%s5638_s0 + $0x5bc] ss:$28 sps:$4 sm:$0xff]  }
 0x14b   :  { %3780 = vmatprep.mubr.msk.bf16.mxu0 %vm4575_vm0, %v4574_v40 }
 0x151   :  { %2084 = vmatmul.mubr.bf16.gmra.mrb[20].mxu1 %v4479_v1  ;;  %v4563_v1 = vld [vmem:[%s5638_s0 + $0x5b8] ss:$28 sps:$4 sm:$0xff]  }
 0x152   :  { %3781 = vmatmul.mubr.bf16.gmra.mrb[20].mxu0 %v4480_v2  ;;  %2091 = vmatprep.mubr.bf16.mxu1 %v4481_v3  ;;  %v4564_v2 = vld [vmem:[%s5638_s0 + $0x5c8] ss:$28 sps:$4 sm:$0xff]   ;;  %v4565_v3 = vld [vmem:[%s5638_s0 + $0x5f4] ss:$28 sps:$4 sm:$0xff]  }
 0x153   :  { %3784 = vmatprep.mubr.msk.bf16.mxu0 %vm4575_vm0, %v4574_v40 }
 0x159   :  { %2092 = vmatmul.mubr.bf16.gmra.mrb[24].mxu1 %v4483_v4  ;;  %v5471_v4 = vld [vmem:[%s5639_s2] ss:$0 sm:$0xff] }
 0x15a   :  { %3785 = vmatmul.mubr.bf16.gmra.mrb[24].mxu0 %v4484_v5  ;;  %2099 = vmatprep.mubr.bf16.mxu1 %v4485_v6 }
 0x15b   :  { %3788 = vmatprep.mubr.msk.bf16.mxu0 %vm4575_vm0, %v4574_v40 }
 0x161   :  { %2100 = vmatmul.mubr.bf16.gmra.mrb[28].mxu1 %v4487_v7 }
 0x162   :  { %3789 = vmatmul.mubr.bf16.gmra.mrb[28].mxu0 %v4488_v8  ;;  %2107 = vmatprep.mubr.bf16.mxu1 %v4489_v9  ;;  %v4567_v9 = vld [vmem:[%s5638_s0 + $0x5f0] ss:$28 sps:$4 sm:$0xff]  }
 0x163   :  { %3792 = vmatprep.mubr.msk.bf16.mxu0 %vm4575_vm0, %v4574_v40 }
 0x169   :  { %2108 = vmatmul.mubr.bf16.gmra.mrb[32].mxu1 %v4491_v10 }
 0x16a   :  { %3793 = vmatmul.mubr.bf16.gmra.mrb[32].mxu0 %v4492_v11  ;;  %2115 = vmatprep.mubr.bf16.mxu1 %v4493_v12  ;;  %v4568_v12 = vld [vmem:[%s5638_s0 + $0x600] ss:$28 sps:$4 sm:$0xff]  }
 0x16b   :  { %3796 = vmatprep.mubr.msk.bf16.mxu0 %vm4575_vm0, %v4574_v40 }
 0x171   :  { %2116 = vmatmul.mubr.bf16.gmra.mrb[36].mxu1 %v4495_v13  ;;  %v4569_v13 = vld [vmem:[%s5638_s0 + $0x62c] ss:$28 sps:$4 sm:$0xff]  }
 0x172   :  { %3797 = vmatmul.mubr.bf16.gmra.mrb[36].mxu0 %v4496_v14  ;;  %2123 = vmatprep.mubr.bf16.mxu1 %v4497_v15 }
 0x173   :  { %3800 = vmatprep.mubr.msk.bf16.mxu0 %vm4575_vm0, %v4574_v40 }
 0x179   :  { %2124 = vmatmul.mubr.bf16.gmra.mrb[40].mxu1 %v4499_v16 }
 0x17a   :  { %3801 = vmatmul.mubr.bf16.gmra.mrb[40].mxu0 %v4500_v17  ;;  %2131 = vmatprep.mubr.bf16.mxu1 %v4501_v18 }
 0x17b   :  { %3804 = vmatprep.mubr.msk.bf16.mxu0 %vm4575_vm0, %v4574_v40 }
 0x181   :  { %2132 = vmatmul.mubr.bf16.gmra.mrb[44].mxu1 %v4503_v19 }
 0x182   :  { %3805 = vmatmul.mubr.bf16.gmra.mrb[44].mxu0 %v4504_v20  ;;  %2139 = vmatprep.mubr.bf16.mxu1 %v4505_v21 }
 0x183   :  { %3808 = vmatprep.mubr.msk.bf16.mxu0 %vm4575_vm0, %v4574_v40 }
 0x189   :  { %2140 = vmatmul.mubr.bf16.gmra.mrb[48].mxu1 %v4507_v22 }
 0x18a   :  { %3809 = vmatmul.mubr.bf16.gmra.mrb[48].mxu0 %v4508_v23  ;;  %2147 = vmatprep.mubr.bf16.mxu1 %v4509_v24 }
 0x18b   :  { %3812 = vmatprep.mubr.msk.bf16.mxu0 %vm4575_vm0, %v4574_v40 }
 0x191   :  { %2148 = vmatmul.mubr.bf16.gmra.mrb[52].mxu1 %v4511_v25 }
 0x192   :  { %3813 = vmatmul.mubr.bf16.gmra.mrb[52].mxu0 %v4512_v26  ;;  %2155 = vmatprep.mubr.bf16.mxu1 %v4513_v27  ;;  %v4571_v27 = vld [vmem:[%s5638_s0 + $0x628] ss:$28 sps:$4 sm:$0xff]  }
 0x193   :  { %3816 = vmatprep.mubr.msk.bf16.mxu0 %vm4575_vm0, %v4574_v40 }
 0x199   :  { %2156 = vmatmul.mubr.bf16.gmra.mrb[56].mxu1 %v4515_v28 }
 0x19a   :  { %3817 = vmatmul.mubr.bf16.gmra.mrb[56].mxu0 %v4516_v29  ;;  %2163 = vmatprep.mubr.bf16.mxu1 %v4517_v30  ;;  %v4572_v30 = vld [vmem:[%s5638_s0 + $0x638] ss:$28 sps:$4 sm:$0xff]  }
 0x19b   :  { %3820 = vmatprep.mubr.msk.bf16.mxu0 %vm4575_vm0, %v4574_v40 }
 0x1a1   :  { %2164 = vmatmul.mubr.bf16.gmra.mrb[60].mxu1 %v4519_v31 }
 0x1a2   :  { %3821 = vmatmul.mubr.bf16.gmra.mrb[60].mxu0 %v4520_v32  ;;  %2171 = vmatprep.mubr.bf16.mxu1 %v4521_v33 }
 0x1a3   :  { %3824 = vmatprep.mubr.msk.bf16.mxu0 %vm4575_vm0, %v4574_v40 }
 0x1a9   :  { %2172 = vmatmul.mubr.bf16.gmra.mrb[64].mxu1 %v4523_v34 }
 0x1aa   :  { %3825 = vmatmul.mubr.bf16.gmra.mrb[64].mxu0 %v4524_v35  ;;  %2179 = vmatprep.mubr.bf16.mxu1 %v4525_v36 }
 0x1ab   :  { %3828 = vmatprep.mubr.msk.bf16.mxu0 %vm4575_vm0, %v4574_v40 }
 0x1b1   :  { %2180 = vmatmul.mubr.bf16.gmra.mrb[68].mxu1 %v4527_v37 }
 0x1b2   :  { %3829 = vmatmul.mubr.bf16.gmra.mrb[68].mxu0 %v4528_v38  ;;  %2187 = vmatprep.mubr.bf16.mxu1 %v4529_v39 }
 0x1b3   :  { %3832 = vmatprep.mubr.msk.bf16.mxu0 %vm4575_vm0, %v4574_v40 }
 0x1b9   :  { %2188 = vmatmul.mubr.bf16.gmra.mrb[72].mxu1 %v4531_v41 }
 0x1ba   :  { %3833 = vmatmul.mubr.bf16.gmra.mrb[72].mxu0 %v4532_v42  ;;  %2195 = vmatprep.mubr.bf16.mxu1 %v4533_v43 }
 0x1bb   :  { %3836 = vmatprep.mubr.msk.bf16.mxu0 %vm4575_vm0, %v4574_v40 }
 0x1c1   :  { %2196 = vmatmul.mubr.bf16.gmra.mrb[76].mxu1 %v4535_v0 }
 0x1c2   :  { %3837 = vmatmul.mubr.bf16.gmra.mrb[76].mxu0 %v4536_v44  ;;  %2203 = vmatprep.mubr.bf16.mxu1 %v4537_v45 }
 0x1c3   :  { %3840 = vmatprep.mubr.msk.bf16.mxu0 %vm4575_vm0, %v4574_v40 }
 0x1c9   :  { %2204 = vmatmul.mubr.bf16.gmra.mrb[80].mxu1 %v4539_v46 }
 0x1ca   :  { %3841 = vmatmul.mubr.bf16.gmra.mrb[80].mxu0 %v4540_v47  ;;  %2211 = vmatprep.mubr.bf16.mxu1 %v4541_v48 }
 0x1cb   :  { %3844 = vmatprep.mubr.msk.bf16.mxu0 %vm4575_vm0, %v4574_v40 }
 0x1d1   :  { %2212 = vmatmul.mubr.bf16.gmra.mrb[84].mxu1 %v4543_v49 }
 0x1d2   :  { %3845 = vmatmul.mubr.bf16.gmra.mrb[84].mxu0 %v4544_v50  ;;  %2219 = vmatprep.mubr.bf16.mxu1 %v4545_v51 }
 0x1d3   :  { %3848 = vmatprep.mubr.msk.bf16.mxu0 %vm4575_vm0, %v4574_v40 }
 0x1d9   :  { %2220 = vmatmul.mubr.bf16.gmra.mrb[88].mxu1 %v4547_v52 }
 0x1da   :  { %3849 = vmatmul.mubr.bf16.gmra.mrb[88].mxu0 %v4548_v53  ;;  %2227 = vmatprep.mubr.bf16.mxu1 %v4549_v54 }
 0x1db   :  { %3852 = vmatprep.mubr.msk.bf16.mxu0 %vm4575_vm0, %v4574_v40 }
 0x1e1   :  { %2228 = vmatmul.mubr.bf16.gmra.mrb[92].mxu1 %v4551_v55 }
 0x1e2   :  { %3853 = vmatmul.mubr.bf16.gmra.mrb[92].mxu0 %v4552_v56  ;;  %2235 = vmatprep.mubr.bf16.mxu1 %v4553_v57 }
 0x1e3   :  { %3856 = vmatprep.mubr.msk.bf16.mxu0 %vm4575_vm0, %v4574_v40 }
 0x1e9   :  { %2236 = vmatmul.mubr.bf16.gmra.mrb[96].mxu1 %v4555_v58 }
 0x1ea   :  { %3857 = vmatmul.mubr.bf16.gmra.mrb[96].mxu0 %v4556_v59  ;;  %2243 = vmatprep.mubr.bf16.mxu1 %v4557_v60 }
 0x1eb   :  { %3860 = vmatprep.mubr.msk.bf16.mxu0 %vm4575_vm0, %v4574_v40 }
 0x1f1   :  { %2244 = vmatmul.mubr.bf16.gmra.mrb[100].mxu1 %v4559_v61 }
 0x1f2   :  { %3861 = vmatmul.mubr.bf16.gmra.mrb[100].mxu0 %v4560_v62  ;;  %2251 = vmatprep.mubr.bf16.mxu1 %v4561_v63 }
 0x1f3   :  { %3864 = vmatprep.mubr.msk.bf16.mxu0 %vm4575_vm0, %v4574_v40 }
 0x1f9   :  { %2252 = vmatmul.mubr.bf16.gmra.mrb[104].mxu1 %v4563_v1 }
 0x1fa   :  { %3865 = vmatmul.mubr.bf16.gmra.mrb[104].mxu0 %v4564_v2  ;;  %2259 = vmatprep.mubr.bf16.mxu1 %v4565_v3 }
 0x1fb   :  { %3868 = vmatprep.mubr.msk.bf16.mxu0 %vm4575_vm0, %v4574_v40 }
 0x1fc   :  { %v2045_v5 = vpop.f32.mrb[0].mxu1 }
 0x1fd   :  { %v3876_v6 = vadd.f32 %v5471_v4, %v2045_v5  ;;  %v2575_v7 = vpop.f32.mrb[0].mxu0  ;;  %v2047_v8 = vpop.f32.mrb[1].mxu1 }
 0x1fe   :  { %v3762_v10 = vpop.f32.mrb[1].mxu0  ;;  %v2048_v11 = vpop.f32.mrb[2].mxu1 }
 0x1ff   :  { %v3877_v14 = vadd.f32 %v3876_v6, %v2575_v7  ;;  %v3878_v15 = vadd.f32 %v5471_v4, %v2048_v11  ;;  %v2578_v16 = vpop.f32.mrb[2].mxu0  ;;  %v2050_v17 = vpop.f32.mrb[3].mxu1 }
 0x200   :  { %v3763_v18 = vpop.f32.mrb[3].mxu0 }
 0x201   :  { %v3879_v19 = vadd.f32 %v3878_v15, %v2578_v16  ;;  %2260 = vmatmul.mubr.bf16.gmra.mrb[108].mxu1 %v4567_v9  ;;  %v2806_v20 = vmax.f32 %v3877_v14, 0.0 }
 0x202   :  { %3869 = vmatmul.mubr.bf16.gmra.mrb[108].mxu0 %v4568_v12  ;;  %2267 = vmatprep.mubr.bf16.mxu1 %v4569_v13 }
 0x203   :  { %v2807_v21 = vmax.f32 %v3879_v19, 0.0  ;;  %3872 = vmatprep.mubr.msk.bf16.mxu0 %vm4575_vm0, %v4574_v40 }
 0x204   :  { %v2053_v22 = vpop.f32.mrb[4].mxu1 }
 0x205   :  { %v3537_v23 = vpack.c.bf16 %v2807_v21, %v2806_v20  ;;  %v3880_v24 = vadd.f32 %v5471_v4, %v2053_v22  ;;  %v2583_v25 = vpop.f32.mrb[4].mxu0  ;;  %v2055_v26 = vpop.f32.mrb[5].mxu1 }
 0x206   :  { %v3766_v28 = vpop.f32.mrb[5].mxu0  ;;  %v2056_v29 = vpop.f32.mrb[6].mxu1 }
 0x207   :  { %3538 = vst [vmem:[%s5640_s3] sm:$0xff] %v3537_v23   ;;  %v3881_v40 = vadd.f32 %v3880_v24, %v2583_v25  ;;  %v3882_v31 = vadd.f32 %v5471_v4, %v2056_v29  ;;  %v2586_v32 = vpop.f32.mrb[6].mxu0  ;;  %v2058_v33 = vpop.f32.mrb[7].mxu1 }
 0x208   :  { %v3767_v34 = vpop.f32.mrb[7].mxu0 }
 0x209   :  { %v3883_v35 = vadd.f32 %v3882_v31, %v2586_v32  ;;  %2268 = vmatmul.mubr.bf16.gmra.mrb[112].mxu1 %v4571_v27  ;;  %v2808_v36 = vmax.f32 %v3881_v40, 0.0 }
 0x20a   :  { %3873 = vmatmul.mubr.bf16.gmra.mrb[112].mxu0 %v4572_v30 }
 0x20b   :  { %v2809_v37 = vmax.f32 %v3883_v35, 0.0 }
 0x20c   :  { %v2061_v38 = vpop.f32.mrb[8].mxu1 }
 0x20d   :  { %v3542_v39 = vpack.c.bf16 %v2809_v37, %v2808_v36  ;;  %v3884_v41 = vadd.f32 %v5471_v4, %v2061_v38  ;;  %v2591_v42 = vpop.f32.mrb[8].mxu0  ;;  %v2063_v43 = vpop.f32.mrb[9].mxu1 }
 0x20e   :  { %v3770_v0 = vpop.f32.mrb[9].mxu0  ;;  %v2064_v44 = vpop.f32.mrb[10].mxu1 }
 0x20f   :  { %3679 = vst [vmem:[%s5640_s3 + $0x8] sm:$0xff] %v3542_v39   ;;  %v3885_v45 = vadd.f32 %v3884_v41, %v2591_v42  ;;  %v3886_v46 = vadd.f32 %v5471_v4, %v2064_v44  ;;  %v2594_v47 = vpop.f32.mrb[10].mxu0  ;;  %v2066_v48 = vpop.f32.mrb[11].mxu1 }
 0x210   :  { %v3771_v49 = vpop.f32.mrb[11].mxu0 }
 0x211   :  { %v3887_v50 = vadd.f32 %v3886_v46, %v2594_v47  ;;  %v2810_v51 = vmax.f32 %v3885_v45, 0.0 }
 0x213   :  { %v2811_v52 = vmax.f32 %v3887_v50, 0.0 }
 0x214   :  { %v2069_v53 = vpop.f32.mrb[12].mxu1 }
 0x215   :  { %v3547_v54 = vpack.c.bf16 %v2811_v52, %v2810_v51  ;;  %v3888_v55 = vadd.f32 %v5471_v4, %v2069_v53  ;;  %v2599_v56 = vpop.f32.mrb[12].mxu0  ;;  %v2071_v57 = vpop.f32.mrb[13].mxu1 }
 0x216   :  { %v3774_v58 = vpop.f32.mrb[13].mxu0  ;;  %v2072_v59 = vpop.f32.mrb[14].mxu1 }
 0x217   :  { %3680 = vst [vmem:[%s5640_s3 + $0x10] sm:$0xff] %v3547_v54   ;;  %v3889_v60 = vadd.f32 %v3888_v55, %v2599_v56  ;;  %v3890_v61 = vadd.f32 %v5471_v4, %v2072_v59  ;;  %v2602_v62 = vpop.f32.mrb[14].mxu0  ;;  %v2074_v63 = vpop.f32.mrb[15].mxu1 }
 0x218   :  { %v3775_v1 = vpop.f32.mrb[15].mxu0 }
 0x219   :  { %v3891_v2 = vadd.f32 %v3890_v61, %v2602_v62  ;;  %v2812_v3 = vmax.f32 %v3889_v60, 0.0 }
 0x21b   :  { %v2813_v5 = vmax.f32 %v3891_v2, 0.0 }
 0x21c   :  { %v2077_v6 = vpop.f32.mrb[16].mxu1 }
 0x21d   :  { %v3552_v7 = vpack.c.bf16 %v2813_v5, %v2812_v3  ;;  %v3892_v8 = vadd.f32 %v5471_v4, %v2077_v6  ;;  %v2607_v9 = vpop.f32.mrb[16].mxu0  ;;  %v2079_v10 = vpop.f32.mrb[17].mxu1 }
 0x21e   :  { %v3778_v11 = vpop.f32.mrb[17].mxu0  ;;  %v2080_v12 = vpop.f32.mrb[18].mxu1 }
 0x21f   :  { %3681 = vst [vmem:[%s5640_s3 + $0x18] sm:$0xff] %v3552_v7   ;;  %v3893_v13 = vadd.f32 %v3892_v8, %v2607_v9  ;;  %v3894_v14 = vadd.f32 %v5471_v4, %v2080_v12  ;;  %v2610_v15 = vpop.f32.mrb[18].mxu0  ;;  %v2082_v16 = vpop.f32.mrb[19].mxu1 }
 0x220   :  { %v3779_v17 = vpop.f32.mrb[19].mxu0 }
 0x221   :  { %v3895_v18 = vadd.f32 %v3894_v14, %v2610_v15  ;;  %v2814_v19 = vmax.f32 %v3893_v13, 0.0 }
 0x223   :  { %v2815_v20 = vmax.f32 %v3895_v18, 0.0 }
 0x224   :  { %v2085_v21 = vpop.f32.mrb[20].mxu1 }
 0x225   :  { %v3557_v22 = vpack.c.bf16 %v2815_v20, %v2814_v19  ;;  %v3896_v23 = vadd.f32 %v5471_v4, %v2085_v21  ;;  %v2615_v24 = vpop.f32.mrb[20].mxu0  ;;  %v2087_v25 = vpop.f32.mrb[21].mxu1 }
 0x226   :  { %v3782_v26 = vpop.f32.mrb[21].mxu0  ;;  %v2088_v27 = vpop.f32.mrb[22].mxu1 }
 0x227   :  { %3682 = vst [vmem:[%s5640_s3 + $0x20] sm:$0xff] %v3557_v22   ;;  %v3897_v28 = vadd.f32 %v3896_v23, %v2615_v24  ;;  %v3898_v29 = vadd.f32 %v5471_v4, %v2088_v27  ;;  %v2618_v30 = vpop.f32.mrb[22].mxu0  ;;  %v2090_v40 = vpop.f32.mrb[23].mxu1 }
 0x228   :  { %v3783_v31 = vpop.f32.mrb[23].mxu0 }
 0x229   :  { %v3899_v32 = vadd.f32 %v3898_v29, %v2618_v30  ;;  %v2816_v33 = vmax.f32 %v3897_v28, 0.0 }
 0x22b   :  { %v2817_v34 = vmax.f32 %v3899_v32, 0.0 }
 0x22c   :  { %v2093_v35 = vpop.f32.mrb[24].mxu1 }
 0x22d   :  { %v3562_v36 = vpack.c.bf16 %v2817_v34, %v2816_v33  ;;  %v3900_v37 = vadd.f32 %v5471_v4, %v2093_v35  ;;  %v2623_v38 = vpop.f32.mrb[24].mxu0  ;;  %v2095_v39 = vpop.f32.mrb[25].mxu1 }
 0x22e   :  { %v3786_v41 = vpop.f32.mrb[25].mxu0  ;;  %v2096_v42 = vpop.f32.mrb[26].mxu1 }
 0x22f   :  { %3683 = vst [vmem:[%s5640_s3 + $0x28] sm:$0xff] %v3562_v36   ;;  %v3901_v43 = vadd.f32 %v3900_v37, %v2623_v38  ;;  %v3902_v0 = vadd.f32 %v5471_v4, %v2096_v42  ;;  %v2626_v44 = vpop.f32.mrb[26].mxu0  ;;  %v2098_v45 = vpop.f32.mrb[27].mxu1 }
 0x230   :  { %v3787_v46 = vpop.f32.mrb[27].mxu0 }
 0x231   :  { %v3903_v47 = vadd.f32 %v3902_v0, %v2626_v44  ;;  %v2818_v48 = vmax.f32 %v3901_v43, 0.0 }
 0x233   :  { %v2819_v49 = vmax.f32 %v3903_v47, 0.0 }
 0x234   :  { %v2101_v50 = vpop.f32.mrb[28].mxu1 }
 0x235   :  { %v3567_v51 = vpack.c.bf16 %v2819_v49, %v2818_v48  ;;  %v3904_v52 = vadd.f32 %v5471_v4, %v2101_v50  ;;  %v2631_v53 = vpop.f32.mrb[28].mxu0  ;;  %v2103_v54 = vpop.f32.mrb[29].mxu1 }
 0x236   :  { %v3790_v55 = vpop.f32.mrb[29].mxu0  ;;  %v2104_v56 = vpop.f32.mrb[30].mxu1 }
 0x237   :  { %3684 = vst [vmem:[%s5640_s3 + $0x30] sm:$0xff] %v3567_v51   ;;  %v3905_v57 = vadd.f32 %v3904_v52, %v2631_v53  ;;  %v3906_v58 = vadd.f32 %v5471_v4, %v2104_v56  ;;  %v2634_v59 = vpop.f32.mrb[30].mxu0  ;;  %v2106_v60 = vpop.f32.mrb[31].mxu1 }
 0x238   :  { %v3791_v61 = vpop.f32.mrb[31].mxu0 }
 0x239   :  { %v3907_v62 = vadd.f32 %v3906_v58, %v2634_v59  ;;  %v2820_v63 = vmax.f32 %v3905_v57, 0.0 }
 0x23b   :  { %v2821_v1 = vmax.f32 %v3907_v62, 0.0 }
 0x23c   :  { %v2109_v2 = vpop.f32.mrb[32].mxu1 }
 0x23d   :  { %v3572_v3 = vpack.c.bf16 %v2821_v1, %v2820_v63  ;;  %v3908_v5 = vadd.f32 %v5471_v4, %v2109_v2  ;;  %v2639_v6 = vpop.f32.mrb[32].mxu0  ;;  %v2111_v7 = vpop.f32.mrb[33].mxu1 }
 0x23e   :  { %v3794_v8 = vpop.f32.mrb[33].mxu0  ;;  %v2112_v9 = vpop.f32.mrb[34].mxu1 }
 0x23f   :  { %3685 = vst [vmem:[%s5640_s3 + $0x38] sm:$0xff] %v3572_v3   ;;  %v3909_v10 = vadd.f32 %v3908_v5, %v2639_v6  ;;  %v3910_v11 = vadd.f32 %v5471_v4, %v2112_v9  ;;  %v2642_v12 = vpop.f32.mrb[34].mxu0  ;;  %v2114_v13 = vpop.f32.mrb[35].mxu1 }
 0x240   :  { %v3795_v14 = vpop.f32.mrb[35].mxu0 }
 0x241   :  { %v3911_v15 = vadd.f32 %v3910_v11, %v2642_v12  ;;  %v2822_v16 = vmax.f32 %v3909_v10, 0.0 }
 0x243   :  { %v2823_v17 = vmax.f32 %v3911_v15, 0.0 }
 0x244   :  { %v2117_v18 = vpop.f32.mrb[36].mxu1 }
 0x245   :  { %v3577_v19 = vpack.c.bf16 %v2823_v17, %v2822_v16  ;;  %v3912_v20 = vadd.f32 %v5471_v4, %v2117_v18  ;;  %v2647_v21 = vpop.f32.mrb[36].mxu0  ;;  %v2119_v22 = vpop.f32.mrb[37].mxu1 }
 0x246   :  { %v3798_v23 = vpop.f32.mrb[37].mxu0  ;;  %v2120_v24 = vpop.f32.mrb[38].mxu1 }
 0x247   :  { %3686 = vst [vmem:[%s5640_s3 + $0x40] sm:$0xff] %v3577_v19   ;;  %v3913_v25 = vadd.f32 %v3912_v20, %v2647_v21  ;;  %v3914_v26 = vadd.f32 %v5471_v4, %v2120_v24  ;;  %v2650_v27 = vpop.f32.mrb[38].mxu0  ;;  %v2122_v28 = vpop.f32.mrb[39].mxu1 }
 0x248   :  { %v3799_v29 = vpop.f32.mrb[39].mxu0 }
 0x249   :  { %v3915_v30 = vadd.f32 %v3914_v26, %v2650_v27  ;;  %v2824_v40 = vmax.f32 %v3913_v25, 0.0 }
 0x24b   :  { %v2825_v31 = vmax.f32 %v3915_v30, 0.0 }
 0x24c   :  { %v2125_v32 = vpop.f32.mrb[40].mxu1 }
 0x24d   :  { %v3582_v33 = vpack.c.bf16 %v2825_v31, %v2824_v40  ;;  %v3916_v34 = vadd.f32 %v5471_v4, %v2125_v32  ;;  %v2655_v35 = vpop.f32.mrb[40].mxu0  ;;  %v2127_v36 = vpop.f32.mrb[41].mxu1 }
 0x24e   :  { %v3802_v37 = vpop.f32.mrb[41].mxu0  ;;  %v2128_v38 = vpop.f32.mrb[42].mxu1 }
 0x24f   :  { %3687 = vst [vmem:[%s5640_s3 + $0x48] sm:$0xff] %v3582_v33   ;;  %v3917_v39 = vadd.f32 %v3916_v34, %v2655_v35  ;;  %v3918_v41 = vadd.f32 %v5471_v4, %v2128_v38  ;;  %v2658_v42 = vpop.f32.mrb[42].mxu0  ;;  %v2130_v43 = vpop.f32.mrb[43].mxu1 }
 0x250   :  { %v3803_v0 = vpop.f32.mrb[43].mxu0 }
 0x251   :  { %v3919_v44 = vadd.f32 %v3918_v41, %v2658_v42  ;;  %v2826_v45 = vmax.f32 %v3917_v39, 0.0 }
 0x253   :  { %v2827_v46 = vmax.f32 %v3919_v44, 0.0 }
 0x254   :  { %v2133_v47 = vpop.f32.mrb[44].mxu1 }
 0x255   :  { %v3587_v48 = vpack.c.bf16 %v2827_v46, %v2826_v45  ;;  %v3920_v49 = vadd.f32 %v5471_v4, %v2133_v47  ;;  %v2663_v50 = vpop.f32.mrb[44].mxu0  ;;  %v2135_v51 = vpop.f32.mrb[45].mxu1 }
 0x256   :  { %v3806_v52 = vpop.f32.mrb[45].mxu0  ;;  %v2136_v53 = vpop.f32.mrb[46].mxu1 }
 0x257   :  { %3688 = vst [vmem:[%s5640_s3 + $0x50] sm:$0xff] %v3587_v48   ;;  %v3921_v54 = vadd.f32 %v3920_v49, %v2663_v50  ;;  %v3922_v55 = vadd.f32 %v5471_v4, %v2136_v53  ;;  %v2666_v56 = vpop.f32.mrb[46].mxu0  ;;  %v2138_v57 = vpop.f32.mrb[47].mxu1 }
 0x258   :  { %v3807_v58 = vpop.f32.mrb[47].mxu0 }
 0x259   :  { %v3923_v59 = vadd.f32 %v3922_v55, %v2666_v56  ;;  %v2828_v60 = vmax.f32 %v3921_v54, 0.0 }
 0x25b   :  { %v2829_v61 = vmax.f32 %v3923_v59, 0.0 }
 0x25c   :  { %v2141_v62 = vpop.f32.mrb[48].mxu1 }
 0x25d   :  { %v3592_v63 = vpack.c.bf16 %v2829_v61, %v2828_v60  ;;  %v3924_v1 = vadd.f32 %v5471_v4, %v2141_v62  ;;  %v2671_v2 = vpop.f32.mrb[48].mxu0  ;;  %v2143_v3 = vpop.f32.mrb[49].mxu1 }
 0x25e   :  { %v3810_v5 = vpop.f32.mrb[49].mxu0  ;;  %v2144_v6 = vpop.f32.mrb[50].mxu1 }
 0x25f   :  { %3689 = vst [vmem:[%s5640_s3 + $0x58] sm:$0xff] %v3592_v63   ;;  %v3925_v7 = vadd.f32 %v3924_v1, %v2671_v2  ;;  %v3926_v8 = vadd.f32 %v5471_v4, %v2144_v6  ;;  %v2674_v9 = vpop.f32.mrb[50].mxu0  ;;  %v2146_v10 = vpop.f32.mrb[51].mxu1 }
 0x260   :  { %v3811_v11 = vpop.f32.mrb[51].mxu0 }
 0x261   :  { %v3927_v12 = vadd.f32 %v3926_v8, %v2674_v9  ;;  %v2830_v13 = vmax.f32 %v3925_v7, 0.0 }
 0x263   :  { %v2831_v14 = vmax.f32 %v3927_v12, 0.0 }
 0x264   :  { %v2149_v15 = vpop.f32.mrb[52].mxu1 }
 0x265   :  { %v3597_v16 = vpack.c.bf16 %v2831_v14, %v2830_v13  ;;  %v3928_v17 = vadd.f32 %v5471_v4, %v2149_v15  ;;  %v2679_v18 = vpop.f32.mrb[52].mxu0  ;;  %v2151_v19 = vpop.f32.mrb[53].mxu1 }
 0x266   :  { %v3814_v20 = vpop.f32.mrb[53].mxu0  ;;  %v2152_v21 = vpop.f32.mrb[54].mxu1 }
 0x267   :  { %3690 = vst [vmem:[%s5640_s3 + $0x60] sm:$0xff] %v3597_v16   ;;  %v3929_v22 = vadd.f32 %v3928_v17, %v2679_v18  ;;  %v3930_v23 = vadd.f32 %v5471_v4, %v2152_v21  ;;  %v2682_v24 = vpop.f32.mrb[54].mxu0  ;;  %v2154_v25 = vpop.f32.mrb[55].mxu1 }
 0x268   :  { %v3815_v26 = vpop.f32.mrb[55].mxu0 }
 0x269   :  { %v3931_v27 = vadd.f32 %v3930_v23, %v2682_v24  ;;  %v2832_v28 = vmax.f32 %v3929_v22, 0.0 }
 0x26b   :  { %v2833_v29 = vmax.f32 %v3931_v27, 0.0 }
 0x26c   :  { %v2157_v30 = vpop.f32.mrb[56].mxu1 }
 0x26d   :  { %v3602_v40 = vpack.c.bf16 %v2833_v29, %v2832_v28  ;;  %v3932_v31 = vadd.f32 %v5471_v4, %v2157_v30  ;;  %v2687_v32 = vpop.f32.mrb[56].mxu0  ;;  %v2159_v33 = vpop.f32.mrb[57].mxu1 }
 0x26e   :  { %v3818_v34 = vpop.f32.mrb[57].mxu0  ;;  %v2160_v35 = vpop.f32.mrb[58].mxu1 }
 0x26f   :  { %3691 = vst [vmem:[%s5640_s3 + $0x68] sm:$0xff] %v3602_v40   ;;  %v3933_v36 = vadd.f32 %v3932_v31, %v2687_v32  ;;  %v3934_v37 = vadd.f32 %v5471_v4, %v2160_v35  ;;  %v2690_v38 = vpop.f32.mrb[58].mxu0  ;;  %v2162_v39 = vpop.f32.mrb[59].mxu1 }
 0x270   :  { %v3819_v41 = vpop.f32.mrb[59].mxu0 }
 0x271   :  { %v3935_v42 = vadd.f32 %v3934_v37, %v2690_v38  ;;  %v2834_v43 = vmax.f32 %v3933_v36, 0.0 }
 0x273   :  { %v2835_v0 = vmax.f32 %v3935_v42, 0.0 }
 0x274   :  { %v2165_v44 = vpop.f32.mrb[60].mxu1 }
 0x275   :  { %v3607_v45 = vpack.c.bf16 %v2835_v0, %v2834_v43  ;;  %v3936_v46 = vadd.f32 %v5471_v4, %v2165_v44  ;;  %v2695_v47 = vpop.f32.mrb[60].mxu0  ;;  %v2167_v48 = vpop.f32.mrb[61].mxu1 }
 0x276   :  { %v3822_v49 = vpop.f32.mrb[61].mxu0  ;;  %v2168_v50 = vpop.f32.mrb[62].mxu1 }
 0x277   :  { %3692 = vst [vmem:[%s5640_s3 + $0x70] sm:$0xff] %v3607_v45   ;;  %v3937_v51 = vadd.f32 %v3936_v46, %v2695_v47  ;;  %v3938_v52 = vadd.f32 %v5471_v4, %v2168_v50  ;;  %v2698_v53 = vpop.f32.mrb[62].mxu0  ;;  %v2170_v54 = vpop.f32.mrb[63].mxu1 }
 0x278   :  { %v3823_v55 = vpop.f32.mrb[63].mxu0 }
 0x279   :  { %v3939_v56 = vadd.f32 %v3938_v52, %v2698_v53  ;;  %v2836_v57 = vmax.f32 %v3937_v51, 0.0 }
 0x27b   :  { %v2837_v58 = vmax.f32 %v3939_v56, 0.0 }
 0x27c   :  { %v2173_v59 = vpop.f32.mrb[64].mxu1 }
 0x27d   :  { %v3612_v60 = vpack.c.bf16 %v2837_v58, %v2836_v57  ;;  %v3940_v61 = vadd.f32 %v5471_v4, %v2173_v59  ;;  %v2703_v62 = vpop.f32.mrb[64].mxu0  ;;  %v2175_v63 = vpop.f32.mrb[65].mxu1 }
 0x27e   :  { %v3826_v1 = vpop.f32.mrb[65].mxu0  ;;  %v2176_v2 = vpop.f32.mrb[66].mxu1 }
 0x27f   :  { %3693 = vst [vmem:[%s5640_s3 + $0x78] sm:$0xff] %v3612_v60   ;;  %v3941_v3 = vadd.f32 %v3940_v61, %v2703_v62  ;;  %v3942_v5 = vadd.f32 %v5471_v4, %v2176_v2  ;;  %v2706_v6 = vpop.f32.mrb[66].mxu0  ;;  %v2178_v7 = vpop.f32.mrb[67].mxu1 }
 0x280   :  { %v3827_v8 = vpop.f32.mrb[67].mxu0 }
 0x281   :  { %v3943_v9 = vadd.f32 %v3942_v5, %v2706_v6  ;;  %v2838_v10 = vmax.f32 %v3941_v3, 0.0 }
 0x283   :  { %v2839_v11 = vmax.f32 %v3943_v9, 0.0 }
 0x284   :  { %v2181_v12 = vpop.f32.mrb[68].mxu1 }
 0x285   :  { %v3617_v13 = vpack.c.bf16 %v2839_v11, %v2838_v10  ;;  %v3944_v14 = vadd.f32 %v5471_v4, %v2181_v12  ;;  %v2711_v15 = vpop.f32.mrb[68].mxu0  ;;  %v2183_v16 = vpop.f32.mrb[69].mxu1 }
 0x286   :  { %v3830_v17 = vpop.f32.mrb[69].mxu0  ;;  %v2184_v18 = vpop.f32.mrb[70].mxu1 }
 0x287   :  { %3694 = vst [vmem:[%s5640_s3 + $0x80] sm:$0xff] %v3617_v13   ;;  %v3945_v19 = vadd.f32 %v3944_v14, %v2711_v15  ;;  %v3946_v20 = vadd.f32 %v5471_v4, %v2184_v18  ;;  %v2714_v21 = vpop.f32.mrb[70].mxu0  ;;  %v2186_v22 = vpop.f32.mrb[71].mxu1 }
 0x288   :  { %v3831_v23 = vpop.f32.mrb[71].mxu0 }
 0x289   :  { %v3947_v24 = vadd.f32 %v3946_v20, %v2714_v21  ;;  %v2840_v25 = vmax.f32 %v3945_v19, 0.0 }
 0x28b   :  { %v2841_v26 = vmax.f32 %v3947_v24, 0.0 }
 0x28c   :  { %v2189_v27 = vpop.f32.mrb[72].mxu1 }
 0x28d   :  { %v3622_v28 = vpack.c.bf16 %v2841_v26, %v2840_v25  ;;  %v3948_v29 = vadd.f32 %v5471_v4, %v2189_v27  ;;  %v2719_v30 = vpop.f32.mrb[72].mxu0  ;;  %v2191_v40 = vpop.f32.mrb[73].mxu1 }
 0x28e   :  { %v3834_v31 = vpop.f32.mrb[73].mxu0  ;;  %v2192_v32 = vpop.f32.mrb[74].mxu1 }
 0x28f   :  { %3695 = vst [vmem:[%s5640_s3 + $0x88] sm:$0xff] %v3622_v28   ;;  %v3949_v33 = vadd.f32 %v3948_v29, %v2719_v30  ;;  %v3950_v34 = vadd.f32 %v5471_v4, %v2192_v32  ;;  %v2722_v35 = vpop.f32.mrb[74].mxu0  ;;  %v2194_v36 = vpop.f32.mrb[75].mxu1 }
 0x290   :  { %v3835_v37 = vpop.f32.mrb[75].mxu0 }
 0x291   :  { %v3951_v38 = vadd.f32 %v3950_v34, %v2722_v35  ;;  %v2842_v39 = vmax.f32 %v3949_v33, 0.0 }
 0x293   :  { %v2843_v41 = vmax.f32 %v3951_v38, 0.0 }
 0x294   :  { %v2197_v42 = vpop.f32.mrb[76].mxu1 }
 0x295   :  { %v3627_v43 = vpack.c.bf16 %v2843_v41, %v2842_v39  ;;  %v3952_v0 = vadd.f32 %v5471_v4, %v2197_v42  ;;  %v2727_v44 = vpop.f32.mrb[76].mxu0  ;;  %v2199_v45 = vpop.f32.mrb[77].mxu1 }
 0x296   :  { %v3838_v46 = vpop.f32.mrb[77].mxu0  ;;  %v2200_v47 = vpop.f32.mrb[78].mxu1 }
 0x297   :  { %3696 = vst [vmem:[%s5640_s3 + $0x90] sm:$0xff] %v3627_v43   ;;  %v3953_v48 = vadd.f32 %v3952_v0, %v2727_v44  ;;  %v3954_v49 = vadd.f32 %v5471_v4, %v2200_v47  ;;  %v2730_v50 = vpop.f32.mrb[78].mxu0  ;;  %v2202_v51 = vpop.f32.mrb[79].mxu1 }
 0x298   :  { %v3839_v52 = vpop.f32.mrb[79].mxu0 }
 0x299   :  { %v3955_v53 = vadd.f32 %v3954_v49, %v2730_v50  ;;  %v2844_v54 = vmax.f32 %v3953_v48, 0.0 }
 0x29b   :  { %v2845_v55 = vmax.f32 %v3955_v53, 0.0 }
 0x29c   :  { %v2205_v56 = vpop.f32.mrb[80].mxu1 }
 0x29d   :  { %v3632_v57 = vpack.c.bf16 %v2845_v55, %v2844_v54  ;;  %v3956_v58 = vadd.f32 %v5471_v4, %v2205_v56  ;;  %v2735_v59 = vpop.f32.mrb[80].mxu0  ;;  %v2207_v60 = vpop.f32.mrb[81].mxu1 }
 0x29e   :  { %v3842_v61 = vpop.f32.mrb[81].mxu0  ;;  %v2208_v62 = vpop.f32.mrb[82].mxu1 }
 0x29f   :  { %3697 = vst [vmem:[%s5640_s3 + $0x98] sm:$0xff] %v3632_v57   ;;  %v3957_v63 = vadd.f32 %v3956_v58, %v2735_v59  ;;  %v3958_v1 = vadd.f32 %v5471_v4, %v2208_v62  ;;  %v2738_v2 = vpop.f32.mrb[82].mxu0  ;;  %v2210_v3 = vpop.f32.mrb[83].mxu1 }
 0x2a0   :  { %v3843_v5 = vpop.f32.mrb[83].mxu0 }
 0x2a1   :  { %v3959_v6 = vadd.f32 %v3958_v1, %v2738_v2  ;;  %v2846_v7 = vmax.f32 %v3957_v63, 0.0 }
 0x2a3   :  { %v2847_v8 = vmax.f32 %v3959_v6, 0.0 }
 0x2a4   :  { %v2213_v9 = vpop.f32.mrb[84].mxu1 }
 0x2a5   :  { %v3637_v10 = vpack.c.bf16 %v2847_v8, %v2846_v7  ;;  %v3960_v11 = vadd.f32 %v5471_v4, %v2213_v9  ;;  %v2743_v12 = vpop.f32.mrb[84].mxu0  ;;  %v2215_v13 = vpop.f32.mrb[85].mxu1 }
 0x2a6   :  { %v3846_v14 = vpop.f32.mrb[85].mxu0  ;;  %v2216_v15 = vpop.f32.mrb[86].mxu1 }
 0x2a7   :  { %3698 = vst [vmem:[%s5640_s3 + $0xa0] sm:$0xff] %v3637_v10   ;;  %v3961_v16 = vadd.f32 %v3960_v11, %v2743_v12  ;;  %v3962_v17 = vadd.f32 %v5471_v4, %v2216_v15  ;;  %v2746_v18 = vpop.f32.mrb[86].mxu0  ;;  %v2218_v19 = vpop.f32.mrb[87].mxu1 }
 0x2a8   :  { %v3847_v20 = vpop.f32.mrb[87].mxu0 }
 0x2a9   :  { %v3963_v21 = vadd.f32 %v3962_v17, %v2746_v18  ;;  %v2848_v22 = vmax.f32 %v3961_v16, 0.0 }
 0x2ab   :  { %v2849_v23 = vmax.f32 %v3963_v21, 0.0 }
 0x2ac   :  { %v2221_v24 = vpop.f32.mrb[88].mxu1 }
 0x2ad   :  { %v3642_v25 = vpack.c.bf16 %v2849_v23, %v2848_v22  ;;  %v3964_v26 = vadd.f32 %v5471_v4, %v2221_v24  ;;  %v2751_v27 = vpop.f32.mrb[88].mxu0  ;;  %v2223_v28 = vpop.f32.mrb[89].mxu1 }
 0x2ae   :  { %v3850_v29 = vpop.f32.mrb[89].mxu0  ;;  %v2224_v30 = vpop.f32.mrb[90].mxu1 }
 0x2af   :  { %3699 = vst [vmem:[%s5640_s3 + $0xa8] sm:$0xff] %v3642_v25   ;;  %v3965_v40 = vadd.f32 %v3964_v26, %v2751_v27  ;;  %v3966_v31 = vadd.f32 %v5471_v4, %v2224_v30  ;;  %v2754_v32 = vpop.f32.mrb[90].mxu0  ;;  %v2226_v33 = vpop.f32.mrb[91].mxu1 }
 0x2b0   :  { %v3851_v34 = vpop.f32.mrb[91].mxu0 }
 0x2b1   :  { %v3967_v35 = vadd.f32 %v3966_v31, %v2754_v32  ;;  %v2850_v36 = vmax.f32 %v3965_v40, 0.0 }
 0x2b3   :  { %v2851_v37 = vmax.f32 %v3967_v35, 0.0 }
 0x2b4   :  { %v2229_v38 = vpop.f32.mrb[92].mxu1 }
 0x2b5   :  { %v3647_v39 = vpack.c.bf16 %v2851_v37, %v2850_v36  ;;  %v3968_v41 = vadd.f32 %v5471_v4, %v2229_v38  ;;  %v2759_v42 = vpop.f32.mrb[92].mxu0  ;;  %v2231_v43 = vpop.f32.mrb[93].mxu1 }
 0x2b6   :  { %v3854_v0 = vpop.f32.mrb[93].mxu0  ;;  %v2232_v44 = vpop.f32.mrb[94].mxu1 }
 0x2b7   :  { %3700 = vst [vmem:[%s5640_s3 + $0xb0] sm:$0xff] %v3647_v39   ;;  %v3969_v45 = vadd.f32 %v3968_v41, %v2759_v42  ;;  %v3970_v46 = vadd.f32 %v5471_v4, %v2232_v44  ;;  %v2762_v47 = vpop.f32.mrb[94].mxu0  ;;  %v2234_v48 = vpop.f32.mrb[95].mxu1 }
 0x2b8   :  { %v3855_v49 = vpop.f32.mrb[95].mxu0 }
 0x2b9   :  { %v3971_v50 = vadd.f32 %v3970_v46, %v2762_v47  ;;  %v2852_v51 = vmax.f32 %v3969_v45, 0.0 }
 0x2bb   :  { %v2853_v52 = vmax.f32 %v3971_v50, 0.0 }
 0x2bc   :  { %v2237_v53 = vpop.f32.mrb[96].mxu1 }
 0x2bd   :  { %v3652_v54 = vpack.c.bf16 %v2853_v52, %v2852_v51  ;;  %v3972_v55 = vadd.f32 %v5471_v4, %v2237_v53  ;;  %v2767_v56 = vpop.f32.mrb[96].mxu0  ;;  %v2239_v57 = vpop.f32.mrb[97].mxu1 }
 0x2be   :  { %v3858_v58 = vpop.f32.mrb[97].mxu0  ;;  %v2240_v59 = vpop.f32.mrb[98].mxu1 }
 0x2bf   :  { %3701 = vst [vmem:[%s5640_s3 + $0xb8] sm:$0xff] %v3652_v54   ;;  %v3973_v60 = vadd.f32 %v3972_v55, %v2767_v56  ;;  %v3974_v61 = vadd.f32 %v5471_v4, %v2240_v59  ;;  %v2770_v62 = vpop.f32.mrb[98].mxu0  ;;  %v2242_v63 = vpop.f32.mrb[99].mxu1 }
 0x2c0   :  { %v3859_v1 = vpop.f32.mrb[99].mxu0 }
 0x2c1   :  { %v3975_v2 = vadd.f32 %v3974_v61, %v2770_v62  ;;  %v2854_v3 = vmax.f32 %v3973_v60, 0.0 }
 0x2c3   :  { %v2855_v5 = vmax.f32 %v3975_v2, 0.0 }
 0x2c4   :  { %v2245_v6 = vpop.f32.mrb[100].mxu1 }
 0x2c5   :  { %v3657_v7 = vpack.c.bf16 %v2855_v5, %v2854_v3  ;;  %v3976_v8 = vadd.f32 %v5471_v4, %v2245_v6  ;;  %v2775_v9 = vpop.f32.mrb[100].mxu0  ;;  %v2247_v10 = vpop.f32.mrb[101].mxu1 }
 0x2c6   :  { %v3862_v11 = vpop.f32.mrb[101].mxu0  ;;  %v2248_v12 = vpop.f32.mrb[102].mxu1 }
 0x2c7   :  { %3702 = vst [vmem:[%s5640_s3 + $0xc0] sm:$0xff] %v3657_v7   ;;  %v3977_v13 = vadd.f32 %v3976_v8, %v2775_v9  ;;  %v3978_v14 = vadd.f32 %v5471_v4, %v2248_v12  ;;  %v2778_v15 = vpop.f32.mrb[102].mxu0  ;;  %v2250_v16 = vpop.f32.mrb[103].mxu1 }
 0x2c8   :  { %v3863_v17 = vpop.f32.mrb[103].mxu0 }
 0x2c9   :  { %v3979_v18 = vadd.f32 %v3978_v14, %v2778_v15  ;;  %v2856_v19 = vmax.f32 %v3977_v13, 0.0 }
 0x2cb   :  { %v2857_v20 = vmax.f32 %v3979_v18, 0.0 }
 0x2cc   :  { %v2253_v21 = vpop.f32.mrb[104].mxu1 }
 0x2cd   :  { %v3662_v22 = vpack.c.bf16 %v2857_v20, %v2856_v19  ;;  %v3980_v23 = vadd.f32 %v5471_v4, %v2253_v21  ;;  %v2783_v24 = vpop.f32.mrb[104].mxu0  ;;  %v2255_v25 = vpop.f32.mrb[105].mxu1 }
 0x2ce   :  { %v3866_v26 = vpop.f32.mrb[105].mxu0  ;;  %v2256_v27 = vpop.f32.mrb[106].mxu1 }
 0x2cf   :  { %3703 = vst [vmem:[%s5640_s3 + $0xc8] sm:$0xff] %v3662_v22   ;;  %v3981_v28 = vadd.f32 %v3980_v23, %v2783_v24  ;;  %v3982_v29 = vadd.f32 %v5471_v4, %v2256_v27  ;;  %v2786_v30 = vpop.f32.mrb[106].mxu0  ;;  %v2258_v40 = vpop.f32.mrb[107].mxu1 }
 0x2d0   :  { %v3867_v31 = vpop.f32.mrb[107].mxu0 }
 0x2d1   :  { %v3983_v32 = vadd.f32 %v3982_v29, %v2786_v30  ;;  %v2858_v33 = vmax.f32 %v3981_v28, 0.0 }
 0x2d3   :  { %v2859_v34 = vmax.f32 %v3983_v32, 0.0 }
 0x2d4   :  { %v2261_v35 = vpop.f32.mrb[108].mxu1 }
 0x2d5   :  { %v3667_v36 = vpack.c.bf16 %v2859_v34, %v2858_v33  ;;  %v3984_v37 = vadd.f32 %v5471_v4, %v2261_v35  ;;  %v2791_v38 = vpop.f32.mrb[108].mxu0  ;;  %v2263_v39 = vpop.f32.mrb[109].mxu1 }
 0x2d6   :  { %v3870_v41 = vpop.f32.mrb[109].mxu0  ;;  %v2264_v42 = vpop.f32.mrb[110].mxu1 }
 0x2d7   :  { %3704 = vst [vmem:[%s5640_s3 + $0xd0] sm:$0xff] %v3667_v36   ;;  %v3985_v43 = vadd.f32 %v3984_v37, %v2791_v38  ;;  %v3986_v0 = vadd.f32 %v5471_v4, %v2264_v42  ;;  %v2794_v44 = vpop.f32.mrb[110].mxu0  ;;  %v2266_v45 = vpop.f32.mrb[111].mxu1 }
 0x2d8   :  { %v3871_v46 = vpop.f32.mrb[111].mxu0 }
 0x2d9   :  { %v3987_v47 = vadd.f32 %v3986_v0, %v2794_v44  ;;  %v2860_v48 = vmax.f32 %v3985_v43, 0.0 }
 0x2db   :  { %v2861_v49 = vmax.f32 %v3987_v47, 0.0 }
 0x2dc   :  { %v2269_v50 = vpop.f32.mrb[112].mxu1 }
 0x2dd   :  { %v3672_v51 = vpack.c.bf16 %v2861_v49, %v2860_v48  ;;  %v3988_v52 = vadd.f32 %v5471_v4, %v2269_v50  ;;  %v2799_v53 = vpop.f32.mrb[112].mxu0  ;;  %v2271_v54 = vpop.f32.mrb[113].mxu1 }
 0x2de   :  { %v3874_v55 = vpop.f32.mrb[113].mxu0  ;;  %v2272_v56 = vpop.f32.mrb[114].mxu1 }
 0x2df   :  { %3705 = vst [vmem:[%s5640_s3 + $0xd8] sm:$0xff] %v3672_v51   ;;  %v3989_v57 = vadd.f32 %v3988_v52, %v2799_v53  ;;  %v3990_v58 = vadd.f32 %v5471_v4, %v2272_v56  ;;  %v2802_v59 = vpop.f32.mrb[114].mxu0  ;;  %v2274_v60 = vpop.f32.mrb[115].mxu1 }
 0x2e0   :  { %v3875_v61 = vpop.f32.mrb[115].mxu0 }
 0x2e1   :  { %v3991_v62 = vadd.f32 %v3990_v58, %v2802_v59  ;;  %v2862_v63 = vmax.f32 %v3989_v57, 0.0 }
 0x2e3   :  { %v2863_v1 = vmax.f32 %v3991_v62, 0.0 }
 0x2e5   :  { %v3677_v2 = vpack.c.bf16 %v2863_v1, %v2862_v63 }
 0x2e7   :  { %3706 = vst [vmem:[%s5640_s3 + $0xe0] sm:$0xff] %v3677_v2  }

// kernel: cvae_forward.5
= control target key start
LH: loop header
LB: loop body
LE: loop exit
PB: predicated region body
PF: predicated region fallthrough
CT: control target
= control target key end

     0   :  { %s22018_s3 = smov 5   ;;  %v24752_v0 = vmov 0   ;;  %s22020_s7 = smov 4   ;;  %s24751_s0 = inlined_call_operand.smem [shape: u32[35], index: -1, kind: input, shape index: {}] }
   0x1   :  { %s22063_s6 = sld [smem:[%s24751_s0 + %s22018_s3]]   ;;  %1206 = vmatprep.mubr.bf16.mxu1 %v24752_v0  ;;  %s22021_s11 = smov 1  }
   0x2   :  { %s22074_s10 = sld [smem:[%s24751_s0 + %s22020_s7]]   ;;  %s22022_s18 = smov 7  }
   0x3   :  { %s16366_s14 = sld [smem:[%s24751_s0 + %s22021_s11]]   ;;  %s22023_s22 = smov 9  }
   0x4   :  { %s22121_s17 = sld [smem:[%s24751_s0]]   ;;  %s22024_s26 = smov 6  }
   0x5   :  { %s23437_s21 = sld [smem:[%s24751_s0 + %s22022_s18]]   ;;  %s22025_s30 = smov 11  }
   0x6   :  { %s23458_s25 = sld [smem:[%s24751_s0 + %s22023_s22]]   ;;  %s22026_s4 = smov 8  }
   0x7   :  { %v19384_v1 = vld [vmem:[%s22063_s6 + $0x4] ss:$8 sps:$4 sm:$0xff]   ;;  %v19386_v2 = vld [vmem:[%s22063_s6] ss:$8 sps:$4 sm:$0xff]   ;;  %v19387_v3 = vld [vmem:[%s22063_s6 + $0x14] ss:$8 sps:$4 sm:$0xff]   ;;  %s16371_s29 = sld [smem:[%s24751_s0 + %s22024_s26]]  }
   0x8   :  { %1174 = vmatprep.subr.bf16.mxu1 %v19384_v1  ;;  %v19389_v4 = vld [vmem:[%s22063_s6 + $0x10] ss:$8 sps:$4 sm:$0xff]   ;;  %v19390_v5 = vld [vmem:[%s22063_s6 + $0x24] ss:$8 sps:$4 sm:$0xff]   ;;  %v19392_v6 = vld [vmem:[%s22063_s6 + $0x20] ss:$8 sps:$4 sm:$0xff]   ;;  %s23542_s3 = sld [smem:[%s24751_s0 + %s22025_s30]]  }
   0x9   :  { %1175 = vmatpush1.bf16.msra.mxu1 %v19386_v2  ;;  %v19393_v7 = vld [vmem:[%s22063_s6 + $0x34] ss:$8 sps:$4 sm:$0xff]   ;;  %v19395_v8 = vld [vmem:[%s22063_s6 + $0x30] ss:$8 sps:$4 sm:$0xff]   ;;  %v19396_v9 = vld [vmem:[%s22063_s6 + $0x44] ss:$8 sps:$4 sm:$0xff]   ;;  %s23548_s7 = sld [smem:[%s24751_s0 + %s22026_s4]]  }
   0xa   :  { %1176 = vmatprep.subr.bf16.mxu1 %v19387_v3  ;;  %v19411_v10 = vld [vmem:[%s22074_s10 + $0x104] ss:$8 sps:$4 sm:$0xff]   ;;  %v19413_v11 = vld [vmem:[%s22074_s10 + $0x100] ss:$8 sps:$4 sm:$0xff]   ;;  %v19399_v13 = vld [vmem:[%s22063_s6 + $0x54] ss:$8 sps:$4 sm:$0xff]  }
   0xb   :  { %v19398_v12 = vld [vmem:[%s22063_s6 + $0x40] ss:$8 sps:$4 sm:$0xff]   ;;  %6016 = vmatprep.subr.bf16.mxu0 %v19411_v10  ;;  %v19417_v14 = vld [vmem:[%s22074_s10 + $0x114] ss:$8 sps:$4 sm:$0xff]   ;;  %v19419_v15 = vld [vmem:[%s22074_s10 + $0x110] ss:$8 sps:$4 sm:$0xff]  }
   0xc   :  { %6017 = vmatpush1.bf16.msra.mxu0 %v19413_v11  ;;  %v19401_v16 = vld [vmem:[%s22063_s6 + $0x50] ss:$8 sps:$4 sm:$0xff]   ;;  %v19423_v17 = vld [vmem:[%s22074_s10 + $0x124] ss:$8 sps:$4 sm:$0xff]   ;;  %v19425_v19 = vld [vmem:[%s22074_s10 + $0x120] ss:$8 sps:$4 sm:$0xff]  }
   0xd   :  { %1177 = vmatpush1.bf16.msra.mxu1 %v19389_v4  ;;  %6018 = vmatprep.subr.bf16.mxu0 %v19417_v14  ;;  %v19402_v18 = vld [vmem:[%s22063_s6 + $0x64] ss:$8 sps:$4 sm:$0xff]   ;;  %v19429_v20 = vld [vmem:[%s22074_s10 + $0x134] ss:$8 sps:$4 sm:$0xff]   ;;  %v19404_v21 = vld [vmem:[%s22063_s6 + $0x60] ss:$8 sps:$4 sm:$0xff]  }
   0xe   :  { %1178 = vmatprep.subr.bf16.mxu1 %v19390_v5  ;;  %v19405_v22 = vld [vmem:[%s22063_s6 + $0x74] ss:$8 sps:$4 sm:$0xff]   ;;  %v19431_v23 = vld [vmem:[%s22074_s10 + $0x130] ss:$8 sps:$4 sm:$0xff]   ;;  %v19435_v24 = vld [vmem:[%s22074_s10 + $0x144] ss:$8 sps:$4 sm:$0xff]  }
   0xf   :  { %v19407_v25 = vld [vmem:[%s22063_s6 + $0x70] ss:$8 sps:$4 sm:$0xff]   ;;  %v19410_v26 = vld [vmem:[%s22074_s10 + $0x4] ss:$8 sps:$4 sm:$0xff]   ;;  %v19437_v27 = vld [vmem:[%s22074_s10 + $0x140] ss:$8 sps:$4 sm:$0xff]  }
  0x10   :  { %6019 = vmatpush1.bf16.msra.mxu0 %v19419_v15  ;;  %v19441_v28 = vld [vmem:[%s22074_s10 + $0x154] ss:$8 sps:$4 sm:$0xff]   ;;  %v1077_v29 = vld [vmem:[%s16366_s14] sm:$0xf]  ;;  %v19443_v32 = vld [vmem:[%s22074_s10 + $0x150] ss:$8 sps:$4 sm:$0xff]  }
  0x11   :  { %1179 = vmatpush1.bf16.msra.mxu1 %v19392_v6  ;;  %6020 = vmatprep.subr.bf16.mxu0 %v19423_v17  ;;  %v19408_v30 = vld [vmem:[%s22074_s10] ss:$8 sps:$4 sm:$0xff]   ;;  %v19416_v31 = vld [vmem:[%s22074_s10 + $0x14] ss:$8 sps:$4 sm:$0xff]   ;;  %v19447_v33 = vld [vmem:[%s22074_s10 + $0x164] ss:$8 sps:$4 sm:$0xff]  }
  0x12   :  { %1180 = vmatprep.subr.bf16.mxu1 %v19393_v7  ;;  %v19414_v34 = vld [vmem:[%s22074_s10 + $0x10] ss:$8 sps:$4 sm:$0xff]   ;;  %v19422_v35 = vld [vmem:[%s22074_s10 + $0x24] ss:$8 sps:$4 sm:$0xff]   ;;  %v19449_v36 = vld [vmem:[%s22074_s10 + $0x160] ss:$8 sps:$4 sm:$0xff]  }
  0x13   :  { %v19453_v37 = vld [vmem:[%s22074_s10 + $0x174] ss:$8 sps:$4 sm:$0xff]   ;;  %v19420_v38 = vld [vmem:[%s22074_s10 + $0x20] ss:$8 sps:$4 sm:$0xff]   ;;  %v19455_v40 = vld [vmem:[%s22074_s10 + $0x170] ss:$8 sps:$4 sm:$0xff]  }
  0x14   :  { %6021 = vmatpush1.bf16.msra.mxu0 %v19425_v19  ;;  %v19428_v39 = vld [vmem:[%s22074_s10 + $0x34] ss:$8 sps:$4 sm:$0xff]   ;;  %v19459_v41 = vld [vmem:[%s22074_s10 + $0x184] ss:$8 sps:$4 sm:$0xff]   ;;  %v19426_v42 = vld [vmem:[%s22074_s10 + $0x30] ss:$8 sps:$4 sm:$0xff]  }
  0x15   :  { %1181 = vmatpush1.bf16.msra.mxu1 %v19395_v8  ;;  %6022 = vmatprep.subr.bf16.mxu0 %v19429_v20  ;;  %v19434_v43 = vld [vmem:[%s22074_s10 + $0x44] ss:$8 sps:$4 sm:$0xff]   ;;  %v19461_v44 = vld [vmem:[%s22074_s10 + $0x180] ss:$8 sps:$4 sm:$0xff]   ;;  %v19465_v45 = vld [vmem:[%s22074_s10 + $0x194] ss:$8 sps:$4 sm:$0xff]  }
  0x16   :  { %1182 = vmatprep.subr.bf16.mxu1 %v19396_v9  ;;  %v19432_v46 = vld [vmem:[%s22074_s10 + $0x40] ss:$8 sps:$4 sm:$0xff]   ;;  %v19440_v47 = vld [vmem:[%s22074_s10 + $0x54] ss:$8 sps:$4 sm:$0xff]   ;;  %v19467_v48 = vld [vmem:[%s22074_s10 + $0x190] ss:$8 sps:$4 sm:$0xff]  }
  0x17   :  { %v19471_v49 = vld [vmem:[%s22074_s10 + $0x1a4] ss:$8 sps:$4 sm:$0xff]   ;;  %v19438_v50 = vld [vmem:[%s22074_s10 + $0x50] ss:$8 sps:$4 sm:$0xff]   ;;  %v19473_v52 = vld [vmem:[%s22074_s10 + $0x1a0] ss:$8 sps:$4 sm:$0xff]  }
  0x18   :  { %6023 = vmatpush1.bf16.msra.mxu0 %v19431_v23  ;;  %v19446_v51 = vld [vmem:[%s22074_s10 + $0x64] ss:$8 sps:$4 sm:$0xff]   ;;  %v19477_v53 = vld [vmem:[%s22074_s10 + $0x1b4] ss:$8 sps:$4 sm:$0xff]   ;;  %v19444_v56 = vld [vmem:[%s22074_s10 + $0x60] ss:$8 sps:$4 sm:$0xff]  }
  0x19   :  { %1183 = vmatpush1.bf16.msra.mxu1 %v19398_v12  ;;  %6024 = vmatprep.subr.bf16.mxu0 %v19435_v24  ;;  %v22132_v54 = vld [vmem:[%s22121_s17] sm:$0xff]  ;;  %v137_v57 = vld [vmem:[%s22121_s17 + $0x8] sm:$0xff]  ;;  %v19452_v58 = vld [vmem:[%s22074_s10 + $0x74] ss:$8 sps:$4 sm:$0xff]   ;;  %s22027_s8 = smov 13   ;;  %s22028_s12 = smov 10  }
  0x1a   :  { %1184 = vmatprep.subr.bf16.mxu1 %v19399_v13  ;;  %v22136_v55 = vcombine.high %v22132_v54, %v22132_v54  ;;  %v19479_v59 = vld [vmem:[%s22074_s10 + $0x1b0] ss:$8 sps:$4 sm:$0xff]   ;;  %v22142_v60 = vcombine.high %v137_v57, %v137_v57  ;;  %v19483_v61 = vld [vmem:[%s22074_s10 + $0x1c4] ss:$8 sps:$4 sm:$0xff]   ;;  %v19485_v1 = vld [vmem:[%s22074_s10 + $0x1c0] ss:$8 sps:$4 sm:$0xff]   ;;  %s23588_s11 = sld [smem:[%s24751_s0 + %s22027_s8]]  }
  0x1b   :  { %v19450_v62 = vld [vmem:[%s22074_s10 + $0x70] ss:$8 sps:$4 sm:$0xff]   ;;  %v19458_v63 = vld [vmem:[%s22074_s10 + $0x84] ss:$8 sps:$4 sm:$0xff]   ;;  %v19489_v2 = vld [vmem:[%s22074_s10 + $0x1d4] ss:$8 sps:$4 sm:$0xff]   ;;  %s23605_s15 = sld [smem:[%s24751_s0 + %s22028_s12]]  }
  0x1c   :  { %6025 = vmatpush1.bf16.msra.mxu0 %v19437_v27  ;;  %6048 = vmatprep.mubr.bf16.mxu0 %v22142_v60  ;;  %v19456_v3 = vld [vmem:[%s22074_s10 + $0x80] ss:$8 sps:$4 sm:$0xff]   ;;  %v19464_v4 = vld [vmem:[%s22074_s10 + $0x94] ss:$8 sps:$4 sm:$0xff]   ;;  %v19491_v5 = vld [vmem:[%s22074_s10 + $0x1d0] ss:$8 sps:$4 sm:$0xff]  }
  0x1d   :  { %1185 = vmatpush1.bf16.msra.mxu1 %v19401_v16  ;;  %6026 = vmatprep.subr.bf16.mxu0 %v19441_v28  ;;  %v19495_v6 = vld [vmem:[%s22074_s10 + $0x1e4] ss:$8 sps:$4 sm:$0xff]   ;;  %v19462_v7 = vld [vmem:[%s22074_s10 + $0x90] ss:$8 sps:$4 sm:$0xff]   ;;  %v19497_v9 = vld [vmem:[%s22074_s10 + $0x1e0] ss:$8 sps:$4 sm:$0xff]   ;;  %v22164_v16 = vcombine.low %v137_v57, %v137_v57 }
  0x1e   :  { %1186 = vmatprep.subr.bf16.mxu1 %v19402_v18  ;;  %v19470_v8 = vld [vmem:[%s22074_s10 + $0xa4] ss:$8 sps:$4 sm:$0xff]   ;;  %v19501_v10 = vld [vmem:[%s22074_s10 + $0x1f4] ss:$8 sps:$4 sm:$0xff]   ;;  %v19468_v11 = vld [vmem:[%s22074_s10 + $0xa0] ss:$8 sps:$4 sm:$0xff]  }
  0x1f   :  { %v19476_v12 = vld [vmem:[%s22074_s10 + $0xb4] ss:$8 sps:$4 sm:$0xff]   ;;  %v19505_v13 = vld [vmem:[%s22074_s10 + $0x1f0] ss:$8 sps:$4 sm:$0xff]   ;;  %v19513_v14 = vld [vmem:[%s22074_s10 + $0x304] ss:$8 sps:$4 sm:$0xff]  }
  0x20   :  { %6027 = vmatpush1.bf16.msra.mxu0 %v19443_v32  ;;  %v19474_v15 = vld [vmem:[%s22074_s10 + $0xb0] ss:$8 sps:$4 sm:$0xff]   ;;  %v19482_v17 = vld [vmem:[%s22074_s10 + $0xc4] ss:$8 sps:$4 sm:$0xff]   ;;  %v19511_v18 = vld [vmem:[%s22074_s10 + $0x300] ss:$8 sps:$4 sm:$0xff]  }
  0x21   :  { %1187 = vmatpush1.bf16.msra.mxu1 %v19404_v21  ;;  %6028 = vmatprep.subr.bf16.mxu0 %v19447_v33  ;;  %v19519_v19 = vld [vmem:[%s22074_s10 + $0x314] ss:$8 sps:$4 sm:$0xff]   ;;  %v19480_v20 = vld [vmem:[%s22074_s10 + $0xc0] ss:$8 sps:$4 sm:$0xff]   ;;  %v19525_v23 = vld [vmem:[%s22074_s10 + $0x324] ss:$8 sps:$4 sm:$0xff]  }
  0x22   :  { %1188 = vmatprep.subr.bf16.mxu1 %v19405_v22  ;;  %v19488_v21 = vld [vmem:[%s22074_s10 + $0xd4] ss:$8 sps:$4 sm:$0xff]   ;;  %v19517_v22 = vld [vmem:[%s22074_s10 + $0x310] ss:$8 sps:$4 sm:$0xff]   ;;  %v19492_v28 = vld [vmem:[%s22074_s10 + $0xe0] ss:$8 sps:$4 sm:$0xff]  }
  0x23   :  { %v19486_v24 = vld [vmem:[%s22074_s10 + $0xd0] ss:$8 sps:$4 sm:$0xff]   ;;  %v19531_v27 = vld [vmem:[%s22074_s10 + $0x334] ss:$8 sps:$4 sm:$0xff]   ;;  %v19508_v33 = vld [vmem:[%s22074_s10 + $0x204] ss:$8 sps:$4 sm:$0xff]  }
  0x24   :  { %6029 = vmatpush1.bf16.msra.mxu0 %v19449_v36  ;;  %v19498_v32 = vld [vmem:[%s22074_s10 + $0xf0] ss:$8 sps:$4 sm:$0xff]   ;;  %v22188_v36 = vcombine.low %v22132_v54, %v22132_v54  ;;  %v19534_v54 = vld [vmem:[%s22074_s10 + $0x244] ss:$8 sps:$4 sm:$0xff]   ;;  %v19567_v57 = vld [vmem:[%s22074_s10 + $0x394] ss:$8 sps:$4 sm:$0xff]  }
  0x25   :  { %1189 = vmatpush1.bf16.msra.mxu1 %v19407_v25  ;;  %6030 = vmatprep.subr.bf16.mxu0 %v19453_v37  ;;  %v19494_v25 = vld [vmem:[%s22074_s10 + $0xe4] ss:$8 sps:$4 sm:$0xff]   ;;  %v19506_v37 = vld [vmem:[%s22074_s10 + $0x200] ss:$8 sps:$4 sm:$0xff]   ;;  %v20553_v0 = vld [vmem:[%s22074_s10 + $0x1770] ss:$8 sps:$4 sm:$0xff]  }
  0x26   :  { %5975 = vmatprep.subr.bf16.mxu1 %v19410_v26  ;;  %v19523_v26 = vld [vmem:[%s22074_s10 + $0x320] ss:$8 sps:$4 sm:$0xff]   ;;  %s22029_s16 = smov 12   ;;  %s22041_s27 = smov 22  }
  0x27   :  { %s23678_s20 = sld [smem:[%s24751_s0 + %s22029_s16]]   ;;  %s22042_s1 = smov 19  }
  0x28   :  { %1207 = vmatmul.mubr.bf16.vlgmr.msra.gmra.mrb[0].mxu1 %v1077_v29  ;;  %6031 = vmatpush1.bf16.msra.mxu0 %v19455_v40  ;;  %v19500_v29 = vld [vmem:[%s22074_s10 + $0xf4] ss:$8 sps:$4 sm:$0xff]   ;;  %v19549_v40 = vld [vmem:[%s22074_s10 + $0x364] ss:$8 sps:$4 sm:$0xff]   ;;  %s24521_s30 = sld [smem:[%s24751_s0 + %s22041_s27]]   ;;  %s22043_s5 = smov 24  }
  0x29   :  { %5976 = vmatpush1.bf16.msra.mxu1 %v19408_v30  ;;  %6032 = vmatprep.subr.bf16.mxu0 %v19459_v41  ;;  %v19529_v30 = vld [vmem:[%s22074_s10 + $0x330] ss:$8 sps:$4 sm:$0xff]   ;;  %s16384_s4 = sld [smem:[%s24751_s0 + %s22042_s1]]   ;;  %s22044_s9 = smov 21  }
  0x2a   :  { %5977 = vmatprep.subr.bf16.mxu1 %v19416_v31  ;;  %6007 = vmatprep.mubr.bf16.mxu1 %v22136_v55  ;;  %v19537_v31 = vld [vmem:[%s22074_s10 + $0x344] ss:$8 sps:$4 sm:$0xff]   ;;  %v22195_v41 = vld [vmem:[%s22121_s17 + $0x10] sm:$0xff]  ;;  %s24597_s8 = sld [smem:[%s24751_s0 + %s22043_s5]]   ;;  %s22045_s13 = smov 26  }
  0x2b   :  { %s16386_s12 = sld [smem:[%s24751_s0 + %s22044_s9]]   ;;  %s22046_s18 = smov 23  }
  0x2c   :  { %6033 = vmatpush1.bf16.msra.mxu0 %v19461_v44  ;;  %v22204_v44 = vld [vmem:[%s22121_s17 + $0x18] sm:$0xff]  ;;  %s24640_s16 = sld [smem:[%s24751_s0 + %s22045_s13]]   ;;  %s22047_s22 = smov 28  }
  0x2d   :  { %5978 = vmatpush1.bf16.msra.mxu1 %v19414_v34  ;;  %6034 = vmatprep.subr.bf16.mxu0 %v19465_v45  ;;  %v19535_v34 = vld [vmem:[%s22074_s10 + $0x340] ss:$8 sps:$4 sm:$0xff]   ;;  %v19522_v45 = vld [vmem:[%s22074_s10 + $0x224] ss:$8 sps:$4 sm:$0xff]  }
  0x2e   :  { %5979 = vmatprep.subr.bf16.mxu1 %v19422_v35  ;;  %v19543_v35 = vld [vmem:[%s22074_s10 + $0x354] ss:$8 sps:$4 sm:$0xff]  }
  0x30   :  { %6035 = vmatpush1.bf16.msra.mxu0 %v19467_v48  ;;  %v19555_v48 = vld [vmem:[%s22074_s10 + $0x374] ss:$8 sps:$4 sm:$0xff]  }
  0x31   :  { %5980 = vmatpush1.bf16.msra.mxu1 %v19420_v38  ;;  %6036 = vmatprep.subr.bf16.mxu0 %v19471_v49  ;;  %v19516_v38 = vld [vmem:[%s22074_s10 + $0x214] ss:$8 sps:$4 sm:$0xff]   ;;  %v19520_v49 = vld [vmem:[%s22074_s10 + $0x220] ss:$8 sps:$4 sm:$0xff]  }
  0x32   :  { %5981 = vmatprep.subr.bf16.mxu1 %v19428_v39  ;;  %v19541_v39 = vld [vmem:[%s22074_s10 + $0x350] ss:$8 sps:$4 sm:$0xff]  }
  0x34   :  { %6037 = vmatpush1.bf16.msra.mxu0 %v19473_v52  ;;  %v19561_v52 = vld [vmem:[%s22074_s10 + $0x384] ss:$8 sps:$4 sm:$0xff]  }
  0x35   :  { %5982 = vmatpush1.bf16.msra.mxu1 %v19426_v42  ;;  %6038 = vmatprep.subr.bf16.mxu0 %v19477_v53  ;;  %v19514_v42 = vld [vmem:[%s22074_s10 + $0x210] ss:$8 sps:$4 sm:$0xff]  }
  0x36   :  { %5983 = vmatprep.subr.bf16.mxu1 %v19434_v43  ;;  %v22201_v43 = vcombine.high %v22195_v41, %v22195_v41  ;;  %v19526_v53 = vld [vmem:[%s22074_s10 + $0x230] ss:$8 sps:$4 sm:$0xff]  }
  0x38   :  { %6039 = vmatpush1.bf16.msra.mxu0 %v19479_v59  ;;  %v19540_v59 = vld [vmem:[%s22074_s10 + $0x254] ss:$8 sps:$4 sm:$0xff]  }
  0x39   :  { %5984 = vmatpush1.bf16.msra.mxu1 %v19432_v46  ;;  %6040 = vmatprep.subr.bf16.mxu0 %v19483_v61  ;;  %v22209_v46 = vcombine.high %v22204_v44, %v22204_v44  ;;  %v19565_v61 = vld [vmem:[%s22074_s10 + $0x390] ss:$8 sps:$4 sm:$0xff]  }
  0x3a   :  { %5985 = vmatprep.subr.bf16.mxu1 %v19440_v47  ;;  %v19547_v47 = vld [vmem:[%s22074_s10 + $0x360] ss:$8 sps:$4 sm:$0xff]  }
  0x3c   :  { %6041 = vmatpush1.bf16.msra.mxu0 %v19485_v1  ;;  %v19546_v1 = vld [vmem:[%s22074_s10 + $0x264] ss:$8 sps:$4 sm:$0xff]  }
  0x3d   :  { %5986 = vmatpush1.bf16.msra.mxu1 %v19438_v50  ;;  %6042 = vmatprep.subr.bf16.mxu0 %v19489_v2  ;;  %v19528_v50 = vld [vmem:[%s22074_s10 + $0x234] ss:$8 sps:$4 sm:$0xff]   ;;  %v19571_v2 = vld [vmem:[%s22074_s10 + $0x3a0] ss:$8 sps:$4 sm:$0xff]  }
  0x3e   :  { %5987 = vmatprep.subr.bf16.mxu1 %v19446_v51  ;;  %v19553_v51 = vld [vmem:[%s22074_s10 + $0x370] ss:$8 sps:$4 sm:$0xff]  }
  0x40   :  { %6043 = vmatpush1.bf16.msra.mxu0 %v19491_v5  ;;  %v19552_v5 = vld [vmem:[%s22074_s10 + $0x274] ss:$8 sps:$4 sm:$0xff]  }
  0x41   :  { %5988 = vmatpush1.bf16.msra.mxu1 %v19444_v56  ;;  %6044 = vmatprep.subr.bf16.mxu0 %v19495_v6  ;;  %v19559_v56 = vld [vmem:[%s22074_s10 + $0x380] ss:$8 sps:$4 sm:$0xff]   ;;  %v19577_v6 = vld [vmem:[%s22074_s10 + $0x3b0] ss:$8 sps:$4 sm:$0xff]  }
  0x42   :  { %5989 = vmatprep.subr.bf16.mxu1 %v19452_v58  ;;  %v19532_v58 = vld [vmem:[%s22074_s10 + $0x240] ss:$8 sps:$4 sm:$0xff]  }
  0x44   :  { %6045 = vmatpush1.bf16.msra.mxu0 %v19497_v9  ;;  %v19558_v9 = vld [vmem:[%s22074_s10 + $0x284] ss:$8 sps:$4 sm:$0xff]  }
  0x45   :  { %5990 = vmatpush1.bf16.msra.mxu1 %v19450_v62  ;;  %6046 = vmatprep.subr.bf16.mxu0 %v19501_v10  ;;  %v19573_v62 = vld [vmem:[%s22074_s10 + $0x3a4] ss:$8 sps:$4 sm:$0xff]   ;;  %v19583_v10 = vld [vmem:[%s22074_s10 + $0x3c0] ss:$8 sps:$4 sm:$0xff]  }
  0x46   :  { %5991 = vmatprep.subr.bf16.mxu1 %v19458_v63  ;;  %v19538_v63 = vld [vmem:[%s22074_s10 + $0x250] ss:$8 sps:$4 sm:$0xff]  }
  0x48   :  { %6047 = vmatpush1.bf16.msra.mxu0 %v19505_v13  ;;  %v19564_v13 = vld [vmem:[%s22074_s10 + $0x294] ss:$8 sps:$4 sm:$0xff]  }
  0x49   :  { %5992 = vmatpush1.bf16.msra.mxu1 %v19456_v3  ;;  %6098 = vmatprep.subr.bf16.mxu0 %v19513_v14  ;;  %v19579_v3 = vld [vmem:[%s22074_s10 + $0x3b4] ss:$8 sps:$4 sm:$0xff]   ;;  %v19589_v14 = vld [vmem:[%s22074_s10 + $0x3d0] ss:$8 sps:$4 sm:$0xff]  }
  0x4a   :  { %5993 = vmatprep.subr.bf16.mxu1 %v19464_v4  ;;  %v19544_v4 = vld [vmem:[%s22074_s10 + $0x260] ss:$8 sps:$4 sm:$0xff]  }
  0x4b   :  { %6049 = vmatmul.mubr.bf16.vlgmr.msra.gmra.mrb[0].mxu0 %v22164_v16 }
  0x4c   :  { %6099 = vmatpush1.bf16.msra.mxu0 %v19511_v18  ;;  %6130 = vmatprep.mubr.bf16.mxu0 %v22209_v46  ;;  %v19570_v18 = vld [vmem:[%s22074_s10 + $0x2a4] ss:$8 sps:$4 sm:$0xff]  }
  0x4d   :  { %5994 = vmatpush1.bf16.msra.mxu1 %v19462_v7  ;;  %6100 = vmatprep.subr.bf16.mxu0 %v19519_v19  ;;  %v19585_v7 = vld [vmem:[%s22074_s10 + $0x3c4] ss:$8 sps:$4 sm:$0xff]   ;;  %v19595_v19 = vld [vmem:[%s22074_s10 + $0x3e0] ss:$8 sps:$4 sm:$0xff]  }
  0x4e   :  { %5995 = vmatprep.subr.bf16.mxu1 %v19470_v8  ;;  %v19550_v8 = vld [vmem:[%s22074_s10 + $0x270] ss:$8 sps:$4 sm:$0xff]  }
  0x50   :  { %6101 = vmatpush1.bf16.msra.mxu0 %v19517_v22  ;;  %v19576_v22 = vld [vmem:[%s22074_s10 + $0x2b4] ss:$8 sps:$4 sm:$0xff]  }
  0x51   :  { %5996 = vmatpush1.bf16.msra.mxu1 %v19468_v11  ;;  %6102 = vmatprep.subr.bf16.mxu0 %v19525_v23  ;;  %v19591_v11 = vld [vmem:[%s22074_s10 + $0x3d4] ss:$8 sps:$4 sm:$0xff]   ;;  %v19601_v23 = vld [vmem:[%s22074_s10 + $0x3f0] ss:$8 sps:$4 sm:$0xff]  }
  0x52   :  { %5997 = vmatprep.subr.bf16.mxu1 %v19476_v12  ;;  %v19556_v12 = vld [vmem:[%s22074_s10 + $0x280] ss:$8 sps:$4 sm:$0xff]  }
  0x54   :  { %6103 = vmatpush1.bf16.msra.mxu0 %v19523_v26  ;;  %v22254_v26 = vcombine.low %v22204_v44, %v22204_v44  ;;  %v19600_v44 = vld [vmem:[%s22074_s10 + $0x2f4] ss:$8 sps:$4 sm:$0xff]  }
  0x55   :  { %5998 = vmatpush1.bf16.msra.mxu1 %v19474_v15  ;;  %6104 = vmatprep.subr.bf16.mxu0 %v19531_v27  ;;  %v19597_v15 = vld [vmem:[%s22074_s10 + $0x3e4] ss:$8 sps:$4 sm:$0xff]  }
  0x56   :  { %5999 = vmatprep.subr.bf16.mxu1 %v19482_v17  ;;  %v19562_v17 = vld [vmem:[%s22074_s10 + $0x290] ss:$8 sps:$4 sm:$0xff]   ;;  %v19582_v27 = vld [vmem:[%s22074_s10 + $0x2c4] ss:$8 sps:$4 sm:$0xff]  }
  0x58   :  { %6105 = vmatpush1.bf16.msra.mxu0 %v19529_v30  ;;  %v22260_v30 = vld [vmem:[%s22121_s17 + $0x28] sm:$0xff] }
  0x59   :  { %6000 = vmatpush1.bf16.msra.mxu1 %v19480_v20  ;;  %6106 = vmatprep.subr.bf16.mxu0 %v19537_v31  ;;  %v19603_v20 = vld [vmem:[%s22074_s10 + $0x3f4] ss:$8 sps:$4 sm:$0xff]   ;;  %v19580_v31 = vld [vmem:[%s22074_s10 + $0x2c0] ss:$8 sps:$4 sm:$0xff]  }
  0x5a   :  { %6001 = vmatprep.subr.bf16.mxu1 %v19488_v21  ;;  %v19568_v21 = vld [vmem:[%s22074_s10 + $0x2a0] ss:$8 sps:$4 sm:$0xff]  }
  0x5c   :  { %6107 = vmatpush1.bf16.msra.mxu0 %v19535_v34  ;;  %v19617_v34 = vld [vmem:[%s22074_s10 + $0x510] ss:$8 sps:$4 sm:$0xff]  }
  0x5d   :  { %6002 = vmatpush1.bf16.msra.mxu1 %v19486_v24  ;;  %6108 = vmatprep.subr.bf16.mxu0 %v19543_v35  ;;  %v19613_v24 = vld [vmem:[%s22074_s10 + $0x504] ss:$8 sps:$4 sm:$0xff]  }
  0x5e   :  { %6003 = vmatprep.subr.bf16.mxu1 %v19494_v25  ;;  %v19574_v25 = vld [vmem:[%s22074_s10 + $0x2b0] ss:$8 sps:$4 sm:$0xff]   ;;  %v19625_v35 = vld [vmem:[%s22074_s10 + $0x524] ss:$8 sps:$4 sm:$0xff]  }
  0x60   :  { %6109 = vmatpush1.bf16.msra.mxu0 %v19541_v39  ;;  %v19623_v39 = vld [vmem:[%s22074_s10 + $0x520] ss:$8 sps:$4 sm:$0xff]  }
  0x61   :  { %6004 = vmatpush1.bf16.msra.mxu1 %v19492_v28  ;;  %6110 = vmatprep.subr.bf16.mxu0 %v19549_v40  ;;  %v19611_v28 = vld [vmem:[%s22074_s10 + $0x500] ss:$8 sps:$4 sm:$0xff]   ;;  %v19631_v40 = vld [vmem:[%s22074_s10 + $0x534] ss:$8 sps:$4 sm:$0xff]  }
  0x62   :  { %6005 = vmatprep.subr.bf16.mxu1 %v19500_v29  ;;  %v19619_v29 = vld [vmem:[%s22074_s10 + $0x514] ss:$8 sps:$4 sm:$0xff]  }
  0x64   :  { %6111 = vmatpush1.bf16.msra.mxu0 %v19547_v47  ;;  %v19637_v47 = vld [vmem:[%s22074_s10 + $0x544] ss:$8 sps:$4 sm:$0xff]  }
  0x65   :  { %6006 = vmatpush1.bf16.msra.mxu1 %v19498_v32  ;;  %6112 = vmatprep.subr.bf16.mxu0 %v19555_v48  ;;  %v22266_v32 = vcombine.high %v22260_v30, %v22260_v30  ;;  %v19598_v48 = vld [vmem:[%s22074_s10 + $0x2f0] ss:$8 sps:$4 sm:$0xff]  }
  0x66   :  { %6057 = vmatprep.subr.bf16.mxu1 %v19508_v33  ;;  %v19588_v33 = vld [vmem:[%s22074_s10 + $0x2d4] ss:$8 sps:$4 sm:$0xff]  }
  0x68   :  { %6008 = vmatmul.mubr.bf16.vlgmr.msra.gmra.mrb[4].mxu1 %v22188_v36  ;;  %6113 = vmatpush1.bf16.msra.mxu0 %v19553_v51  ;;  %v22284_v51 = vld [vmem:[%s22121_s17 + $0x20] sm:$0xff] }
  0x69   :  { %6058 = vmatpush1.bf16.msra.mxu1 %v19506_v37  ;;  %6089 = vmatprep.mubr.bf16.mxu1 %v22201_v43  ;;  %v19586_v37 = vld [vmem:[%s22074_s10 + $0x2d0] ss:$8 sps:$4 sm:$0xff]  }
  0x6a   :  { %6059 = vmatprep.subr.bf16.mxu1 %v19516_v38  ;;  %6114 = vmatprep.subr.bf16.mxu0 %v19561_v52  ;;  %v19594_v38 = vld [vmem:[%s22074_s10 + $0x2e4] ss:$8 sps:$4 sm:$0xff]   ;;  %v19643_v52 = vld [vmem:[%s22074_s10 + $0x554] ss:$8 sps:$4 sm:$0xff]  }
  0x6c   :  { %6115 = vmatpush1.bf16.msra.mxu0 %v19559_v56  ;;  %v22294_v56 = vcombine.high %v22284_v51, %v22284_v51 }
  0x6d   :  { %6060 = vmatpush1.bf16.msra.mxu1 %v19514_v42  ;;  %6116 = vmatprep.subr.bf16.mxu0 %v19567_v57  ;;  %v19592_v42 = vld [vmem:[%s22074_s10 + $0x2e0] ss:$8 sps:$4 sm:$0xff]   ;;  %v19616_v57 = vld [vmem:[%s22074_s10 + $0x414] ss:$8 sps:$4 sm:$0xff]  }
  0x6e   :  { %6061 = vmatprep.subr.bf16.mxu1 %v19522_v45  ;;  %v19629_v45 = vld [vmem:[%s22074_s10 + $0x530] ss:$8 sps:$4 sm:$0xff]  }
  0x70   :  { %6117 = vmatpush1.bf16.msra.mxu0 %v19565_v61  ;;  %v19622_v61 = vld [vmem:[%s22074_s10 + $0x424] ss:$8 sps:$4 sm:$0xff]  }
  0x71   :  { %6062 = vmatpush1.bf16.msra.mxu1 %v19520_v49  ;;  %6118 = vmatprep.subr.bf16.mxu0 %v19573_v62  ;;  %v19608_v49 = vld [vmem:[%s22074_s10 + $0x404] ss:$8 sps:$4 sm:$0xff]   ;;  %v19647_v62 = vld [vmem:[%s22074_s10 + $0x560] ss:$8 sps:$4 sm:$0xff]  }
  0x72   :  { %6063 = vmatprep.subr.bf16.mxu1 %v19528_v50  ;;  %v19635_v50 = vld [vmem:[%s22074_s10 + $0x540] ss:$8 sps:$4 sm:$0xff]  }
  0x74   :  { %6119 = vmatpush1.bf16.msra.mxu0 %v19571_v2  ;;  %v19628_v2 = vld [vmem:[%s22074_s10 + $0x434] ss:$8 sps:$4 sm:$0xff]  }
  0x75   :  { %6064 = vmatpush1.bf16.msra.mxu1 %v19526_v53  ;;  %6120 = vmatprep.subr.bf16.mxu0 %v19579_v3  ;;  %v22289_v53 = vcombine.low %v22195_v41, %v22195_v41  ;;  %v19614_v41 = vld [vmem:[%s22074_s10 + $0x410] ss:$8 sps:$4 sm:$0xff]  }
  0x76   :  { %6065 = vmatprep.subr.bf16.mxu1 %v19534_v54  ;;  %v19606_v54 = vld [vmem:[%s22074_s10 + $0x400] ss:$8 sps:$4 sm:$0xff]   ;;  %v19653_v3 = vld [vmem:[%s22074_s10 + $0x570] ss:$8 sps:$4 sm:$0xff]  }
  0x78   :  { %6121 = vmatpush1.bf16.msra.mxu0 %v19577_v6  ;;  %v19634_v6 = vld [vmem:[%s22074_s10 + $0x444] ss:$8 sps:$4 sm:$0xff]  }
  0x79   :  { %6066 = vmatpush1.bf16.msra.mxu1 %v19532_v58  ;;  %6122 = vmatprep.subr.bf16.mxu0 %v19585_v7  ;;  %v19641_v58 = vld [vmem:[%s22074_s10 + $0x550] ss:$8 sps:$4 sm:$0xff]   ;;  %v19659_v7 = vld [vmem:[%s22074_s10 + $0x580] ss:$8 sps:$4 sm:$0xff]  }
  0x7a   :  { %6067 = vmatprep.subr.bf16.mxu1 %v19540_v59  ;;  %v19649_v59 = vld [vmem:[%s22074_s10 + $0x564] ss:$8 sps:$4 sm:$0xff]  }
  0x7c   :  { %6123 = vmatpush1.bf16.msra.mxu0 %v19583_v10  ;;  %v19640_v10 = vld [vmem:[%s22074_s10 + $0x454] ss:$8 sps:$4 sm:$0xff]  }
  0x7d   :  { %6068 = vmatpush1.bf16.msra.mxu1 %v19538_v63  ;;  %6124 = vmatprep.subr.bf16.mxu0 %v19591_v11  ;;  %v19655_v63 = vld [vmem:[%s22074_s10 + $0x574] ss:$8 sps:$4 sm:$0xff]   ;;  %v19665_v11 = vld [vmem:[%s22074_s10 + $0x590] ss:$8 sps:$4 sm:$0xff]  }
  0x7e   :  { %6069 = vmatprep.subr.bf16.mxu1 %v19546_v1  ;;  %v19620_v1 = vld [vmem:[%s22074_s10 + $0x420] ss:$8 sps:$4 sm:$0xff]  }
  0x80   :  { %6125 = vmatpush1.bf16.msra.mxu0 %v19589_v14  ;;  %v19646_v14 = vld [vmem:[%s22074_s10 + $0x464] ss:$8 sps:$4 sm:$0xff]  }
  0x81   :  { %6070 = vmatpush1.bf16.msra.mxu1 %v19544_v4  ;;  %6126 = vmatprep.subr.bf16.mxu0 %v19597_v15  ;;  %v19661_v4 = vld [vmem:[%s22074_s10 + $0x584] ss:$8 sps:$4 sm:$0xff]   ;;  %v19671_v15 = vld [vmem:[%s22074_s10 + $0x5a0] ss:$8 sps:$4 sm:$0xff]  }
  0x82   :  { %6071 = vmatprep.subr.bf16.mxu1 %v19552_v5  ;;  %v19626_v5 = vld [vmem:[%s22074_s10 + $0x430] ss:$8 sps:$4 sm:$0xff]  }
  0x84   :  { %6127 = vmatpush1.bf16.msra.mxu0 %v19595_v19  ;;  %v19652_v19 = vld [vmem:[%s22074_s10 + $0x474] ss:$8 sps:$4 sm:$0xff]  }
  0x85   :  { %6072 = vmatpush1.bf16.msra.mxu1 %v19550_v8  ;;  %6128 = vmatprep.subr.bf16.mxu0 %v19603_v20  ;;  %v19667_v8 = vld [vmem:[%s22074_s10 + $0x594] ss:$8 sps:$4 sm:$0xff]   ;;  %v19677_v20 = vld [vmem:[%s22074_s10 + $0x5b0] ss:$8 sps:$4 sm:$0xff]  }
  0x86   :  { %6073 = vmatprep.subr.bf16.mxu1 %v19558_v9  ;;  %v19632_v9 = vld [vmem:[%s22074_s10 + $0x440] ss:$8 sps:$4 sm:$0xff]  }
  0x88   :  { %6129 = vmatpush1.bf16.msra.mxu0 %v19601_v23  ;;  %v19658_v23 = vld [vmem:[%s22074_s10 + $0x484] ss:$8 sps:$4 sm:$0xff]  }
  0x89   :  { %6074 = vmatpush1.bf16.msra.mxu1 %v19556_v12  ;;  %6180 = vmatprep.subr.bf16.mxu0 %v19613_v24  ;;  %v19673_v12 = vld [vmem:[%s22074_s10 + $0x5a4] ss:$8 sps:$4 sm:$0xff]   ;;  %v19683_v24 = vld [vmem:[%s22074_s10 + $0x5c0] ss:$8 sps:$4 sm:$0xff]  }
  0x8a   :  { %6075 = vmatprep.subr.bf16.mxu1 %v19564_v13  ;;  %v19638_v13 = vld [vmem:[%s22074_s10 + $0x450] ss:$8 sps:$4 sm:$0xff]  }
  0x8b   :  { %6131 = vmatmul.mubr.bf16.vlgmr.msra.gmra.mrb[4].mxu0 %v22254_v26 }
  0x8c   :  { %6181 = vmatpush1.bf16.msra.mxu0 %v19611_v28  ;;  %6212 = vmatprep.mubr.bf16.mxu0 %v22266_v32  ;;  %v19664_v28 = vld [vmem:[%s22074_s10 + $0x494] ss:$8 sps:$4 sm:$0xff]  }
  0x8d   :  { %6076 = vmatpush1.bf16.msra.mxu1 %v19562_v17  ;;  %6182 = vmatprep.subr.bf16.mxu0 %v19619_v29  ;;  %v19679_v17 = vld [vmem:[%s22074_s10 + $0x5b4] ss:$8 sps:$4 sm:$0xff]   ;;  %v19689_v29 = vld [vmem:[%s22074_s10 + $0x5d0] ss:$8 sps:$4 sm:$0xff]  }
  0x8e   :  { %6077 = vmatprep.subr.bf16.mxu1 %v19570_v18  ;;  %v19644_v18 = vld [vmem:[%s22074_s10 + $0x460] ss:$8 sps:$4 sm:$0xff]  }
  0x90   :  { %6183 = vmatpush1.bf16.msra.mxu0 %v19617_v34  ;;  %v19670_v34 = vld [vmem:[%s22074_s10 + $0x4a4] ss:$8 sps:$4 sm:$0xff]  }
  0x91   :  { %6078 = vmatpush1.bf16.msra.mxu1 %v19568_v21  ;;  %6184 = vmatprep.subr.bf16.mxu0 %v19625_v35  ;;  %v19685_v21 = vld [vmem:[%s22074_s10 + $0x5c4] ss:$8 sps:$4 sm:$0xff]   ;;  %v19695_v35 = vld [vmem:[%s22074_s10 + $0x5e0] ss:$8 sps:$4 sm:$0xff]  }
  0x92   :  { %6079 = vmatprep.subr.bf16.mxu1 %v19576_v22  ;;  %v19650_v22 = vld [vmem:[%s22074_s10 + $0x470] ss:$8 sps:$4 sm:$0xff]  }
  0x94   :  { %6185 = vmatpush1.bf16.msra.mxu0 %v19623_v39  ;;  %v19676_v39 = vld [vmem:[%s22074_s10 + $0x4b4] ss:$8 sps:$4 sm:$0xff]  }
  0x95   :  { %6080 = vmatpush1.bf16.msra.mxu1 %v19574_v25  ;;  %6186 = vmatprep.subr.bf16.mxu0 %v19631_v40  ;;  %v19691_v25 = vld [vmem:[%s22074_s10 + $0x5d4] ss:$8 sps:$4 sm:$0xff]   ;;  %v19701_v40 = vld [vmem:[%s22074_s10 + $0x5f0] ss:$8 sps:$4 sm:$0xff]  }
  0x96   :  { %6081 = vmatprep.subr.bf16.mxu1 %v19582_v27  ;;  %v19656_v27 = vld [vmem:[%s22074_s10 + $0x480] ss:$8 sps:$4 sm:$0xff]  }
  0x98   :  { %6187 = vmatpush1.bf16.msra.mxu0 %v19629_v45  ;;  %v22343_v45 = vld [vmem:[%s22121_s17 + $0x38] sm:$0xff] }
  0x99   :  { %6082 = vmatpush1.bf16.msra.mxu1 %v19580_v31  ;;  %6188 = vmatprep.subr.bf16.mxu0 %v19637_v47  ;;  %v19697_v31 = vld [vmem:[%s22074_s10 + $0x5e4] ss:$8 sps:$4 sm:$0xff]  }
  0x9a   :  { %6083 = vmatprep.subr.bf16.mxu1 %v19588_v33  ;;  %v19662_v33 = vld [vmem:[%s22074_s10 + $0x490] ss:$8 sps:$4 sm:$0xff]   ;;  %v19682_v47 = vld [vmem:[%s22074_s10 + $0x4c4] ss:$8 sps:$4 sm:$0xff]  }
  0x9c   :  { %6189 = vmatpush1.bf16.msra.mxu0 %v19635_v50  ;;  %v19719_v50 = vld [vmem:[%s22074_s10 + $0x714] ss:$8 sps:$4 sm:$0xff]  }
  0x9d   :  { %6084 = vmatpush1.bf16.msra.mxu1 %v19586_v37  ;;  %6190 = vmatprep.subr.bf16.mxu0 %v19643_v52  ;;  %v19703_v37 = vld [vmem:[%s22074_s10 + $0x5f4] ss:$8 sps:$4 sm:$0xff]   ;;  %v22354_v52 = vcombine.high %v22343_v45, %v22343_v45 }
  0x9e   :  { %6085 = vmatprep.subr.bf16.mxu1 %v19594_v38  ;;  %v19668_v38 = vld [vmem:[%s22074_s10 + $0x4a0] ss:$8 sps:$4 sm:$0xff]  }
  0xa0   :  { %6191 = vmatpush1.bf16.msra.mxu0 %v19641_v58  ;;  %v19725_v58 = vld [vmem:[%s22074_s10 + $0x724] ss:$8 sps:$4 sm:$0xff]  }
  0xa1   :  { %6086 = vmatpush1.bf16.msra.mxu1 %v19592_v42  ;;  %6192 = vmatprep.subr.bf16.mxu0 %v19649_v59  ;;  %v19713_v42 = vld [vmem:[%s22074_s10 + $0x704] ss:$8 sps:$4 sm:$0xff]   ;;  %v19686_v59 = vld [vmem:[%s22074_s10 + $0x4d0] ss:$8 sps:$4 sm:$0xff]  }
  0xa2   :  { %6087 = vmatprep.subr.bf16.mxu1 %v19600_v44  ;;  %v19674_v44 = vld [vmem:[%s22074_s10 + $0x4b0] ss:$8 sps:$4 sm:$0xff]  }
  0xa4   :  { %6193 = vmatpush1.bf16.msra.mxu0 %v19647_v62  ;;  %v19731_v62 = vld [vmem:[%s22074_s10 + $0x734] ss:$8 sps:$4 sm:$0xff]  }
  0xa5   :  { %6088 = vmatpush1.bf16.msra.mxu1 %v19598_v48  ;;  %6194 = vmatprep.subr.bf16.mxu0 %v19655_v63  ;;  %v22348_v48 = vcombine.low %v22260_v30, %v22260_v30  ;;  %v19717_v30 = vld [vmem:[%s22074_s10 + $0x710] ss:$8 sps:$4 sm:$0xff]   ;;  %v19692_v63 = vld [vmem:[%s22074_s10 + $0x4e0] ss:$8 sps:$4 sm:$0xff]  }
  0xa6   :  { %6139 = vmatprep.subr.bf16.mxu1 %v19608_v49  ;;  %v19711_v49 = vld [vmem:[%s22074_s10 + $0x700] ss:$8 sps:$4 sm:$0xff]  }
  0xa8   :  { %6090 = vmatmul.mubr.bf16.vlgmr.msra.gmra.mrb[8].mxu1 %v22289_v53  ;;  %6195 = vmatpush1.bf16.msra.mxu0 %v19653_v3  ;;  %v19737_v3 = vld [vmem:[%s22074_s10 + $0x744] ss:$8 sps:$4 sm:$0xff]  }
  0xa9   :  { %6140 = vmatpush1.bf16.msra.mxu1 %v19606_v54  ;;  %6171 = vmatprep.mubr.bf16.mxu1 %v22294_v56  ;;  %v19680_v54 = vld [vmem:[%s22074_s10 + $0x4c0] ss:$8 sps:$4 sm:$0xff]  }
  0xaa   :  { %6141 = vmatprep.subr.bf16.mxu1 %v19616_v57  ;;  %6196 = vmatprep.subr.bf16.mxu0 %v19661_v4  ;;  %v19688_v57 = vld [vmem:[%s22074_s10 + $0x4d4] ss:$8 sps:$4 sm:$0xff]   ;;  %v19698_v4 = vld [vmem:[%s22074_s10 + $0x4f0] ss:$8 sps:$4 sm:$0xff]  }
  0xac   :  { %6197 = vmatpush1.bf16.msra.mxu0 %v19659_v7  ;;  %v22374_v7 = vld [vmem:[%s22121_s17 + $0x30] sm:$0xff] }
  0xad   :  { %6142 = vmatpush1.bf16.msra.mxu1 %v19614_v41  ;;  %6198 = vmatprep.subr.bf16.mxu0 %v19667_v8  ;;  %v19694_v41 = vld [vmem:[%s22074_s10 + $0x4e4] ss:$8 sps:$4 sm:$0xff]   ;;  %v19743_v8 = vld [vmem:[%s22074_s10 + $0x754] ss:$8 sps:$4 sm:$0xff]  }
  0xae   :  { %6143 = vmatprep.subr.bf16.mxu1 %v19622_v61  ;;  %v19723_v61 = vld [vmem:[%s22074_s10 + $0x720] ss:$8 sps:$4 sm:$0xff]  }
  0xb0   :  { %6199 = vmatpush1.bf16.msra.mxu0 %v19665_v11  ;;  %v19716_v11 = vld [vmem:[%s22074_s10 + $0x614] ss:$8 sps:$4 sm:$0xff]  }
  0xb1   :  { %6144 = vmatpush1.bf16.msra.mxu1 %v19620_v1  ;;  %6200 = vmatprep.subr.bf16.mxu0 %v19673_v12  ;;  %v19700_v1 = vld [vmem:[%s22074_s10 + $0x4f4] ss:$8 sps:$4 sm:$0xff]   ;;  %v22385_v12 = vcombine.high %v22374_v7, %v22374_v7 }
  0xb2   :  { %6145 = vmatprep.subr.bf16.mxu1 %v19628_v2  ;;  %v19729_v2 = vld [vmem:[%s22074_s10 + $0x730] ss:$8 sps:$4 sm:$0xff]  }
  0xb4   :  { %6201 = vmatpush1.bf16.msra.mxu0 %v19671_v15  ;;  %v19722_v15 = vld [vmem:[%s22074_s10 + $0x624] ss:$8 sps:$4 sm:$0xff]  }
  0xb5   :  { %6146 = vmatpush1.bf16.msra.mxu1 %v19626_v5  ;;  %6202 = vmatprep.subr.bf16.mxu0 %v19679_v17  ;;  %v19708_v5 = vld [vmem:[%s22074_s10 + $0x604] ss:$8 sps:$4 sm:$0xff]   ;;  %v19747_v17 = vld [vmem:[%s22074_s10 + $0x760] ss:$8 sps:$4 sm:$0xff]  }
  0xb6   :  { %6147 = vmatprep.subr.bf16.mxu1 %v19634_v6  ;;  %v19735_v6 = vld [vmem:[%s22074_s10 + $0x740] ss:$8 sps:$4 sm:$0xff]  }
  0xb8   :  { %6203 = vmatpush1.bf16.msra.mxu0 %v19677_v20  ;;  %v19728_v20 = vld [vmem:[%s22074_s10 + $0x634] ss:$8 sps:$4 sm:$0xff]  }
  0xb9   :  { %6148 = vmatpush1.bf16.msra.mxu1 %v19632_v9  ;;  %6204 = vmatprep.subr.bf16.mxu0 %v19685_v21  ;;  %v22379_v9 = vcombine.low %v22284_v51, %v22284_v51  ;;  %v19714_v51 = vld [vmem:[%s22074_s10 + $0x610] ss:$8 sps:$4 sm:$0xff]  }
  0xba   :  { %6149 = vmatprep.subr.bf16.mxu1 %v19640_v10  ;;  %v19706_v10 = vld [vmem:[%s22074_s10 + $0x600] ss:$8 sps:$4 sm:$0xff]   ;;  %v19753_v21 = vld [vmem:[%s22074_s10 + $0x770] ss:$8 sps:$4 sm:$0xff]  }
  0xbc   :  { %6205 = vmatpush1.bf16.msra.mxu0 %v19683_v24  ;;  %v19734_v24 = vld [vmem:[%s22074_s10 + $0x644] ss:$8 sps:$4 sm:$0xff]  }
  0xbd   :  { %6150 = vmatpush1.bf16.msra.mxu1 %v19638_v13  ;;  %6206 = vmatprep.subr.bf16.mxu0 %v19691_v25  ;;  %v19741_v13 = vld [vmem:[%s22074_s10 + $0x750] ss:$8 sps:$4 sm:$0xff]   ;;  %v19759_v25 = vld [vmem:[%s22074_s10 + $0x780] ss:$8 sps:$4 sm:$0xff]  }
  0xbe   :  { %6151 = vmatprep.subr.bf16.mxu1 %v19646_v14  ;;  %v19749_v14 = vld [vmem:[%s22074_s10 + $0x764] ss:$8 sps:$4 sm:$0xff]  }
  0xc0   :  { %6207 = vmatpush1.bf16.msra.mxu0 %v19689_v29  ;;  %v19740_v29 = vld [vmem:[%s22074_s10 + $0x654] ss:$8 sps:$4 sm:$0xff]  }
  0xc1   :  { %6152 = vmatpush1.bf16.msra.mxu1 %v19644_v18  ;;  %6208 = vmatprep.subr.bf16.mxu0 %v19697_v31  ;;  %v19755_v18 = vld [vmem:[%s22074_s10 + $0x774] ss:$8 sps:$4 sm:$0xff]   ;;  %v19765_v31 = vld [vmem:[%s22074_s10 + $0x790] ss:$8 sps:$4 sm:$0xff]  }
  0xc2   :  { %6153 = vmatprep.subr.bf16.mxu1 %v19652_v19  ;;  %v19720_v19 = vld [vmem:[%s22074_s10 + $0x620] ss:$8 sps:$4 sm:$0xff]  }
  0xc4   :  { %6209 = vmatpush1.bf16.msra.mxu0 %v19695_v35  ;;  %v19746_v35 = vld [vmem:[%s22074_s10 + $0x664] ss:$8 sps:$4 sm:$0xff]  }
  0xc5   :  { %6154 = vmatpush1.bf16.msra.mxu1 %v19650_v22  ;;  %6210 = vmatprep.subr.bf16.mxu0 %v19703_v37  ;;  %v19761_v22 = vld [vmem:[%s22074_s10 + $0x784] ss:$8 sps:$4 sm:$0xff]   ;;  %v19771_v37 = vld [vmem:[%s22074_s10 + $0x7a0] ss:$8 sps:$4 sm:$0xff]  }
  0xc6   :  { %6155 = vmatprep.subr.bf16.mxu1 %v19658_v23  ;;  %v19726_v23 = vld [vmem:[%s22074_s10 + $0x630] ss:$8 sps:$4 sm:$0xff]  }
  0xc8   :  { %6211 = vmatpush1.bf16.msra.mxu0 %v19701_v40 }
  0xc9   :  { %6156 = vmatpush1.bf16.msra.mxu1 %v19656_v27  ;;  %6262 = vmatprep.subr.bf16.mxu0 %v19713_v42  ;;  %v19767_v27 = vld [vmem:[%s22074_s10 + $0x794] ss:$8 sps:$4 sm:$0xff]   ;;  %v19744_v42 = vld [vmem:[%s22074_s10 + $0x660] ss:$8 sps:$4 sm:$0xff]  }
  0xca   :  { %6157 = vmatprep.subr.bf16.mxu1 %v19664_v28  ;;  %v19732_v28 = vld [vmem:[%s22074_s10 + $0x640] ss:$8 sps:$4 sm:$0xff]  }
  0xcb   :  { %6213 = vmatmul.mubr.bf16.vlgmr.msra.gmra.mrb[8].mxu0 %v22348_v48 }
  0xcc   :  { %6263 = vmatpush1.bf16.msra.mxu0 %v19711_v49  ;;  %6294 = vmatprep.mubr.bf16.mxu0 %v22354_v52 }
  0xcd   :  { %6158 = vmatpush1.bf16.msra.mxu1 %v19662_v33  ;;  %6264 = vmatprep.subr.bf16.mxu0 %v19719_v50  ;;  %v19773_v33 = vld [vmem:[%s22074_s10 + $0x7a4] ss:$8 sps:$4 sm:$0xff]   ;;  %v19777_v50 = vld [vmem:[%s22074_s10 + $0x7b0] ss:$8 sps:$4 sm:$0xff]  }
  0xce   :  { %6159 = vmatprep.subr.bf16.mxu1 %v19670_v34  ;;  %v19738_v34 = vld [vmem:[%s22074_s10 + $0x650] ss:$8 sps:$4 sm:$0xff]  }
  0xd0   :  { %6265 = vmatpush1.bf16.msra.mxu0 %v19717_v30  ;;  %v19758_v30 = vld [vmem:[%s22074_s10 + $0x684] ss:$8 sps:$4 sm:$0xff]  }
  0xd1   :  { %6160 = vmatpush1.bf16.msra.mxu1 %v19668_v38  ;;  %6266 = vmatprep.subr.bf16.mxu0 %v19725_v58  ;;  %v19783_v58 = vld [vmem:[%s22074_s10 + $0x7c0] ss:$8 sps:$4 sm:$0xff]  }
  0xd2   :  { %6161 = vmatprep.subr.bf16.mxu1 %v19676_v39  ;;  %v19779_v39 = vld [vmem:[%s22074_s10 + $0x7b4] ss:$8 sps:$4 sm:$0xff]  }
  0xd4   :  { %6267 = vmatpush1.bf16.msra.mxu0 %v19723_v61  ;;  %v19764_v61 = vld [vmem:[%s22074_s10 + $0x694] ss:$8 sps:$4 sm:$0xff]  }
  0xd5   :  { %6162 = vmatpush1.bf16.msra.mxu1 %v19674_v44  ;;  %6268 = vmatprep.subr.bf16.mxu0 %v19731_v62  ;;  %v19789_v62 = vld [vmem:[%s22074_s10 + $0x7d0] ss:$8 sps:$4 sm:$0xff]  }
  0xd6   :  { %6163 = vmatprep.subr.bf16.mxu1 %v19682_v47  ;;  %v19752_v47 = vld [vmem:[%s22074_s10 + $0x674] ss:$8 sps:$4 sm:$0xff]  }
  0xd8   :  { %6269 = vmatpush1.bf16.msra.mxu0 %v19729_v2  ;;  %v19770_v2 = vld [vmem:[%s22074_s10 + $0x6a4] ss:$8 sps:$4 sm:$0xff]  }
  0xd9   :  { %6164 = vmatpush1.bf16.msra.mxu1 %v19680_v54  ;;  %6270 = vmatprep.subr.bf16.mxu0 %v19737_v3  ;;  %v19785_v54 = vld [vmem:[%s22074_s10 + $0x7c4] ss:$8 sps:$4 sm:$0xff]   ;;  %v19795_v3 = vld [vmem:[%s22074_s10 + $0x7e0] ss:$8 sps:$4 sm:$0xff]  }
  0xda   :  { %6165 = vmatprep.subr.bf16.mxu1 %v19688_v57  ;;  %v19750_v57 = vld [vmem:[%s22074_s10 + $0x670] ss:$8 sps:$4 sm:$0xff]  }
  0xdc   :  { %6271 = vmatpush1.bf16.msra.mxu0 %v19735_v6  ;;  %v19776_v6 = vld [vmem:[%s22074_s10 + $0x6b4] ss:$8 sps:$4 sm:$0xff]  }
  0xdd   :  { %6166 = vmatpush1.bf16.msra.mxu1 %v19686_v59  ;;  %6272 = vmatprep.subr.bf16.mxu0 %v19743_v8  ;;  %v19791_v59 = vld [vmem:[%s22074_s10 + $0x7d4] ss:$8 sps:$4 sm:$0xff]   ;;  %v19801_v8 = vld [vmem:[%s22074_s10 + $0x7f0] ss:$8 sps:$4 sm:$0xff]  }
  0xde   :  { %6167 = vmatprep.subr.bf16.mxu1 %v19694_v41  ;;  %v19756_v41 = vld [vmem:[%s22074_s10 + $0x680] ss:$8 sps:$4 sm:$0xff]  }
  0xe0   :  { %6273 = vmatpush1.bf16.msra.mxu0 %v19741_v13  ;;  %v22437_v13 = vld [vmem:[%s22121_s17 + $0x48] sm:$0xff] }
  0xe1   :  { %6168 = vmatpush1.bf16.msra.mxu1 %v19692_v63  ;;  %6274 = vmatprep.subr.bf16.mxu0 %v19749_v14  ;;  %v19797_v63 = vld [vmem:[%s22074_s10 + $0x7e4] ss:$8 sps:$4 sm:$0xff]  }
  0xe2   :  { %6169 = vmatprep.subr.bf16.mxu1 %v19700_v1  ;;  %v19762_v1 = vld [vmem:[%s22074_s10 + $0x690] ss:$8 sps:$4 sm:$0xff]   ;;  %v19782_v14 = vld [vmem:[%s22074_s10 + $0x6c4] ss:$8 sps:$4 sm:$0xff]  }
  0xe4   :  { %6275 = vmatpush1.bf16.msra.mxu0 %v19747_v17  ;;  %v19819_v17 = vld [vmem:[%s22074_s10 + $0x914] ss:$8 sps:$4 sm:$0xff]  }
  0xe5   :  { %6170 = vmatpush1.bf16.msra.mxu1 %v19698_v4  ;;  %6276 = vmatprep.subr.bf16.mxu0 %v19755_v18  ;;  %v19803_v4 = vld [vmem:[%s22074_s10 + $0x7f4] ss:$8 sps:$4 sm:$0xff]   ;;  %v22448_v18 = vcombine.high %v22437_v13, %v22437_v13 }
  0xe6   :  { %6221 = vmatprep.subr.bf16.mxu1 %v19708_v5  ;;  %v19768_v5 = vld [vmem:[%s22074_s10 + $0x6a0] ss:$8 sps:$4 sm:$0xff]  }
  0xe8   :  { %6172 = vmatmul.mubr.bf16.vlgmr.msra.gmra.mrb[12].mxu1 %v22379_v9  ;;  %6277 = vmatpush1.bf16.msra.mxu0 %v19753_v21  ;;  %v19825_v21 = vld [vmem:[%s22074_s10 + $0x924] ss:$8 sps:$4 sm:$0xff]  }
  0xe9   :  { %6222 = vmatpush1.bf16.msra.mxu1 %v19706_v10  ;;  %6253 = vmatprep.mubr.bf16.mxu1 %v22385_v12  ;;  %v19813_v10 = vld [vmem:[%s22074_s10 + $0x904] ss:$8 sps:$4 sm:$0xff]  }
  0xea   :  { %6223 = vmatprep.subr.bf16.mxu1 %v19716_v11  ;;  %6278 = vmatprep.subr.bf16.mxu0 %v19761_v22  ;;  %v19774_v11 = vld [vmem:[%s22074_s10 + $0x6b0] ss:$8 sps:$4 sm:$0xff]  }
  0xeb   :  { %v19786_v22 = vld [vmem:[%s22074_s10 + $0x6d0] ss:$8 sps:$4 sm:$0xff]  }
  0xec   :  { %6279 = vmatpush1.bf16.msra.mxu0 %v19759_v25  ;;  %v19831_v25 = vld [vmem:[%s22074_s10 + $0x934] ss:$8 sps:$4 sm:$0xff]  }
  0xed   :  { %6224 = vmatpush1.bf16.msra.mxu1 %v19714_v51  ;;  %6280 = vmatprep.subr.bf16.mxu0 %v19767_v27  ;;  %v22442_v51 = vcombine.low %v22343_v45, %v22343_v45  ;;  %v19817_v45 = vld [vmem:[%s22074_s10 + $0x910] ss:$8 sps:$4 sm:$0xff]   ;;  %v19792_v27 = vld [vmem:[%s22074_s10 + $0x6e0] ss:$8 sps:$4 sm:$0xff]  }
  0xee   :  { %6225 = vmatprep.subr.bf16.mxu1 %v19722_v15  ;;  %v19811_v15 = vld [vmem:[%s22074_s10 + $0x900] ss:$8 sps:$4 sm:$0xff]  }
  0xf0   :  { %6281 = vmatpush1.bf16.msra.mxu0 %v19765_v31  ;;  %v19837_v31 = vld [vmem:[%s22074_s10 + $0x944] ss:$8 sps:$4 sm:$0xff]  }
  0xf1   :  { %6226 = vmatpush1.bf16.msra.mxu1 %v19720_v19  ;;  %6282 = vmatprep.subr.bf16.mxu0 %v19773_v33  ;;  %v19780_v19 = vld [vmem:[%s22074_s10 + $0x6c0] ss:$8 sps:$4 sm:$0xff]   ;;  %v19798_v33 = vld [vmem:[%s22074_s10 + $0x6f0] ss:$8 sps:$4 sm:$0xff]  }
  0xf2   :  { %6227 = vmatprep.subr.bf16.mxu1 %v19728_v20  ;;  %v19788_v20 = vld [vmem:[%s22074_s10 + $0x6d4] ss:$8 sps:$4 sm:$0xff]  }
  0xf4   :  { %6283 = vmatpush1.bf16.msra.mxu0 %v19771_v37  ;;  %v19843_v37 = vld [vmem:[%s22074_s10 + $0x954] ss:$8 sps:$4 sm:$0xff]  }
  0xf5   :  { %6228 = vmatpush1.bf16.msra.mxu1 %v19726_v23  ;;  %6284 = vmatprep.subr.bf16.mxu0 %v19779_v39  ;;  %v19794_v23 = vld [vmem:[%s22074_s10 + $0x6e4] ss:$8 sps:$4 sm:$0xff]  }
  0xf6   :  { %6229 = vmatprep.subr.bf16.mxu1 %v19734_v24  ;;  %v19823_v24 = vld [vmem:[%s22074_s10 + $0x920] ss:$8 sps:$4 sm:$0xff]  }
  0xf7   :  { %v22469_v39 = vld [vmem:[%s22121_s17 + $0x40] sm:$0xff] }
  0xf8   :  { %6285 = vmatpush1.bf16.msra.mxu0 %v19777_v50  ;;  %v19841_v50 = vld [vmem:[%s22074_s10 + $0x950] ss:$8 sps:$4 sm:$0xff]  }
  0xf9   :  { %6230 = vmatpush1.bf16.msra.mxu1 %v19732_v28  ;;  %6286 = vmatprep.subr.bf16.mxu0 %v19785_v54  ;;  %v19800_v28 = vld [vmem:[%s22074_s10 + $0x6f4] ss:$8 sps:$4 sm:$0xff]   ;;  %v19849_v54 = vld [vmem:[%s22074_s10 + $0x964] ss:$8 sps:$4 sm:$0xff]  }
  0xfa   :  { %6231 = vmatprep.subr.bf16.mxu1 %v19740_v29  ;;  %v19829_v29 = vld [vmem:[%s22074_s10 + $0x930] ss:$8 sps:$4 sm:$0xff]  }
  0xfb   :  { %v22410_v38 = vpop.f32.mrb[0].mxu1 }
  0xfc   :  { %v22413_v40 = vpop.f32.mrb[1].mxu1  ;;  %6287 = vmatpush1.bf16.msra.mxu0 %v19783_v58 }
  0xfd   :  { %v1212_v44 = vpop.f32.mrb[2].mxu1  ;;  %6232 = vmatpush1.bf16.msra.mxu1 %v19738_v34  ;;  %6288 = vmatprep.subr.bf16.mxu0 %v19791_v59  ;;  %v19808_v34 = vld [vmem:[%s22074_s10 + $0x804] ss:$8 sps:$4 sm:$0xff]   ;;  %v19847_v59 = vld [vmem:[%s22074_s10 + $0x960] ss:$8 sps:$4 sm:$0xff]  }
  0xfe   :  { %v1213_v49 = vpop.f32.mrb[3].mxu1  ;;  %6233 = vmatprep.subr.bf16.mxu1 %v19746_v35  ;;  %v19835_v35 = vld [vmem:[%s22074_s10 + $0x940] ss:$8 sps:$4 sm:$0xff]  }
  0xff   :  { %v19806_v44 = vld [vmem:[%s22074_s10 + $0x800] ss:$8 sps:$4 sm:$0xff]   ;;  %v19816_v49 = vld [vmem:[%s22074_s10 + $0x814] ss:$8 sps:$4 sm:$0xff]  }
 0x100   :  { %6289 = vmatpush1.bf16.msra.mxu0 %v19789_v62 }
 0x101   :  { %6234 = vmatpush1.bf16.msra.mxu1 %v19744_v42  ;;  %6290 = vmatprep.subr.bf16.mxu0 %v19797_v63  ;;  %v22473_v42 = vcombine.low %v22374_v7, %v22374_v7  ;;  %v19814_v7 = vld [vmem:[%s22074_s10 + $0x810] ss:$8 sps:$4 sm:$0xff]   ;;  %v19820_v63 = vld [vmem:[%s22074_s10 + $0x820] ss:$8 sps:$4 sm:$0xff]  }
 0x102   :  { %6235 = vmatprep.subr.bf16.mxu1 %v19752_v47  ;;  %v22478_v47 = vcombine.high %v22469_v39, %v22469_v39 }
 0x104   :  { %6291 = vmatpush1.bf16.msra.mxu0 %v19795_v3  ;;  %v19861_v3 = vld [vmem:[%s22074_s10 + $0x984] ss:$8 sps:$4 sm:$0xff]  }
 0x105   :  { %6236 = vmatpush1.bf16.msra.mxu1 %v19750_v57  ;;  %6292 = vmatprep.subr.bf16.mxu0 %v19803_v4  ;;  %v19826_v4 = vld [vmem:[%s22074_s10 + $0x830] ss:$8 sps:$4 sm:$0xff]  }
 0x106   :  { %6237 = vmatprep.subr.bf16.mxu1 %v19758_v30  ;;  %v19822_v30 = vld [vmem:[%s22074_s10 + $0x824] ss:$8 sps:$4 sm:$0xff]  }
 0x108   :  { %6293 = vmatpush1.bf16.msra.mxu0 %v19801_v8  ;;  %v19867_v8 = vld [vmem:[%s22074_s10 + $0x994] ss:$8 sps:$4 sm:$0xff]  }
 0x109   :  { %6238 = vmatpush1.bf16.msra.mxu1 %v19756_v41  ;;  %6344 = vmatprep.subr.bf16.mxu0 %v19813_v10  ;;  %v19855_v41 = vld [vmem:[%s22074_s10 + $0x974] ss:$8 sps:$4 sm:$0xff]   ;;  %v19832_v10 = vld [vmem:[%s22074_s10 + $0x840] ss:$8 sps:$4 sm:$0xff]  }
 0x10a   :  { %6239 = vmatprep.subr.bf16.mxu1 %v19764_v61 }
 0x10b   :  { %6295 = vmatmul.mubr.bf16.vlgmr.msra.gmra.mrb[12].mxu0 %v22442_v51 }
 0x10c   :  { %6345 = vmatpush1.bf16.msra.mxu0 %v19811_v15  ;;  %6376 = vmatprep.mubr.bf16.mxu0 %v22448_v18  ;;  %v19873_v15 = vld [vmem:[%s22074_s10 + $0x9a4] ss:$8 sps:$4 sm:$0xff]  }
 0x10d   :  { %6240 = vmatpush1.bf16.msra.mxu1 %v19762_v1  ;;  %6346 = vmatprep.subr.bf16.mxu0 %v19819_v17  ;;  %v19828_v1 = vld [vmem:[%s22074_s10 + $0x834] ss:$8 sps:$4 sm:$0xff]   ;;  %v19838_v17 = vld [vmem:[%s22074_s10 + $0x850] ss:$8 sps:$4 sm:$0xff]  }
 0x10e   :  { %6241 = vmatprep.subr.bf16.mxu1 %v19770_v2  ;;  %v19853_v2 = vld [vmem:[%s22074_s10 + $0x970] ss:$8 sps:$4 sm:$0xff]  }
 0x110   :  { %6347 = vmatpush1.bf16.msra.mxu0 %v19817_v45 }
 0x111   :  { %6242 = vmatpush1.bf16.msra.mxu1 %v19768_v5  ;;  %6348 = vmatprep.subr.bf16.mxu0 %v19825_v21  ;;  %v19834_v5 = vld [vmem:[%s22074_s10 + $0x844] ss:$8 sps:$4 sm:$0xff]   ;;  %v19879_v21 = vld [vmem:[%s22074_s10 + $0x9b4] ss:$8 sps:$4 sm:$0xff]  }
 0x112   :  { %6243 = vmatprep.subr.bf16.mxu1 %v19776_v6  ;;  %v19859_v6 = vld [vmem:[%s22074_s10 + $0x980] ss:$8 sps:$4 sm:$0xff]  }
 0x114   :  { %6349 = vmatpush1.bf16.msra.mxu0 %v19823_v24  ;;  %v19844_v24 = vld [vmem:[%s22074_s10 + $0x860] ss:$8 sps:$4 sm:$0xff]  }
 0x115   :  { %6244 = vmatpush1.bf16.msra.mxu1 %v19774_v11  ;;  %6350 = vmatprep.subr.bf16.mxu0 %v19831_v25  ;;  %v19840_v11 = vld [vmem:[%s22074_s10 + $0x854] ss:$8 sps:$4 sm:$0xff]  }
 0x116   :  { %6245 = vmatprep.subr.bf16.mxu1 %v19782_v14  ;;  %v19865_v14 = vld [vmem:[%s22074_s10 + $0x990] ss:$8 sps:$4 sm:$0xff]  }
 0x118   :  { %6351 = vmatpush1.bf16.msra.mxu0 %v19829_v29 }
 0x119   :  { %6246 = vmatpush1.bf16.msra.mxu1 %v19780_v19  ;;  %6352 = vmatprep.subr.bf16.mxu0 %v19837_v31  ;;  %v19846_v19 = vld [vmem:[%s22074_s10 + $0x864] ss:$8 sps:$4 sm:$0xff]  }
 0x11a   :  { %6247 = vmatprep.subr.bf16.mxu1 %v19788_v20  ;;  %v19871_v20 = vld [vmem:[%s22074_s10 + $0x9a0] ss:$8 sps:$4 sm:$0xff]  }
 0x11c   :  { %6353 = vmatpush1.bf16.msra.mxu0 %v19835_v35  ;;  %v19850_v35 = vld [vmem:[%s22074_s10 + $0x870] ss:$8 sps:$4 sm:$0xff]  }
 0x11d   :  { %6248 = vmatpush1.bf16.msra.mxu1 %v19786_v22  ;;  %6354 = vmatprep.subr.bf16.mxu0 %v19843_v37  ;;  %v19883_v37 = vld [vmem:[%s22074_s10 + $0x9c0] ss:$8 sps:$4 sm:$0xff]  }
 0x11e   :  { %6249 = vmatprep.subr.bf16.mxu1 %v19794_v23  ;;  %v6050_v57 = vpop.f32.mrb[0].mxu0 }
 0x11f   :  { %v6052_v58 = vpop.f32.mrb[1].mxu0 }
 0x120   :  { %6355 = vmatpush1.bf16.msra.mxu0 %v19841_v50  ;;  %v6054_v61 = vpop.f32.mrb[2].mxu0  ;;  %v19864_v50 = vld [vmem:[%s22074_s10 + $0x894] ss:$8 sps:$4 sm:$0xff]  }
 0x121   :  { %6250 = vmatpush1.bf16.msra.mxu1 %v19792_v27  ;;  %6356 = vmatprep.subr.bf16.mxu0 %v19849_v54  ;;  %v6055_v62 = vpop.f32.mrb[3].mxu0  ;;  %v19889_v54 = vld [vmem:[%s22074_s10 + $0x9d0] ss:$8 sps:$4 sm:$0xff]   ;;  %v19876_v61 = vld [vmem:[%s22074_s10 + $0x8b4] ss:$8 sps:$4 sm:$0xff]  }
 0x122   :  { %6251 = vmatprep.subr.bf16.mxu1 %v19800_v28  ;;  %v19852_v28 = vld [vmem:[%s22074_s10 + $0x874] ss:$8 sps:$4 sm:$0xff]   ;;  %v19901_v62 = vld [vmem:[%s22074_s10 + $0x9f0] ss:$8 sps:$4 sm:$0xff]  }
 0x124   :  { %6357 = vmatpush1.bf16.msra.mxu0 %v19847_v59  ;;  %v19903_v59 = vld [vmem:[%s22074_s10 + $0x9f4] ss:$8 sps:$4 sm:$0xff]  }
 0x125   :  { %6252 = vmatpush1.bf16.msra.mxu1 %v19798_v33  ;;  %6358 = vmatprep.subr.bf16.mxu0 %v19855_v41  ;;  %v19877_v33 = vld [vmem:[%s22074_s10 + $0x9b0] ss:$8 sps:$4 sm:$0xff]   ;;  %v19868_v41 = vld [vmem:[%s22074_s10 + $0x8a0] ss:$8 sps:$4 sm:$0xff]  }
 0x126   :  { %6303 = vmatprep.subr.bf16.mxu1 %v19808_v34  ;;  %v19885_v34 = vld [vmem:[%s22074_s10 + $0x9c4] ss:$8 sps:$4 sm:$0xff]  }
 0x128   :  { %6254 = vmatmul.mubr.bf16.vlgmr.msra.gmra.mrb[16].mxu1 %v22473_v42  ;;  %6359 = vmatpush1.bf16.msra.mxu0 %v19853_v2  ;;  %v22533_v2 = vld [vmem:[%s22121_s17 + $0x58] sm:$0xff] }
 0x129   :  { %6304 = vmatpush1.bf16.msra.mxu1 %v19806_v44  ;;  %6335 = vmatprep.mubr.bf16.mxu1 %v22478_v47  ;;  %v19891_v44 = vld [vmem:[%s22074_s10 + $0x9d4] ss:$8 sps:$4 sm:$0xff]  }
 0x12a   :  { %6305 = vmatprep.subr.bf16.mxu1 %v19816_v49  ;;  %6360 = vmatprep.subr.bf16.mxu0 %v19861_v3  ;;  %v19856_v49 = vld [vmem:[%s22074_s10 + $0x880] ss:$8 sps:$4 sm:$0xff]   ;;  %v19882_v3 = vld [vmem:[%s22074_s10 + $0x8c4] ss:$8 sps:$4 sm:$0xff]  }
 0x12c   :  { %6361 = vmatpush1.bf16.msra.mxu0 %v19859_v6  ;;  %v19919_v6 = vld [vmem:[%s22074_s10 + $0xb14] ss:$8 sps:$4 sm:$0xff]  }
 0x12d   :  { %6306 = vmatpush1.bf16.msra.mxu1 %v19814_v7  ;;  %6362 = vmatprep.subr.bf16.mxu0 %v19867_v8  ;;  %v19897_v7 = vld [vmem:[%s22074_s10 + $0x9e4] ss:$8 sps:$4 sm:$0xff]   ;;  %v22544_v8 = vcombine.high %v22533_v2, %v22533_v2 }
 0x12e   :  { %6307 = vmatprep.subr.bf16.mxu1 %v19822_v30  ;;  %v19870_v30 = vld [vmem:[%s22074_s10 + $0x8a4] ss:$8 sps:$4 sm:$0xff]  }
 0x130   :  { %6363 = vmatpush1.bf16.msra.mxu0 %v19865_v14  ;;  %v19925_v14 = vld [vmem:[%s22074_s10 + $0xb24] ss:$8 sps:$4 sm:$0xff]  }
 0x131   :  { %6308 = vmatpush1.bf16.msra.mxu1 %v19820_v63  ;;  %6364 = vmatprep.subr.bf16.mxu0 %v19873_v15  ;;  %v19913_v63 = vld [vmem:[%s22074_s10 + $0xb04] ss:$8 sps:$4 sm:$0xff]   ;;  %v19886_v15 = vld [vmem:[%s22074_s10 + $0x8d0] ss:$8 sps:$4 sm:$0xff]  }
 0x132   :  { %6309 = vmatprep.subr.bf16.mxu1 %v19828_v1  ;;  %v19874_v1 = vld [vmem:[%s22074_s10 + $0x8b0] ss:$8 sps:$4 sm:$0xff]  }
 0x134   :  { %6365 = vmatpush1.bf16.msra.mxu0 %v19871_v20  ;;  %v19931_v20 = vld [vmem:[%s22074_s10 + $0xb34] ss:$8 sps:$4 sm:$0xff]  }
 0x135   :  { %6310 = vmatpush1.bf16.msra.mxu1 %v19826_v4  ;;  %6366 = vmatprep.subr.bf16.mxu0 %v19879_v21  ;;  %v22538_v4 = vcombine.low %v22437_v13, %v22437_v13  ;;  %v19917_v13 = vld [vmem:[%s22074_s10 + $0xb10] ss:$8 sps:$4 sm:$0xff]   ;;  %v19900_v21 = vld [vmem:[%s22074_s10 + $0x8f4] ss:$8 sps:$4 sm:$0xff]  }
 0x136   :  { %6311 = vmatprep.subr.bf16.mxu1 %v19834_v5  ;;  %v19911_v5 = vld [vmem:[%s22074_s10 + $0xb00] ss:$8 sps:$4 sm:$0xff]  }
 0x138   :  { %6367 = vmatpush1.bf16.msra.mxu0 %v19877_v33  ;;  %v22569_v33 = vcombine.low %v22469_v39, %v22469_v39  ;;  %v19914_v39 = vld [vmem:[%s22074_s10 + $0xa10] ss:$8 sps:$4 sm:$0xff]  }
 0x139   :  { %6312 = vmatpush1.bf16.msra.mxu1 %v19832_v10  ;;  %6368 = vmatprep.subr.bf16.mxu0 %v19885_v34  ;;  %v19880_v10 = vld [vmem:[%s22074_s10 + $0x8c0] ss:$8 sps:$4 sm:$0xff]  }
 0x13a   :  { %6313 = vmatprep.subr.bf16.mxu1 %v19840_v11  ;;  %v19888_v11 = vld [vmem:[%s22074_s10 + $0x8d4] ss:$8 sps:$4 sm:$0xff]   ;;  %v19906_v34 = vld [vmem:[%s22074_s10 + $0xa00] ss:$8 sps:$4 sm:$0xff]  }
 0x13b   :  { %v6009_v45 = vpop.f32.mrb[4].mxu1 }
 0x13c   :  { %v6010_v22 = vadd.f32 %v6009_v45, %v22410_v38  ;;  %v6011_v23 = vpop.f32.mrb[5].mxu1  ;;  %6369 = vmatpush1.bf16.msra.mxu0 %v19883_v37  ;;  %v19892_v45 = vld [vmem:[%s22074_s10 + $0x8e0] ss:$8 sps:$4 sm:$0xff]   ;;  %v19941_v37 = vld [vmem:[%s22074_s10 + $0xb50] ss:$8 sps:$4 sm:$0xff]  }
 0x13d   :  { %v6012_v25 = vadd.f32 %v6011_v23, %v22413_v40  ;;  %v6013_v27 = vpop.f32.mrb[6].mxu1  ;;  %6314 = vmatpush1.bf16.msra.mxu1 %v19838_v17  ;;  %v19858_v40 = vld [vmem:[%s22074_s10 + $0x884] ss:$8 sps:$4 sm:$0xff]   ;;  %6370 = vmatprep.subr.bf16.mxu0 %v19891_v44 }
 0x13e   :  { %v22509_v29 = vadd.f32 %v6050_v57, %v6010_v22  ;;  %v6014_v31 = vpop.f32.mrb[7].mxu1  ;;  %6315 = vmatprep.subr.bf16.mxu1 %v19846_v19  ;;  %v19862_v57 = vld [vmem:[%s22074_s10 + $0x890] ss:$8 sps:$4 sm:$0xff]   ;;  %v19894_v17 = vld [vmem:[%s22074_s10 + $0x8e4] ss:$8 sps:$4 sm:$0xff]  }
 0x13f   :  { %v22512_v38 = vadd.f32 %v6052_v58, %v6012_v25  ;;  %v19895_v58 = vld [vmem:[%s22074_s10 + $0x9e0] ss:$8 sps:$4 sm:$0xff]   ;;  %v19929_v22 = vld [vmem:[%s22074_s10 + $0xb30] ss:$8 sps:$4 sm:$0xff]   ;;  %v19937_v23 = vld [vmem:[%s22074_s10 + $0xb44] ss:$8 sps:$4 sm:$0xff]  }
 0x140   :  { %6371 = vmatpush1.bf16.msra.mxu0 %v19889_v54  ;;  %v19923_v19 = vld [vmem:[%s22074_s10 + $0xb20] ss:$8 sps:$4 sm:$0xff]   ;;  %v19908_v25 = vld [vmem:[%s22074_s10 + $0xa04] ss:$8 sps:$4 sm:$0xff]   ;;  %v22565_v31 = vld [vmem:[%s22121_s17 + $0x50] sm:$0xff] }
 0x141   :  { %6316 = vmatpush1.bf16.msra.mxu1 %v19844_v24  ;;  %6372 = vmatprep.subr.bf16.mxu0 %v19897_v7  ;;  %v19898_v24 = vld [vmem:[%s22074_s10 + $0x8f0] ss:$8 sps:$4 sm:$0xff]   ;;  %v19935_v27 = vld [vmem:[%s22074_s10 + $0xb40] ss:$8 sps:$4 sm:$0xff]   ;;  %v19949_v44 = vld [vmem:[%s22074_s10 + $0xb64] ss:$8 sps:$4 sm:$0xff]  }
 0x142   :  { %6317 = vmatprep.subr.bf16.mxu1 %v19852_v28  ;;  %v19943_v28 = vld [vmem:[%s22074_s10 + $0xb54] ss:$8 sps:$4 sm:$0xff]   ;;  %v19947_v7 = vld [vmem:[%s22074_s10 + $0xb60] ss:$8 sps:$4 sm:$0xff]  }
 0x144   :  { %6373 = vmatpush1.bf16.msra.mxu0 %v19895_v58 }
 0x145   :  { %6318 = vmatpush1.bf16.msra.mxu1 %v19850_v35  ;;  %6374 = vmatprep.subr.bf16.mxu0 %v19903_v59  ;;  %v22574_v35 = vcombine.high %v22565_v31, %v22565_v31  ;;  %v19920_v59 = vld [vmem:[%s22074_s10 + $0xa20] ss:$8 sps:$4 sm:$0xff]  }
 0x146   :  { %6319 = vmatprep.subr.bf16.mxu1 %v19858_v40  ;;  %v19916_v40 = vld [vmem:[%s22074_s10 + $0xa14] ss:$8 sps:$4 sm:$0xff]  }
 0x148   :  { %6375 = vmatpush1.bf16.msra.mxu0 %v19901_v62  ;;  %v19961_v62 = vld [vmem:[%s22074_s10 + $0xb84] ss:$8 sps:$4 sm:$0xff]  }
 0x149   :  { %6320 = vmatpush1.bf16.msra.mxu1 %v19856_v49  ;;  %6426 = vmatprep.subr.bf16.mxu0 %v19913_v63  ;;  %v19926_v63 = vld [vmem:[%s22074_s10 + $0xa30] ss:$8 sps:$4 sm:$0xff]  }
 0x14a   :  { %6321 = vmatprep.subr.bf16.mxu1 %v19864_v50  ;;  %v19922_v50 = vld [vmem:[%s22074_s10 + $0xa24] ss:$8 sps:$4 sm:$0xff]  }
 0x14b   :  { %6377 = vmatmul.mubr.bf16.vlgmr.msra.gmra.mrb[16].mxu0 %v22538_v4 }
 0x14c   :  { %6427 = vmatpush1.bf16.msra.mxu0 %v19911_v5  ;;  %6458 = vmatprep.mubr.bf16.mxu0 %v22544_v8  ;;  %v19967_v5 = vld [vmem:[%s22074_s10 + $0xb94] ss:$8 sps:$4 sm:$0xff]  }
 0x14d   :  { %6322 = vmatpush1.bf16.msra.mxu1 %v19862_v57  ;;  %6428 = vmatprep.subr.bf16.mxu0 %v19919_v6  ;;  %v19955_v57 = vld [vmem:[%s22074_s10 + $0xb74] ss:$8 sps:$4 sm:$0xff]   ;;  %v19932_v6 = vld [vmem:[%s22074_s10 + $0xa40] ss:$8 sps:$4 sm:$0xff]  }
 0x14e   :  { %6323 = vmatprep.subr.bf16.mxu1 %v19870_v30 }
 0x150   :  { %6429 = vmatpush1.bf16.msra.mxu0 %v19917_v13  ;;  %v19973_v13 = vld [vmem:[%s22074_s10 + $0xba4] ss:$8 sps:$4 sm:$0xff]  }
 0x151   :  { %6324 = vmatpush1.bf16.msra.mxu1 %v19868_v41  ;;  %6430 = vmatprep.subr.bf16.mxu0 %v19925_v14  ;;  %v19928_v41 = vld [vmem:[%s22074_s10 + $0xa34] ss:$8 sps:$4 sm:$0xff]   ;;  %v19938_v14 = vld [vmem:[%s22074_s10 + $0xa50] ss:$8 sps:$4 sm:$0xff]  }
 0x152   :  { %6325 = vmatprep.subr.bf16.mxu1 %v19876_v61  ;;  %v19953_v61 = vld [vmem:[%s22074_s10 + $0xb70] ss:$8 sps:$4 sm:$0xff]  }
 0x154   :  { %6431 = vmatpush1.bf16.msra.mxu0 %v19923_v19 }
 0x155   :  { %6326 = vmatpush1.bf16.msra.mxu1 %v19874_v1  ;;  %6432 = vmatprep.subr.bf16.mxu0 %v19931_v20  ;;  %v19934_v1 = vld [vmem:[%s22074_s10 + $0xa44] ss:$8 sps:$4 sm:$0xff]   ;;  %v19979_v20 = vld [vmem:[%s22074_s10 + $0xbb4] ss:$8 sps:$4 sm:$0xff]  }
 0x156   :  { %6327 = vmatprep.subr.bf16.mxu1 %v19882_v3  ;;  %v19959_v3 = vld [vmem:[%s22074_s10 + $0xb80] ss:$8 sps:$4 sm:$0xff]  }
 0x158   :  { %6433 = vmatpush1.bf16.msra.mxu0 %v19929_v22  ;;  %v19944_v22 = vld [vmem:[%s22074_s10 + $0xa60] ss:$8 sps:$4 sm:$0xff]  }
 0x159   :  { %6328 = vmatpush1.bf16.msra.mxu1 %v19880_v10  ;;  %6434 = vmatprep.subr.bf16.mxu0 %v19937_v23  ;;  %v19940_v10 = vld [vmem:[%s22074_s10 + $0xa54] ss:$8 sps:$4 sm:$0xff]  }
 0x15a   :  { %6329 = vmatprep.subr.bf16.mxu1 %v19888_v11  ;;  %v19965_v11 = vld [vmem:[%s22074_s10 + $0xb90] ss:$8 sps:$4 sm:$0xff]  }
 0x15c   :  { %6435 = vmatpush1.bf16.msra.mxu0 %v19935_v27 }
 0x15d   :  { %6330 = vmatpush1.bf16.msra.mxu1 %v19886_v15  ;;  %6436 = vmatprep.subr.bf16.mxu0 %v19943_v28  ;;  %v19946_v15 = vld [vmem:[%s22074_s10 + $0xa64] ss:$8 sps:$4 sm:$0xff]  }
 0x15e   :  { %6331 = vmatprep.subr.bf16.mxu1 %v19894_v17  ;;  %v6132_v49 = vpop.f32.mrb[4].mxu0  ;;  %v19971_v17 = vld [vmem:[%s22074_s10 + $0xba0] ss:$8 sps:$4 sm:$0xff]  }
 0x15f   :  { %v6134_v54 = vpop.f32.mrb[5].mxu0 }
 0x160   :  { %6437 = vmatpush1.bf16.msra.mxu0 %v19941_v37  ;;  %v6136_v30 = vpop.f32.mrb[6].mxu0  ;;  %v19950_v37 = vld [vmem:[%s22074_s10 + $0xa70] ss:$8 sps:$4 sm:$0xff]  }
 0x161   :  { %6332 = vmatpush1.bf16.msra.mxu1 %v19892_v45  ;;  %6438 = vmatprep.subr.bf16.mxu0 %v19949_v44  ;;  %v6137_v58 = vpop.f32.mrb[7].mxu0  ;;  %v19983_v44 = vld [vmem:[%s22074_s10 + $0xbc0] ss:$8 sps:$4 sm:$0xff]   ;;  %v19970_v30 = vld [vmem:[%s22074_s10 + $0xaa4] ss:$8 sps:$4 sm:$0xff]  }
 0x162   :  { %6333 = vmatprep.subr.bf16.mxu1 %v19900_v21  ;;  %v19995_v58 = vld [vmem:[%s22074_s10 + $0xbe0] ss:$8 sps:$4 sm:$0xff]  }
 0x164   :  { %6439 = vmatpush1.bf16.msra.mxu0 %v19947_v7  ;;  %v19997_v7 = vld [vmem:[%s22074_s10 + $0xbe4] ss:$8 sps:$4 sm:$0xff]  }
 0x165   :  { %6334 = vmatpush1.bf16.msra.mxu1 %v19898_v24  ;;  %6440 = vmatprep.subr.bf16.mxu0 %v19955_v57  ;;  %v19962_v57 = vld [vmem:[%s22074_s10 + $0xa90] ss:$8 sps:$4 sm:$0xff]  }
 0x166   :  { %6385 = vmatprep.subr.bf16.mxu1 %v19908_v25  ;;  %v19952_v25 = vld [vmem:[%s22074_s10 + $0xa74] ss:$8 sps:$4 sm:$0xff]  }
 0x168   :  { %6336 = vmatmul.mubr.bf16.vlgmr.msra.gmra.mrb[20].mxu1 %v22569_v33  ;;  %6441 = vmatpush1.bf16.msra.mxu0 %v19953_v61  ;;  %v19976_v61 = vld [vmem:[%s22074_s10 + $0xab4] ss:$8 sps:$4 sm:$0xff]  }
 0x169   :  { %6386 = vmatpush1.bf16.msra.mxu1 %v19906_v34  ;;  %6417 = vmatprep.mubr.bf16.mxu1 %v22574_v35  ;;  %v19977_v34 = vld [vmem:[%s22074_s10 + $0xbb0] ss:$8 sps:$4 sm:$0xff]  }
 0x16a   :  { %6387 = vmatprep.subr.bf16.mxu1 %v19916_v40  ;;  %6442 = vmatprep.subr.bf16.mxu0 %v19961_v62  ;;  %v19985_v40 = vld [vmem:[%s22074_s10 + $0xbc4] ss:$8 sps:$4 sm:$0xff]   ;;  %v20001_v62 = vld [vmem:[%s22074_s10 + $0xbf0] ss:$8 sps:$4 sm:$0xff]  }
 0x16c   :  { %6443 = vmatpush1.bf16.msra.mxu0 %v19959_v3  ;;  %v22629_v3 = vld [vmem:[%s22121_s17 + $0x68] sm:$0xff] }
 0x16d   :  { %6388 = vmatpush1.bf16.msra.mxu1 %v19914_v39  ;;  %6444 = vmatprep.subr.bf16.mxu0 %v19967_v5  ;;  %v19991_v39 = vld [vmem:[%s22074_s10 + $0xbd4] ss:$8 sps:$4 sm:$0xff]   ;;  %v19982_v5 = vld [vmem:[%s22074_s10 + $0xac4] ss:$8 sps:$4 sm:$0xff]  }
 0x16e   :  { %6389 = vmatprep.subr.bf16.mxu1 %v19922_v50  ;;  %v19964_v50 = vld [vmem:[%s22074_s10 + $0xa94] ss:$8 sps:$4 sm:$0xff]  }
 0x170   :  { %6445 = vmatpush1.bf16.msra.mxu0 %v19965_v11  ;;  %v20019_v11 = vld [vmem:[%s22074_s10 + $0xd14] ss:$8 sps:$4 sm:$0xff]  }
 0x171   :  { %6390 = vmatpush1.bf16.msra.mxu1 %v19920_v59  ;;  %6446 = vmatprep.subr.bf16.mxu0 %v19973_v13  ;;  %v20003_v59 = vld [vmem:[%s22074_s10 + $0xbf4] ss:$8 sps:$4 sm:$0xff]   ;;  %v22640_v13 = vcombine.high %v22629_v3, %v22629_v3 }
 0x172   :  { %6391 = vmatprep.subr.bf16.mxu1 %v19928_v41  ;;  %v19968_v41 = vld [vmem:[%s22074_s10 + $0xaa0] ss:$8 sps:$4 sm:$0xff]  }
 0x174   :  { %6447 = vmatpush1.bf16.msra.mxu0 %v19971_v17  ;;  %v20025_v17 = vld [vmem:[%s22074_s10 + $0xd24] ss:$8 sps:$4 sm:$0xff]  }
 0x175   :  { %6392 = vmatpush1.bf16.msra.mxu1 %v19926_v63  ;;  %6448 = vmatprep.subr.bf16.mxu0 %v19979_v20  ;;  %v20013_v63 = vld [vmem:[%s22074_s10 + $0xd04] ss:$8 sps:$4 sm:$0xff]  }
 0x176   :  { %6393 = vmatprep.subr.bf16.mxu1 %v19934_v1  ;;  %v19974_v1 = vld [vmem:[%s22074_s10 + $0xab0] ss:$8 sps:$4 sm:$0xff]   ;;  %v19994_v20 = vld [vmem:[%s22074_s10 + $0xae4] ss:$8 sps:$4 sm:$0xff]  }
 0x178   :  { %6449 = vmatpush1.bf16.msra.mxu0 %v19977_v34  ;;  %v20008_v34 = vld [vmem:[%s22074_s10 + $0xc04] ss:$8 sps:$4 sm:$0xff]  }
 0x179   :  { %6394 = vmatpush1.bf16.msra.mxu1 %v19932_v6  ;;  %6450 = vmatprep.subr.bf16.mxu0 %v19985_v40  ;;  %v22634_v6 = vcombine.low %v22533_v2, %v22533_v2  ;;  %v20017_v2 = vld [vmem:[%s22074_s10 + $0xd10] ss:$8 sps:$4 sm:$0xff]   ;;  %v20035_v40 = vld [vmem:[%s22074_s10 + $0xd40] ss:$8 sps:$4 sm:$0xff]  }
 0x17a   :  { %6395 = vmatprep.subr.bf16.mxu1 %v19940_v10  ;;  %v20011_v10 = vld [vmem:[%s22074_s10 + $0xd00] ss:$8 sps:$4 sm:$0xff]  }
 0x17b   :  { %v6091_v19 = vpop.f32.mrb[8].mxu1 }
 0x17c   :  { %v6092_v45 = vadd.f32 %v6091_v19, %v22509_v29  ;;  %v6093_v21 = vpop.f32.mrb[9].mxu1  ;;  %6451 = vmatpush1.bf16.msra.mxu0 %v19983_v44  ;;  %v19986_v19 = vld [vmem:[%s22074_s10 + $0xad0] ss:$8 sps:$4 sm:$0xff]   ;;  %v22665_v44 = vcombine.low %v22565_v31, %v22565_v31 }
 0x17d   :  { %v6094_v23 = vadd.f32 %v6093_v21, %v22512_v38  ;;  %v6095_v24 = vpop.f32.mrb[10].mxu1  ;;  %6396 = vmatpush1.bf16.msra.mxu1 %v19938_v14  ;;  %v19958_v38 = vld [vmem:[%s22074_s10 + $0xa84] ss:$8 sps:$4 sm:$0xff]   ;;  %6452 = vmatprep.subr.bf16.mxu0 %v19991_v39  ;;  %v19980_v14 = vld [vmem:[%s22074_s10 + $0xac0] ss:$8 sps:$4 sm:$0xff]  }
 0x17e   :  { %v22605_v27 = vadd.f32 %v6132_v49, %v6092_v45  ;;  %v6096_v28 = vpop.f32.mrb[11].mxu1  ;;  %6397 = vmatprep.subr.bf16.mxu1 %v19946_v15  ;;  %v19956_v49 = vld [vmem:[%s22074_s10 + $0xa80] ss:$8 sps:$4 sm:$0xff]   ;;  %v19988_v15 = vld [vmem:[%s22074_s10 + $0xad4] ss:$8 sps:$4 sm:$0xff]  }
 0x17f   :  { %v22608_v29 = vadd.f32 %v6134_v54, %v6094_v23  ;;  %v19989_v54 = vld [vmem:[%s22074_s10 + $0xbd0] ss:$8 sps:$4 sm:$0xff]   ;;  %v20023_v45 = vld [vmem:[%s22074_s10 + $0xd20] ss:$8 sps:$4 sm:$0xff]   ;;  %v20031_v21 = vld [vmem:[%s22074_s10 + $0xd34] ss:$8 sps:$4 sm:$0xff]  }
 0x180   :  { %6453 = vmatpush1.bf16.msra.mxu0 %v19989_v54  ;;  %v20000_v23 = vld [vmem:[%s22074_s10 + $0xaf4] ss:$8 sps:$4 sm:$0xff]   ;;  %v20029_v24 = vld [vmem:[%s22074_s10 + $0xd30] ss:$8 sps:$4 sm:$0xff]   ;;  %v20006_v39 = vld [vmem:[%s22074_s10 + $0xc00] ss:$8 sps:$4 sm:$0xff]  }
 0x181   :  { %6398 = vmatpush1.bf16.msra.mxu1 %v19944_v22  ;;  %6454 = vmatprep.subr.bf16.mxu0 %v19997_v7  ;;  %v19992_v22 = vld [vmem:[%s22074_s10 + $0xae0] ss:$8 sps:$4 sm:$0xff]   ;;  %v19998_v28 = vld [vmem:[%s22074_s10 + $0xaf0] ss:$8 sps:$4 sm:$0xff]   ;;  %v20049_v7 = vld [vmem:[%s22074_s10 + $0xd64] ss:$8 sps:$4 sm:$0xff]  }
 0x182   :  { %6399 = vmatprep.subr.bf16.mxu1 %v19952_v25  ;;  %v20037_v25 = vld [vmem:[%s22074_s10 + $0xd44] ss:$8 sps:$4 sm:$0xff]   ;;  %v20041_v54 = vld [vmem:[%s22074_s10 + $0xd50] ss:$8 sps:$4 sm:$0xff]  }
 0x183   :  { %v20014_v31 = vld [vmem:[%s22074_s10 + $0xc10] ss:$8 sps:$4 sm:$0xff]  }
 0x184   :  { %6455 = vmatpush1.bf16.msra.mxu0 %v19995_v58 }
 0x185   :  { %6400 = vmatpush1.bf16.msra.mxu1 %v19950_v37  ;;  %6456 = vmatprep.subr.bf16.mxu0 %v20003_v59  ;;  %v20043_v37 = vld [vmem:[%s22074_s10 + $0xd54] ss:$8 sps:$4 sm:$0xff]   ;;  %v20047_v59 = vld [vmem:[%s22074_s10 + $0xd60] ss:$8 sps:$4 sm:$0xff]  }
 0x186   :  { %6401 = vmatprep.subr.bf16.mxu1 %v19958_v38  ;;  %v22661_v38 = vld [vmem:[%s22121_s17 + $0x60] sm:$0xff] }
 0x188   :  { %6457 = vmatpush1.bf16.msra.mxu0 %v20001_v62 }
 0x189   :  { %6402 = vmatpush1.bf16.msra.mxu1 %v19956_v49  ;;  %6508 = vmatprep.subr.bf16.mxu0 %v20013_v63  ;;  %v22670_v49 = vcombine.high %v22661_v38, %v22661_v38  ;;  %v20020_v63 = vld [vmem:[%s22074_s10 + $0xc20] ss:$8 sps:$4 sm:$0xff]  }
 0x18a   :  { %6403 = vmatprep.subr.bf16.mxu1 %v19964_v50  ;;  %v20016_v50 = vld [vmem:[%s22074_s10 + $0xc14] ss:$8 sps:$4 sm:$0xff]  }
 0x18b   :  { %6459 = vmatmul.mubr.bf16.vlgmr.msra.gmra.mrb[20].mxu0 %v22634_v6 }
 0x18c   :  { %6509 = vmatpush1.bf16.msra.mxu0 %v20011_v10  ;;  %6540 = vmatprep.mubr.bf16.mxu0 %v22640_v13  ;;  %v20061_v10 = vld [vmem:[%s22074_s10 + $0xd84] ss:$8 sps:$4 sm:$0xff]  }
 0x18d   :  { %6404 = vmatpush1.bf16.msra.mxu1 %v19962_v57  ;;  %6510 = vmatprep.subr.bf16.mxu0 %v20019_v11  ;;  %v20026_v11 = vld [vmem:[%s22074_s10 + $0xc30] ss:$8 sps:$4 sm:$0xff]  }
 0x18e   :  { %6405 = vmatprep.subr.bf16.mxu1 %v19970_v30  ;;  %v20022_v30 = vld [vmem:[%s22074_s10 + $0xc24] ss:$8 sps:$4 sm:$0xff]  }
 0x190   :  { %6511 = vmatpush1.bf16.msra.mxu0 %v20017_v2  ;;  %v20067_v2 = vld [vmem:[%s22074_s10 + $0xd94] ss:$8 sps:$4 sm:$0xff]  }
 0x191   :  { %6406 = vmatpush1.bf16.msra.mxu1 %v19968_v41  ;;  %6512 = vmatprep.subr.bf16.mxu0 %v20025_v17  ;;  %v20055_v41 = vld [vmem:[%s22074_s10 + $0xd74] ss:$8 sps:$4 sm:$0xff]   ;;  %v20032_v17 = vld [vmem:[%s22074_s10 + $0xc40] ss:$8 sps:$4 sm:$0xff]  }
 0x192   :  { %6407 = vmatprep.subr.bf16.mxu1 %v19976_v61 }
 0x194   :  { %6513 = vmatpush1.bf16.msra.mxu0 %v20023_v45  ;;  %v20073_v45 = vld [vmem:[%s22074_s10 + $0xda4] ss:$8 sps:$4 sm:$0xff]  }
 0x195   :  { %6408 = vmatpush1.bf16.msra.mxu1 %v19974_v1  ;;  %6514 = vmatprep.subr.bf16.mxu0 %v20031_v21  ;;  %v20028_v1 = vld [vmem:[%s22074_s10 + $0xc34] ss:$8 sps:$4 sm:$0xff]   ;;  %v20038_v21 = vld [vmem:[%s22074_s10 + $0xc50] ss:$8 sps:$4 sm:$0xff]  }
 0x196   :  { %6409 = vmatprep.subr.bf16.mxu1 %v19982_v5  ;;  %v20053_v5 = vld [vmem:[%s22074_s10 + $0xd70] ss:$8 sps:$4 sm:$0xff]  }
 0x198   :  { %6515 = vmatpush1.bf16.msra.mxu0 %v20029_v24 }
 0x199   :  { %6410 = vmatpush1.bf16.msra.mxu1 %v19980_v14  ;;  %6516 = vmatprep.subr.bf16.mxu0 %v20037_v25  ;;  %v20034_v14 = vld [vmem:[%s22074_s10 + $0xc44] ss:$8 sps:$4 sm:$0xff]   ;;  %v20079_v25 = vld [vmem:[%s22074_s10 + $0xdb4] ss:$8 sps:$4 sm:$0xff]  }
 0x19a   :  { %6411 = vmatprep.subr.bf16.mxu1 %v19988_v15  ;;  %v20059_v15 = vld [vmem:[%s22074_s10 + $0xd80] ss:$8 sps:$4 sm:$0xff]  }
 0x19c   :  { %6517 = vmatpush1.bf16.msra.mxu0 %v20035_v40  ;;  %v20044_v40 = vld [vmem:[%s22074_s10 + $0xc60] ss:$8 sps:$4 sm:$0xff]  }
 0x19d   :  { %6412 = vmatpush1.bf16.msra.mxu1 %v19986_v19  ;;  %6518 = vmatprep.subr.bf16.mxu0 %v20043_v37  ;;  %v20040_v19 = vld [vmem:[%s22074_s10 + $0xc54] ss:$8 sps:$4 sm:$0xff]  }
 0x19e   :  { %6413 = vmatprep.subr.bf16.mxu1 %v19994_v20  ;;  %v6214_v57 = vpop.f32.mrb[8].mxu0  ;;  %v20065_v20 = vld [vmem:[%s22074_s10 + $0xd90] ss:$8 sps:$4 sm:$0xff]  }
 0x19f   :  { %v6216_v58 = vpop.f32.mrb[9].mxu0 }
 0x1a0   :  { %6519 = vmatpush1.bf16.msra.mxu0 %v20041_v54  ;;  %v6218_v61 = vpop.f32.mrb[10].mxu0 }
 0x1a1   :  { %6414 = vmatpush1.bf16.msra.mxu1 %v19992_v22  ;;  %6520 = vmatprep.subr.bf16.mxu0 %v20049_v7  ;;  %v6219_v62 = vpop.f32.mrb[11].mxu0  ;;  %v20046_v22 = vld [vmem:[%s22074_s10 + $0xc64] ss:$8 sps:$4 sm:$0xff]   ;;  %v20056_v61 = vld [vmem:[%s22074_s10 + $0xc80] ss:$8 sps:$4 sm:$0xff]  }
 0x1a2   :  { %6415 = vmatprep.subr.bf16.mxu1 %v20000_v23  ;;  %v20071_v23 = vld [vmem:[%s22074_s10 + $0xda0] ss:$8 sps:$4 sm:$0xff]   ;;  %v20064_v62 = vld [vmem:[%s22074_s10 + $0xc94] ss:$8 sps:$4 sm:$0xff]  }
 0x1a4   :  { %6521 = vmatpush1.bf16.msra.mxu0 %v20047_v59  ;;  %v20050_v59 = vld [vmem:[%s22074_s10 + $0xc70] ss:$8 sps:$4 sm:$0xff]  }
 0x1a5   :  { %6416 = vmatpush1.bf16.msra.mxu1 %v19998_v28  ;;  %6522 = vmatprep.subr.bf16.mxu0 %v20055_v41  ;;  %v20083_v41 = vld [vmem:[%s22074_s10 + $0xdc0] ss:$8 sps:$4 sm:$0xff]  }
 0x1a6   :  { %6467 = vmatprep.subr.bf16.mxu1 %v20008_v34 }
 0x1a8   :  { %6418 = vmatmul.mubr.bf16.vlgmr.msra.gmra.mrb[24].mxu1 %v22665_v44  ;;  %6523 = vmatpush1.bf16.msra.mxu0 %v20053_v5  ;;  %v20070_v5 = vld [vmem:[%s22074_s10 + $0xca4] ss:$8 sps:$4 sm:$0xff]  }
 0x1a9   :  { %6468 = vmatpush1.bf16.msra.mxu1 %v20006_v39  ;;  %6499 = vmatprep.mubr.bf16.mxu1 %v22670_v49 }
 0x1aa   :  { %6469 = vmatprep.subr.bf16.mxu1 %v20016_v50  ;;  %6524 = vmatprep.subr.bf16.mxu0 %v20061_v10  ;;  %v20052_v50 = vld [vmem:[%s22074_s10 + $0xc74] ss:$8 sps:$4 sm:$0xff]   ;;  %v20095_v10 = vld [vmem:[%s22074_s10 + $0xde0] ss:$8 sps:$4 sm:$0xff]  }
 0x1ac   :  { %6525 = vmatpush1.bf16.msra.mxu0 %v20059_v15  ;;  %v20076_v15 = vld [vmem:[%s22074_s10 + $0xcb4] ss:$8 sps:$4 sm:$0xff]  }
 0x1ad   :  { %6470 = vmatpush1.bf16.msra.mxu1 %v20014_v31  ;;  %6526 = vmatprep.subr.bf16.mxu0 %v20067_v2  ;;  %v20077_v31 = vld [vmem:[%s22074_s10 + $0xdb0] ss:$8 sps:$4 sm:$0xff]  }
 0x1ae   :  { %6471 = vmatprep.subr.bf16.mxu1 %v20022_v30  ;;  %v20085_v30 = vld [vmem:[%s22074_s10 + $0xdc4] ss:$8 sps:$4 sm:$0xff]   ;;  %v20101_v2 = vld [vmem:[%s22074_s10 + $0xdf0] ss:$8 sps:$4 sm:$0xff]  }
 0x1b0   :  { %6527 = vmatpush1.bf16.msra.mxu0 %v20065_v20  ;;  %v22725_v20 = vld [vmem:[%s22121_s17 + $0x78] sm:$0xff] }
 0x1b1   :  { %6472 = vmatpush1.bf16.msra.mxu1 %v20020_v63  ;;  %6528 = vmatprep.subr.bf16.mxu0 %v20073_v45  ;;  %v20097_v63 = vld [vmem:[%s22074_s10 + $0xde4] ss:$8 sps:$4 sm:$0xff]  }
 0x1b2   :  { %6473 = vmatprep.subr.bf16.mxu1 %v20028_v1  ;;  %v20062_v1 = vld [vmem:[%s22074_s10 + $0xc90] ss:$8 sps:$4 sm:$0xff]   ;;  %v20082_v45 = vld [vmem:[%s22074_s10 + $0xcc4] ss:$8 sps:$4 sm:$0xff]  }
 0x1b4   :  { %6529 = vmatpush1.bf16.msra.mxu0 %v20071_v23  ;;  %v20119_v23 = vld [vmem:[%s22074_s10 + $0xf14] ss:$8 sps:$4 sm:$0xff]  }
 0x1b5   :  { %6474 = vmatpush1.bf16.msra.mxu1 %v20026_v11  ;;  %6530 = vmatprep.subr.bf16.mxu0 %v20079_v25  ;;  %v20103_v11 = vld [vmem:[%s22074_s10 + $0xdf4] ss:$8 sps:$4 sm:$0xff]   ;;  %v20080_v25 = vld [vmem:[%s22074_s10 + $0xcc0] ss:$8 sps:$4 sm:$0xff]  }
 0x1b6   :  { %6475 = vmatprep.subr.bf16.mxu1 %v20034_v14  ;;  %v20068_v14 = vld [vmem:[%s22074_s10 + $0xca0] ss:$8 sps:$4 sm:$0xff]  }
 0x1b8   :  { %6531 = vmatpush1.bf16.msra.mxu0 %v20077_v31  ;;  %v20100_v31 = vld [vmem:[%s22074_s10 + $0xcf4] ss:$8 sps:$4 sm:$0xff]  }
 0x1b9   :  { %6476 = vmatpush1.bf16.msra.mxu1 %v20032_v17  ;;  %6532 = vmatprep.subr.bf16.mxu0 %v20085_v30  ;;  %v20113_v17 = vld [vmem:[%s22074_s10 + $0xf04] ss:$8 sps:$4 sm:$0xff]   ;;  %v20129_v30 = vld [vmem:[%s22074_s10 + $0xf30] ss:$8 sps:$4 sm:$0xff]  }
 0x1ba   :  { %6477 = vmatprep.subr.bf16.mxu1 %v20040_v19  ;;  %v20074_v19 = vld [vmem:[%s22074_s10 + $0xcb0] ss:$8 sps:$4 sm:$0xff]  }
 0x1bb   :  { %v6173_v24 = vpop.f32.mrb[12].mxu1 }
 0x1bc   :  { %v6174_v28 = vadd.f32 %v6173_v24, %v22605_v27  ;;  %v6175_v34 = vpop.f32.mrb[13].mxu1  ;;  %6533 = vmatpush1.bf16.msra.mxu0 %v20083_v41  ;;  %v22736_v24 = vcombine.high %v22725_v20, %v22725_v20  ;;  %v20108_v41 = vld [vmem:[%s22074_s10 + $0xe04] ss:$8 sps:$4 sm:$0xff]  }
 0x1bd   :  { %v6176_v37 = vadd.f32 %v6175_v34, %v22608_v29  ;;  %v6177_v39 = vpop.f32.mrb[14].mxu1  ;;  %6478 = vmatpush1.bf16.msra.mxu1 %v20038_v21  ;;  %v20058_v29 = vld [vmem:[%s22074_s10 + $0xc84] ss:$8 sps:$4 sm:$0xff]   ;;  %v22730_v21 = vcombine.low %v22629_v3, %v22629_v3  ;;  %v20117_v3 = vld [vmem:[%s22074_s10 + $0xf10] ss:$8 sps:$4 sm:$0xff]  }
 0x1be   :  { %v22701_v54 = vadd.f32 %v6214_v57, %v6174_v28  ;;  %v6178_v7 = vpop.f32.mrb[15].mxu1  ;;  %6479 = vmatprep.subr.bf16.mxu1 %v20046_v22  ;;  %v20091_v57 = vld [vmem:[%s22074_s10 + $0xdd4] ss:$8 sps:$4 sm:$0xff]   ;;  %v20111_v22 = vld [vmem:[%s22074_s10 + $0xf00] ss:$8 sps:$4 sm:$0xff]  }
 0x1bf   :  { %v22704_v27 = vadd.f32 %v6216_v58, %v6176_v37  ;;  %v20089_v58 = vld [vmem:[%s22074_s10 + $0xdd0] ss:$8 sps:$4 sm:$0xff]   ;;  %6534 = vmatprep.subr.bf16.mxu0 %v20091_v57  ;;  %v20088_v28 = vld [vmem:[%s22074_s10 + $0xcd4] ss:$8 sps:$4 sm:$0xff]   ;;  %v20125_v34 = vld [vmem:[%s22074_s10 + $0xf24] ss:$8 sps:$4 sm:$0xff]  }
 0x1c0   :  { %6535 = vmatpush1.bf16.msra.mxu0 %v20089_v58  ;;  %v20094_v37 = vld [vmem:[%s22074_s10 + $0xce4] ss:$8 sps:$4 sm:$0xff]   ;;  %v20123_v39 = vld [vmem:[%s22074_s10 + $0xf20] ss:$8 sps:$4 sm:$0xff]   ;;  %v22761_v58 = vcombine.low %v22661_v38, %v22661_v38  ;;  %v20114_v38 = vld [vmem:[%s22074_s10 + $0xe10] ss:$8 sps:$4 sm:$0xff]  }
 0x1c1   :  { %6480 = vmatpush1.bf16.msra.mxu1 %v20044_v40  ;;  %6536 = vmatprep.subr.bf16.mxu0 %v20097_v63  ;;  %v20086_v40 = vld [vmem:[%s22074_s10 + $0xcd0] ss:$8 sps:$4 sm:$0xff]   ;;  %v20092_v7 = vld [vmem:[%s22074_s10 + $0xce0] ss:$8 sps:$4 sm:$0xff]  }
 0x1c2   :  { %6481 = vmatprep.subr.bf16.mxu1 %v20052_v50  ;;  %v20131_v50 = vld [vmem:[%s22074_s10 + $0xf34] ss:$8 sps:$4 sm:$0xff]   ;;  %v20135_v57 = vld [vmem:[%s22074_s10 + $0xf40] ss:$8 sps:$4 sm:$0xff]  }
 0x1c3   :  { %v20106_v63 = vld [vmem:[%s22074_s10 + $0xe00] ss:$8 sps:$4 sm:$0xff]  }
 0x1c4   :  { %6537 = vmatpush1.bf16.msra.mxu0 %v20095_v10  ;;  %v20141_v10 = vld [vmem:[%s22074_s10 + $0xf50] ss:$8 sps:$4 sm:$0xff]  }
 0x1c5   :  { %6482 = vmatpush1.bf16.msra.mxu1 %v20050_v59  ;;  %6538 = vmatprep.subr.bf16.mxu0 %v20103_v11  ;;  %v20137_v59 = vld [vmem:[%s22074_s10 + $0xf44] ss:$8 sps:$4 sm:$0xff]  }
 0x1c6   :  { %6483 = vmatprep.subr.bf16.mxu1 %v20058_v29  ;;  %v20098_v29 = vld [vmem:[%s22074_s10 + $0xcf0] ss:$8 sps:$4 sm:$0xff]   ;;  %v20149_v11 = vld [vmem:[%s22074_s10 + $0xf64] ss:$8 sps:$4 sm:$0xff]  }
 0x1c8   :  { %6539 = vmatpush1.bf16.msra.mxu0 %v20101_v2 }
 0x1c9   :  { %6484 = vmatpush1.bf16.msra.mxu1 %v20056_v61  ;;  %6590 = vmatprep.subr.bf16.mxu0 %v20113_v17  ;;  %v20143_v61 = vld [vmem:[%s22074_s10 + $0xf54] ss:$8 sps:$4 sm:$0xff]   ;;  %v20147_v17 = vld [vmem:[%s22074_s10 + $0xf60] ss:$8 sps:$4 sm:$0xff]  }
 0x1ca   :  { %6485 = vmatprep.subr.bf16.mxu1 %v20064_v62  ;;  %v22757_v62 = vld [vmem:[%s22121_s17 + $0x70] sm:$0xff] }
 0x1cb   :  { %6541 = vmatmul.mubr.bf16.vlgmr.msra.gmra.mrb[24].mxu0 %v22730_v21 }
 0x1cc   :  { %6591 = vmatpush1.bf16.msra.mxu0 %v20111_v22  ;;  %6622 = vmatprep.mubr.bf16.mxu0 %v22736_v24 }
 0x1cd   :  { %6486 = vmatpush1.bf16.msra.mxu1 %v20062_v1  ;;  %6592 = vmatprep.subr.bf16.mxu0 %v20119_v23  ;;  %v22766_v1 = vcombine.high %v22757_v62, %v22757_v62  ;;  %v20120_v23 = vld [vmem:[%s22074_s10 + $0xe20] ss:$8 sps:$4 sm:$0xff]  }
 0x1ce   :  { %6487 = vmatprep.subr.bf16.mxu1 %v20070_v5  ;;  %v20116_v5 = vld [vmem:[%s22074_s10 + $0xe14] ss:$8 sps:$4 sm:$0xff]  }
 0x1d0   :  { %6593 = vmatpush1.bf16.msra.mxu0 %v20117_v3  ;;  %v20161_v3 = vld [vmem:[%s22074_s10 + $0xf84] ss:$8 sps:$4 sm:$0xff]  }
 0x1d1   :  { %6488 = vmatpush1.bf16.msra.mxu1 %v20068_v14  ;;  %6594 = vmatprep.subr.bf16.mxu0 %v20125_v34  ;;  %v20126_v34 = vld [vmem:[%s22074_s10 + $0xe30] ss:$8 sps:$4 sm:$0xff]  }
 0x1d2   :  { %6489 = vmatprep.subr.bf16.mxu1 %v20076_v15  ;;  %v20122_v15 = vld [vmem:[%s22074_s10 + $0xe24] ss:$8 sps:$4 sm:$0xff]  }
 0x1d4   :  { %6595 = vmatpush1.bf16.msra.mxu0 %v20123_v39  ;;  %v20167_v39 = vld [vmem:[%s22074_s10 + $0xf94] ss:$8 sps:$4 sm:$0xff]  }
 0x1d5   :  { %6490 = vmatpush1.bf16.msra.mxu1 %v20074_v19  ;;  %6596 = vmatprep.subr.bf16.mxu0 %v20131_v50  ;;  %v20155_v19 = vld [vmem:[%s22074_s10 + $0xf74] ss:$8 sps:$4 sm:$0xff]   ;;  %v20132_v50 = vld [vmem:[%s22074_s10 + $0xe40] ss:$8 sps:$4 sm:$0xff]  }
 0x1d6   :  { %6491 = vmatprep.subr.bf16.mxu1 %v20082_v45 }
 0x1d8   :  { %6597 = vmatpush1.bf16.msra.mxu0 %v20129_v30  ;;  %v20173_v30 = vld [vmem:[%s22074_s10 + $0xfa4] ss:$8 sps:$4 sm:$0xff]  }
 0x1d9   :  { %6492 = vmatpush1.bf16.msra.mxu1 %v20080_v25  ;;  %6598 = vmatprep.subr.bf16.mxu0 %v20137_v59  ;;  %v20128_v25 = vld [vmem:[%s22074_s10 + $0xe34] ss:$8 sps:$4 sm:$0xff]   ;;  %v20138_v59 = vld [vmem:[%s22074_s10 + $0xe50] ss:$8 sps:$4 sm:$0xff]  }
 0x1da   :  { %6493 = vmatprep.subr.bf16.mxu1 %v20088_v28  ;;  %v20153_v28 = vld [vmem:[%s22074_s10 + $0xf70] ss:$8 sps:$4 sm:$0xff]  }
 0x1dc   :  { %6599 = vmatpush1.bf16.msra.mxu0 %v20135_v57 }
 0x1dd   :  { %6494 = vmatpush1.bf16.msra.mxu1 %v20086_v40  ;;  %6600 = vmatprep.subr.bf16.mxu0 %v20143_v61  ;;  %v20134_v40 = vld [vmem:[%s22074_s10 + $0xe44] ss:$8 sps:$4 sm:$0xff]   ;;  %v20179_v61 = vld [vmem:[%s22074_s10 + $0xfb4] ss:$8 sps:$4 sm:$0xff]  }
 0x1de   :  { %6495 = vmatprep.subr.bf16.mxu1 %v20094_v37  ;;  %v6296_v14 = vpop.f32.mrb[12].mxu0  ;;  %v20159_v37 = vld [vmem:[%s22074_s10 + $0xf80] ss:$8 sps:$4 sm:$0xff]  }
 0x1df   :  { %v6298_v2 = vpop.f32.mrb[13].mxu0 }
 0x1e0   :  { %6601 = vmatpush1.bf16.msra.mxu0 %v20141_v10  ;;  %v6300_v45 = vpop.f32.mrb[14].mxu0  ;;  %v20144_v10 = vld [vmem:[%s22074_s10 + $0xe60] ss:$8 sps:$4 sm:$0xff]  }
 0x1e1   :  { %6496 = vmatpush1.bf16.msra.mxu1 %v20092_v7  ;;  %6602 = vmatprep.subr.bf16.mxu0 %v20149_v11  ;;  %v6301_v22 = vpop.f32.mrb[15].mxu0  ;;  %v20140_v7 = vld [vmem:[%s22074_s10 + $0xe54] ss:$8 sps:$4 sm:$0xff]   ;;  %v20177_v45 = vld [vmem:[%s22074_s10 + $0xfb0] ss:$8 sps:$4 sm:$0xff]  }
 0x1e2   :  { %6497 = vmatprep.subr.bf16.mxu1 %v20100_v31  ;;  %v20165_v31 = vld [vmem:[%s22074_s10 + $0xf90] ss:$8 sps:$4 sm:$0xff]   ;;  %v20185_v22 = vld [vmem:[%s22074_s10 + $0xfc4] ss:$8 sps:$4 sm:$0xff]  }
 0x1e4   :  { %6603 = vmatpush1.bf16.msra.mxu0 %v20147_v17 }
 0x1e5   :  { %6498 = vmatpush1.bf16.msra.mxu1 %v20098_v29  ;;  %6604 = vmatprep.subr.bf16.mxu0 %v20155_v19  ;;  %v20146_v29 = vld [vmem:[%s22074_s10 + $0xe64] ss:$8 sps:$4 sm:$0xff]  }
 0x1e6   :  { %6549 = vmatprep.subr.bf16.mxu1 %v20108_v41  ;;  %v20171_v41 = vld [vmem:[%s22074_s10 + $0xfa0] ss:$8 sps:$4 sm:$0xff]  }
 0x1e8   :  { %6500 = vmatmul.mubr.bf16.vlgmr.msra.gmra.mrb[28].mxu1 %v22761_v58  ;;  %6605 = vmatpush1.bf16.msra.mxu0 %v20153_v28  ;;  %v20156_v28 = vld [vmem:[%s22074_s10 + $0xe80] ss:$8 sps:$4 sm:$0xff]  }
 0x1e9   :  { %6550 = vmatpush1.bf16.msra.mxu1 %v20106_v63  ;;  %6581 = vmatprep.mubr.bf16.mxu1 %v22766_v1 }
 0x1ea   :  { %6551 = vmatprep.subr.bf16.mxu1 %v20116_v5  ;;  %6606 = vmatprep.subr.bf16.mxu0 %v20161_v3  ;;  %v20164_v3 = vld [vmem:[%s22074_s10 + $0xe94] ss:$8 sps:$4 sm:$0xff]  }
 0x1ec   :  { %6607 = vmatpush1.bf16.msra.mxu0 %v20159_v37  ;;  %v20170_v37 = vld [vmem:[%s22074_s10 + $0xea4] ss:$8 sps:$4 sm:$0xff]  }
 0x1ed   :  { %6552 = vmatpush1.bf16.msra.mxu1 %v20114_v38  ;;  %6608 = vmatprep.subr.bf16.mxu0 %v20167_v39  ;;  %v20195_v39 = vld [vmem:[%s22074_s10 + $0xfe0] ss:$8 sps:$4 sm:$0xff]  }
 0x1ee   :  { %6553 = vmatprep.subr.bf16.mxu1 %v20122_v15  ;;  %v20152_v15 = vld [vmem:[%s22074_s10 + $0xe74] ss:$8 sps:$4 sm:$0xff]  }
 0x1f0   :  { %6609 = vmatpush1.bf16.msra.mxu0 %v20165_v31  ;;  %v20176_v31 = vld [vmem:[%s22074_s10 + $0xeb4] ss:$8 sps:$4 sm:$0xff]  }
 0x1f1   :  { %6554 = vmatpush1.bf16.msra.mxu1 %v20120_v23  ;;  %6610 = vmatprep.subr.bf16.mxu0 %v20173_v30  ;;  %v20150_v23 = vld [vmem:[%s22074_s10 + $0xe70] ss:$8 sps:$4 sm:$0xff]  }
 0x1f2   :  { %6555 = vmatprep.subr.bf16.mxu1 %v20128_v25  ;;  %v20183_v25 = vld [vmem:[%s22074_s10 + $0xfc0] ss:$8 sps:$4 sm:$0xff]   ;;  %v20201_v30 = vld [vmem:[%s22074_s10 + $0xff0] ss:$8 sps:$4 sm:$0xff]  }
 0x1f4   :  { %6611 = vmatpush1.bf16.msra.mxu0 %v20171_v41  ;;  %v22821_v41 = vld [vmem:[%s22121_s17 + $0x88] sm:$0xff] }
 0x1f5   :  { %6556 = vmatpush1.bf16.msra.mxu1 %v20126_v34  ;;  %6612 = vmatprep.subr.bf16.mxu0 %v20179_v61  ;;  %v20197_v34 = vld [vmem:[%s22074_s10 + $0xfe4] ss:$8 sps:$4 sm:$0xff]   ;;  %v22826_v61 = vcombine.low %v22725_v20, %v22725_v20  ;;  %v20217_v20 = vld [vmem:[%s22074_s10 + $0x1110] ss:$8 sps:$4 sm:$0xff]  }
 0x1f6   :  { %6557 = vmatprep.subr.bf16.mxu1 %v20134_v40  ;;  %v20162_v40 = vld [vmem:[%s22074_s10 + $0xe90] ss:$8 sps:$4 sm:$0xff]  }
 0x1f7   :  { %24771 = vst [vmem:[#allocation2_spill] sm:$0xff] %v22826_v61 }
 0x1f8   :  { %6613 = vmatpush1.bf16.msra.mxu0 %v20177_v45  ;;  %v20194_v45 = vld [vmem:[%s22074_s10 + $0xee4] ss:$8 sps:$4 sm:$0xff]  }
 0x1f9   :  { %6558 = vmatpush1.bf16.msra.mxu1 %v20132_v50  ;;  %6614 = vmatprep.subr.bf16.mxu0 %v20185_v22  ;;  %v20203_v50 = vld [vmem:[%s22074_s10 + $0xff4] ss:$8 sps:$4 sm:$0xff]   ;;  %v20223_v22 = vld [vmem:[%s22074_s10 + $0x1120] ss:$8 sps:$4 sm:$0xff]  }
 0x1fa   :  { %6559 = vmatprep.subr.bf16.mxu1 %v20140_v7  ;;  %v20168_v7 = vld [vmem:[%s22074_s10 + $0xea0] ss:$8 sps:$4 sm:$0xff]  }
 0x1fb   :  { %v6255_v57 = vpop.f32.mrb[16].mxu1 }
 0x1fc   :  { %v6256_v63 = vadd.f32 %v6255_v57, %v22701_v54  ;;  %v6257_v5 = vpop.f32.mrb[17].mxu1  ;;  %6615 = vmatpush1.bf16.msra.mxu0 %v20183_v25  ;;  %v20182_v57 = vld [vmem:[%s22074_s10 + $0xec4] ss:$8 sps:$4 sm:$0xff]   ;;  %v20200_v25 = vld [vmem:[%s22074_s10 + $0xef4] ss:$8 sps:$4 sm:$0xff]  }
 0x1fd   :  { %v6258_v11 = vadd.f32 %v6257_v5, %v22704_v27  ;;  %v6259_v38 = vpop.f32.mrb[18].mxu1  ;;  %6560 = vmatpush1.bf16.msra.mxu1 %v20138_v59  ;;  %v20158_v27 = vld [vmem:[%s22074_s10 + $0xe84] ss:$8 sps:$4 sm:$0xff]   ;;  %v20219_v5 = vld [vmem:[%s22074_s10 + $0x1114] ss:$8 sps:$4 sm:$0xff]  }
 0x1fe   :  { %v22797_v17 = vadd.f32 %v6296_v14, %v6256_v63  ;;  %v6260_v19 = vpop.f32.mrb[19].mxu1  ;;  %6561 = vmatprep.subr.bf16.mxu1 %v20146_v29  ;;  %v20191_v14 = vld [vmem:[%s22074_s10 + $0xfd4] ss:$8 sps:$4 sm:$0xff]   ;;  %v20213_v59 = vld [vmem:[%s22074_s10 + $0x1104] ss:$8 sps:$4 sm:$0xff]  }
 0x1ff   :  { %v22800_v54 = vadd.f32 %v6298_v2, %v6258_v11  ;;  %v20189_v2 = vld [vmem:[%s22074_s10 + $0xfd0] ss:$8 sps:$4 sm:$0xff]   ;;  %6616 = vmatprep.subr.bf16.mxu0 %v20191_v14  ;;  %v20211_v63 = vld [vmem:[%s22074_s10 + $0x1100] ss:$8 sps:$4 sm:$0xff]   ;;  %v20188_v38 = vld [vmem:[%s22074_s10 + $0xed4] ss:$8 sps:$4 sm:$0xff]  }
 0x200   :  { %6617 = vmatpush1.bf16.msra.mxu0 %v20189_v2  ;;  %v20174_v29 = vld [vmem:[%s22074_s10 + $0xeb0] ss:$8 sps:$4 sm:$0xff]   ;;  %v20180_v11 = vld [vmem:[%s22074_s10 + $0xec0] ss:$8 sps:$4 sm:$0xff]   ;;  %v20208_v2 = vld [vmem:[%s22074_s10 + $0x1004] ss:$8 sps:$4 sm:$0xff]  }
 0x201   :  { %6562 = vmatpush1.bf16.msra.mxu1 %v20144_v10  ;;  %6618 = vmatprep.subr.bf16.mxu0 %v20197_v34  ;;  %v22832_v10 = vcombine.high %v22821_v41, %v22821_v41  ;;  %v20186_v19 = vld [vmem:[%s22074_s10 + $0xed0] ss:$8 sps:$4 sm:$0xff]   ;;  %v20235_v34 = vld [vmem:[%s22074_s10 + $0x1140] ss:$8 sps:$4 sm:$0xff]  }
 0x202   :  { %6563 = vmatprep.subr.bf16.mxu1 %v20152_v15  ;;  %v20225_v15 = vld [vmem:[%s22074_s10 + $0x1124] ss:$8 sps:$4 sm:$0xff]   ;;  %v20229_v14 = vld [vmem:[%s22074_s10 + $0x1130] ss:$8 sps:$4 sm:$0xff]  }
 0x203   :  { %24772 = vst [vmem:[#allocation3_spill] sm:$0xff] %v22832_v10 }
 0x204   :  { %6619 = vmatpush1.bf16.msra.mxu0 %v20195_v39  ;;  %v22857_v39 = vcombine.low %v22757_v62, %v22757_v62 }
 0x205   :  { %6564 = vmatpush1.bf16.msra.mxu1 %v20150_v23  ;;  %6620 = vmatprep.subr.bf16.mxu0 %v20203_v50  ;;  %v20231_v23 = vld [vmem:[%s22074_s10 + $0x1134] ss:$8 sps:$4 sm:$0xff]   ;;  %v20206_v50 = vld [vmem:[%s22074_s10 + $0x1000] ss:$8 sps:$4 sm:$0xff]  }
 0x206   :  { %6565 = vmatprep.subr.bf16.mxu1 %v20158_v27  ;;  %v20192_v27 = vld [vmem:[%s22074_s10 + $0xee0] ss:$8 sps:$4 sm:$0xff]  }
 0x208   :  { %6621 = vmatpush1.bf16.msra.mxu0 %v20201_v30  ;;  %v20241_v30 = vld [vmem:[%s22074_s10 + $0x1150] ss:$8 sps:$4 sm:$0xff]  }
 0x209   :  { %6566 = vmatpush1.bf16.msra.mxu1 %v20156_v28  ;;  %6672 = vmatprep.subr.bf16.mxu0 %v20213_v59  ;;  %v20237_v28 = vld [vmem:[%s22074_s10 + $0x1144] ss:$8 sps:$4 sm:$0xff]  }
 0x20a   :  { %6567 = vmatprep.subr.bf16.mxu1 %v20164_v3  ;;  %v20198_v3 = vld [vmem:[%s22074_s10 + $0xef0] ss:$8 sps:$4 sm:$0xff]   ;;  %v20249_v59 = vld [vmem:[%s22074_s10 + $0x1164] ss:$8 sps:$4 sm:$0xff]  }
 0x20b   :  { %6623 = vmatmul.mubr.bf16.vlgmr.msra.gmra.mrb[28].mxu0 %v22826_v61 }
 0x20c   :  { %6673 = vmatpush1.bf16.msra.mxu0 %v20211_v63  ;;  %6704 = vmatprep.mubr.bf16.mxu0 %v22832_v10  ;;  %v20222_v63 = vld [vmem:[%s22074_s10 + $0x1024] ss:$8 sps:$4 sm:$0xff]  }
 0x20d   :  { %6568 = vmatpush1.bf16.msra.mxu1 %v20162_v40  ;;  %6674 = vmatprep.subr.bf16.mxu0 %v20219_v5  ;;  %v22852_v40 = vld [vmem:[%s22121_s17 + $0x80] sm:$0xff] }
 0x20e   :  { %6569 = vmatprep.subr.bf16.mxu1 %v20170_v37  ;;  %v20243_v37 = vld [vmem:[%s22074_s10 + $0x1154] ss:$8 sps:$4 sm:$0xff]   ;;  %v20247_v5 = vld [vmem:[%s22074_s10 + $0x1160] ss:$8 sps:$4 sm:$0xff]  }
 0x210   :  { %6675 = vmatpush1.bf16.msra.mxu0 %v20217_v20 }
 0x211   :  { %6570 = vmatpush1.bf16.msra.mxu1 %v20168_v7  ;;  %6676 = vmatprep.subr.bf16.mxu0 %v20225_v15  ;;  %v22862_v7 = vcombine.high %v22852_v40, %v22852_v40  ;;  %v20220_v15 = vld [vmem:[%s22074_s10 + $0x1020] ss:$8 sps:$4 sm:$0xff]  }
 0x212   :  { %6571 = vmatprep.subr.bf16.mxu1 %v20176_v31  ;;  %v20216_v31 = vld [vmem:[%s22074_s10 + $0x1014] ss:$8 sps:$4 sm:$0xff]  }
 0x214   :  { %6677 = vmatpush1.bf16.msra.mxu0 %v20223_v22  ;;  %v20261_v22 = vld [vmem:[%s22074_s10 + $0x1184] ss:$8 sps:$4 sm:$0xff]  }
 0x215   :  { %6572 = vmatpush1.bf16.msra.mxu1 %v20174_v29  ;;  %6678 = vmatprep.subr.bf16.mxu0 %v20231_v23  ;;  %v20214_v29 = vld [vmem:[%s22074_s10 + $0x1010] ss:$8 sps:$4 sm:$0xff]  }
 0x216   :  { %6573 = vmatprep.subr.bf16.mxu1 %v20182_v57  ;;  %v20226_v23 = vld [vmem:[%s22074_s10 + $0x1030] ss:$8 sps:$4 sm:$0xff]  }
 0x218   :  { %6679 = vmatpush1.bf16.msra.mxu0 %v20229_v14  ;;  %v20267_v14 = vld [vmem:[%s22074_s10 + $0x1194] ss:$8 sps:$4 sm:$0xff]  }
 0x219   :  { %6574 = vmatpush1.bf16.msra.mxu1 %v20180_v11  ;;  %6680 = vmatprep.subr.bf16.mxu0 %v20237_v28  ;;  %v20232_v28 = vld [vmem:[%s22074_s10 + $0x1040] ss:$8 sps:$4 sm:$0xff]  }
 0x21a   :  { %6575 = vmatprep.subr.bf16.mxu1 %v20188_v38  ;;  %v20255_v38 = vld [vmem:[%s22074_s10 + $0x1174] ss:$8 sps:$4 sm:$0xff]  }
 0x21c   :  { %6681 = vmatpush1.bf16.msra.mxu0 %v20235_v34  ;;  %v20273_v34 = vld [vmem:[%s22074_s10 + $0x11a4] ss:$8 sps:$4 sm:$0xff]  }
 0x21d   :  { %6576 = vmatpush1.bf16.msra.mxu1 %v20186_v19  ;;  %6682 = vmatprep.subr.bf16.mxu0 %v20243_v37  ;;  %v20228_v19 = vld [vmem:[%s22074_s10 + $0x1034] ss:$8 sps:$4 sm:$0xff]   ;;  %v20238_v37 = vld [vmem:[%s22074_s10 + $0x1050] ss:$8 sps:$4 sm:$0xff]  }
 0x21e   :  { %6577 = vmatprep.subr.bf16.mxu1 %v20194_v45  ;;  %v6378_v62 = vpop.f32.mrb[16].mxu0  ;;  %v20253_v45 = vld [vmem:[%s22074_s10 + $0x1170] ss:$8 sps:$4 sm:$0xff]  }
 0x21f   :  { %v6380_v57 = vpop.f32.mrb[17].mxu0 }
 0x220   :  { %6683 = vmatpush1.bf16.msra.mxu0 %v20241_v30  ;;  %v6382_v11 = vpop.f32.mrb[18].mxu0 }
 0x221   :  { %6578 = vmatpush1.bf16.msra.mxu1 %v20192_v27  ;;  %6684 = vmatprep.subr.bf16.mxu0 %v20249_v59  ;;  %v6383_v20 = vpop.f32.mrb[19].mxu0  ;;  %v20234_v27 = vld [vmem:[%s22074_s10 + $0x1044] ss:$8 sps:$4 sm:$0xff]   ;;  %v20279_v59 = vld [vmem:[%s22074_s10 + $0x11b4] ss:$8 sps:$4 sm:$0xff]  }
 0x222   :  { %6579 = vmatprep.subr.bf16.mxu1 %v20200_v25  ;;  %v20259_v25 = vld [vmem:[%s22074_s10 + $0x1180] ss:$8 sps:$4 sm:$0xff]  }
 0x224   :  { %6685 = vmatpush1.bf16.msra.mxu0 %v20247_v5 }
 0x225   :  { %6580 = vmatpush1.bf16.msra.mxu1 %v20198_v3  ;;  %6686 = vmatprep.subr.bf16.mxu0 %v20255_v38  ;;  %v20240_v3 = vld [vmem:[%s22074_s10 + $0x1054] ss:$8 sps:$4 sm:$0xff]   ;;  %v20244_v38 = vld [vmem:[%s22074_s10 + $0x1060] ss:$8 sps:$4 sm:$0xff]  }
 0x226   :  { %6631 = vmatprep.subr.bf16.mxu1 %v20208_v2  ;;  %v20265_v2 = vld [vmem:[%s22074_s10 + $0x1190] ss:$8 sps:$4 sm:$0xff]  }
 0x228   :  { %6582 = vmatmul.mubr.bf16.vlgmr.msra.gmra.mrb[32].mxu1 %v22857_v39  ;;  %6687 = vmatpush1.bf16.msra.mxu0 %v20253_v45  ;;  %v20277_v45 = vld [vmem:[%s22074_s10 + $0x11b0] ss:$8 sps:$4 sm:$0xff]  }
 0x229   :  { %6632 = vmatpush1.bf16.msra.mxu1 %v20206_v50  ;;  %6663 = vmatprep.mubr.bf16.mxu1 %v22862_v7  ;;  %v20246_v50 = vld [vmem:[%s22074_s10 + $0x1064] ss:$8 sps:$4 sm:$0xff]  }
 0x22a   :  { %6633 = vmatprep.subr.bf16.mxu1 %v20216_v31  ;;  %6688 = vmatprep.subr.bf16.mxu0 %v20261_v22  ;;  %v20271_v31 = vld [vmem:[%s22074_s10 + $0x11a0] ss:$8 sps:$4 sm:$0xff]   ;;  %v20250_v22 = vld [vmem:[%s22074_s10 + $0x1070] ss:$8 sps:$4 sm:$0xff]  }
 0x22c   :  { %6689 = vmatpush1.bf16.msra.mxu0 %v20259_v25  ;;  %v20256_v25 = vld [vmem:[%s22074_s10 + $0x1080] ss:$8 sps:$4 sm:$0xff]  }
 0x22d   :  { %6634 = vmatpush1.bf16.msra.mxu1 %v20214_v29  ;;  %6690 = vmatprep.subr.bf16.mxu0 %v20267_v14  ;;  %v20289_v14 = vld [vmem:[%s22074_s10 + $0x11d0] ss:$8 sps:$4 sm:$0xff]  }
 0x22e   :  { %6635 = vmatprep.subr.bf16.mxu1 %v20222_v63 }
 0x230   :  { %6691 = vmatpush1.bf16.msra.mxu0 %v20265_v2  ;;  %v20270_v2 = vld [vmem:[%s22074_s10 + $0x10a4] ss:$8 sps:$4 sm:$0xff]  }
 0x231   :  { %6636 = vmatpush1.bf16.msra.mxu1 %v20220_v15  ;;  %6692 = vmatprep.subr.bf16.mxu0 %v20273_v34  ;;  %v20295_v34 = vld [vmem:[%s22074_s10 + $0x11e0] ss:$8 sps:$4 sm:$0xff]  }
 0x232   :  { %6637 = vmatprep.subr.bf16.mxu1 %v20228_v19  ;;  %v20252_v19 = vld [vmem:[%s22074_s10 + $0x1074] ss:$8 sps:$4 sm:$0xff]  }
 0x234   :  { %6693 = vmatpush1.bf16.msra.mxu0 %v20271_v31  ;;  %v20276_v31 = vld [vmem:[%s22074_s10 + $0x10b4] ss:$8 sps:$4 sm:$0xff]  }
 0x235   :  { %6638 = vmatpush1.bf16.msra.mxu1 %v20226_v23  ;;  %6694 = vmatprep.subr.bf16.mxu0 %v20279_v59  ;;  %v20283_v23 = vld [vmem:[%s22074_s10 + $0x11c0] ss:$8 sps:$4 sm:$0xff]   ;;  %v20313_v59 = vld [vmem:[%s22074_s10 + $0x1304] ss:$8 sps:$4 sm:$0xff]  }
 0x236   :  { %6639 = vmatprep.subr.bf16.mxu1 %v20234_v27  ;;  %v20291_v27 = vld [vmem:[%s22074_s10 + $0x11d4] ss:$8 sps:$4 sm:$0xff]  }
 0x238   :  { %6695 = vmatpush1.bf16.msra.mxu0 %v20277_v45  ;;  %v20280_v45 = vld [vmem:[%s22074_s10 + $0x10c0] ss:$8 sps:$4 sm:$0xff]  }
 0x239   :  { %6640 = vmatpush1.bf16.msra.mxu1 %v20232_v28  ;;  %v20297_v28 = vld [vmem:[%s22074_s10 + $0x11e4] ss:$8 sps:$4 sm:$0xff]  }
 0x23a   :  { %6641 = vmatprep.subr.bf16.mxu1 %v20240_v3  ;;  %v20262_v3 = vld [vmem:[%s22074_s10 + $0x1090] ss:$8 sps:$4 sm:$0xff]  }
 0x23b   :  { %v6337_v30 = vpop.f32.mrb[20].mxu1 }
 0x23c   :  { %v6338_v29 = vadd.f32 %v6337_v30, %v22797_v17  ;;  %v6339_v63 = vpop.f32.mrb[21].mxu1  ;;  %v20301_v30 = vld [vmem:[%s22074_s10 + $0x11f0] ss:$8 sps:$4 sm:$0xff]  }
 0x23d   :  { %v6340_v5 = vadd.f32 %v6339_v63, %v22800_v54  ;;  %v6341_v11 = vpop.f32.mrb[22].mxu1  ;;  %6642 = vmatpush1.bf16.msra.mxu1 %v20238_v37  ;;  %v20285_v54 = vld [vmem:[%s22074_s10 + $0x11c4] ss:$8 sps:$4 sm:$0xff]   ;;  %v20303_v37 = vld [vmem:[%s22074_s10 + $0x11f4] ss:$8 sps:$4 sm:$0xff]  }
 0x23e   :  { %v22892_v20 = vadd.f32 %v6378_v62, %v6338_v29  ;;  %v6342_v15 = vpop.f32.mrb[23].mxu1  ;;  %6643 = vmatprep.subr.bf16.mxu1 %v20246_v50  ;;  %v20258_v62 = vld [vmem:[%s22074_s10 + $0x1084] ss:$8 sps:$4 sm:$0xff]   ;;  %6696 = vmatprep.subr.bf16.mxu0 %v20285_v54  ;;  %v20268_v50 = vld [vmem:[%s22074_s10 + $0x10a0] ss:$8 sps:$4 sm:$0xff]   ;;  %v22916_v29 = vld [vmem:[%s22121_s17 + $0x98] sm:$0xff] }
 0x23f   :  { %v22896_v17 = vadd.f32 %v6380_v57, %v6340_v5  ;;  %v20264_v57 = vld [vmem:[%s22074_s10 + $0x1094] ss:$8 sps:$4 sm:$0xff]   ;;  %6697 = vmatpush1.bf16.msra.mxu0 %v20283_v23  ;;  %v20274_v63 = vld [vmem:[%s22074_s10 + $0x10b0] ss:$8 sps:$4 sm:$0xff]   ;;  %v22921_v5 = vcombine.low %v22821_v41, %v22821_v41  ;;  %v20282_v11 = vld [vmem:[%s22074_s10 + $0x10c4] ss:$8 sps:$4 sm:$0xff]  }
 0x240   :  { %6698 = vmatprep.subr.bf16.mxu0 %v20291_v27  ;;  %v20319_v15 = vld [vmem:[%s22074_s10 + $0x1314] ss:$8 sps:$4 sm:$0xff]   ;;  %v20317_v54 = vld [vmem:[%s22074_s10 + $0x1310] ss:$8 sps:$4 sm:$0xff]   ;;  %v20294_v23 = vld [vmem:[%s22074_s10 + $0x10e4] ss:$8 sps:$4 sm:$0xff]  }
 0x241   :  { %6644 = vmatpush1.bf16.msra.mxu1 %v20244_v38  ;;  %24773 = vst [vmem:[#allocation4_spill] sm:$0xff] %v22921_v5  ;;  %v20311_v38 = vld [vmem:[%s22074_s10 + $0x1300] ss:$8 sps:$4 sm:$0xff]   ;;  %v20288_v41 = vld [vmem:[%s22074_s10 + $0x10d4] ss:$8 sps:$4 sm:$0xff]  }
 0x242   :  { %6645 = vmatprep.subr.bf16.mxu1 %v20252_v19  ;;  %v22928_v19 = vcombine.high %v22916_v29, %v22916_v29  ;;  %v20323_v27 = vld [vmem:[%s22074_s10 + $0x1320] ss:$8 sps:$4 sm:$0xff]  }
 0x243   :  { %6699 = vmatpush1.bf16.msra.mxu0 %v20289_v14  ;;  %v20300_v14 = vld [vmem:[%s22074_s10 + $0x10f4] ss:$8 sps:$4 sm:$0xff]  }
 0x244   :  { %6700 = vmatprep.subr.bf16.mxu0 %v20297_v28  ;;  %24774 = vst [vmem:[#allocation5_spill] sm:$0xff] %v22928_v19  ;;  %v20329_v28 = vld [vmem:[%s22074_s10 + $0x1330] ss:$8 sps:$4 sm:$0xff]  }
 0x245   :  { %6646 = vmatpush1.bf16.msra.mxu1 %v20250_v22  ;;  %v20325_v22 = vld [vmem:[%s22074_s10 + $0x1324] ss:$8 sps:$4 sm:$0xff]  }
 0x246   :  { %6647 = vmatprep.subr.bf16.mxu1 %v20258_v62  ;;  %v20286_v62 = vld [vmem:[%s22074_s10 + $0x10d0] ss:$8 sps:$4 sm:$0xff]  }
 0x247   :  { %6701 = vmatpush1.bf16.msra.mxu0 %v20295_v34  ;;  %v20308_v34 = vld [vmem:[%s22074_s10 + $0x1204] ss:$8 sps:$4 sm:$0xff]  }
 0x248   :  { %6702 = vmatprep.subr.bf16.mxu0 %v20303_v37  ;;  %v20335_v37 = vld [vmem:[%s22074_s10 + $0x1340] ss:$8 sps:$4 sm:$0xff]  }
 0x249   :  { %6648 = vmatpush1.bf16.msra.mxu1 %v20256_v25  ;;  %v20331_v25 = vld [vmem:[%s22074_s10 + $0x1334] ss:$8 sps:$4 sm:$0xff]  }
 0x24a   :  { %6649 = vmatprep.subr.bf16.mxu1 %v20264_v57  ;;  %v20292_v57 = vld [vmem:[%s22074_s10 + $0x10e0] ss:$8 sps:$4 sm:$0xff]  }
 0x24b   :  { %6703 = vmatpush1.bf16.msra.mxu0 %v20301_v30  ;;  %v22953_v30 = vcombine.low %v22852_v40, %v22852_v40 }
 0x24c   :  { %6754 = vmatprep.subr.bf16.mxu0 %v20313_v59  ;;  %v20306_v59 = vld [vmem:[%s22074_s10 + $0x1200] ss:$8 sps:$4 sm:$0xff]  }
 0x24d   :  { %6650 = vmatpush1.bf16.msra.mxu1 %v20262_v3  ;;  %v20337_v3 = vld [vmem:[%s22074_s10 + $0x1344] ss:$8 sps:$4 sm:$0xff]  }
 0x24e   :  { %6651 = vmatprep.subr.bf16.mxu1 %v20270_v2  ;;  %6705 = vmatmul.mubr.bf16.vlgmr.msra.gmra.mrb[32].mxu0 %v22921_v5  ;;  %v20298_v2 = vld [vmem:[%s22074_s10 + $0x10f0] ss:$8 sps:$4 sm:$0xff]  }
 0x24f   :  { %6755 = vmatpush1.bf16.msra.mxu0 %v20311_v38  ;;  %6786 = vmatprep.mubr.bf16.mxu0 %v22928_v19  ;;  %v20341_v38 = vld [vmem:[%s22074_s10 + $0x1350] ss:$8 sps:$4 sm:$0xff]  }
 0x250   :  { %6756 = vmatprep.subr.bf16.mxu0 %v20319_v15  ;;  %v20349_v15 = vld [vmem:[%s22074_s10 + $0x1364] ss:$8 sps:$4 sm:$0xff]   ;;  %v20777_v5 = vld [vmem:[%s22074_s10 + $0x1bb0] ss:$8 sps:$4 sm:$0xff]  }
 0x251   :  { %6652 = vmatpush1.bf16.msra.mxu1 %v20268_v50  ;;  %v22948_v50 = vld [vmem:[%s22121_s17 + $0x90] sm:$0xff] }
 0x252   :  { %6653 = vmatprep.subr.bf16.mxu1 %v20276_v31  ;;  %v20343_v31 = vld [vmem:[%s22074_s10 + $0x1354] ss:$8 sps:$4 sm:$0xff]  }
 0x253   :  { %6757 = vmatpush1.bf16.msra.mxu0 %v20317_v54  ;;  %v20322_v54 = vld [vmem:[%s22074_s10 + $0x1224] ss:$8 sps:$4 sm:$0xff]  }
 0x254   :  { %6758 = vmatprep.subr.bf16.mxu0 %v20325_v22  ;;  %v20347_v22 = vld [vmem:[%s22074_s10 + $0x1360] ss:$8 sps:$4 sm:$0xff]  }
 0x255   :  { %6654 = vmatpush1.bf16.msra.mxu1 %v20274_v63  ;;  %v22958_v63 = vcombine.high %v22948_v50, %v22948_v50 }
 0x256   :  { %6655 = vmatprep.subr.bf16.mxu1 %v20282_v11  ;;  %v20316_v11 = vld [vmem:[%s22074_s10 + $0x1214] ss:$8 sps:$4 sm:$0xff]  }
 0x257   :  { %6759 = vmatpush1.bf16.msra.mxu0 %v20323_v27 }
 0x258   :  { %6760 = vmatprep.subr.bf16.mxu0 %v20331_v25  ;;  %v20320_v25 = vld [vmem:[%s22074_s10 + $0x1220] ss:$8 sps:$4 sm:$0xff]  }
 0x259   :  { %6656 = vmatpush1.bf16.msra.mxu1 %v20280_v45  ;;  %v20314_v45 = vld [vmem:[%s22074_s10 + $0x1210] ss:$8 sps:$4 sm:$0xff]  }
 0x25a   :  { %6657 = vmatprep.subr.bf16.mxu1 %v20288_v41 }
 0x25b   :  { %6761 = vmatpush1.bf16.msra.mxu0 %v20329_v28  ;;  %v20361_v28 = vld [vmem:[%s22074_s10 + $0x1384] ss:$8 sps:$4 sm:$0xff]  }
 0x25c   :  { %6762 = vmatprep.subr.bf16.mxu0 %v20337_v3  ;;  %v20326_v3 = vld [vmem:[%s22074_s10 + $0x1230] ss:$8 sps:$4 sm:$0xff]  }
 0x25d   :  { %6658 = vmatpush1.bf16.msra.mxu1 %v20286_v62 }
 0x25e   :  { %6659 = vmatprep.subr.bf16.mxu1 %v20294_v23  ;;  %v6460_v40 = vpop.f32.mrb[20].mxu0  ;;  %v20355_v23 = vld [vmem:[%s22074_s10 + $0x1374] ss:$8 sps:$4 sm:$0xff]  }
 0x25f   :  { %6763 = vmatpush1.bf16.msra.mxu0 %v20335_v37  ;;  %v6462_v41 = vpop.f32.mrb[21].mxu0  ;;  %v20367_v37 = vld [vmem:[%s22074_s10 + $0x1394] ss:$8 sps:$4 sm:$0xff]  }
 0x260   :  { %6764 = vmatprep.subr.bf16.mxu0 %v20343_v31  ;;  %v6464_v62 = vpop.f32.mrb[22].mxu0  ;;  %v20332_v31 = vld [vmem:[%s22074_s10 + $0x1240] ss:$8 sps:$4 sm:$0xff]  }
 0x261   :  { %6660 = vmatpush1.bf16.msra.mxu1 %v20292_v57  ;;  %v6465_v27 = vpop.f32.mrb[23].mxu0  ;;  %v20328_v57 = vld [vmem:[%s22074_s10 + $0x1234] ss:$8 sps:$4 sm:$0xff]  }
 0x262   :  { %6661 = vmatprep.subr.bf16.mxu1 %v20300_v14  ;;  %v20353_v14 = vld [vmem:[%s22074_s10 + $0x1370] ss:$8 sps:$4 sm:$0xff]   ;;  %v20379_v62 = vld [vmem:[%s22074_s10 + $0x13b4] ss:$8 sps:$4 sm:$0xff]  }
 0x263   :  { %6765 = vmatpush1.bf16.msra.mxu0 %v20341_v38  ;;  %v20373_v38 = vld [vmem:[%s22074_s10 + $0x13a4] ss:$8 sps:$4 sm:$0xff]  }
 0x264   :  { %6766 = vmatprep.subr.bf16.mxu0 %v20349_v15  ;;  %v20338_v15 = vld [vmem:[%s22074_s10 + $0x1250] ss:$8 sps:$4 sm:$0xff]  }
 0x265   :  { %6662 = vmatpush1.bf16.msra.mxu1 %v20298_v2  ;;  %v20334_v2 = vld [vmem:[%s22074_s10 + $0x1244] ss:$8 sps:$4 sm:$0xff]  }
 0x266   :  { %6713 = vmatprep.subr.bf16.mxu1 %v20308_v34  ;;  %v20359_v34 = vld [vmem:[%s22074_s10 + $0x1380] ss:$8 sps:$4 sm:$0xff]  }
 0x267   :  { %6767 = vmatpush1.bf16.msra.mxu0 %v20347_v22 }
 0x268   :  { %6664 = vmatmul.mubr.bf16.vlgmr.msra.gmra.mrb[36].mxu1 %v22953_v30  ;;  %6768 = vmatprep.subr.bf16.mxu0 %v20355_v23 }
 0x269   :  { %6714 = vmatpush1.bf16.msra.mxu1 %v20306_v59  ;;  %6745 = vmatprep.mubr.bf16.mxu1 %v22958_v63  ;;  %v20340_v59 = vld [vmem:[%s22074_s10 + $0x1254] ss:$8 sps:$4 sm:$0xff]  }
 0x26a   :  { %6715 = vmatprep.subr.bf16.mxu1 %v20316_v11  ;;  %v20365_v11 = vld [vmem:[%s22074_s10 + $0x1390] ss:$8 sps:$4 sm:$0xff]  }
 0x26b   :  { %6769 = vmatpush1.bf16.msra.mxu0 %v20353_v14  ;;  %v20344_v14 = vld [vmem:[%s22074_s10 + $0x1260] ss:$8 sps:$4 sm:$0xff]  }
 0x26c   :  { %6770 = vmatprep.subr.bf16.mxu0 %v20361_v28 }
 0x26d   :  { %6716 = vmatpush1.bf16.msra.mxu1 %v20314_v45  ;;  %v20346_v45 = vld [vmem:[%s22074_s10 + $0x1264] ss:$8 sps:$4 sm:$0xff]  }
 0x26e   :  { %6717 = vmatprep.subr.bf16.mxu1 %v20322_v54  ;;  %v20371_v54 = vld [vmem:[%s22074_s10 + $0x13a0] ss:$8 sps:$4 sm:$0xff]  }
 0x26f   :  { %6771 = vmatpush1.bf16.msra.mxu0 %v20359_v34  ;;  %v20377_v34 = vld [vmem:[%s22074_s10 + $0x13b0] ss:$8 sps:$4 sm:$0xff]  }
 0x270   :  { %6772 = vmatprep.subr.bf16.mxu0 %v20367_v37  ;;  %v20350_v37 = vld [vmem:[%s22074_s10 + $0x1270] ss:$8 sps:$4 sm:$0xff]  }
 0x271   :  { %6718 = vmatpush1.bf16.msra.mxu1 %v20320_v25 }
 0x272   :  { %6719 = vmatprep.subr.bf16.mxu1 %v20328_v57 }
 0x273   :  { %6773 = vmatpush1.bf16.msra.mxu0 %v20365_v11  ;;  %v20356_v11 = vld [vmem:[%s22074_s10 + $0x1280] ss:$8 sps:$4 sm:$0xff]  }
 0x274   :  { %6774 = vmatprep.subr.bf16.mxu0 %v20373_v38  ;;  %v20389_v38 = vld [vmem:[%s22074_s10 + $0x13d0] ss:$8 sps:$4 sm:$0xff]  }
 0x275   :  { %6720 = vmatpush1.bf16.msra.mxu1 %v20326_v3 }
 0x276   :  { %6721 = vmatprep.subr.bf16.mxu1 %v20334_v2  ;;  %v20352_v2 = vld [vmem:[%s22074_s10 + $0x1274] ss:$8 sps:$4 sm:$0xff]  }
 0x277   :  { %6775 = vmatpush1.bf16.msra.mxu0 %v20371_v54  ;;  %v20370_v54 = vld [vmem:[%s22074_s10 + $0x12a4] ss:$8 sps:$4 sm:$0xff]  }
 0x278   :  { %6776 = vmatprep.subr.bf16.mxu0 %v20379_v62  ;;  %v20403_v62 = vld [vmem:[%s22074_s10 + $0x13f4] ss:$8 sps:$4 sm:$0xff]  }
 0x279   :  { %6722 = vmatpush1.bf16.msra.mxu1 %v20332_v31  ;;  %v20383_v31 = vld [vmem:[%s22074_s10 + $0x13c0] ss:$8 sps:$4 sm:$0xff]  }
 0x27a   :  { %6723 = vmatprep.subr.bf16.mxu1 %v20340_v59  ;;  %v20391_v59 = vld [vmem:[%s22074_s10 + $0x13d4] ss:$8 sps:$4 sm:$0xff]  }
 0x27b   :  { %v6419_v22 = vpop.f32.mrb[24].mxu1  ;;  %6777 = vmatpush1.bf16.msra.mxu0 %v20377_v34  ;;  %v20382_v34 = vld [vmem:[%s22074_s10 + $0x12c4] ss:$8 sps:$4 sm:$0xff]  }
 0x27c   :  { %v6420_v23 = vadd.f32 %v6419_v22, %v22892_v20  ;;  %v6421_v27 = vpop.f32.mrb[25].mxu1  ;;  %v20395_v22 = vld [vmem:[%s22074_s10 + $0x13e0] ss:$8 sps:$4 sm:$0xff]  }
 0x27d   :  { %v6422_v25 = vadd.f32 %v6421_v27, %v22896_v17  ;;  %v6423_v57 = vpop.f32.mrb[26].mxu1  ;;  %6724 = vmatpush1.bf16.msra.mxu1 %v20338_v15  ;;  %v20385_v17 = vld [vmem:[%s22074_s10 + $0x13c4] ss:$8 sps:$4 sm:$0xff]   ;;  %v20376_v27 = vld [vmem:[%s22074_s10 + $0x12b4] ss:$8 sps:$4 sm:$0xff]  }
 0x27e   :  { %v22988_v28 = vadd.f32 %v6460_v40, %v6420_v23  ;;  %v6424_v3 = vpop.f32.mrb[27].mxu1  ;;  %6725 = vmatprep.subr.bf16.mxu1 %v20346_v45  ;;  %v20358_v40 = vld [vmem:[%s22074_s10 + $0x1284] ss:$8 sps:$4 sm:$0xff]   ;;  %6778 = vmatprep.subr.bf16.mxu0 %v20385_v17  ;;  %v20362_v45 = vld [vmem:[%s22074_s10 + $0x1290] ss:$8 sps:$4 sm:$0xff]  }
 0x27f   :  { %v22992_v20 = vadd.f32 %v6462_v41, %v6422_v25  ;;  %v20364_v41 = vld [vmem:[%s22074_s10 + $0x1294] ss:$8 sps:$4 sm:$0xff]   ;;  %6779 = vmatpush1.bf16.msra.mxu0 %v20383_v31  ;;  %v20397_v15 = vld [vmem:[%s22074_s10 + $0x13e4] ss:$8 sps:$4 sm:$0xff]   ;;  %v20368_v23 = vld [vmem:[%s22074_s10 + $0x12a0] ss:$8 sps:$4 sm:$0xff]  }
 0x280   :  { %6780 = vmatprep.subr.bf16.mxu0 %v20391_v59  ;;  %v20401_v25 = vld [vmem:[%s22074_s10 + $0x13f0] ss:$8 sps:$4 sm:$0xff]   ;;  %v20413_v57 = vld [vmem:[%s22074_s10 + $0x1504] ss:$8 sps:$4 sm:$0xff]   ;;  %v20411_v17 = vld [vmem:[%s22074_s10 + $0x1500] ss:$8 sps:$4 sm:$0xff]  }
 0x281   :  { %6726 = vmatpush1.bf16.msra.mxu1 %v20344_v14  ;;  %v23012_v14 = vld [vmem:[%s22121_s17 + $0xa8] sm:$0xff]  ;;  %v20374_v3 = vld [vmem:[%s22074_s10 + $0x12b0] ss:$8 sps:$4 sm:$0xff]  }
 0x282   :  { %6727 = vmatprep.subr.bf16.mxu1 %v20352_v2  ;;  %v23017_v2 = vcombine.low %v22916_v29, %v22916_v29  ;;  %v20380_v31 = vld [vmem:[%s22074_s10 + $0x12c0] ss:$8 sps:$4 sm:$0xff]   ;;  %v20388_v29 = vld [vmem:[%s22074_s10 + $0x12d4] ss:$8 sps:$4 sm:$0xff]   ;;  %v20417_v59 = vld [vmem:[%s22074_s10 + $0x1510] ss:$8 sps:$4 sm:$0xff]  }
 0x283   :  { %6781 = vmatpush1.bf16.msra.mxu0 %v20389_v38  ;;  %v20394_v38 = vld [vmem:[%s22074_s10 + $0x12e4] ss:$8 sps:$4 sm:$0xff]  }
 0x284   :  { %6782 = vmatprep.subr.bf16.mxu0 %v20397_v15  ;;  %24775 = vst [vmem:[#allocation6_spill] sm:$0xff] %v23017_v2  ;;  %v20423_v15 = vld [vmem:[%s22074_s10 + $0x1520] ss:$8 sps:$4 sm:$0xff]  }
 0x285   :  { %6728 = vmatpush1.bf16.msra.mxu1 %v20350_v37  ;;  %v20419_v37 = vld [vmem:[%s22074_s10 + $0x1514] ss:$8 sps:$4 sm:$0xff]  }
 0x286   :  { %6729 = vmatprep.subr.bf16.mxu1 %v20358_v40  ;;  %v23024_v40 = vcombine.high %v23012_v14, %v23012_v14 }
 0x287   :  { %6783 = vmatpush1.bf16.msra.mxu0 %v20395_v22  ;;  %v20400_v22 = vld [vmem:[%s22074_s10 + $0x12f4] ss:$8 sps:$4 sm:$0xff]  }
 0x288   :  { %6784 = vmatprep.subr.bf16.mxu0 %v20403_v62  ;;  %24776 = vst [vmem:[#allocation7_spill] sm:$0xff] %v23024_v40  ;;  %v20429_v62 = vld [vmem:[%s22074_s10 + $0x1530] ss:$8 sps:$4 sm:$0xff]  }
 0x289   :  { %6730 = vmatpush1.bf16.msra.mxu1 %v20356_v11  ;;  %v20425_v11 = vld [vmem:[%s22074_s10 + $0x1524] ss:$8 sps:$4 sm:$0xff]  }
 0x28a   :  { %6731 = vmatprep.subr.bf16.mxu1 %v20364_v41  ;;  %v20386_v41 = vld [vmem:[%s22074_s10 + $0x12d0] ss:$8 sps:$4 sm:$0xff]  }
 0x28b   :  { %6785 = vmatpush1.bf16.msra.mxu0 %v20401_v25  ;;  %v20408_v25 = vld [vmem:[%s22074_s10 + $0x1404] ss:$8 sps:$4 sm:$0xff]  }
 0x28c   :  { %6836 = vmatprep.subr.bf16.mxu0 %v20413_v57  ;;  %v20435_v57 = vld [vmem:[%s22074_s10 + $0x1540] ss:$8 sps:$4 sm:$0xff]  }
 0x28d   :  { %6732 = vmatpush1.bf16.msra.mxu1 %v20362_v45  ;;  %v20431_v45 = vld [vmem:[%s22074_s10 + $0x1534] ss:$8 sps:$4 sm:$0xff]  }
 0x28e   :  { %6733 = vmatprep.subr.bf16.mxu1 %v20370_v54  ;;  %6787 = vmatmul.mubr.bf16.vlgmr.msra.gmra.mrb[36].mxu0 %v23017_v2  ;;  %v20392_v54 = vld [vmem:[%s22074_s10 + $0x12e0] ss:$8 sps:$4 sm:$0xff]   ;;  %v20677_v2 = vld [vmem:[%s22074_s10 + $0x19b0] ss:$8 sps:$4 sm:$0xff]  }
 0x28f   :  { %6837 = vmatpush1.bf16.msra.mxu0 %v20411_v17  ;;  %6868 = vmatprep.mubr.bf16.mxu0 %v23024_v40  ;;  %v23049_v17 = vcombine.low %v22948_v50, %v22948_v50 }
 0x290   :  { %6838 = vmatprep.subr.bf16.mxu0 %v20419_v37  ;;  %v20406_v37 = vld [vmem:[%s22074_s10 + $0x1400] ss:$8 sps:$4 sm:$0xff]  }
 0x291   :  { %6734 = vmatpush1.bf16.msra.mxu1 %v20368_v23  ;;  %v20437_v23 = vld [vmem:[%s22074_s10 + $0x1544] ss:$8 sps:$4 sm:$0xff]  }
 0x292   :  { %6735 = vmatprep.subr.bf16.mxu1 %v20376_v27  ;;  %v20398_v27 = vld [vmem:[%s22074_s10 + $0x12f0] ss:$8 sps:$4 sm:$0xff]  }
 0x293   :  { %6839 = vmatpush1.bf16.msra.mxu0 %v20417_v59  ;;  %v20441_v59 = vld [vmem:[%s22074_s10 + $0x1550] ss:$8 sps:$4 sm:$0xff]  }
 0x294   :  { %6840 = vmatprep.subr.bf16.mxu0 %v20425_v11  ;;  %v20449_v11 = vld [vmem:[%s22074_s10 + $0x1564] ss:$8 sps:$4 sm:$0xff]  }
 0x295   :  { %6736 = vmatpush1.bf16.msra.mxu1 %v20374_v3  ;;  %v23044_v3 = vld [vmem:[%s22121_s17 + $0xa0] sm:$0xff] }
 0x296   :  { %6737 = vmatprep.subr.bf16.mxu1 %v20382_v34  ;;  %v20443_v34 = vld [vmem:[%s22074_s10 + $0x1554] ss:$8 sps:$4 sm:$0xff]  }
 0x297   :  { %6841 = vmatpush1.bf16.msra.mxu0 %v20423_v15  ;;  %v20422_v15 = vld [vmem:[%s22074_s10 + $0x1424] ss:$8 sps:$4 sm:$0xff]  }
 0x298   :  { %6842 = vmatprep.subr.bf16.mxu0 %v20431_v45  ;;  %v20447_v45 = vld [vmem:[%s22074_s10 + $0x1560] ss:$8 sps:$4 sm:$0xff]  }
 0x299   :  { %6738 = vmatpush1.bf16.msra.mxu1 %v20380_v31  ;;  %v23054_v31 = vcombine.high %v23044_v3, %v23044_v3 }
 0x29a   :  { %6739 = vmatprep.subr.bf16.mxu1 %v20388_v29  ;;  %v20416_v29 = vld [vmem:[%s22074_s10 + $0x1414] ss:$8 sps:$4 sm:$0xff]  }
 0x29b   :  { %6843 = vmatpush1.bf16.msra.mxu0 %v20429_v62 }
 0x29c   :  { %6844 = vmatprep.subr.bf16.mxu0 %v20437_v23  ;;  %v20420_v23 = vld [vmem:[%s22074_s10 + $0x1420] ss:$8 sps:$4 sm:$0xff]  }
 0x29d   :  { %6740 = vmatpush1.bf16.msra.mxu1 %v20386_v41  ;;  %v20414_v41 = vld [vmem:[%s22074_s10 + $0x1410] ss:$8 sps:$4 sm:$0xff]  }
 0x29e   :  { %6741 = vmatprep.subr.bf16.mxu1 %v20394_v38  ;;  %v6542_v50 = vpop.f32.mrb[24].mxu0 }
 0x29f   :  { %6845 = vmatpush1.bf16.msra.mxu0 %v20435_v57  ;;  %v6544_v38 = vpop.f32.mrb[25].mxu0  ;;  %v20461_v57 = vld [vmem:[%s22074_s10 + $0x1584] ss:$8 sps:$4 sm:$0xff]  }
 0x2a0   :  { %6846 = vmatprep.subr.bf16.mxu0 %v20443_v34  ;;  %v20426_v34 = vld [vmem:[%s22074_s10 + $0x1430] ss:$8 sps:$4 sm:$0xff]  }
 0x2a1   :  { %6742 = vmatpush1.bf16.msra.mxu1 %v20392_v54  ;;  %v6546_v54 = vpop.f32.mrb[26].mxu0 }
 0x2a2   :  { %6743 = vmatprep.subr.bf16.mxu1 %v20400_v22  ;;  %v20455_v22 = vld [vmem:[%s22074_s10 + $0x1574] ss:$8 sps:$4 sm:$0xff]   ;;  %v6547_v62 = vpop.f32.mrb[27].mxu0  ;;  %v20438_v54 = vld [vmem:[%s22074_s10 + $0x1450] ss:$8 sps:$4 sm:$0xff]  }
 0x2a3   :  { %6847 = vmatpush1.bf16.msra.mxu0 %v20441_v59  ;;  %v20467_v59 = vld [vmem:[%s22074_s10 + $0x1594] ss:$8 sps:$4 sm:$0xff]   ;;  %v20471_v62 = vld [vmem:[%s22074_s10 + $0x15a0] ss:$8 sps:$4 sm:$0xff]  }
 0x2a4   :  { %6848 = vmatprep.subr.bf16.mxu0 %v20449_v11  ;;  %v20432_v11 = vld [vmem:[%s22074_s10 + $0x1440] ss:$8 sps:$4 sm:$0xff]  }
 0x2a5   :  { %6744 = vmatpush1.bf16.msra.mxu1 %v20398_v27  ;;  %v20428_v27 = vld [vmem:[%s22074_s10 + $0x1434] ss:$8 sps:$4 sm:$0xff]  }
 0x2a6   :  { %6795 = vmatprep.subr.bf16.mxu1 %v20408_v25  ;;  %v20453_v25 = vld [vmem:[%s22074_s10 + $0x1570] ss:$8 sps:$4 sm:$0xff]  }
 0x2a7   :  { %6849 = vmatpush1.bf16.msra.mxu0 %v20447_v45  ;;  %v20473_v45 = vld [vmem:[%s22074_s10 + $0x15a4] ss:$8 sps:$4 sm:$0xff]  }
 0x2a8   :  { %6746 = vmatmul.mubr.bf16.vlgmr.msra.gmra.mrb[40].mxu1 %v23049_v17  ;;  %6850 = vmatprep.subr.bf16.mxu0 %v20455_v22  ;;  %v20446_v22 = vld [vmem:[%s22074_s10 + $0x1464] ss:$8 sps:$4 sm:$0xff]  }
 0x2a9   :  { %6796 = vmatpush1.bf16.msra.mxu1 %v20406_v37  ;;  %6827 = vmatprep.mubr.bf16.mxu1 %v23054_v31  ;;  %v20434_v37 = vld [vmem:[%s22074_s10 + $0x1444] ss:$8 sps:$4 sm:$0xff]  }
 0x2aa   :  { %6797 = vmatprep.subr.bf16.mxu1 %v20416_v29  ;;  %v20459_v29 = vld [vmem:[%s22074_s10 + $0x1580] ss:$8 sps:$4 sm:$0xff]  }
 0x2ab   :  { %6851 = vmatpush1.bf16.msra.mxu0 %v20453_v25 }
 0x2ac   :  { %6852 = vmatprep.subr.bf16.mxu0 %v20461_v57 }
 0x2ad   :  { %6798 = vmatpush1.bf16.msra.mxu1 %v20414_v41  ;;  %v20440_v41 = vld [vmem:[%s22074_s10 + $0x1454] ss:$8 sps:$4 sm:$0xff]  }
 0x2ae   :  { %6799 = vmatprep.subr.bf16.mxu1 %v20422_v15  ;;  %v20465_v15 = vld [vmem:[%s22074_s10 + $0x1590] ss:$8 sps:$4 sm:$0xff]  }
 0x2af   :  { %6853 = vmatpush1.bf16.msra.mxu0 %v20459_v29  ;;  %v20444_v29 = vld [vmem:[%s22074_s10 + $0x1460] ss:$8 sps:$4 sm:$0xff]  }
 0x2b0   :  { %6854 = vmatprep.subr.bf16.mxu0 %v20467_v59 }
 0x2b1   :  { %6800 = vmatpush1.bf16.msra.mxu1 %v20420_v23 }
 0x2b2   :  { %6801 = vmatprep.subr.bf16.mxu1 %v20428_v27  ;;  %v20479_v27 = vld [vmem:[%s22074_s10 + $0x15b4] ss:$8 sps:$4 sm:$0xff]  }
 0x2b3   :  { %6855 = vmatpush1.bf16.msra.mxu0 %v20465_v15  ;;  %v20477_v15 = vld [vmem:[%s22074_s10 + $0x15b0] ss:$8 sps:$4 sm:$0xff]  }
 0x2b4   :  { %6856 = vmatprep.subr.bf16.mxu0 %v20473_v45  ;;  %v20450_v45 = vld [vmem:[%s22074_s10 + $0x1470] ss:$8 sps:$4 sm:$0xff]  }
 0x2b5   :  { %6802 = vmatpush1.bf16.msra.mxu1 %v20426_v34 }
 0x2b6   :  { %6803 = vmatprep.subr.bf16.mxu1 %v20434_v37 }
 0x2b7   :  { %6857 = vmatpush1.bf16.msra.mxu0 %v20471_v62  ;;  %v20456_v62 = vld [vmem:[%s22074_s10 + $0x1480] ss:$8 sps:$4 sm:$0xff]  }
 0x2b8   :  { %6858 = vmatprep.subr.bf16.mxu0 %v20479_v27  ;;  %v20497_v27 = vld [vmem:[%s22074_s10 + $0x15e4] ss:$8 sps:$4 sm:$0xff]  }
 0x2b9   :  { %6804 = vmatpush1.bf16.msra.mxu1 %v20432_v11 }
 0x2ba   :  { %6805 = vmatprep.subr.bf16.mxu1 %v20440_v41  ;;  %v20452_v41 = vld [vmem:[%s22074_s10 + $0x1474] ss:$8 sps:$4 sm:$0xff]  }
 0x2bb   :  { %v6501_v23 = vpop.f32.mrb[28].mxu1  ;;  %6859 = vmatpush1.bf16.msra.mxu0 %v20477_v15  ;;  %v20513_v15 = vld [vmem:[%s22074_s10 + $0x1704] ss:$8 sps:$4 sm:$0xff]  }
 0x2bc   :  { %v6502_v25 = vadd.f32 %v6501_v23, %v22988_v28  ;;  %v6503_v57 = vpop.f32.mrb[29].mxu1  ;;  %v20489_v23 = vld [vmem:[%s22074_s10 + $0x15d0] ss:$8 sps:$4 sm:$0xff]  }
 0x2bd   :  { %v6504_v34 = vadd.f32 %v6503_v57, %v22992_v20  ;;  %v6505_v37 = vpop.f32.mrb[30].mxu1  ;;  %6806 = vmatpush1.bf16.msra.mxu1 %v20438_v54  ;;  %v20485_v20 = vld [vmem:[%s22074_s10 + $0x15c4] ss:$8 sps:$4 sm:$0xff]   ;;  %v20483_v54 = vld [vmem:[%s22074_s10 + $0x15c0] ss:$8 sps:$4 sm:$0xff]  }
 0x2be   :  { %v23084_v59 = vadd.f32 %v6542_v50, %v6502_v25  ;;  %v6506_v11 = vpop.f32.mrb[31].mxu1  ;;  %6807 = vmatprep.subr.bf16.mxu1 %v20446_v22  ;;  %v20458_v50 = vld [vmem:[%s22074_s10 + $0x1484] ss:$8 sps:$4 sm:$0xff]   ;;  %6860 = vmatprep.subr.bf16.mxu0 %v20485_v20  ;;  %v20491_v22 = vld [vmem:[%s22074_s10 + $0x15d4] ss:$8 sps:$4 sm:$0xff]  }
 0x2bf   :  { %v23088_v28 = vadd.f32 %v6544_v38, %v6504_v34  ;;  %v20464_v38 = vld [vmem:[%s22074_s10 + $0x1494] ss:$8 sps:$4 sm:$0xff]   ;;  %6861 = vmatpush1.bf16.msra.mxu0 %v20483_v54  ;;  %v20462_v25 = vld [vmem:[%s22074_s10 + $0x1490] ss:$8 sps:$4 sm:$0xff]   ;;  %v20470_v57 = vld [vmem:[%s22074_s10 + $0x14a4] ss:$8 sps:$4 sm:$0xff]  }
 0x2c0   :  { %6862 = vmatprep.subr.bf16.mxu0 %v20491_v22  ;;  %v20495_v34 = vld [vmem:[%s22074_s10 + $0x15e0] ss:$8 sps:$4 sm:$0xff]   ;;  %v20503_v37 = vld [vmem:[%s22074_s10 + $0x15f4] ss:$8 sps:$4 sm:$0xff]   ;;  %v20482_v54 = vld [vmem:[%s22074_s10 + $0x14c4] ss:$8 sps:$4 sm:$0xff]  }
 0x2c1   :  { %6808 = vmatpush1.bf16.msra.mxu1 %v20444_v29  ;;  %v20468_v29 = vld [vmem:[%s22074_s10 + $0x14a0] ss:$8 sps:$4 sm:$0xff]   ;;  %v20476_v11 = vld [vmem:[%s22074_s10 + $0x14b4] ss:$8 sps:$4 sm:$0xff]  }
 0x2c2   :  { %6809 = vmatprep.subr.bf16.mxu1 %v20452_v41  ;;  %v20501_v41 = vld [vmem:[%s22074_s10 + $0x15f0] ss:$8 sps:$4 sm:$0xff]   ;;  %v20511_v22 = vld [vmem:[%s22074_s10 + $0x1700] ss:$8 sps:$4 sm:$0xff]  }
 0x2c3   :  { %6863 = vmatpush1.bf16.msra.mxu0 %v20489_v23  ;;  %v23108_v20 = vld [vmem:[%s22121_s17 + $0xb8] sm:$0xff]  ;;  %v20480_v23 = vld [vmem:[%s22074_s10 + $0x14c0] ss:$8 sps:$4 sm:$0xff]  }
 0x2c4   :  { %6864 = vmatprep.subr.bf16.mxu0 %v20497_v27  ;;  %v20517_v27 = vld [vmem:[%s22074_s10 + $0x1710] ss:$8 sps:$4 sm:$0xff]  }
 0x2c5   :  { %6810 = vmatpush1.bf16.msra.mxu1 %v20450_v45  ;;  %v20474_v45 = vld [vmem:[%s22074_s10 + $0x14b0] ss:$8 sps:$4 sm:$0xff]  }
 0x2c6   :  { %6811 = vmatprep.subr.bf16.mxu1 %v20458_v50  ;;  %v23113_v50 = vcombine.low %v23012_v14, %v23012_v14  ;;  %v20488_v14 = vld [vmem:[%s22074_s10 + $0x14d4] ss:$8 sps:$4 sm:$0xff]  }
 0x2c7   :  { %6865 = vmatpush1.bf16.msra.mxu0 %v20495_v34  ;;  %v20494_v34 = vld [vmem:[%s22074_s10 + $0x14e4] ss:$8 sps:$4 sm:$0xff]  }
 0x2c8   :  { %6866 = vmatprep.subr.bf16.mxu0 %v20503_v37  ;;  %24777 = vst [vmem:[#allocation8_spill] sm:$0xff] %v23113_v50  ;;  %v20523_v37 = vld [vmem:[%s22074_s10 + $0x1720] ss:$8 sps:$4 sm:$0xff]  }
 0x2c9   :  { %6812 = vmatpush1.bf16.msra.mxu1 %v20456_v62  ;;  %v20519_v62 = vld [vmem:[%s22074_s10 + $0x1714] ss:$8 sps:$4 sm:$0xff]  }
 0x2ca   :  { %6813 = vmatprep.subr.bf16.mxu1 %v20464_v38  ;;  %v23120_v38 = vcombine.high %v23108_v20, %v23108_v20 }
 0x2cb   :  { %6867 = vmatpush1.bf16.msra.mxu0 %v20501_v41  ;;  %v20500_v41 = vld [vmem:[%s22074_s10 + $0x14f4] ss:$8 sps:$4 sm:$0xff]  }
 0x2cc   :  { %6918 = vmatprep.subr.bf16.mxu0 %v20513_v15  ;;  %24778 = vst [vmem:[#allocation9_spill] sm:$0xff] %v23120_v38  ;;  %v20529_v15 = vld [vmem:[%s22074_s10 + $0x1730] ss:$8 sps:$4 sm:$0xff]  }
 0x2cd   :  { %6814 = vmatpush1.bf16.msra.mxu1 %v20462_v25  ;;  %v20525_v25 = vld [vmem:[%s22074_s10 + $0x1724] ss:$8 sps:$4 sm:$0xff]  }
 0x2ce   :  { %6815 = vmatprep.subr.bf16.mxu1 %v20470_v57  ;;  %6869 = vmatmul.mubr.bf16.vlgmr.msra.gmra.mrb[40].mxu0 %v23113_v50  ;;  %v20486_v57 = vld [vmem:[%s22074_s10 + $0x14d0] ss:$8 sps:$4 sm:$0xff]  }
 0x2cf   :  { %6919 = vmatpush1.bf16.msra.mxu0 %v20511_v22  ;;  %6950 = vmatprep.mubr.bf16.mxu0 %v23120_v38  ;;  %v20508_v22 = vld [vmem:[%s22074_s10 + $0x1604] ss:$8 sps:$4 sm:$0xff]   ;;  %v20577_v50 = vld [vmem:[%s22074_s10 + $0x17b0] ss:$8 sps:$4 sm:$0xff]  }
 0x2d0   :  { %6920 = vmatprep.subr.bf16.mxu0 %v20519_v62  ;;  %v20535_v62 = vld [vmem:[%s22074_s10 + $0x1740] ss:$8 sps:$4 sm:$0xff]  }
 0x2d1   :  { %6816 = vmatpush1.bf16.msra.mxu1 %v20468_v29  ;;  %v20531_v29 = vld [vmem:[%s22074_s10 + $0x1734] ss:$8 sps:$4 sm:$0xff]  }
 0x2d2   :  { %6817 = vmatprep.subr.bf16.mxu1 %v20476_v11  ;;  %v20492_v11 = vld [vmem:[%s22074_s10 + $0x14e0] ss:$8 sps:$4 sm:$0xff]  }
 0x2d3   :  { %6921 = vmatpush1.bf16.msra.mxu0 %v20517_v27  ;;  %v23145_v27 = vcombine.low %v23044_v3, %v23044_v3 }
 0x2d4   :  { %6922 = vmatprep.subr.bf16.mxu0 %v20525_v25  ;;  %v20506_v25 = vld [vmem:[%s22074_s10 + $0x1600] ss:$8 sps:$4 sm:$0xff]  }
 0x2d5   :  { %6818 = vmatpush1.bf16.msra.mxu1 %v20474_v45  ;;  %v20537_v45 = vld [vmem:[%s22074_s10 + $0x1744] ss:$8 sps:$4 sm:$0xff]  }
 0x2d6   :  { %6819 = vmatprep.subr.bf16.mxu1 %v20482_v54  ;;  %v20498_v54 = vld [vmem:[%s22074_s10 + $0x14f0] ss:$8 sps:$4 sm:$0xff]  }
 0x2d7   :  { %6923 = vmatpush1.bf16.msra.mxu0 %v20523_v37  ;;  %v20541_v37 = vld [vmem:[%s22074_s10 + $0x1750] ss:$8 sps:$4 sm:$0xff]  }
 0x2d8   :  { %6924 = vmatprep.subr.bf16.mxu0 %v20531_v29  ;;  %v20549_v29 = vld [vmem:[%s22074_s10 + $0x1764] ss:$8 sps:$4 sm:$0xff]  }
 0x2d9   :  { %6820 = vmatpush1.bf16.msra.mxu1 %v20480_v23  ;;  %v23140_v23 = vld [vmem:[%s22121_s17 + $0xb0] sm:$0xff] }
 0x2da   :  { %6821 = vmatprep.subr.bf16.mxu1 %v20488_v14  ;;  %v20543_v14 = vld [vmem:[%s22074_s10 + $0x1754] ss:$8 sps:$4 sm:$0xff]  }
 0x2db   :  { %6925 = vmatpush1.bf16.msra.mxu0 %v20529_v15  ;;  %v20522_v15 = vld [vmem:[%s22074_s10 + $0x1624] ss:$8 sps:$4 sm:$0xff]  }
 0x2dc   :  { %6926 = vmatprep.subr.bf16.mxu0 %v20537_v45  ;;  %v20547_v45 = vld [vmem:[%s22074_s10 + $0x1760] ss:$8 sps:$4 sm:$0xff]  }
 0x2dd   :  { %6822 = vmatpush1.bf16.msra.mxu1 %v20486_v57  ;;  %v23150_v57 = vcombine.high %v23140_v23, %v23140_v23 }
 0x2de   :  { %6823 = vmatprep.subr.bf16.mxu1 %v20494_v34  ;;  %v20516_v34 = vld [vmem:[%s22074_s10 + $0x1614] ss:$8 sps:$4 sm:$0xff]   ;;  %v6624_v3 = vpop.f32.mrb[28].mxu0 }
 0x2df   :  { %6927 = vmatpush1.bf16.msra.mxu0 %v20535_v62 }
 0x2e0   :  { %6928 = vmatprep.subr.bf16.mxu0 %v20543_v14  ;;  %v20520_v14 = vld [vmem:[%s22074_s10 + $0x1620] ss:$8 sps:$4 sm:$0xff]  }
 0x2e1   :  { %6824 = vmatpush1.bf16.msra.mxu1 %v20492_v11  ;;  %v20514_v11 = vld [vmem:[%s22074_s10 + $0x1610] ss:$8 sps:$4 sm:$0xff]  }
 0x2e2   :  { %6825 = vmatprep.subr.bf16.mxu1 %v20500_v41  ;;  %v6626_v41 = vpop.f32.mrb[29].mxu0 }
 0x2e3   :  { %6929 = vmatpush1.bf16.msra.mxu0 %v20541_v37  ;;  %v20526_v37 = vld [vmem:[%s22074_s10 + $0x1630] ss:$8 sps:$4 sm:$0xff]  }
 0x2e4   :  { %6930 = vmatprep.subr.bf16.mxu0 %v20549_v29  ;;  %v20534_v29 = vld [vmem:[%s22074_s10 + $0x1644] ss:$8 sps:$4 sm:$0xff]  }
 0x2e5   :  { %6826 = vmatpush1.bf16.msra.mxu1 %v20498_v54  ;;  %v6628_v54 = vpop.f32.mrb[30].mxu0 }
 0x2e6   :  { %6877 = vmatprep.subr.bf16.mxu1 %v20508_v22  ;;  %v20555_v22 = vld [vmem:[%s22074_s10 + $0x1774] ss:$8 sps:$4 sm:$0xff]   ;;  %v6629_v62 = vpop.f32.mrb[31].mxu0  ;;  %v20559_v54 = vld [vmem:[%s22074_s10 + $0x1780] ss:$8 sps:$4 sm:$0xff]  }
 0x2e7   :  { %6931 = vmatpush1.bf16.msra.mxu0 %v20547_v45  ;;  %v20540_v45 = vld [vmem:[%s22074_s10 + $0x1654] ss:$8 sps:$4 sm:$0xff]   ;;  %v20573_v62 = vld [vmem:[%s22074_s10 + $0x17a4] ss:$8 sps:$4 sm:$0xff]  }
 0x2e8   :  { %6828 = vmatmul.mubr.bf16.vlgmr.msra.gmra.mrb[44].mxu1 %v23145_v27  ;;  %6932 = vmatprep.subr.bf16.mxu0 %v20555_v22  ;;  %v20565_v22 = vld [vmem:[%s22074_s10 + $0x1790] ss:$8 sps:$4 sm:$0xff]  }
 0x2e9   :  { %6878 = vmatpush1.bf16.msra.mxu1 %v20506_v25  ;;  %6909 = vmatprep.mubr.bf16.mxu1 %v23150_v57  ;;  %v20528_v25 = vld [vmem:[%s22074_s10 + $0x1634] ss:$8 sps:$4 sm:$0xff]  }
 0x2ea   :  { %6879 = vmatprep.subr.bf16.mxu1 %v20516_v34  ;;  %v20561_v34 = vld [vmem:[%s22074_s10 + $0x1784] ss:$8 sps:$4 sm:$0xff]  }
 0x2eb   :  { %6933 = vmatpush1.bf16.msra.mxu0 %v20553_v0  ;;  %v20571_v0 = vld [vmem:[%s22074_s10 + $0x17a0] ss:$8 sps:$4 sm:$0xff]  }
 0x2ec   :  { %6934 = vmatprep.subr.bf16.mxu0 %v20561_v34 }
 0x2ed   :  { %6880 = vmatpush1.bf16.msra.mxu1 %v20514_v11  ;;  %v20567_v11 = vld [vmem:[%s22074_s10 + $0x1794] ss:$8 sps:$4 sm:$0xff]  }
 0x2ee   :  { %6881 = vmatprep.subr.bf16.mxu1 %v20522_v15  ;;  %v20532_v15 = vld [vmem:[%s22074_s10 + $0x1640] ss:$8 sps:$4 sm:$0xff]  }
 0x2ef   :  { %6935 = vmatpush1.bf16.msra.mxu0 %v20559_v54 }
 0x2f0   :  { %6936 = vmatprep.subr.bf16.mxu0 %v20567_v11 }
 0x2f1   :  { %6882 = vmatpush1.bf16.msra.mxu1 %v20520_v14  ;;  %v20538_v14 = vld [vmem:[%s22074_s10 + $0x1650] ss:$8 sps:$4 sm:$0xff]  }
 0x2f2   :  { %6883 = vmatprep.subr.bf16.mxu1 %v20528_v25  ;;  %v20546_v25 = vld [vmem:[%s22074_s10 + $0x1664] ss:$8 sps:$4 sm:$0xff]  }
 0x2f3   :  { %6937 = vmatpush1.bf16.msra.mxu0 %v20565_v22 }
 0x2f4   :  { %6938 = vmatprep.subr.bf16.mxu0 %v20573_v62  ;;  %v20552_v62 = vld [vmem:[%s22074_s10 + $0x1674] ss:$8 sps:$4 sm:$0xff]  }
 0x2f5   :  { %6884 = vmatpush1.bf16.msra.mxu1 %v20526_v37  ;;  %v20579_v37 = vld [vmem:[%s22074_s10 + $0x17b4] ss:$8 sps:$4 sm:$0xff]  }
 0x2f6   :  { %6885 = vmatprep.subr.bf16.mxu1 %v20534_v29 }
 0x2f7   :  { %6939 = vmatpush1.bf16.msra.mxu0 %v20571_v0  ;;  %v20556_v0 = vld [vmem:[%s22074_s10 + $0x1680] ss:$8 sps:$4 sm:$0xff]  }
 0x2f8   :  { %6940 = vmatprep.subr.bf16.mxu0 %v20579_v37  ;;  %v20597_v37 = vld [vmem:[%s22074_s10 + $0x17e4] ss:$8 sps:$4 sm:$0xff]  }
 0x2f9   :  { %6886 = vmatpush1.bf16.msra.mxu1 %v20532_v15  ;;  %v20544_v15 = vld [vmem:[%s22074_s10 + $0x1660] ss:$8 sps:$4 sm:$0xff]  }
 0x2fa   :  { %6887 = vmatprep.subr.bf16.mxu1 %v20540_v45 }
 0x2fb   :  { %v6583_v34 = vpop.f32.mrb[32].mxu1  ;;  %6941 = vmatpush1.bf16.msra.mxu0 %v20577_v50  ;;  %v20562_v50 = vld [vmem:[%s22074_s10 + $0x1690] ss:$8 sps:$4 sm:$0xff]  }
 0x2fc   :  { %v6584_v29 = vadd.f32 %v6583_v34, %v23084_v59  ;;  %v6585_v54 = vpop.f32.mrb[33].mxu1  ;;  %v20589_v34 = vld [vmem:[%s22074_s10 + $0x17d0] ss:$8 sps:$4 sm:$0xff]  }
 0x2fd   :  { %v6586_v11 = vadd.f32 %v6585_v54, %v23088_v28  ;;  %v6587_v38 = vpop.f32.mrb[34].mxu1  ;;  %6888 = vmatpush1.bf16.msra.mxu1 %v20538_v14  ;;  %v20585_v28 = vld [vmem:[%s22074_s10 + $0x17c4] ss:$8 sps:$4 sm:$0xff]   ;;  %v20583_v14 = vld [vmem:[%s22074_s10 + $0x17c0] ss:$8 sps:$4 sm:$0xff]  }
 0x2fe   :  { %v23180_v45 = vadd.f32 %v6624_v3, %v6584_v29  ;;  %v6588_v22 = vpop.f32.mrb[35].mxu1  ;;  %6889 = vmatprep.subr.bf16.mxu1 %v20546_v25  ;;  %v20550_v38 = vld [vmem:[%s22074_s10 + $0x1670] ss:$8 sps:$4 sm:$0xff]   ;;  %v20558_v3 = vld [vmem:[%s22074_s10 + $0x1684] ss:$8 sps:$4 sm:$0xff]   ;;  %6942 = vmatprep.subr.bf16.mxu0 %v20585_v28 }
 0x2ff   :  { %v23184_v59 = vadd.f32 %v6626_v41, %v6586_v11  ;;  %v20591_v25 = vld [vmem:[%s22074_s10 + $0x17d4] ss:$8 sps:$4 sm:$0xff]   ;;  %6943 = vmatpush1.bf16.msra.mxu0 %v20583_v14  ;;  %v20570_v29 = vld [vmem:[%s22074_s10 + $0x16a4] ss:$8 sps:$4 sm:$0xff]   ;;  %v20595_v54 = vld [vmem:[%s22074_s10 + $0x17e0] ss:$8 sps:$4 sm:$0xff]   ;;  %v23209_v14 = vcombine.low %v23108_v20, %v23108_v20 }
 0x300   :  { %v20564_v41 = vld [vmem:[%s22074_s10 + $0x1694] ss:$8 sps:$4 sm:$0xff]   ;;  %6944 = vmatprep.subr.bf16.mxu0 %v20591_v25  ;;  %v20613_v28 = vld [vmem:[%s22074_s10 + $0x1904] ss:$8 sps:$4 sm:$0xff]  }
 0x301   :  { %6890 = vmatpush1.bf16.msra.mxu1 %v20544_v15  ;;  %v20603_v11 = vld [vmem:[%s22074_s10 + $0x17f4] ss:$8 sps:$4 sm:$0xff]   ;;  %v20568_v15 = vld [vmem:[%s22074_s10 + $0x16a0] ss:$8 sps:$4 sm:$0xff]   ;;  %24779 = vst [vmem:[#allocation10_spill] sm:$0xff] %v23209_v14 }
 0x302   :  { %6891 = vmatprep.subr.bf16.mxu1 %v20552_v62  ;;  %v20576_v22 = vld [vmem:[%s22074_s10 + $0x16b4] ss:$8 sps:$4 sm:$0xff]   ;;  %v20601_v62 = vld [vmem:[%s22074_s10 + $0x17f0] ss:$8 sps:$4 sm:$0xff]   ;;  %v20582_v25 = vld [vmem:[%s22074_s10 + $0x16c4] ss:$8 sps:$4 sm:$0xff]  }
 0x303   :  { %6945 = vmatpush1.bf16.msra.mxu0 %v20589_v34  ;;  %v20588_v20 = vld [vmem:[%s22074_s10 + $0x16d4] ss:$8 sps:$4 sm:$0xff]  }
 0x304   :  { %6946 = vmatprep.subr.bf16.mxu0 %v20597_v37  ;;  %v20580_v37 = vld [vmem:[%s22074_s10 + $0x16c0] ss:$8 sps:$4 sm:$0xff]  }
 0x305   :  { %6892 = vmatpush1.bf16.msra.mxu1 %v20550_v38  ;;  %v23204_v38 = vld [vmem:[%s22121_s17 + $0xc8] sm:$0xff] }
 0x306   :  { %6893 = vmatprep.subr.bf16.mxu1 %v20558_v3  ;;  %v20574_v3 = vld [vmem:[%s22074_s10 + $0x16b0] ss:$8 sps:$4 sm:$0xff]   ;;  %v23216_v34 = vcombine.high %v23204_v38, %v23204_v38 }
 0x307   :  { %6947 = vmatpush1.bf16.msra.mxu0 %v20595_v54  ;;  %v20586_v54 = vld [vmem:[%s22074_s10 + $0x16d0] ss:$8 sps:$4 sm:$0xff]  }
 0x308   :  { %6948 = vmatprep.subr.bf16.mxu0 %v20603_v11  ;;  %24780 = vst [vmem:[#allocation11_spill] sm:$0xff] %v23216_v34  ;;  %v20594_v11 = vld [vmem:[%s22074_s10 + $0x16e4] ss:$8 sps:$4 sm:$0xff]  }
 0x309   :  { %6894 = vmatpush1.bf16.msra.mxu1 %v20556_v0  ;;  %v20611_v0 = vld [vmem:[%s22074_s10 + $0x1900] ss:$8 sps:$4 sm:$0xff]  }
 0x30a   :  { %6895 = vmatprep.subr.bf16.mxu1 %v20564_v41  ;;  %v20619_v41 = vld [vmem:[%s22074_s10 + $0x1914] ss:$8 sps:$4 sm:$0xff]  }
 0x30b   :  { %6949 = vmatpush1.bf16.msra.mxu0 %v20601_v62  ;;  %v20592_v62 = vld [vmem:[%s22074_s10 + $0x16e0] ss:$8 sps:$4 sm:$0xff]  }
 0x30c   :  { %7000 = vmatprep.subr.bf16.mxu0 %v20613_v28  ;;  %v20600_v28 = vld [vmem:[%s22074_s10 + $0x16f4] ss:$8 sps:$4 sm:$0xff]  }
 0x30d   :  { %6896 = vmatpush1.bf16.msra.mxu1 %v20562_v50  ;;  %v20617_v50 = vld [vmem:[%s22074_s10 + $0x1910] ss:$8 sps:$4 sm:$0xff]  }
 0x30e   :  { %6897 = vmatprep.subr.bf16.mxu1 %v20570_v29  ;;  %6951 = vmatmul.mubr.bf16.vlgmr.msra.gmra.mrb[44].mxu0 %v23209_v14  ;;  %v20625_v29 = vld [vmem:[%s22074_s10 + $0x1924] ss:$8 sps:$4 sm:$0xff]   ;;  %v20653_v14 = vld [vmem:[%s22074_s10 + $0x1970] ss:$8 sps:$4 sm:$0xff]  }
 0x30f   :  { %7001 = vmatpush1.bf16.msra.mxu0 %v20611_v0  ;;  %7032 = vmatprep.mubr.bf16.mxu0 %v23216_v34  ;;  %v20598_v0 = vld [vmem:[%s22074_s10 + $0x16f0] ss:$8 sps:$4 sm:$0xff]   ;;  %v20628_v34 = vld [vmem:[%s22074_s10 + $0x1834] ss:$8 sps:$4 sm:$0xff]  }
 0x310   :  { %7002 = vmatprep.subr.bf16.mxu0 %v20619_v41  ;;  %v20608_v41 = vld [vmem:[%s22074_s10 + $0x1804] ss:$8 sps:$4 sm:$0xff]  }
 0x311   :  { %6898 = vmatpush1.bf16.msra.mxu1 %v20568_v15  ;;  %v20623_v15 = vld [vmem:[%s22074_s10 + $0x1920] ss:$8 sps:$4 sm:$0xff]  }
 0x312   :  { %6899 = vmatprep.subr.bf16.mxu1 %v20576_v22  ;;  %v20631_v22 = vld [vmem:[%s22074_s10 + $0x1934] ss:$8 sps:$4 sm:$0xff]  }
 0x313   :  { %7003 = vmatpush1.bf16.msra.mxu0 %v20617_v50  ;;  %v20643_v50 = vld [vmem:[%s22074_s10 + $0x1954] ss:$8 sps:$4 sm:$0xff]  }
 0x314   :  { %7004 = vmatprep.subr.bf16.mxu0 %v20625_v29  ;;  %v23241_v29 = vcombine.low %v23140_v23, %v23140_v23 }
 0x315   :  { %6900 = vmatpush1.bf16.msra.mxu1 %v20574_v3  ;;  %v20629_v3 = vld [vmem:[%s22074_s10 + $0x1930] ss:$8 sps:$4 sm:$0xff]  }
 0x316   :  { %6901 = vmatprep.subr.bf16.mxu1 %v20582_v25  ;;  %v20637_v25 = vld [vmem:[%s22074_s10 + $0x1944] ss:$8 sps:$4 sm:$0xff]  }
 0x317   :  { %7005 = vmatpush1.bf16.msra.mxu0 %v20623_v15  ;;  %v20616_v15 = vld [vmem:[%s22074_s10 + $0x1814] ss:$8 sps:$4 sm:$0xff]  }
 0x318   :  { %7006 = vmatprep.subr.bf16.mxu0 %v20631_v22  ;;  %v20641_v22 = vld [vmem:[%s22074_s10 + $0x1950] ss:$8 sps:$4 sm:$0xff]  }
 0x319   :  { %6902 = vmatpush1.bf16.msra.mxu1 %v20580_v37  ;;  %v20635_v37 = vld [vmem:[%s22074_s10 + $0x1940] ss:$8 sps:$4 sm:$0xff]  }
 0x31a   :  { %6903 = vmatprep.subr.bf16.mxu1 %v20588_v20  ;;  %v23236_v20 = vld [vmem:[%s22121_s17 + $0xc0] sm:$0xff] }
 0x31b   :  { %7007 = vmatpush1.bf16.msra.mxu0 %v20629_v3 }
 0x31c   :  { %7008 = vmatprep.subr.bf16.mxu0 %v20637_v25  ;;  %v20622_v25 = vld [vmem:[%s22074_s10 + $0x1824] ss:$8 sps:$4 sm:$0xff]  }
 0x31d   :  { %6904 = vmatpush1.bf16.msra.mxu1 %v20586_v54  ;;  %v20606_v54 = vld [vmem:[%s22074_s10 + $0x1800] ss:$8 sps:$4 sm:$0xff]  }
 0x31e   :  { %6905 = vmatprep.subr.bf16.mxu1 %v20594_v11  ;;  %v23246_v11 = vcombine.high %v23236_v20, %v23236_v20 }
 0x31f   :  { %7009 = vmatpush1.bf16.msra.mxu0 %v20635_v37  ;;  %v20655_v37 = vld [vmem:[%s22074_s10 + $0x1974] ss:$8 sps:$4 sm:$0xff]  }
 0x320   :  { %24781 = vst [vmem:[#allocation12_spill] sm:$0xff] %v23246_v11  ;;  %7010 = vmatprep.subr.bf16.mxu0 %v20643_v50 }
 0x321   :  { %6906 = vmatpush1.bf16.msra.mxu1 %v20592_v62  ;;  %v20649_v62 = vld [vmem:[%s22074_s10 + $0x1964] ss:$8 sps:$4 sm:$0xff]   ;;  %v6706_v23 = vpop.f32.mrb[32].mxu0 }
 0x322   :  { %6907 = vmatprep.subr.bf16.mxu1 %v20600_v28  ;;  %v20614_v28 = vld [vmem:[%s22074_s10 + $0x1810] ss:$8 sps:$4 sm:$0xff]   ;;  %v6708_v3 = vpop.f32.mrb[33].mxu0 }
 0x323   :  { %7011 = vmatpush1.bf16.msra.mxu0 %v20641_v22  ;;  %v20626_v22 = vld [vmem:[%s22074_s10 + $0x1830] ss:$8 sps:$4 sm:$0xff]  }
 0x324   :  { %7012 = vmatprep.subr.bf16.mxu0 %v20649_v62  ;;  %v20634_v62 = vld [vmem:[%s22074_s10 + $0x1844] ss:$8 sps:$4 sm:$0xff]  }
 0x325   :  { %6908 = vmatpush1.bf16.msra.mxu1 %v20598_v0  ;;  %v20647_v0 = vld [vmem:[%s22074_s10 + $0x1960] ss:$8 sps:$4 sm:$0xff]  }
 0x326   :  { %6959 = vmatprep.subr.bf16.mxu1 %v20608_v41  ;;  %v6710_v41 = vpop.f32.mrb[34].mxu0 }
 0x327   :  { %v6711_v50 = vpop.f32.mrb[35].mxu0  ;;  %7013 = vmatpush1.bf16.msra.mxu0 %v20647_v0  ;;  %v20659_v41 = vld [vmem:[%s22074_s10 + $0x1980] ss:$8 sps:$4 sm:$0xff]   ;;  %v20640_v0 = vld [vmem:[%s22074_s10 + $0x1854] ss:$8 sps:$4 sm:$0xff]  }
 0x328   :  { %6910 = vmatmul.mubr.bf16.vlgmr.msra.gmra.mrb[48].mxu1 %v23241_v29  ;;  %7014 = vmatprep.subr.bf16.mxu0 %v20655_v37  ;;  %v20665_v37 = vld [vmem:[%s22074_s10 + $0x1990] ss:$8 sps:$4 sm:$0xff]   ;;  %v20673_v50 = vld [vmem:[%s22074_s10 + $0x19a4] ss:$8 sps:$4 sm:$0xff]  }
 0x329   :  { %6960 = vmatpush1.bf16.msra.mxu1 %v20606_v54  ;;  %6991 = vmatprep.mubr.bf16.mxu1 %v23246_v11  ;;  %v20620_v54 = vld [vmem:[%s22074_s10 + $0x1820] ss:$8 sps:$4 sm:$0xff]  }
 0x32a   :  { %6961 = vmatprep.subr.bf16.mxu1 %v20616_v15  ;;  %v20661_v15 = vld [vmem:[%s22074_s10 + $0x1984] ss:$8 sps:$4 sm:$0xff]  }
 0x32b   :  { %7015 = vmatpush1.bf16.msra.mxu0 %v20653_v14  ;;  %v20671_v14 = vld [vmem:[%s22074_s10 + $0x19a0] ss:$8 sps:$4 sm:$0xff]  }
 0x32c   :  { %7016 = vmatprep.subr.bf16.mxu0 %v20661_v15 }
 0x32d   :  { %6962 = vmatpush1.bf16.msra.mxu1 %v20614_v28  ;;  %v20667_v28 = vld [vmem:[%s22074_s10 + $0x1994] ss:$8 sps:$4 sm:$0xff]  }
 0x32e   :  { %6963 = vmatprep.subr.bf16.mxu1 %v20622_v25  ;;  %v20632_v25 = vld [vmem:[%s22074_s10 + $0x1840] ss:$8 sps:$4 sm:$0xff]  }
 0x32f   :  { %7017 = vmatpush1.bf16.msra.mxu0 %v20659_v41 }
 0x330   :  { %7018 = vmatprep.subr.bf16.mxu0 %v20667_v28 }
 0x331   :  { %6964 = vmatpush1.bf16.msra.mxu1 %v20620_v54  ;;  %v20638_v54 = vld [vmem:[%s22074_s10 + $0x1850] ss:$8 sps:$4 sm:$0xff]  }
 0x332   :  { %6965 = vmatprep.subr.bf16.mxu1 %v20628_v34  ;;  %v20646_v34 = vld [vmem:[%s22074_s10 + $0x1864] ss:$8 sps:$4 sm:$0xff]  }
 0x333   :  { %7019 = vmatpush1.bf16.msra.mxu0 %v20665_v37 }
 0x334   :  { %7020 = vmatprep.subr.bf16.mxu0 %v20673_v50  ;;  %v20652_v50 = vld [vmem:[%s22074_s10 + $0x1874] ss:$8 sps:$4 sm:$0xff]  }
 0x335   :  { %6966 = vmatpush1.bf16.msra.mxu1 %v20626_v22  ;;  %v20679_v22 = vld [vmem:[%s22074_s10 + $0x19b4] ss:$8 sps:$4 sm:$0xff]  }
 0x336   :  { %6967 = vmatprep.subr.bf16.mxu1 %v20634_v62 }
 0x337   :  { %7021 = vmatpush1.bf16.msra.mxu0 %v20671_v14  ;;  %v20656_v14 = vld [vmem:[%s22074_s10 + $0x1880] ss:$8 sps:$4 sm:$0xff]  }
 0x338   :  { %7022 = vmatprep.subr.bf16.mxu0 %v20679_v22  ;;  %v20697_v22 = vld [vmem:[%s22074_s10 + $0x19e4] ss:$8 sps:$4 sm:$0xff]  }
 0x339   :  { %6968 = vmatpush1.bf16.msra.mxu1 %v20632_v25  ;;  %v20644_v25 = vld [vmem:[%s22074_s10 + $0x1860] ss:$8 sps:$4 sm:$0xff]  }
 0x33a   :  { %6969 = vmatprep.subr.bf16.mxu1 %v20640_v0 }
 0x33b   :  { %v6665_v15 = vpop.f32.mrb[36].mxu1  ;;  %7023 = vmatpush1.bf16.msra.mxu0 %v20677_v2  ;;  %v20662_v2 = vld [vmem:[%s22074_s10 + $0x1890] ss:$8 sps:$4 sm:$0xff]  }
 0x33c   :  { %v6666_v62 = vadd.f32 %v6665_v15, %v23180_v45  ;;  %v6667_v41 = vpop.f32.mrb[37].mxu1  ;;  %v20689_v15 = vld [vmem:[%s22074_s10 + $0x19d0] ss:$8 sps:$4 sm:$0xff]  }
 0x33d   :  { %v6668_v28 = vadd.f32 %v6667_v41, %v23184_v59  ;;  %v6669_v40 = vpop.f32.mrb[38].mxu1  ;;  %6970 = vmatpush1.bf16.msra.mxu1 %v20638_v54  ;;  %v20685_v59 = vld [vmem:[%s22074_s10 + $0x19c4] ss:$8 sps:$4 sm:$0xff]   ;;  %v20683_v54 = vld [vmem:[%s22074_s10 + $0x19c0] ss:$8 sps:$4 sm:$0xff]  }
 0x33e   :  { %v23276_v0 = vadd.f32 %v6706_v23, %v6666_v62  ;;  %v6670_v37 = vpop.f32.mrb[39].mxu1  ;;  %6971 = vmatprep.subr.bf16.mxu1 %v20646_v34  ;;  %v20650_v40 = vld [vmem:[%s22074_s10 + $0x1870] ss:$8 sps:$4 sm:$0xff]   ;;  %v20658_v23 = vld [vmem:[%s22074_s10 + $0x1884] ss:$8 sps:$4 sm:$0xff]   ;;  %7024 = vmatprep.subr.bf16.mxu0 %v20685_v59 }
 0x33f   :  { %v23280_v45 = vadd.f32 %v6708_v3, %v6668_v28  ;;  %v20691_v34 = vld [vmem:[%s22074_s10 + $0x19d4] ss:$8 sps:$4 sm:$0xff]   ;;  %7025 = vmatpush1.bf16.msra.mxu0 %v20683_v54  ;;  %v20670_v62 = vld [vmem:[%s22074_s10 + $0x18a4] ss:$8 sps:$4 sm:$0xff]   ;;  %v20695_v41 = vld [vmem:[%s22074_s10 + $0x19e0] ss:$8 sps:$4 sm:$0xff]   ;;  %v23305_v54 = vcombine.low %v23204_v38, %v23204_v38 }
 0x340   :  { %v20664_v3 = vld [vmem:[%s22074_s10 + $0x1894] ss:$8 sps:$4 sm:$0xff]   ;;  %7026 = vmatprep.subr.bf16.mxu0 %v20691_v34  ;;  %v20713_v59 = vld [vmem:[%s22074_s10 + $0x1b04] ss:$8 sps:$4 sm:$0xff]  }
 0x341   :  { %6972 = vmatpush1.bf16.msra.mxu1 %v20644_v25  ;;  %v20703_v28 = vld [vmem:[%s22074_s10 + $0x19f4] ss:$8 sps:$4 sm:$0xff]   ;;  %v20668_v25 = vld [vmem:[%s22074_s10 + $0x18a0] ss:$8 sps:$4 sm:$0xff]   ;;  %24782 = vst [vmem:[#allocation13_spill] sm:$0xff] %v23305_v54 }
 0x342   :  { %6973 = vmatprep.subr.bf16.mxu1 %v20652_v50  ;;  %v20676_v37 = vld [vmem:[%s22074_s10 + $0x18b4] ss:$8 sps:$4 sm:$0xff]   ;;  %v20701_v50 = vld [vmem:[%s22074_s10 + $0x19f0] ss:$8 sps:$4 sm:$0xff]   ;;  %v20682_v34 = vld [vmem:[%s22074_s10 + $0x18c4] ss:$8 sps:$4 sm:$0xff]  }
 0x343   :  { %7027 = vmatpush1.bf16.msra.mxu0 %v20689_v15  ;;  %v20688_v38 = vld [vmem:[%s22074_s10 + $0x18d4] ss:$8 sps:$4 sm:$0xff]  }
 0x344   :  { %7028 = vmatprep.subr.bf16.mxu0 %v20697_v22  ;;  %v20680_v22 = vld [vmem:[%s22074_s10 + $0x18c0] ss:$8 sps:$4 sm:$0xff]  }
 0x345   :  { %6974 = vmatpush1.bf16.msra.mxu1 %v20650_v40  ;;  %v23300_v40 = vld [vmem:[%s22121_s17 + $0xd8] sm:$0xff] }
 0x346   :  { %6975 = vmatprep.subr.bf16.mxu1 %v20658_v23  ;;  %v20674_v23 = vld [vmem:[%s22074_s10 + $0x18b0] ss:$8 sps:$4 sm:$0xff]   ;;  %v23312_v15 = vcombine.high %v23300_v40, %v23300_v40 }
 0x347   :  { %7029 = vmatpush1.bf16.msra.mxu0 %v20695_v41  ;;  %v20686_v41 = vld [vmem:[%s22074_s10 + $0x18d0] ss:$8 sps:$4 sm:$0xff]  }
 0x348   :  { %7030 = vmatprep.subr.bf16.mxu0 %v20703_v28  ;;  %24783 = vst [vmem:[#allocation14_spill] sm:$0xff] %v23312_v15  ;;  %v20694_v28 = vld [vmem:[%s22074_s10 + $0x18e4] ss:$8 sps:$4 sm:$0xff]  }
 0x349   :  { %6976 = vmatpush1.bf16.msra.mxu1 %v20656_v14  ;;  %v20711_v14 = vld [vmem:[%s22074_s10 + $0x1b00] ss:$8 sps:$4 sm:$0xff]  }
 0x34a   :  { %6977 = vmatprep.subr.bf16.mxu1 %v20664_v3  ;;  %v20719_v3 = vld [vmem:[%s22074_s10 + $0x1b14] ss:$8 sps:$4 sm:$0xff]  }
 0x34b   :  { %7031 = vmatpush1.bf16.msra.mxu0 %v20701_v50  ;;  %v20692_v50 = vld [vmem:[%s22074_s10 + $0x18e0] ss:$8 sps:$4 sm:$0xff]  }
 0x34c   :  { %7082 = vmatprep.subr.bf16.mxu0 %v20713_v59  ;;  %v20700_v59 = vld [vmem:[%s22074_s10 + $0x18f4] ss:$8 sps:$4 sm:$0xff]  }
 0x34d   :  { %6978 = vmatpush1.bf16.msra.mxu1 %v20662_v2  ;;  %v20717_v2 = vld [vmem:[%s22074_s10 + $0x1b10] ss:$8 sps:$4 sm:$0xff]  }
 0x34e   :  { %6979 = vmatprep.subr.bf16.mxu1 %v20670_v62  ;;  %7033 = vmatmul.mubr.bf16.vlgmr.msra.gmra.mrb[48].mxu0 %v23305_v54  ;;  %v20725_v62 = vld [vmem:[%s22074_s10 + $0x1b24] ss:$8 sps:$4 sm:$0xff]   ;;  %v20753_v54 = vld [vmem:[%s22074_s10 + $0x1b70] ss:$8 sps:$4 sm:$0xff]  }
 0x34f   :  { %7083 = vmatpush1.bf16.msra.mxu0 %v20711_v14  ;;  %7114 = vmatprep.mubr.bf16.mxu0 %v23312_v15  ;;  %v20698_v14 = vld [vmem:[%s22074_s10 + $0x18f0] ss:$8 sps:$4 sm:$0xff]   ;;  %v20728_v15 = vld [vmem:[%s22074_s10 + $0x1a34] ss:$8 sps:$4 sm:$0xff]  }
 0x350   :  { %7084 = vmatprep.subr.bf16.mxu0 %v20719_v3  ;;  %v20708_v3 = vld [vmem:[%s22074_s10 + $0x1a04] ss:$8 sps:$4 sm:$0xff]  }
 0x351   :  { %6980 = vmatpush1.bf16.msra.mxu1 %v20668_v25  ;;  %v20723_v25 = vld [vmem:[%s22074_s10 + $0x1b20] ss:$8 sps:$4 sm:$0xff]  }
 0x352   :  { %6981 = vmatprep.subr.bf16.mxu1 %v20676_v37  ;;  %v20731_v37 = vld [vmem:[%s22074_s10 + $0x1b34] ss:$8 sps:$4 sm:$0xff]  }
 0x353   :  { %7085 = vmatpush1.bf16.msra.mxu0 %v20717_v2  ;;  %v20743_v2 = vld [vmem:[%s22074_s10 + $0x1b54] ss:$8 sps:$4 sm:$0xff]  }
 0x354   :  { %7086 = vmatprep.subr.bf16.mxu0 %v20725_v62  ;;  %v23337_v62 = vcombine.low %v23236_v20, %v23236_v20 }
 0x355   :  { %6982 = vmatpush1.bf16.msra.mxu1 %v20674_v23  ;;  %v20729_v23 = vld [vmem:[%s22074_s10 + $0x1b30] ss:$8 sps:$4 sm:$0xff]  }
 0x356   :  { %6983 = vmatprep.subr.bf16.mxu1 %v20682_v34  ;;  %v20737_v34 = vld [vmem:[%s22074_s10 + $0x1b44] ss:$8 sps:$4 sm:$0xff]   ;;  %24784 = vst [vmem:[#allocation15_spill] sm:$0xff] %v23337_v62 }
 0x357   :  { %7087 = vmatpush1.bf16.msra.mxu0 %v20723_v25  ;;  %v20716_v25 = vld [vmem:[%s22074_s10 + $0x1a14] ss:$8 sps:$4 sm:$0xff]  }
 0x358   :  { %7088 = vmatprep.subr.bf16.mxu0 %v20731_v37  ;;  %v20741_v37 = vld [vmem:[%s22074_s10 + $0x1b50] ss:$8 sps:$4 sm:$0xff]  }
 0x359   :  { %6984 = vmatpush1.bf16.msra.mxu1 %v20680_v22  ;;  %v20735_v22 = vld [vmem:[%s22074_s10 + $0x1b40] ss:$8 sps:$4 sm:$0xff]  }
 0x35a   :  { %6985 = vmatprep.subr.bf16.mxu1 %v20688_v38  ;;  %v23332_v38 = vld [vmem:[%s22121_s17 + $0xd0] sm:$0xff] }
 0x35b   :  { %7089 = vmatpush1.bf16.msra.mxu0 %v20729_v23 }
 0x35c   :  { %7090 = vmatprep.subr.bf16.mxu0 %v20737_v34  ;;  %v20722_v34 = vld [vmem:[%s22074_s10 + $0x1a24] ss:$8 sps:$4 sm:$0xff]  }
 0x35d   :  { %6986 = vmatpush1.bf16.msra.mxu1 %v20686_v41  ;;  %v20706_v41 = vld [vmem:[%s22074_s10 + $0x1a00] ss:$8 sps:$4 sm:$0xff]  }
 0x35e   :  { %6987 = vmatprep.subr.bf16.mxu1 %v20694_v28  ;;  %v23342_v28 = vcombine.high %v23332_v38, %v23332_v38 }
 0x35f   :  { %7091 = vmatpush1.bf16.msra.mxu0 %v20735_v22  ;;  %v20755_v22 = vld [vmem:[%s22074_s10 + $0x1b74] ss:$8 sps:$4 sm:$0xff]  }
 0x360   :  { %24785 = vst [vmem:[#allocation16_spill] sm:$0xff] %v23342_v28  ;;  %7092 = vmatprep.subr.bf16.mxu0 %v20743_v2 }
 0x361   :  { %6988 = vmatpush1.bf16.msra.mxu1 %v20692_v50  ;;  %v20749_v50 = vld [vmem:[%s22074_s10 + $0x1b64] ss:$8 sps:$4 sm:$0xff]   ;;  %v6788_v20 = vpop.f32.mrb[36].mxu0 }
 0x362   :  { %6989 = vmatprep.subr.bf16.mxu1 %v20700_v59  ;;  %v20714_v59 = vld [vmem:[%s22074_s10 + $0x1a10] ss:$8 sps:$4 sm:$0xff]   ;;  %v6790_v23 = vpop.f32.mrb[37].mxu0 }
 0x363   :  { %7093 = vmatpush1.bf16.msra.mxu0 %v20741_v37  ;;  %v20726_v37 = vld [vmem:[%s22074_s10 + $0x1a30] ss:$8 sps:$4 sm:$0xff]  }
 0x364   :  { %7094 = vmatprep.subr.bf16.mxu0 %v20749_v50  ;;  %v20734_v50 = vld [vmem:[%s22074_s10 + $0x1a44] ss:$8 sps:$4 sm:$0xff]  }
 0x365   :  { %6990 = vmatpush1.bf16.msra.mxu1 %v20698_v14  ;;  %v20747_v14 = vld [vmem:[%s22074_s10 + $0x1b60] ss:$8 sps:$4 sm:$0xff]  }
 0x366   :  { %7041 = vmatprep.subr.bf16.mxu1 %v20708_v3  ;;  %v6792_v3 = vpop.f32.mrb[38].mxu0 }
 0x367   :  { %v6793_v2 = vpop.f32.mrb[39].mxu0  ;;  %7095 = vmatpush1.bf16.msra.mxu0 %v20747_v14  ;;  %v20759_v3 = vld [vmem:[%s22074_s10 + $0x1b80] ss:$8 sps:$4 sm:$0xff]   ;;  %v20740_v14 = vld [vmem:[%s22074_s10 + $0x1a54] ss:$8 sps:$4 sm:$0xff]  }
 0x368   :  { %6992 = vmatmul.mubr.bf16.vlgmr.msra.gmra.mrb[52].mxu1 %v23337_v62  ;;  %7096 = vmatprep.subr.bf16.mxu0 %v20755_v22  ;;  %v20765_v22 = vld [vmem:[%s22074_s10 + $0x1b90] ss:$8 sps:$4 sm:$0xff]   ;;  %v20773_v2 = vld [vmem:[%s22074_s10 + $0x1ba4] ss:$8 sps:$4 sm:$0xff]  }
 0x369   :  { %7042 = vmatpush1.bf16.msra.mxu1 %v20706_v41  ;;  %7073 = vmatprep.mubr.bf16.mxu1 %v23342_v28  ;;  %v20720_v41 = vld [vmem:[%s22074_s10 + $0x1a20] ss:$8 sps:$4 sm:$0xff]  }
 0x36a   :  { %7043 = vmatprep.subr.bf16.mxu1 %v20716_v25  ;;  %v20761_v25 = vld [vmem:[%s22074_s10 + $0x1b84] ss:$8 sps:$4 sm:$0xff]  }
 0x36b   :  { %7097 = vmatpush1.bf16.msra.mxu0 %v20753_v54  ;;  %v20771_v54 = vld [vmem:[%s22074_s10 + $0x1ba0] ss:$8 sps:$4 sm:$0xff]  }
 0x36c   :  { %7098 = vmatprep.subr.bf16.mxu0 %v20761_v25 }
 0x36d   :  { %7044 = vmatpush1.bf16.msra.mxu1 %v20714_v59  ;;  %v20767_v59 = vld [vmem:[%s22074_s10 + $0x1b94] ss:$8 sps:$4 sm:$0xff]  }
 0x36e   :  { %7045 = vmatprep.subr.bf16.mxu1 %v20722_v34  ;;  %v20732_v34 = vld [vmem:[%s22074_s10 + $0x1a40] ss:$8 sps:$4 sm:$0xff]  }
 0x36f   :  { %7099 = vmatpush1.bf16.msra.mxu0 %v20759_v3 }
 0x370   :  { %7100 = vmatprep.subr.bf16.mxu0 %v20767_v59 }
 0x371   :  { %7046 = vmatpush1.bf16.msra.mxu1 %v20720_v41  ;;  %v20738_v41 = vld [vmem:[%s22074_s10 + $0x1a50] ss:$8 sps:$4 sm:$0xff]  }
 0x372   :  { %7047 = vmatprep.subr.bf16.mxu1 %v20728_v15  ;;  %v20746_v15 = vld [vmem:[%s22074_s10 + $0x1a64] ss:$8 sps:$4 sm:$0xff]  }
 0x373   :  { %7101 = vmatpush1.bf16.msra.mxu0 %v20765_v22 }
 0x374   :  { %7102 = vmatprep.subr.bf16.mxu0 %v20773_v2  ;;  %v20752_v2 = vld [vmem:[%s22074_s10 + $0x1a74] ss:$8 sps:$4 sm:$0xff]  }
 0x375   :  { %7048 = vmatpush1.bf16.msra.mxu1 %v20726_v37  ;;  %v20779_v37 = vld [vmem:[%s22074_s10 + $0x1bb4] ss:$8 sps:$4 sm:$0xff]  }
 0x376   :  { %7049 = vmatprep.subr.bf16.mxu1 %v20734_v50 }
 0x377   :  { %7103 = vmatpush1.bf16.msra.mxu0 %v20771_v54  ;;  %v20756_v54 = vld [vmem:[%s22074_s10 + $0x1a80] ss:$8 sps:$4 sm:$0xff]  }
 0x378   :  { %7104 = vmatprep.subr.bf16.mxu0 %v20779_v37  ;;  %v20797_v37 = vld [vmem:[%s22074_s10 + $0x1be4] ss:$8 sps:$4 sm:$0xff]  }
 0x379   :  { %7050 = vmatpush1.bf16.msra.mxu1 %v20732_v34  ;;  %v20744_v34 = vld [vmem:[%s22074_s10 + $0x1a60] ss:$8 sps:$4 sm:$0xff]  }
 0x37a   :  { %7051 = vmatprep.subr.bf16.mxu1 %v20740_v14 }
 0x37b   :  { %v6747_v25 = vpop.f32.mrb[40].mxu1  ;;  %7105 = vmatpush1.bf16.msra.mxu0 %v20777_v5  ;;  %v20770_v5 = vld [vmem:[%s22074_s10 + $0x1aa4] ss:$8 sps:$4 sm:$0xff]  }
 0x37c   :  { %v6748_v50 = vadd.f32 %v6747_v25, %v23276_v0  ;;  %v6749_v3 = vpop.f32.mrb[41].mxu1  ;;  %v20789_v25 = vld [vmem:[%s22074_s10 + $0x1bd0] ss:$8 sps:$4 sm:$0xff]  }
 0x37d   :  { %v6750_v59 = vadd.f32 %v6749_v3, %v23280_v45  ;;  %v6751_v19 = vpop.f32.mrb[42].mxu1  ;;  %7052 = vmatpush1.bf16.msra.mxu1 %v20738_v41  ;;  %v20785_v45 = vld [vmem:[%s22074_s10 + $0x1bc4] ss:$8 sps:$4 sm:$0xff]   ;;  %v20783_v41 = vld [vmem:[%s22074_s10 + $0x1bc0] ss:$8 sps:$4 sm:$0xff]  }
 0x37e   :  { %v23372_v14 = vadd.f32 %v6788_v20, %v6748_v50  ;;  %v6752_v22 = vpop.f32.mrb[43].mxu1  ;;  %7053 = vmatprep.subr.bf16.mxu1 %v20746_v15  ;;  %v20750_v19 = vld [vmem:[%s22074_s10 + $0x1a70] ss:$8 sps:$4 sm:$0xff]   ;;  %v20758_v20 = vld [vmem:[%s22074_s10 + $0x1a84] ss:$8 sps:$4 sm:$0xff]   ;;  %7106 = vmatprep.subr.bf16.mxu0 %v20785_v45 }
 0x37f   :  { %v23376_v0 = vadd.f32 %v6790_v23, %v6750_v59  ;;  %v20791_v15 = vld [vmem:[%s22074_s10 + $0x1bd4] ss:$8 sps:$4 sm:$0xff]   ;;  %7107 = vmatpush1.bf16.msra.mxu0 %v20783_v41  ;;  %v20762_v50 = vld [vmem:[%s22074_s10 + $0x1a90] ss:$8 sps:$4 sm:$0xff]   ;;  %v20795_v3 = vld [vmem:[%s22074_s10 + $0x1be0] ss:$8 sps:$4 sm:$0xff]  }
 0x380   :  { %v20764_v23 = vld [vmem:[%s22074_s10 + $0x1a94] ss:$8 sps:$4 sm:$0xff]   ;;  %7108 = vmatprep.subr.bf16.mxu0 %v20791_v15  ;;  %v20774_v45 = vld [vmem:[%s22074_s10 + $0x1ab0] ss:$8 sps:$4 sm:$0xff]   ;;  %v20780_v41 = vld [vmem:[%s22074_s10 + $0x1ac0] ss:$8 sps:$4 sm:$0xff]  }
 0x381   :  { %7054 = vmatpush1.bf16.msra.mxu1 %v20744_v34  ;;  %v20803_v59 = vld [vmem:[%s22074_s10 + $0x1bf4] ss:$8 sps:$4 sm:$0xff]   ;;  %v20768_v34 = vld [vmem:[%s22074_s10 + $0x1aa0] ss:$8 sps:$4 sm:$0xff]  }
 0x382   :  { %7055 = vmatprep.subr.bf16.mxu1 %v20752_v2  ;;  %v20776_v22 = vld [vmem:[%s22074_s10 + $0x1ab4] ss:$8 sps:$4 sm:$0xff]   ;;  %v20801_v2 = vld [vmem:[%s22074_s10 + $0x1bf0] ss:$8 sps:$4 sm:$0xff]  }
 0x383   :  { %7109 = vmatpush1.bf16.msra.mxu0 %v20789_v25  ;;  %v20788_v15 = vld [vmem:[%s22074_s10 + $0x1ad4] ss:$8 sps:$4 sm:$0xff]   ;;  %v20792_v25 = vld [vmem:[%s22074_s10 + $0x1ae0] ss:$8 sps:$4 sm:$0xff]  }
 0x384   :  { %7110 = vmatprep.subr.bf16.mxu0 %v20797_v37  ;;  %v20800_v37 = vld [vmem:[%s22074_s10 + $0x1af4] ss:$8 sps:$4 sm:$0xff]  }
 0x385   :  { %7056 = vmatpush1.bf16.msra.mxu1 %v20750_v19  ;;  %v23397_v19 = vcombine.low %v23300_v40, %v23300_v40  ;;  %v20794_v40 = vld [vmem:[%s22074_s10 + $0x1ae4] ss:$8 sps:$4 sm:$0xff]  }
 0x386   :  { %7057 = vmatprep.subr.bf16.mxu1 %v20758_v20  ;;  %v20782_v20 = vld [vmem:[%s22074_s10 + $0x1ac4] ss:$8 sps:$4 sm:$0xff]  }
 0x387   :  { %7111 = vmatpush1.bf16.msra.mxu0 %v20795_v3  ;;  %24786 = vst [vmem:[#allocation17_spill] sm:$0xff] %v23397_v19  ;;  %v23412_v3 = vcombine.low %v23332_v38, %v23332_v38  ;;  %v20816_v38 = vld [vmem:[%s22074_s10 + $0x1c24] ss:$8 sps:$4 sm:$0xff]  }
 0x388   :  { %7112 = vmatprep.subr.bf16.mxu0 %v20803_v59  ;;  %v20806_v59 = vld [vmem:[%s22074_s10 + $0x1c00] ss:$8 sps:$4 sm:$0xff]  }
 0x389   :  { %7058 = vmatpush1.bf16.msra.mxu1 %v20756_v54  ;;  %v24787_v54 = vmov 0   ;;  %24788 = vst [vmem:[#allocation18_spill] sm:$0xff] %v23412_v3 }
 0x38a   :  { %7059 = vmatprep.subr.bf16.mxu1 %v20764_v23  ;;  %v20786_v23 = vld [vmem:[%s22074_s10 + $0x1ad0] ss:$8 sps:$4 sm:$0xff]  }
 0x38b   :  { %7113 = vmatpush1.bf16.msra.mxu0 %v20801_v2  ;;  %v20811_v2 = vld [vmem:[%s22074_s10 + $0x1c10] ss:$8 sps:$4 sm:$0xff]  }
 0x38d   :  { %7060 = vmatpush1.bf16.msra.mxu1 %v20762_v50  ;;  %v20798_v50 = vld [vmem:[%s22074_s10 + $0x1af0] ss:$8 sps:$4 sm:$0xff]  }
 0x38e   :  { %7061 = vmatprep.subr.bf16.mxu1 %v20770_v5  ;;  %7115 = vmatmul.mubr.bf16.vlgmr.msra.gmra.mrb[52].mxu0 %v23397_v19  ;;  %v20808_v5 = vld [vmem:[%s22074_s10 + $0x1c04] ss:$8 sps:$4 sm:$0xff]  }
 0x38f   :  { %7325 = vmatprep.mubr.bf16.mxu0 %v24787_v54 }
 0x391   :  { %7062 = vmatpush1.bf16.msra.mxu1 %v20768_v34  ;;  %v20813_v34 = vld [vmem:[%s22074_s10 + $0x1c14] ss:$8 sps:$4 sm:$0xff]  }
 0x392   :  { %7063 = vmatprep.subr.bf16.mxu1 %v20776_v22 }
 0x395   :  { %7064 = vmatpush1.bf16.msra.mxu1 %v20774_v45 }
 0x396   :  { %7065 = vmatprep.subr.bf16.mxu1 %v20782_v20 }
 0x399   :  { %7066 = vmatpush1.bf16.msra.mxu1 %v20780_v41 }
 0x39a   :  { %7067 = vmatprep.subr.bf16.mxu1 %v20788_v15  ;;  %v20814_v15 = vld [vmem:[%s22074_s10 + $0x1c20] ss:$8 sps:$4 sm:$0xff]  }
 0x39d   :  { %7068 = vmatpush1.bf16.msra.mxu1 %v20786_v23  ;;  %v20819_v23 = vld [vmem:[%s22074_s10 + $0x1c34] ss:$8 sps:$4 sm:$0xff]  }
 0x39e   :  { %7069 = vmatprep.subr.bf16.mxu1 %v20794_v40  ;;  %v20817_v40 = vld [vmem:[%s22074_s10 + $0x1c30] ss:$8 sps:$4 sm:$0xff]  }
 0x3a1   :  { %7070 = vmatpush1.bf16.msra.mxu1 %v20792_v25  ;;  %v6870_v22 = vpop.f32.mrb[40].mxu0  ;;  %v20822_v25 = vld [vmem:[%s22074_s10 + $0x1c44] ss:$8 sps:$4 sm:$0xff]  }
 0x3a2   :  { %7071 = vmatprep.subr.bf16.mxu1 %v20800_v37  ;;  %v6872_v45 = vpop.f32.mrb[41].mxu0  ;;  %v20820_v37 = vld [vmem:[%s22074_s10 + $0x1c40] ss:$8 sps:$4 sm:$0xff]  }
 0x3a3   :  { %v6874_v20 = vpop.f32.mrb[42].mxu0 }
 0x3a4   :  { %v6875_v41 = vpop.f32.mrb[43].mxu0 }
 0x3a5   :  { %7072 = vmatpush1.bf16.msra.mxu1 %v20798_v50  ;;  %v20825_v50 = vld [vmem:[%s22074_s10 + $0x1c54] ss:$8 sps:$4 sm:$0xff]  }
 0x3a6   :  { %7123 = vmatprep.subr.bf16.mxu1 %v20808_v5  ;;  %v20823_v5 = vld [vmem:[%s22074_s10 + $0x1c50] ss:$8 sps:$4 sm:$0xff]  }
 0x3a8   :  { %7074 = vmatmul.mubr.bf16.vlgmr.msra.gmra.mrb[56].mxu1 %v23412_v3 }
 0x3a9   :  { %7124 = vmatpush1.bf16.msra.mxu1 %v20806_v59  ;;  %7155 = vmatprep.mubr.bf16.mxu1 %v24787_v54  ;;  %v20828_v59 = vld [vmem:[%s22074_s10 + $0x1c64] ss:$8 sps:$4 sm:$0xff]  }
 0x3aa   :  { %7125 = vmatprep.subr.bf16.mxu1 %v20813_v34 }
 0x3ad   :  { %7126 = vmatpush1.bf16.msra.mxu1 %v20811_v2 }
 0x3ae   :  { %7127 = vmatprep.subr.bf16.mxu1 %v20816_v38 }
 0x3b1   :  { %7128 = vmatpush1.bf16.msra.mxu1 %v20814_v15  ;;  %v20826_v15 = vld [vmem:[%s22074_s10 + $0x1c60] ss:$8 sps:$4 sm:$0xff]  }
 0x3b2   :  { %7129 = vmatprep.subr.bf16.mxu1 %v20819_v23 }
 0x3b5   :  { %7130 = vmatpush1.bf16.msra.mxu1 %v20817_v40 }
 0x3b6   :  { %7131 = vmatprep.subr.bf16.mxu1 %v20822_v25  ;;  %v20831_v25 = vld [vmem:[%s22074_s10 + $0x1c74] ss:$8 sps:$4 sm:$0xff]  }
 0x3b9   :  { %7132 = vmatpush1.bf16.msra.mxu1 %v20820_v37  ;;  %v20829_v37 = vld [vmem:[%s22074_s10 + $0x1c70] ss:$8 sps:$4 sm:$0xff]  }
 0x3ba   :  { %7133 = vmatprep.subr.bf16.mxu1 %v20825_v50  ;;  %v20832_v50 = vld [vmem:[%s22121_s17 + $0xe0] ss:$0 sps:$4 sm:$0xff]  }
 0x3bb   :  { %v6829_v34 = vpop.f32.mrb[44].mxu1 }
 0x3bc   :  { %v6830_v2 = vadd.f32 %v6829_v34, %v23372_v14  ;;  %v6831_v38 = vpop.f32.mrb[45].mxu1 }
 0x3bd   :  { %v6832_v20 = vadd.f32 %v6831_v38, %v23376_v0  ;;  %v6833_v41 = vpop.f32.mrb[46].mxu1  ;;  %7134 = vmatpush1.bf16.msra.mxu1 %v20823_v5 }
 0x3be   :  { %v6871_v23 = vadd.f32 %v6870_v22, %v6830_v2  ;;  %v6834_v40 = vpop.f32.mrb[47].mxu1  ;;  %7135 = vmatprep.subr.bf16.mxu1 %v20828_v59  ;;  %v20835_v59 = vld [vmem:[%s23437_s21 + $0x4] ss:$8 sps:$4 sm:$0xff]   ;;  %v20838_v2 = vld [vmem:[%s23437_s21 + $0x14] ss:$8 sps:$4 sm:$0xff]  }
 0x3bf   :  { %v6873_v19 = vadd.f32 %v6872_v45, %v6832_v20  ;;  %7293 = vmatprep.subr.bf16.mxu0 %v20835_v59  ;;  %v20836_v20 = vld [vmem:[%s23437_s21 + $0x10] ss:$8 sps:$4 sm:$0xff]   ;;  %v20844_v40 = vld [vmem:[%s23437_s21 + $0x34] ss:$8 sps:$4 sm:$0xff]  }
 0x3c0   :  { %v20857_v59 = vld [vmem:[%s23458_s25] ss:$16 sps:$4 sm:$0xff]  }
 0x3c1   :  { %7136 = vmatpush1.bf16.msra.mxu1 %v20826_v15  ;;  %v20841_v15 = vld [vmem:[%s23437_s21 + $0x24] ss:$8 sps:$4 sm:$0xff]  }
 0x3c2   :  { %7137 = vmatprep.subr.bf16.mxu1 %v20831_v25  ;;  %v20845_v25 = vld [vmem:[%s23437_s21 + $0x40] ss:$8 sps:$4 sm:$0xff]  }
 0x3c5   :  { %7138 = vmatpush1.bf16.msra.mxu1 %v20829_v37  ;;  %v20850_v37 = vld [vmem:[%s23437_s21 + $0x54] ss:$8 sps:$4 sm:$0xff]  }
 0x3c8   :  { %7156 = vmatmul.mubr.bf16.vlgmr.msra.gmra.mrb[60].mxu1 %v20832_v50  ;;  %v20848_v50 = vld [vmem:[%s23437_s21 + $0x50] ss:$8 sps:$4 sm:$0xff]  }
 0x3e1   :  { %v6952_v3 = vpop.f32.mrb[44].mxu0 }
 0x3e2   :  { %v6954_v28 = vpop.f32.mrb[45].mxu0 }
 0x3e3   :  { %v6956_v14 = vpop.f32.mrb[46].mxu0 }
 0x3e4   :  { %v6957_v34 = vpop.f32.mrb[47].mxu0  ;;  %v20853_v14 = vld [vmem:[%s23437_s21 + $0x64] ss:$8 sps:$4 sm:$0xff]  }
 0x3e5   :  { %v20851_v34 = vld [vmem:[%s23437_s21 + $0x60] ss:$8 sps:$4 sm:$0xff]  }
 0x3fb   :  { %v6911_v62 = vpop.f32.mrb[48].mxu1 }
 0x3fc   :  { %v6912_v0 = vadd.f32 %v6911_v62, %v6871_v23  ;;  %v6913_v38 = vpop.f32.mrb[49].mxu1  ;;  %v20839_v23 = vld [vmem:[%s23437_s21 + $0x20] ss:$8 sps:$4 sm:$0xff]  }
 0x3fd   :  { %v6914_v5 = vadd.f32 %v6913_v38, %v6873_v19  ;;  %v6915_v41 = vpop.f32.mrb[50].mxu1  ;;  %v20833_v19 = vld [vmem:[%s23437_s21] ss:$8 sps:$4 sm:$0xff]   ;;  %v20854_v38 = vld [vmem:[%s23437_s21 + $0x70] ss:$8 sps:$4 sm:$0xff]  }
 0x3fe   :  { %v6953_v22 = vadd.f32 %v6952_v3, %v6912_v0  ;;  %v6916_v62 = vpop.f32.mrb[51].mxu1  ;;  %7294 = vmatpush1.bf16.msra.mxu0 %v20833_v19  ;;  %v20842_v3 = vld [vmem:[%s23437_s21 + $0x30] ss:$8 sps:$4 sm:$0xff]   ;;  %v20856_v0 = vld [vmem:[%s23437_s21 + $0x74] ss:$8 sps:$4 sm:$0xff]  }
 0x3ff   :  { %v6955_v45 = vadd.f32 %v6954_v28, %v6914_v5  ;;  %7295 = vmatprep.subr.bf16.mxu0 %v20838_v2  ;;  %v20847_v28 = vld [vmem:[%s23437_s21 + $0x44] ss:$8 sps:$4 sm:$0xff]  }
 0x400   :  { %v20859_v2 = vld [vmem:[%s23458_s25 + $0x4] ss:$16 sps:$4 sm:$0xff]  }
 0x401   :  { %7748 = vmatprep.subr.bf16.mxu1 %v20859_v2 }
 0x402   :  { %7296 = vmatpush1.bf16.msra.mxu0 %v20836_v20  ;;  %v20862_v20 = vld [vmem:[%s23458_s25 + $0xc] ss:$16 sps:$4 sm:$0xff]   ;;  %7749 = vmatpush1.bf16.msra.mxu1 %v20857_v59 }
 0x403   :  { %7297 = vmatprep.subr.bf16.mxu0 %v20841_v15  ;;  %v20865_v15 = vld [vmem:[%s23458_s25 + $0x24] ss:$16 sps:$4 sm:$0xff]  }
 0x404   :  { %7750 = vmatprep.subr.bf16.mxu1 %v20865_v15  ;;  %v20887_v15 = vld [vmem:[%s23458_s25 + $0xa0] ss:$16 sps:$4 sm:$0xff]  }
 0x406   :  { %7298 = vmatpush1.bf16.msra.mxu0 %v20839_v23  ;;  %v20863_v23 = vld [vmem:[%s23458_s25 + $0x20] ss:$16 sps:$4 sm:$0xff]  }
 0x407   :  { %7299 = vmatprep.subr.bf16.mxu0 %v20844_v40  ;;  %v20871_v40 = vld [vmem:[%s23458_s25 + $0x44] ss:$16 sps:$4 sm:$0xff]   ;;  %7751 = vmatpush1.bf16.msra.mxu1 %v20863_v23  ;;  %v20893_v23 = vld [vmem:[%s23458_s25 + $0xc0] ss:$16 sps:$4 sm:$0xff]  }
 0x408   :  { %7752 = vmatprep.subr.bf16.mxu1 %v20871_v40  ;;  %v20901_v40 = vld [vmem:[%s23458_s25 + $0xe4] ss:$16 sps:$4 sm:$0xff]  }
 0x40a   :  { %7300 = vmatpush1.bf16.msra.mxu0 %v20842_v3  ;;  %v20869_v3 = vld [vmem:[%s23458_s25 + $0x40] ss:$16 sps:$4 sm:$0xff]  }
 0x40b   :  { %7301 = vmatprep.subr.bf16.mxu0 %v20847_v28  ;;  %v20877_v28 = vld [vmem:[%s23458_s25 + $0x64] ss:$16 sps:$4 sm:$0xff]   ;;  %7753 = vmatpush1.bf16.msra.mxu1 %v20869_v3 }
 0x40c   :  { %7754 = vmatprep.subr.bf16.mxu1 %v20877_v28  ;;  %v20907_v3 = vld [vmem:[%s23458_s25 + $0x104] ss:$16 sps:$4 sm:$0xff]   ;;  %v20911_v28 = vld [vmem:[%s23458_s25 + $0x120] ss:$16 sps:$4 sm:$0xff]  }
 0x40e   :  { %7302 = vmatpush1.bf16.msra.mxu0 %v20845_v25  ;;  %v20875_v25 = vld [vmem:[%s23458_s25 + $0x60] ss:$16 sps:$4 sm:$0xff]  }
 0x40f   :  { %7303 = vmatprep.subr.bf16.mxu0 %v20850_v37  ;;  %v20883_v37 = vld [vmem:[%s23458_s25 + $0x84] ss:$16 sps:$4 sm:$0xff]   ;;  %7755 = vmatpush1.bf16.msra.mxu1 %v20875_v25 }
 0x410   :  { %7756 = vmatprep.subr.bf16.mxu1 %v20883_v37  ;;  %v20919_v25 = vld [vmem:[%s23458_s25 + $0x144] ss:$16 sps:$4 sm:$0xff]   ;;  %v20917_v37 = vld [vmem:[%s23458_s25 + $0x140] ss:$16 sps:$4 sm:$0xff]  }
 0x412   :  { %7304 = vmatpush1.bf16.msra.mxu0 %v20848_v50 }
 0x413   :  { %7305 = vmatprep.subr.bf16.mxu0 %v20853_v14 }
 0x416   :  { %7306 = vmatpush1.bf16.msra.mxu0 %v20851_v34 }
 0x417   :  { %7307 = vmatprep.subr.bf16.mxu0 %v20856_v0  ;;  %v20881_v0 = vld [vmem:[%s23458_s25 + $0x80] ss:$16 sps:$4 sm:$0xff]  }
 0x418   :  { %7757 = vmatpush1.bf16.msra.mxu1 %v20881_v0  ;;  %v20929_v0 = vld [vmem:[%s23458_s25 + $0x180] ss:$16 sps:$4 sm:$0xff]  }
 0x41a   :  { %7308 = vmatpush1.bf16.msra.mxu0 %v20854_v38 }
 0x41b   :  { %7789 = vmatprep.subr.bf16.mxu0 %v20862_v20 }
 0x421   :  { %v7034_v5 = vpop.f32.mrb[48].mxu0 }
 0x422   :  { %v7036_v41 = vpop.f32.mrb[49].mxu0 }
 0x423   :  { %v7038_v62 = vpop.f32.mrb[50].mxu0 }
 0x424   :  { %v7039_v19 = vpop.f32.mrb[51].mxu0 }
 0x425   :  { %v20889_v19 = vld [vmem:[%s23458_s25 + $0xa4] ss:$16 sps:$4 sm:$0xff]  }
 0x426   :  { %7758 = vmatprep.subr.bf16.mxu1 %v20889_v19 }
 0x427   :  { %7759 = vmatpush1.bf16.msra.mxu1 %v20887_v15 }
 0x43b   :  { %v6993_v50 = vpop.f32.mrb[52].mxu1 }
 0x43c   :  { %v6994_v14 = vadd.f32 %v6993_v50, %v6953_v22  ;;  %v6995_v34 = vpop.f32.mrb[53].mxu1  ;;  %v20895_v22 = vld [vmem:[%s23458_s25 + $0xc4] ss:$16 sps:$4 sm:$0xff]  }
 0x43d   :  { %v6996_v38 = vadd.f32 %v6995_v34, %v6955_v45  ;;  %v6997_v62 = vpop.f32.mrb[54].mxu1  ;;  %7760 = vmatprep.subr.bf16.mxu1 %v20895_v22  ;;  %v20899_v45 = vld [vmem:[%s23458_s25 + $0xe0] ss:$16 sps:$4 sm:$0xff]   ;;  %v20925_v50 = vld [vmem:[%s23458_s25 + $0x164] ss:$16 sps:$4 sm:$0xff]  }
 0x43e   :  { %v7035_v59 = vadd.f32 %v7034_v5, %v6994_v14  ;;  %v6998_v2 = vpop.f32.mrb[55].mxu1  ;;  %7761 = vmatpush1.bf16.msra.mxu1 %v20893_v23  ;;  %v20905_v5 = vld [vmem:[%s23458_s25 + $0x100] ss:$16 sps:$4 sm:$0xff]   ;;  %v20931_v34 = vld [vmem:[%s23458_s25 + $0x184] ss:$16 sps:$4 sm:$0xff]  }
 0x43f   :  { %v7037_v20 = vadd.f32 %v7036_v41, %v6996_v38  ;;  %7762 = vmatprep.subr.bf16.mxu1 %v20901_v40  ;;  %v20913_v41 = vld [vmem:[%s23458_s25 + $0x124] ss:$16 sps:$4 sm:$0xff]   ;;  %v20923_v14 = vld [vmem:[%s23458_s25 + $0x160] ss:$16 sps:$4 sm:$0xff]  }
 0x440   :  { %v20937_v38 = vld [vmem:[%s23458_s25 + $0x1a4] ss:$16 sps:$4 sm:$0xff]   ;;  %v20935_v62 = vld [vmem:[%s23458_s25 + $0x1a0] ss:$16 sps:$4 sm:$0xff]  }
 0x442   :  { %7763 = vmatpush1.bf16.msra.mxu1 %v20899_v45 }
 0x443   :  { %7764 = vmatprep.subr.bf16.mxu1 %v20907_v3 }
 0x446   :  { %7765 = vmatpush1.bf16.msra.mxu1 %v20905_v5 }
 0x447   :  { %7766 = vmatprep.subr.bf16.mxu1 %v20913_v41 }
 0x44a   :  { %7767 = vmatpush1.bf16.msra.mxu1 %v20911_v28 }
 0x44b   :  { %7768 = vmatprep.subr.bf16.mxu1 %v20919_v25 }
 0x44e   :  { %7769 = vmatpush1.bf16.msra.mxu1 %v20917_v37  ;;  %v7166_v37 = vlaneseq }
 0x44f   :  { %7770 = vmatprep.subr.bf16.mxu1 %v20925_v50 }
 0x450   :  { %v23492_v50 = vshrl.u32 %v7166_v37, 7  ;;  %v20868_v37 = vld [vmem:[%s23458_s25 + $0x2c] ss:$16 sps:$4 sm:$0xff]  }
 0x452   :  { %7771 = vmatpush1.bf16.msra.mxu1 %v20923_v14  ;;  %v23495_v14 = vsub.s32 0, %v23492_v50 }
 0x453   :  { %7772 = vmatprep.subr.bf16.mxu1 %v20931_v34  ;;  %v7164_v34 = vld [vmem:[%s16371_s29] sm:$0x3]  ;;  %s22034_s29 = smov 17  }
 0x454   :  { %s23887_s2 = sld [smem:[%s24751_s0 + %s22034_s29]]   ;;  %s22049_s29 = smov 27  }
 0x456   :  { %7773 = vmatpush1.bf16.msra.mxu1 %v20929_v0 }
 0x457   :  { %7774 = vmatprep.subr.bf16.mxu1 %v20937_v38 }
 0x45a   :  { %7775 = vmatpush1.bf16.msra.mxu1 %v20935_v62 }
 0x461   :  { %v7116_v19 = vpop.f32.mrb[52].mxu0 }
 0x462   :  { %v7118_v2 = vpop.f32.mrb[53].mxu0 }
 0x463   :  { %v7120_v15 = vpop.f32.mrb[54].mxu0 }
 0x464   :  { %v7121_v22 = vpop.f32.mrb[55].mxu0 }
 0x47b   :  { %v7075_v23 = vpop.f32.mrb[56].mxu1 }
 0x47c   :  { %v7076_v40 = vadd.f32 %v7075_v23, %v7035_v59  ;;  %v7077_v45 = vpop.f32.mrb[57].mxu1  ;;  %v23498_v59 = vsub.s32 1, %v23492_v50 }
 0x47d   :  { %v7078_v3 = vadd.f32 %v7077_v45, %v7037_v20  ;;  %v7079_v5 = vpop.f32.mrb[58].mxu1  ;;  %v7169_v20 = vrot.slane %v7164_v34, %v23495_v14 }
 0x47e   :  { %v7117_v41 = vadd.f32 %v7116_v19, %v7076_v40  ;;  %v7080_v28 = vpop.f32.mrb[59].mxu1  ;;  %v7173_v38 = vrot.slane %v7164_v34, %v23498_v59  ;;  %v20860_v5 = vld [vmem:[%s23458_s25 + $0x8] ss:$16 sps:$4 sm:$0xff]  }
 0x47f   :  { %v7119_v25 = vadd.f32 %v7118_v2, %v7078_v3  ;;  %v20872_v34 = vld [vmem:[%s23458_s25 + $0x48] ss:$16 sps:$4 sm:$0xff]  }
 0x49b   :  { %v7157_v0 = vpop.f32.mrb[60].mxu1 }
 0x49c   :  { %v7158_v62 = vadd.f32 %v7157_v0, %v7117_v41  ;;  %v7159_v19 = vpop.f32.mrb[61].mxu1  ;;  %v20866_v41 = vld [vmem:[%s23458_s25 + $0x28] ss:$16 sps:$4 sm:$0xff]  }
 0x49d   :  { %v7160_v2 = vadd.f32 %v7159_v19, %v7119_v25  ;;  %v7161_v15 = vpop.f32.mrb[62].mxu1  ;;  %v20874_v25 = vld [vmem:[%s23458_s25 + $0x4c] ss:$16 sps:$4 sm:$0xff]   ;;  %v20878_v0 = vld [vmem:[%s23458_s25 + $0x68] ss:$16 sps:$4 sm:$0xff]  }
 0x49e   :  { %v7176_v22 = vadd.f32 %v7169_v20, %v7158_v62  ;;  %v7162_v23 = vpop.f32.mrb[63].mxu1  ;;  %v20880_v20 = vld [vmem:[%s23458_s25 + $0x6c] ss:$16 sps:$4 sm:$0xff]   ;;  %v20884_v62 = vld [vmem:[%s23458_s25 + $0x88] ss:$16 sps:$4 sm:$0xff]  }
 0x49f   :  { %v23502_v40 = vadd.f32 %v7173_v38, %v7160_v2  ;;  %v20886_v38 = vld [vmem:[%s23458_s25 + $0x8c] ss:$16 sps:$4 sm:$0xff]   ;;  %v20890_v2 = vld [vmem:[%s23458_s25 + $0xa8] ss:$16 sps:$4 sm:$0xff]  }
 0x4a0   :  { %vm7178_vm0 = vcmp.ge.f32.partialorder %v7176_v22, 0.0  ;;  %v7180_v45 = vmul.f32 0.01, %v7176_v22  ;;  %v20892_v19 = vld [vmem:[%s23458_s25 + $0xac] ss:$16 sps:$4 sm:$0xff]  }
 0x4a1   :  { %v20898_v15 = vld [vmem:[%s23458_s25 + $0xcc] ss:$16 sps:$4 sm:$0xff]   ;;  %vm7179_vm9 = vcmp.ge.f32.partialorder %v23502_v40, 0.0 }
 0x4a2   :  { %v7182_v3 = vsel %vm7178_vm0, %v7176_v22, %v7180_v45  ;;  %v20896_v22 = vld [vmem:[%s23458_s25 + $0xc8] ss:$16 sps:$4 sm:$0xff]   ;;  %v20904_v23 = vld [vmem:[%s23458_s25 + $0xec] ss:$16 sps:$4 sm:$0xff]  }
 0x4a3   :  { %v7184_v28 = vpack.c.bf16 %v7182_v3, %v7182_v3  ;;  %v20902_v45 = vld [vmem:[%s23458_s25 + $0xe8] ss:$16 sps:$4 sm:$0xff]   ;;  %v20910_v3 = vld [vmem:[%s23458_s25 + $0x10c] ss:$16 sps:$4 sm:$0xff]  }
 0x4a5   :  { %7326 = vmatmul.mubr.bf16.vlgmr.msra.gmra.mrb[56].mxu0 %v7184_v28  ;;  %v20916_v28 = vld [vmem:[%s23458_s25 + $0x12c] ss:$16 sps:$4 sm:$0xff]  }
 0x4a6   :  { %7790 = vmatpush1.bf16.msra.mxu0 %v20860_v5  ;;  %v20908_v5 = vld [vmem:[%s23458_s25 + $0x108] ss:$16 sps:$4 sm:$0xff]  }
 0x4a7   :  { %7791 = vmatprep.subr.bf16.mxu0 %v20868_v37  ;;  %v20914_v37 = vld [vmem:[%s23458_s25 + $0x128] ss:$16 sps:$4 sm:$0xff]  }
 0x4aa   :  { %7792 = vmatpush1.bf16.msra.mxu0 %v20866_v41  ;;  %v20922_v41 = vld [vmem:[%s23458_s25 + $0x14c] ss:$16 sps:$4 sm:$0xff]  }
 0x4ab   :  { %7793 = vmatprep.subr.bf16.mxu0 %v20874_v25  ;;  %v20920_v25 = vld [vmem:[%s23458_s25 + $0x148] ss:$16 sps:$4 sm:$0xff]  }
 0x4ae   :  { %7794 = vmatpush1.bf16.msra.mxu0 %v20872_v34  ;;  %v20928_v34 = vld [vmem:[%s23458_s25 + $0x16c] ss:$16 sps:$4 sm:$0xff]  }
 0x4af   :  { %7795 = vmatprep.subr.bf16.mxu0 %v20880_v20  ;;  %v20926_v20 = vld [vmem:[%s23458_s25 + $0x168] ss:$16 sps:$4 sm:$0xff]  }
 0x4b2   :  { %7796 = vmatpush1.bf16.msra.mxu0 %v20878_v0  ;;  %v20934_v0 = vld [vmem:[%s23458_s25 + $0x18c] ss:$16 sps:$4 sm:$0xff]  }
 0x4b3   :  { %7797 = vmatprep.subr.bf16.mxu0 %v20886_v38  ;;  %v20932_v38 = vld [vmem:[%s23458_s25 + $0x188] ss:$16 sps:$4 sm:$0xff]  }
 0x4b6   :  { %7798 = vmatpush1.bf16.msra.mxu0 %v20884_v62  ;;  %v20940_v62 = vld [vmem:[%s23458_s25 + $0x1ac] ss:$16 sps:$4 sm:$0xff]  }
 0x4b7   :  { %7799 = vmatprep.subr.bf16.mxu0 %v20892_v19  ;;  %v20938_v19 = vld [vmem:[%s23458_s25 + $0x1a8] ss:$16 sps:$4 sm:$0xff]  }
 0x4ba   :  { %7800 = vmatpush1.bf16.msra.mxu0 %v20890_v2  ;;  %v20943_v2 = vld [vmem:[%s23458_s25 + $0x1c4] ss:$16 sps:$4 sm:$0xff]  }
 0x4bb   :  { %7801 = vmatprep.subr.bf16.mxu0 %v20898_v15  ;;  %v20946_v15 = vld [vmem:[%s23458_s25 + $0x1cc] ss:$16 sps:$4 sm:$0xff]   ;;  %7776 = vmatprep.subr.bf16.mxu1 %v20943_v2 }
 0x4be   :  { %7802 = vmatpush1.bf16.msra.mxu0 %v20896_v22  ;;  %v20941_v22 = vld [vmem:[%s23458_s25 + $0x1c0] ss:$16 sps:$4 sm:$0xff]  }
 0x4bf   :  { %7803 = vmatprep.subr.bf16.mxu0 %v20904_v23  ;;  %v20944_v23 = vld [vmem:[%s23458_s25 + $0x1c8] ss:$16 sps:$4 sm:$0xff]   ;;  %7777 = vmatpush1.bf16.msra.mxu1 %v20941_v22 }
 0x4c2   :  { %7804 = vmatpush1.bf16.msra.mxu0 %v20902_v45  ;;  %v20949_v45 = vld [vmem:[%s23458_s25 + $0x1e4] ss:$16 sps:$4 sm:$0xff]  }
 0x4c3   :  { %7805 = vmatprep.subr.bf16.mxu0 %v20910_v3  ;;  %v20952_v3 = vld [vmem:[%s23458_s25 + $0x1ec] ss:$16 sps:$4 sm:$0xff]   ;;  %7778 = vmatprep.subr.bf16.mxu1 %v20949_v45 }
 0x4c6   :  { %7806 = vmatpush1.bf16.msra.mxu0 %v20908_v5  ;;  %v20947_v5 = vld [vmem:[%s23458_s25 + $0x1e0] ss:$16 sps:$4 sm:$0xff]  }
 0x4c7   :  { %7807 = vmatprep.subr.bf16.mxu0 %v20916_v28  ;;  %v20950_v28 = vld [vmem:[%s23458_s25 + $0x1e8] ss:$16 sps:$4 sm:$0xff]   ;;  %7779 = vmatpush1.bf16.msra.mxu1 %v20947_v5 }
 0x4c8   :  { %v20953_v5 = vld [vmem:[%s23542_s3] ss:$8 sps:$4 sm:$0xff]  }
 0x4ca   :  { %7808 = vmatpush1.bf16.msra.mxu0 %v20914_v37  ;;  %v20955_v37 = vld [vmem:[%s23542_s3 + $0x4] ss:$8 sps:$4 sm:$0xff]  }
 0x4cb   :  { %7809 = vmatprep.subr.bf16.mxu0 %v20922_v41  ;;  %8242 = vmatprep.subr.bf16.mxu1 %v20955_v37  ;;  %v7201_v41 = vld [vmem:[%s23548_s7] sm:$0x3]  ;;  %v20958_v37 = vld [vmem:[%s23542_s3 + $0x14] ss:$8 sps:$4 sm:$0xff]  }
 0x4ce   :  { %7810 = vmatpush1.bf16.msra.mxu0 %v20920_v25  ;;  %v7206_v25 = vrot.slane %v7201_v41, %v23495_v14 }
 0x4cf   :  { %7811 = vmatprep.subr.bf16.mxu0 %v20928_v34  ;;  %v7210_v34 = vrot.slane %v7201_v41, %v23498_v59  ;;  %v20956_v41 = vld [vmem:[%s23542_s3 + $0x10] ss:$8 sps:$4 sm:$0xff]  }
 0x4d2   :  { %7812 = vmatpush1.bf16.msra.mxu0 %v20926_v20 }
 0x4d3   :  { %7813 = vmatprep.subr.bf16.mxu0 %v20934_v0 }
 0x4d6   :  { %7814 = vmatpush1.bf16.msra.mxu0 %v20932_v38 }
 0x4d7   :  { %7815 = vmatprep.subr.bf16.mxu0 %v20940_v62 }
 0x4da   :  { %7816 = vmatpush1.bf16.msra.mxu0 %v20938_v19 }
 0x4db   :  { %7817 = vmatprep.subr.bf16.mxu0 %v20946_v15 }
 0x4de   :  { %7818 = vmatpush1.bf16.msra.mxu0 %v20944_v23 }
 0x4df   :  { %7819 = vmatprep.subr.bf16.mxu0 %v20952_v3 }
 0x4e2   :  { %7820 = vmatpush1.bf16.msra.mxu0 %v20950_v28 }
 0x578   :  { %v7327_v20 = vpop.f32.mrb[56].mxu0 }
 0x579   :  { %v7328_v0 = vadd.f32 %v7327_v20, %v7206_v25  ;;  %v7329_v38 = vpop.f32.mrb[57].mxu0  ;;  %v20961_v25 = vld [vmem:[%s23542_s3 + $0x24] ss:$8 sps:$4 sm:$0xff]   ;;  %v20964_v20 = vld [vmem:[%s23542_s3 + $0x34] ss:$8 sps:$4 sm:$0xff]  }
 0x57a   :  { %v7330_v62 = vadd.f32 %v7329_v38, %v7210_v34  ;;  %v7331_v19 = vpop.f32.mrb[58].mxu0  ;;  %v20959_v34 = vld [vmem:[%s23542_s3 + $0x20] ss:$8 sps:$4 sm:$0xff]   ;;  %v20967_v38 = vld [vmem:[%s23542_s3 + $0x44] ss:$8 sps:$4 sm:$0xff]  }
 0x57b   :  { %vm7334_vm1 = vcmp.ge.f32.partialorder %v7328_v0, 0.0  ;;  %v7336_v2 = vmul.f32 0.01, %v7328_v0  ;;  %v7332_v15 = vpop.f32.mrb[59].mxu0  ;;  %v20970_v19 = vld [vmem:[%s23542_s3 + $0x54] ss:$8 sps:$4 sm:$0xff]  }
 0x57c   :  { %vm7335_vm2 = vcmp.ge.f32.partialorder %v7330_v62, 0.0  ;;  %v7337_v22 = vmul.f32 0.01, %v7330_v62  ;;  %v20973_v15 = vld [vmem:[%s23542_s3 + $0x64] ss:$8 sps:$4 sm:$0xff]  }
 0x57d   :  { %v7338_v23 = vsel %vm7334_vm1, %v7328_v0, %v7336_v2  ;;  %v20962_v0 = vld [vmem:[%s23542_s3 + $0x30] ss:$8 sps:$4 sm:$0xff]  }
 0x57e   :  { %v7339_v45 = vsel %vm7335_vm2, %v7330_v62, %v7337_v22  ;;  %v7340_v28 = vpack.c.bf16 %v7338_v23, %v7338_v23  ;;  %v20965_v62 = vld [vmem:[%s23542_s3 + $0x40] ss:$8 sps:$4 sm:$0xff]   ;;  %v20968_v2 = vld [vmem:[%s23542_s3 + $0x50] ss:$8 sps:$4 sm:$0xff]   ;;  %v20976_v23 = vld [vmem:[%s23542_s3 + $0x74] ss:$8 sps:$4 sm:$0xff]  }
 0x57f   :  { %v7341_v3 = vpack.c.bf16 %v7339_v45, %v7339_v45  ;;  %v20971_v22 = vld [vmem:[%s23542_s3 + $0x60] ss:$8 sps:$4 sm:$0xff]   ;;  %v20974_v45 = vld [vmem:[%s23542_s3 + $0x70] ss:$8 sps:$4 sm:$0xff]   ;;  %vm22033_vm2 = vmmov 0  }
 0x581   :  { %7780 = vmatprep.mubr.bf16.mxu1 %v7341_v3  ;;  %7821 = vmatprep.mubr.bf16.mxu0 %v7341_v3  ;;  %v20979_v3 = vld [vmem:[%s23542_s3 + $0x84] ss:$8 sps:$4 sm:$0xff]  }
 0x582   :  { %7781 = vmatmul.mubr.bf16.vlgmr.msra.gmra.mrb[64].mxu1 %v7340_v28  ;;  %7822 = vmatmul.mubr.bf16.vlgmr.msra.gmra.mrb[60].mxu0 %v7340_v28  ;;  %v20982_v28 = vld [vmem:[%s23542_s3 + $0x94] ss:$8 sps:$4 sm:$0xff]  }
 0x583   :  { %8243 = vmatpush1.bf16.msra.mxu1 %v20953_v5  ;;  %v20977_v5 = vld [vmem:[%s23542_s3 + $0x80] ss:$8 sps:$4 sm:$0xff]  }
 0x584   :  { %8244 = vmatprep.subr.bf16.mxu1 %v20958_v37  ;;  %v20980_v37 = vld [vmem:[%s23542_s3 + $0x90] ss:$8 sps:$4 sm:$0xff]  }
 0x587   :  { %8245 = vmatpush1.bf16.msra.mxu1 %v20956_v41  ;;  %v20985_v41 = vld [vmem:[%s23542_s3 + $0xa4] ss:$8 sps:$4 sm:$0xff]  }
 0x588   :  { %8246 = vmatprep.subr.bf16.mxu1 %v20961_v25  ;;  %v20983_v25 = vld [vmem:[%s23542_s3 + $0xa0] ss:$8 sps:$4 sm:$0xff]  }
 0x58b   :  { %8247 = vmatpush1.bf16.msra.mxu1 %v20959_v34  ;;  %v20988_v34 = vld [vmem:[%s23542_s3 + $0xb4] ss:$8 sps:$4 sm:$0xff]  }
 0x58c   :  { %8248 = vmatprep.subr.bf16.mxu1 %v20964_v20  ;;  %v20986_v20 = vld [vmem:[%s23542_s3 + $0xb0] ss:$8 sps:$4 sm:$0xff]  }
 0x58f   :  { %8249 = vmatpush1.bf16.msra.mxu1 %v20962_v0  ;;  %v20991_v0 = vld [vmem:[%s23542_s3 + $0xc4] ss:$8 sps:$4 sm:$0xff]  }
 0x590   :  { %8250 = vmatprep.subr.bf16.mxu1 %v20967_v38  ;;  %v20989_v38 = vld [vmem:[%s23542_s3 + $0xc0] ss:$8 sps:$4 sm:$0xff]  }
 0x593   :  { %8251 = vmatpush1.bf16.msra.mxu1 %v20965_v62  ;;  %v20994_v62 = vld [vmem:[%s23542_s3 + $0xd4] ss:$8 sps:$4 sm:$0xff]  }
 0x594   :  { %8252 = vmatprep.subr.bf16.mxu1 %v20970_v19  ;;  %v20992_v19 = vld [vmem:[%s23542_s3 + $0xd0] ss:$8 sps:$4 sm:$0xff]  }
 0x597   :  { %8253 = vmatpush1.bf16.msra.mxu1 %v20968_v2  ;;  %v20997_v2 = vld [vmem:[%s23542_s3 + $0xe4] ss:$8 sps:$4 sm:$0xff]  }
 0x598   :  { %8254 = vmatprep.subr.bf16.mxu1 %v20973_v15  ;;  %v20995_v15 = vld [vmem:[%s23542_s3 + $0xe0] ss:$8 sps:$4 sm:$0xff]  }
 0x59b   :  { %8255 = vmatpush1.bf16.msra.mxu1 %v20971_v22  ;;  %v21000_v22 = vld [vmem:[%s23542_s3 + $0xf4] ss:$8 sps:$4 sm:$0xff]  }
 0x59c   :  { %8256 = vmatprep.subr.bf16.mxu1 %v20976_v23  ;;  %v20998_v23 = vld [vmem:[%s23542_s3 + $0xf0] ss:$8 sps:$4 sm:$0xff]  }
 0x59f   :  { %8257 = vmatpush1.bf16.msra.mxu1 %v20974_v45  ;;  %v21003_v45 = vld [vmem:[%s23542_s3 + $0x104] ss:$8 sps:$4 sm:$0xff]  }
 0x5a0   :  { %8258 = vmatprep.subr.bf16.mxu1 %v20979_v3  ;;  %v21049_v3 = vld [vmem:[%s23588_s11 + $0x40] sm:$0xff]  }
 0x5a1   :  { %18531 = vmatprep.subr.bf16.mxu0 %v21049_v3 }
 0x5a3   :  { %8259 = vmatpush1.bf16.msra.mxu1 %v20977_v5  ;;  %v21050_v5 = vld [vmem:[%s23588_s11] sm:$0xff]  }
 0x5a4   :  { %8260 = vmatprep.subr.bf16.mxu1 %v20982_v28  ;;  %v21051_v28 = vld [vmem:[%s23588_s11 + $0x48] sm:$0xff]   ;;  %18532 = vmatpush3.bf16.msra.mxu0 %v21050_v5 }
 0x5a5   :  { %18533 = vmatprep.subr.bf16.mxu0 %v21051_v28 }
 0x5a7   :  { %8261 = vmatpush1.bf16.msra.mxu1 %v20980_v37  ;;  %v21052_v37 = vld [vmem:[%s23588_s11 + $0x8] sm:$0xff]  }
 0x5a8   :  { %8262 = vmatprep.subr.bf16.mxu1 %v20985_v41  ;;  %v21053_v41 = vld [vmem:[%s23588_s11 + $0x50] sm:$0xff]   ;;  %18534 = vmatpush3.bf16.msra.mxu0 %v21052_v37 }
 0x5a9   :  { %18535 = vmatprep.subr.bf16.mxu0 %v21053_v41 }
 0x5ab   :  { %8263 = vmatpush1.bf16.msra.mxu1 %v20983_v25  ;;  %v21054_v25 = vld [vmem:[%s23588_s11 + $0x10] sm:$0xff]  }
 0x5ac   :  { %8264 = vmatprep.subr.bf16.mxu1 %v20988_v34  ;;  %v21055_v34 = vld [vmem:[%s23588_s11 + $0x58] sm:$0xff]   ;;  %18536 = vmatpush3.bf16.msra.mxu0 %v21054_v25 }
 0x5ad   :  { %18537 = vmatprep.subr.bf16.mxu0 %v21055_v34 }
 0x5af   :  { %8265 = vmatpush1.bf16.msra.mxu1 %v20986_v20  ;;  %v21056_v20 = vld [vmem:[%s23588_s11 + $0x18] sm:$0xff]  }
 0x5b0   :  { %8266 = vmatprep.subr.bf16.mxu1 %v20991_v0  ;;  %v21057_v0 = vld [vmem:[%s23588_s11 + $0x60] sm:$0xff]   ;;  %18538 = vmatpush3.bf16.msra.mxu0 %v21056_v20 }
 0x5b1   :  { %18539 = vmatprep.subr.bf16.mxu0 %v21057_v0 }
 0x5b3   :  { %8267 = vmatpush1.bf16.msra.mxu1 %v20989_v38  ;;  %v21058_v38 = vld [vmem:[%s23588_s11 + $0x20] sm:$0xff]  }
 0x5b4   :  { %8268 = vmatprep.subr.bf16.mxu1 %v20994_v62  ;;  %v21059_v62 = vld [vmem:[%s23588_s11 + $0x68] sm:$0xff]   ;;  %18540 = vmatpush3.bf16.msra.mxu0 %v21058_v38 }
 0x5b5   :  { %18541 = vmatprep.subr.bf16.mxu0 %v21059_v62 }
 0x5b7   :  { %8269 = vmatpush1.bf16.msra.mxu1 %v20992_v19  ;;  %v21060_v19 = vld [vmem:[%s23588_s11 + $0x28] sm:$0xff]  }
 0x5b8   :  { %8270 = vmatprep.subr.bf16.mxu1 %v20997_v2  ;;  %18542 = vmatpush3.bf16.msra.mxu0 %v21060_v19  ;;  %v23608_v2 = vld [vmem:[%s23605_s15] sm:$0xf] }
 0x5bb   :  { %8271 = vmatpush1.bf16.msra.mxu1 %v20995_v15  ;;  %v23611_v15 = vsub.s32 3, %v23492_v50 }
 0x5bc   :  { %8272 = vmatprep.subr.bf16.mxu1 %v21000_v22  ;;  %v7411_v22 = vrot.slane %v23608_v2, %v23495_v14 }
 0x5bf   :  { %8273 = vmatpush1.bf16.msra.mxu1 %v20998_v23  ;;  %v7415_v23 = vrot.slane %v23608_v2, %v23498_v59 }
 0x5c0   :  { %8283 = vmatprep.subr.bf16.mxu1 %v21003_v45  ;;  %v7423_v45 = vrot.slane %v23608_v2, %v23611_v15 }
 0x655   :  { %v7782_v3 = vpop.f32.mrb[64].mxu1  ;;  %v23619_v5 = vpop.f32.mrb[60].mxu0 }
 0x656   :  { %v7783_v28 = vadd.f32 %v7782_v3, %v7411_v22  ;;  %v7784_v37 = vpop.f32.mrb[65].mxu1  ;;  %v7825_v41 = vpop.f32.mrb[61].mxu0 }
 0x657   :  { %v7785_v25 = vadd.f32 %v7784_v37, %v7415_v23  ;;  %v7826_v34 = vadd.f32 %v7825_v41, %v7423_v45  ;;  %v7786_v20 = vpop.f32.mrb[66].mxu1  ;;  %v7827_v0 = vpop.f32.mrb[62].mxu0  ;;  %v21001_v45 = vld [vmem:[%s23542_s3 + $0x100] ss:$8 sps:$4 sm:$0xff]   ;;  %v21006_v41 = vld [vmem:[%s23542_s3 + $0x114] ss:$8 sps:$4 sm:$0xff]  }
 0x658   :  { %vm7830_vm3 = vcmp.ge.f32.partialorder %v7783_v28, 0.0  ;;  %v7834_v38 = vmul.f32 0.01, %v7783_v28  ;;  %v7787_v61 = vpop.f32.mrb[67].mxu1  ;;  %v7828_v11 = vpop.f32.mrb[63].mxu0 }
 0x659   :  { %vm7831_vm4 = vcmp.ge.f32.partialorder %v7785_v25, 0.0  ;;  %v7835_v62 = vmul.f32 0.01, %v7785_v25  ;;  %vm7833_vm5 = vcmp.ge.f32.partialorder %v7826_v34, 0.0  ;;  %v7837_v19 = vmul.f32 0.01, %v7826_v34 }
 0x65a   :  { %v7838_v10 = vsel %vm7830_vm3, %v7783_v28, %v7834_v38  ;;  %v21004_v28 = vld [vmem:[%s23542_s3 + $0x110] ss:$8 sps:$4 sm:$0xff]   ;;  %v21009_v61 = vld [vmem:[%s23542_s3 + $0x124] ss:$8 sps:$4 sm:$0xff]   ;;  %v21007_v11 = vld [vmem:[%s23542_s3 + $0x120] ss:$8 sps:$4 sm:$0xff]  }
 0x65b   :  { %v7839_v22 = vsel %vm7831_vm4, %v7785_v25, %v7835_v62  ;;  %v7841_v3 = vsel %vm7833_vm5, %v7826_v34, %v7837_v19  ;;  %v7842_v37 = vpack.c.bf16 %v7838_v10, %v7838_v10  ;;  %v21012_v25 = vld [vmem:[%s23542_s3 + $0x134] ss:$8 sps:$4 sm:$0xff]   ;;  %v21010_v10 = vld [vmem:[%s23542_s3 + $0x130] ss:$8 sps:$4 sm:$0xff]   ;;  %v21015_v34 = vld [vmem:[%s23542_s3 + $0x144] ss:$8 sps:$4 sm:$0xff]  }
 0x65c   :  { %v7843_v23 = vpack.c.bf16 %v7839_v22, %v7839_v22  ;;  %v7845_v20 = vpack.c.bf16 %v7841_v3, %v7841_v3  ;;  %v21013_v0 = vld [vmem:[%s23542_s3 + $0x140] ss:$8 sps:$4 sm:$0xff]   ;;  %v21018_v38 = vld [vmem:[%s23542_s3 + $0x154] ss:$8 sps:$4 sm:$0xff]   ;;  %v21016_v62 = vld [vmem:[%s23542_s3 + $0x150] ss:$8 sps:$4 sm:$0xff]  }
 0x65d   :  { %v21021_v19 = vld [vmem:[%s23542_s3 + $0x164] ss:$8 sps:$4 sm:$0xff]   ;;  %v21019_v22 = vld [vmem:[%s23542_s3 + $0x160] ss:$8 sps:$4 sm:$0xff]   ;;  %v21024_v3 = vld [vmem:[%s23542_s3 + $0x174] ss:$8 sps:$4 sm:$0xff]  }
 0x65e   :  { %8274 = vmatprep.mubr.bf16.mxu1 %v7843_v23  ;;  %v21022_v23 = vld [vmem:[%s23542_s3 + $0x170] ss:$8 sps:$4 sm:$0xff]  }
 0x65f   :  { %8275 = vmatmul.mubr.bf16.vlgmr.msra.gmra.mrb[68].mxu1 %v7842_v37  ;;  %v21025_v37 = vld [vmem:[%s23542_s3 + $0x180] ss:$8 sps:$4 sm:$0xff]  }
 0x660   :  { %8284 = vmatpush1.bf16.msra.mxu1 %v21001_v45  ;;  %8315 = vmatprep.mubr.bf16.mxu1 %v7845_v20  ;;  %v21027_v45 = vld [vmem:[%s23542_s3 + $0x184] ss:$8 sps:$4 sm:$0xff]   ;;  %v21028_v20 = vld [vmem:[%s23542_s3 + $0x190] ss:$8 sps:$4 sm:$0xff]  }
 0x661   :  { %8285 = vmatprep.subr.bf16.mxu1 %v21006_v41  ;;  %v21030_v41 = vld [vmem:[%s23542_s3 + $0x194] ss:$8 sps:$4 sm:$0xff]  }
 0x664   :  { %8286 = vmatpush1.bf16.msra.mxu1 %v21004_v28  ;;  %v21033_v28 = vld [vmem:[%s23542_s3 + $0x1a4] ss:$8 sps:$4 sm:$0xff]  }
 0x665   :  { %8287 = vmatprep.subr.bf16.mxu1 %v21009_v61  ;;  %v21031_v61 = vld [vmem:[%s23542_s3 + $0x1a0] ss:$8 sps:$4 sm:$0xff]  }
 0x668   :  { %8288 = vmatpush1.bf16.msra.mxu1 %v21007_v11  ;;  %v21036_v11 = vld [vmem:[%s23542_s3 + $0x1b4] ss:$8 sps:$4 sm:$0xff]  }
 0x669   :  { %8289 = vmatprep.subr.bf16.mxu1 %v21012_v25  ;;  %v21034_v25 = vld [vmem:[%s23542_s3 + $0x1b0] ss:$8 sps:$4 sm:$0xff]  }
 0x66c   :  { %8290 = vmatpush1.bf16.msra.mxu1 %v21010_v10  ;;  %v21039_v10 = vld [vmem:[%s23542_s3 + $0x1c4] ss:$8 sps:$4 sm:$0xff]  }
 0x66d   :  { %8291 = vmatprep.subr.bf16.mxu1 %v21015_v34  ;;  %v23646_v34 = vsub.s32 2, %v23492_v50  ;;  %v21048_v50 = vld [vmem:[%s23542_s3 + $0x1f4] ss:$8 sps:$4 sm:$0xff]  }
 0x670   :  { %8292 = vmatpush1.bf16.msra.mxu1 %v21013_v0  ;;  %v21037_v0 = vld [vmem:[%s23542_s3 + $0x1c0] ss:$8 sps:$4 sm:$0xff]  }
 0x671   :  { %8293 = vmatprep.subr.bf16.mxu1 %v21018_v38  ;;  %v21042_v38 = vld [vmem:[%s23542_s3 + $0x1d4] ss:$8 sps:$4 sm:$0xff]  }
 0x674   :  { %8294 = vmatpush1.bf16.msra.mxu1 %v21016_v62  ;;  %v7419_v62 = vrot.slane %v23608_v2, %v23646_v34 }
 0x675   :  { %8295 = vmatprep.subr.bf16.mxu1 %v21021_v19  ;;  %v21040_v19 = vld [vmem:[%s23542_s3 + $0x1d0] ss:$8 sps:$4 sm:$0xff]  }
 0x678   :  { %8296 = vmatpush1.bf16.msra.mxu1 %v21019_v22  ;;  %v21045_v22 = vld [vmem:[%s23542_s3 + $0x1e4] ss:$8 sps:$4 sm:$0xff]  }
 0x679   :  { %8297 = vmatprep.subr.bf16.mxu1 %v21024_v3  ;;  %v7824_v3 = vadd.f32 %v23619_v5, %v7419_v62  ;;  %v21061_v5 = vld [vmem:[%s23588_s11 + $0x70] sm:$0xff]   ;;  %v21106_v62 = vld [vmem:[%s23458_s25 + $0x24c] ss:$16 sps:$4 sm:$0xff]  }
 0x67a   :  { %18543 = vmatprep.subr.bf16.mxu0 %v21061_v5 }
 0x67b   :  { %vm7832_vm6 = vcmp.ge.f32.partialorder %v7824_v3, 0.0 }
 0x67c   :  { %8298 = vmatpush1.bf16.msra.mxu1 %v21022_v23  ;;  %v21043_v23 = vld [vmem:[%s23542_s3 + $0x1e0] ss:$8 sps:$4 sm:$0xff]  }
 0x67d   :  { %8299 = vmatprep.subr.bf16.mxu1 %v21027_v45  ;;  %v7836_v45 = vmul.f32 0.01, %v7824_v3 }
 0x67f   :  { %v7840_v2 = vsel %vm7832_vm6, %v7824_v3, %v7836_v45  ;;  %v21110_v3 = vld [vmem:[%s23458_s25 + $0x268] ss:$16 sps:$4 sm:$0xff]   ;;  %v21124_v45 = vld [vmem:[%s23458_s25 + $0x2ac] ss:$16 sps:$4 sm:$0xff]  }
 0x680   :  { %8300 = vmatpush1.bf16.msra.mxu1 %v21025_v37  ;;  %v21046_v37 = vld [vmem:[%s23542_s3 + $0x1f0] ss:$8 sps:$4 sm:$0xff]  }
 0x681   :  { %8301 = vmatprep.subr.bf16.mxu1 %v21030_v41  ;;  %v7844_v41 = vpack.c.bf16 %v7840_v2, %v7840_v2  ;;  %v7910_v2 = vld [vmem:[%s23678_s20] sm:$0x3] }
 0x682   :  { %v7919_v5 = vrot.slane %v7910_v2, %v23498_v59 }
 0x684   :  { %8302 = vmatpush1.bf16.msra.mxu1 %v21028_v20  ;;  %v21062_v20 = vld [vmem:[%s23588_s11 + $0x30] sm:$0xff]  }
 0x685   :  { %8303 = vmatprep.subr.bf16.mxu1 %v21033_v28  ;;  %18544 = vmatpush3.bf16.msra.mxu0 %v21062_v20  ;;  %v21063_v28 = vld [vmem:[%s23588_s11 + $0x78] sm:$0xff]  }
 0x686   :  { %18545 = vmatprep.subr.bf16.mxu0 %v21063_v28 }
 0x688   :  { %8304 = vmatpush1.bf16.msra.mxu1 %v21031_v61  ;;  %v21064_v61 = vld [vmem:[%s23588_s11 + $0x38] sm:$0xff]  }
 0x689   :  { %8305 = vmatprep.subr.bf16.mxu1 %v21036_v11  ;;  %18546 = vmatpush3.bf16.msra.mxu0 %v21064_v61  ;;  %v21067_v11 = vld [vmem:[%s23437_s21 + $0x84] ss:$8 sps:$4 sm:$0xff]  }
 0x68a   :  { %8621 = vmatprep.subr.bf16.mxu0 %v21067_v11 }
 0x68c   :  { %8306 = vmatpush1.bf16.msra.mxu1 %v21034_v25  ;;  %v21092_v25 = vld [vmem:[%s23458_s25 + $0x208] ss:$16 sps:$4 sm:$0xff]  }
 0x68d   :  { %8307 = vmatprep.subr.bf16.mxu1 %v21039_v10  ;;  %v21094_v10 = vld [vmem:[%s23458_s25 + $0x20c] ss:$16 sps:$4 sm:$0xff]  }
 0x690   :  { %8308 = vmatpush1.bf16.msra.mxu1 %v21037_v0  ;;  %v21100_v0 = vld [vmem:[%s23458_s25 + $0x22c] ss:$16 sps:$4 sm:$0xff]  }
 0x691   :  { %8309 = vmatprep.subr.bf16.mxu1 %v21042_v38  ;;  %v21098_v38 = vld [vmem:[%s23458_s25 + $0x228] ss:$16 sps:$4 sm:$0xff]  }
 0x694   :  { %8310 = vmatpush1.bf16.msra.mxu1 %v21040_v19  ;;  %v21104_v19 = vld [vmem:[%s23458_s25 + $0x248] ss:$16 sps:$4 sm:$0xff]  }
 0x695   :  { %8311 = vmatprep.subr.bf16.mxu1 %v21045_v22  ;;  %v21112_v22 = vld [vmem:[%s23458_s25 + $0x26c] ss:$16 sps:$4 sm:$0xff]  }
 0x698   :  { %8312 = vmatpush1.bf16.msra.mxu1 %v21043_v23  ;;  %v21118_v23 = vld [vmem:[%s23458_s25 + $0x28c] ss:$16 sps:$4 sm:$0xff]  }
 0x699   :  { %8313 = vmatprep.subr.bf16.mxu1 %v21048_v50  ;;  %v21116_v50 = vld [vmem:[%s23458_s25 + $0x288] ss:$16 sps:$4 sm:$0xff]  }
 0x69c   :  { %8314 = vmatpush1.bf16.msra.mxu1 %v21046_v37  ;;  %v21122_v37 = vld [vmem:[%s23458_s25 + $0x2a8] ss:$16 sps:$4 sm:$0xff]  }
 0x69d   :  { %9119 = vmatprep.subr.bf16.mxu1 %v21094_v10 }
 0x69f   :  { %8316 = vmatmul.mubr.bf16.vlgmr.msra.gmra.mrb[68].mxu1 %v7844_v41  ;;  %v7915_v41 = vrot.slane %v7910_v2, %v23495_v14  ;;  %v21071_v2 = vld [vmem:[%s23437_s21 + $0xa0] ss:$8 sps:$4 sm:$0xff]  }
 0x6a0   :  { %9120 = vmatpush1.bf16.msra.mxu1 %v21092_v25 }
 0x6a1   :  { %9121 = vmatprep.subr.bf16.mxu1 %v21100_v0 }
 0x6a4   :  { %9122 = vmatpush1.bf16.msra.mxu1 %v21098_v38 }
 0x6a5   :  { %9123 = vmatprep.subr.bf16.mxu1 %v21106_v62 }
 0x6a8   :  { %9124 = vmatpush1.bf16.msra.mxu1 %v21104_v19 }
 0x6a9   :  { %9125 = vmatprep.subr.bf16.mxu1 %v21112_v22 }
 0x6ac   :  { %9126 = vmatpush1.bf16.msra.mxu1 %v21110_v3  ;;  %v21065_v3 = vld [vmem:[%s23437_s21 + $0x80] ss:$8 sps:$4 sm:$0xff]  }
 0x6ad   :  { %9127 = vmatprep.subr.bf16.mxu1 %v21118_v23 }
 0x6b0   :  { %9128 = vmatpush1.bf16.msra.mxu1 %v21116_v50  ;;  %v21070_v50 = vld [vmem:[%s23437_s21 + $0x94] ss:$8 sps:$4 sm:$0xff]  }
 0x6b1   :  { %9129 = vmatprep.subr.bf16.mxu1 %v21124_v45  ;;  %v21068_v45 = vld [vmem:[%s23437_s21 + $0x90] ss:$8 sps:$4 sm:$0xff]  }
 0x6b4   :  { %9130 = vmatpush1.bf16.msra.mxu1 %v21122_v37  ;;  %v21073_v37 = vld [vmem:[%s23437_s21 + $0xa4] ss:$8 sps:$4 sm:$0xff]  }
 0x772   :  { %v8317_v20 = vpop.f32.mrb[68].mxu1 }
 0x773   :  { %v19329_v28 = vadd.f32 %v8317_v20, %v7915_v41  ;;  %v8319_v61 = vpop.f32.mrb[69].mxu1  ;;  %v21076_v41 = vld [vmem:[%s23437_s21 + $0xb4] ss:$8 sps:$4 sm:$0xff]   ;;  %v21079_v20 = vld [vmem:[%s23437_s21 + $0xc4] ss:$8 sps:$4 sm:$0xff]  }
 0x774   :  { %v19330_v11 = vadd.f32 %v8319_v61, %v7919_v5  ;;  %v8321_v25 = vpop.f32.mrb[70].mxu1  ;;  %v21074_v5 = vld [vmem:[%s23437_s21 + $0xb0] ss:$8 sps:$4 sm:$0xff]   ;;  %v21082_v61 = vld [vmem:[%s23437_s21 + $0xd4] ss:$8 sps:$4 sm:$0xff]  }
 0x775   :  { %vm8324_vm7 = vcmp.ge.f32.partialorder %v19329_v28, 0.0  ;;  %v8326_v10 = vmul.f32 0.01, %v19329_v28  ;;  %v8322_v0 = vpop.f32.mrb[71].mxu1  ;;  %v21085_v25 = vld [vmem:[%s23437_s21 + $0xe4] ss:$8 sps:$4 sm:$0xff]  }
 0x776   :  { %vm8325_vm8 = vcmp.ge.f32.partialorder %v19330_v11, 0.0  ;;  %v8327_v38 = vmul.f32 0.01, %v19330_v11  ;;  %v21088_v0 = vld [vmem:[%s23437_s21 + $0xf4] ss:$8 sps:$4 sm:$0xff]  }
 0x777   :  { %v8328_v62 = vsel %vm8324_vm7, %v19329_v28, %v8326_v10  ;;  %v21077_v28 = vld [vmem:[%s23437_s21 + $0xc0] ss:$8 sps:$4 sm:$0xff]  }
 0x778   :  { %v8329_v19 = vsel %vm8325_vm8, %v19330_v11, %v8327_v38  ;;  %v8330_v23 = vpack.c.bf16 %v8328_v62, %v8328_v62  ;;  %v21080_v11 = vld [vmem:[%s23437_s21 + $0xd0] ss:$8 sps:$4 sm:$0xff]   ;;  %v21083_v10 = vld [vmem:[%s23437_s21 + $0xe0] ss:$8 sps:$4 sm:$0xff]   ;;  %v7181_v38 = vmul.f32 0.01, %v23502_v40 }
 0x779   :  { %v8331_v22 = vpack.c.bf16 %v8329_v19, %v8329_v19  ;;  %v21086_v62 = vld [vmem:[%s23437_s21 + $0xf0] ss:$8 sps:$4 sm:$0xff]   ;;  %v21091_v19 = vld [vmem:[%s23458_s25 + $0x204] ss:$16 sps:$4 sm:$0xff]   ;;  %s22031_s21 = smov 15  }
 0x77a   :  { %s23858_s24 = sld [smem:[%s24751_s0 + %s22031_s21]]  }
 0x77b   :  { %8499 = vmatprep.mubr.bf16.mxu0 %v8331_v22  ;;  %v7183_v22 = vsel %vm7179_vm9, %v23502_v40, %v7181_v38  ;;  %v21109_v40 = vld [vmem:[%s23458_s25 + $0x264] ss:$16 sps:$4 sm:$0xff]   ;;  %s16388_s21 = sld [smem:[%s24751_s0 + %s22046_s18]]  }
 0x77c   :  { %8500 = vmatmul.mubr.bf16.vlgmr.msra.gmra.mrb[64].mxu0 %v8330_v23  ;;  %v8510_v23 = vpack.c.bf16 %v7183_v22, %v7183_v22  ;;  %v21133_v38 = vld [vmem:[%s23458_s25 + $0x2e4] ss:$16 sps:$4 sm:$0xff]   ;;  %v21134_v22 = vld [vmem:[%s23458_s25 + $0x2e8] ss:$16 sps:$4 sm:$0xff]  }
 0x77d   :  { %8622 = vmatpush1.bf16.msra.mxu0 %v21065_v3  ;;  %8653 = vmatprep.mubr.bf16.mxu0 %v24787_v54  ;;  %v21089_v3 = vld [vmem:[%s23458_s25 + $0x200] ss:$16 sps:$4 sm:$0xff]  }
 0x77e   :  { %8623 = vmatprep.subr.bf16.mxu0 %v21070_v50  ;;  %v21097_v50 = vld [vmem:[%s23458_s25 + $0x224] ss:$16 sps:$4 sm:$0xff]  }
 0x781   :  { %8624 = vmatpush1.bf16.msra.mxu0 %v21068_v45  ;;  %v21095_v45 = vld [vmem:[%s23458_s25 + $0x220] ss:$16 sps:$4 sm:$0xff]  }
 0x782   :  { %8625 = vmatprep.subr.bf16.mxu0 %v21073_v37  ;;  %v21103_v37 = vld [vmem:[%s23458_s25 + $0x244] ss:$16 sps:$4 sm:$0xff]  }
 0x785   :  { %8626 = vmatpush1.bf16.msra.mxu0 %v21071_v2  ;;  %v21101_v2 = vld [vmem:[%s23458_s25 + $0x240] ss:$16 sps:$4 sm:$0xff]  }
 0x786   :  { %8627 = vmatprep.subr.bf16.mxu0 %v21076_v41  ;;  %v21107_v41 = vld [vmem:[%s23458_s25 + $0x260] ss:$16 sps:$4 sm:$0xff]  }
 0x789   :  { %8628 = vmatpush1.bf16.msra.mxu0 %v21074_v5  ;;  %v21115_v5 = vld [vmem:[%s23458_s25 + $0x284] ss:$16 sps:$4 sm:$0xff]  }
 0x78a   :  { %8629 = vmatprep.subr.bf16.mxu0 %v21079_v20  ;;  %v21113_v20 = vld [vmem:[%s23458_s25 + $0x280] ss:$16 sps:$4 sm:$0xff]  }
 0x78d   :  { %8630 = vmatpush1.bf16.msra.mxu0 %v21077_v28  ;;  %v21121_v28 = vld [vmem:[%s23458_s25 + $0x2a4] ss:$16 sps:$4 sm:$0xff]  }
 0x78e   :  { %8631 = vmatprep.subr.bf16.mxu0 %v21082_v61  ;;  %v21119_v61 = vld [vmem:[%s23458_s25 + $0x2a0] ss:$16 sps:$4 sm:$0xff]  }
 0x791   :  { %8632 = vmatpush1.bf16.msra.mxu0 %v21080_v11  ;;  %v21127_v11 = vld [vmem:[%s23458_s25 + $0x2c4] ss:$16 sps:$4 sm:$0xff]  }
 0x792   :  { %8633 = vmatprep.subr.bf16.mxu0 %v21085_v25  ;;  %v21130_v25 = vld [vmem:[%s23458_s25 + $0x2cc] ss:$16 sps:$4 sm:$0xff]  }
 0x793   :  { %9131 = vmatprep.subr.bf16.mxu1 %v21130_v25  ;;  %v21160_v25 = vld [vmem:[%s23458_s25 + $0x36c] ss:$16 sps:$4 sm:$0xff]  }
 0x795   :  { %8634 = vmatpush1.bf16.msra.mxu0 %v21083_v10  ;;  %v21125_v10 = vld [vmem:[%s23458_s25 + $0x2c0] ss:$16 sps:$4 sm:$0xff]  }
 0x796   :  { %8635 = vmatprep.subr.bf16.mxu0 %v21088_v0  ;;  %v21128_v0 = vld [vmem:[%s23458_s25 + $0x2c8] ss:$16 sps:$4 sm:$0xff]  }
 0x797   :  { %9132 = vmatpush1.bf16.msra.mxu1 %v21128_v0  ;;  %v21158_v0 = vld [vmem:[%s23458_s25 + $0x368] ss:$16 sps:$4 sm:$0xff]  }
 0x799   :  { %8636 = vmatpush1.bf16.msra.mxu0 %v21086_v62  ;;  %v21136_v62 = vld [vmem:[%s23458_s25 + $0x2ec] ss:$16 sps:$4 sm:$0xff]  }
 0x79a   :  { %9078 = vmatprep.subr.bf16.mxu0 %v21091_v19  ;;  %v21131_v19 = vld [vmem:[%s23458_s25 + $0x2e0] ss:$16 sps:$4 sm:$0xff]   ;;  %9133 = vmatprep.subr.bf16.mxu1 %v21136_v62  ;;  %v21166_v62 = vld [vmem:[%s23458_s25 + $0x38c] ss:$16 sps:$4 sm:$0xff]  }
 0x79b   :  { %9134 = vmatpush1.bf16.msra.mxu1 %v21134_v22  ;;  %v21164_v22 = vld [vmem:[%s23458_s25 + $0x388] ss:$16 sps:$4 sm:$0xff]  }
 0x79c   :  { %8654 = vmatmul.mubr.bf16.vlgmr.msra.gmra.mrb[68].mxu0 %v8510_v23  ;;  %v21139_v23 = vld [vmem:[%s23458_s25 + $0x304] ss:$16 sps:$4 sm:$0xff]  }
 0x79d   :  { %9079 = vmatpush1.bf16.msra.mxu0 %v21089_v3  ;;  %v21137_v3 = vld [vmem:[%s23458_s25 + $0x300] ss:$16 sps:$4 sm:$0xff]  }
 0x79e   :  { %9080 = vmatprep.subr.bf16.mxu0 %v21097_v50  ;;  %v21140_v50 = vld [vmem:[%s23458_s25 + $0x308] ss:$16 sps:$4 sm:$0xff]  }
 0x7a1   :  { %9081 = vmatpush1.bf16.msra.mxu0 %v21095_v45  ;;  %v21142_v45 = vld [vmem:[%s23458_s25 + $0x30c] ss:$16 sps:$4 sm:$0xff]  }
 0x7a2   :  { %9082 = vmatprep.subr.bf16.mxu0 %v21103_v37  ;;  %v21145_v37 = vld [vmem:[%s23458_s25 + $0x324] ss:$16 sps:$4 sm:$0xff]   ;;  %9135 = vmatprep.subr.bf16.mxu1 %v21142_v45  ;;  %v21170_v45 = vld [vmem:[%s23458_s25 + $0x3a8] ss:$16 sps:$4 sm:$0xff]  }
 0x7a3   :  { %9136 = vmatpush1.bf16.msra.mxu1 %v21140_v50  ;;  %v21167_v50 = vld [vmem:[%s23458_s25 + $0x3a0] ss:$16 sps:$4 sm:$0xff]  }
 0x7a5   :  { %9083 = vmatpush1.bf16.msra.mxu0 %v21101_v2  ;;  %v21148_v2 = vld [vmem:[%s23458_s25 + $0x32c] ss:$16 sps:$4 sm:$0xff]  }
 0x7a6   :  { %9084 = vmatprep.subr.bf16.mxu0 %v21109_v40  ;;  %v21143_v40 = vld [vmem:[%s23458_s25 + $0x320] ss:$16 sps:$4 sm:$0xff]   ;;  %9137 = vmatprep.subr.bf16.mxu1 %v21148_v2  ;;  %v21178_v2 = vld [vmem:[%s23458_s25 + $0x3cc] ss:$16 sps:$4 sm:$0xff]  }
 0x7a9   :  { %9085 = vmatpush1.bf16.msra.mxu0 %v21107_v41  ;;  %v21146_v41 = vld [vmem:[%s23458_s25 + $0x328] ss:$16 sps:$4 sm:$0xff]  }
 0x7aa   :  { %9086 = vmatprep.subr.bf16.mxu0 %v21115_v5  ;;  %v21151_v5 = vld [vmem:[%s23458_s25 + $0x344] ss:$16 sps:$4 sm:$0xff]   ;;  %9138 = vmatpush1.bf16.msra.mxu1 %v21146_v41  ;;  %v21176_v41 = vld [vmem:[%s23458_s25 + $0x3c8] ss:$16 sps:$4 sm:$0xff]  }
 0x7ad   :  { %9087 = vmatpush1.bf16.msra.mxu0 %v21113_v20  ;;  %v21154_v20 = vld [vmem:[%s23458_s25 + $0x34c] ss:$16 sps:$4 sm:$0xff]  }
 0x7ae   :  { %9088 = vmatprep.subr.bf16.mxu0 %v21121_v28  ;;  %v21149_v28 = vld [vmem:[%s23458_s25 + $0x340] ss:$16 sps:$4 sm:$0xff]   ;;  %9139 = vmatprep.subr.bf16.mxu1 %v21154_v20  ;;  %v21184_v20 = vld [vmem:[%s23458_s25 + $0x3ec] ss:$16 sps:$4 sm:$0xff]  }
 0x7b1   :  { %9089 = vmatpush1.bf16.msra.mxu0 %v21119_v61  ;;  %v21152_v61 = vld [vmem:[%s23458_s25 + $0x348] ss:$16 sps:$4 sm:$0xff]  }
 0x7b2   :  { %9090 = vmatprep.subr.bf16.mxu0 %v21127_v11  ;;  %v21157_v11 = vld [vmem:[%s23458_s25 + $0x364] ss:$16 sps:$4 sm:$0xff]   ;;  %9140 = vmatpush1.bf16.msra.mxu1 %v21152_v61  ;;  %v21182_v61 = vld [vmem:[%s23458_s25 + $0x3e8] ss:$16 sps:$4 sm:$0xff]  }
 0x7b3   :  { %9141 = vmatprep.subr.bf16.mxu1 %v21160_v25 }
 0x7b5   :  { %9091 = vmatpush1.bf16.msra.mxu0 %v21125_v10  ;;  %v21155_v10 = vld [vmem:[%s23458_s25 + $0x360] ss:$16 sps:$4 sm:$0xff]  }
 0x7b6   :  { %9092 = vmatprep.subr.bf16.mxu0 %v21133_v38  ;;  %v21163_v38 = vld [vmem:[%s23458_s25 + $0x384] ss:$16 sps:$4 sm:$0xff]   ;;  %9142 = vmatpush1.bf16.msra.mxu1 %v21158_v0 }
 0x7b7   :  { %9143 = vmatprep.subr.bf16.mxu1 %v21166_v62 }
 0x7b9   :  { %9093 = vmatpush1.bf16.msra.mxu0 %v21131_v19  ;;  %v21161_v19 = vld [vmem:[%s23458_s25 + $0x380] ss:$16 sps:$4 sm:$0xff]  }
 0x7ba   :  { %9094 = vmatprep.subr.bf16.mxu0 %v21139_v23  ;;  %v21172_v23 = vld [vmem:[%s23458_s25 + $0x3ac] ss:$16 sps:$4 sm:$0xff]   ;;  %9144 = vmatpush1.bf16.msra.mxu1 %v21164_v22 }
 0x7bb   :  { %9145 = vmatprep.subr.bf16.mxu1 %v21172_v23 }
 0x7bd   :  { %9095 = vmatpush1.bf16.msra.mxu0 %v21137_v3  ;;  %v21169_v3 = vld [vmem:[%s23458_s25 + $0x3a4] ss:$16 sps:$4 sm:$0xff]  }
 0x7be   :  { %9096 = vmatprep.subr.bf16.mxu0 %v21145_v37  ;;  %9146 = vmatpush1.bf16.msra.mxu1 %v21170_v45  ;;  %v21175_v37 = vld [vmem:[%s23458_s25 + $0x3c4] ss:$16 sps:$4 sm:$0xff]  }
 0x7bf   :  { %9147 = vmatprep.subr.bf16.mxu1 %v21178_v2 }
 0x7c1   :  { %9097 = vmatpush1.bf16.msra.mxu0 %v21143_v40  ;;  %v21173_v40 = vld [vmem:[%s23458_s25 + $0x3c0] ss:$16 sps:$4 sm:$0xff]  }
 0x7c2   :  { %9098 = vmatprep.subr.bf16.mxu0 %v21151_v5  ;;  %9148 = vmatpush1.bf16.msra.mxu1 %v21176_v41  ;;  %v21181_v5 = vld [vmem:[%s23458_s25 + $0x3e4] ss:$16 sps:$4 sm:$0xff]  }
 0x7c3   :  { %9149 = vmatprep.subr.bf16.mxu1 %v21184_v20 }
 0x7c5   :  { %9099 = vmatpush1.bf16.msra.mxu0 %v21149_v28  ;;  %v21179_v28 = vld [vmem:[%s23458_s25 + $0x3e0] ss:$16 sps:$4 sm:$0xff]   ;;  %s22032_s25 = smov 14  }
 0x7c6   :  { %9100 = vmatprep.subr.bf16.mxu0 %v21157_v11  ;;  %9150 = vmatpush1.bf16.msra.mxu1 %v21182_v61  ;;  %v21187_v11 = vld [vmem:[%s23542_s3 + $0x204] ss:$8 sps:$4 sm:$0xff]   ;;  %s16379_s28 = sld [smem:[%s24751_s0 + %s22032_s25]]   ;;  %s22048_s25 = smov 25  }
 0x7c9   :  { %9101 = vmatpush1.bf16.msra.mxu0 %v21155_v10 }
 0x7ca   :  { %9102 = vmatprep.subr.bf16.mxu0 %v21163_v38 }
 0x7cd   :  { %9103 = vmatpush1.bf16.msra.mxu0 %v21161_v19  ;;  %v17562_v19 = vld [vmem:[%s23548_s7 + $0x2] sm:$0x3]  ;;  %s22036_s7 = smov 16  }
 0x7ce   :  { %9104 = vmatprep.subr.bf16.mxu0 %v21169_v3  ;;  %v8534_v22 = vrot.slane %v17562_v19, %v23495_v14  ;;  %v8538_v3 = vrot.slane %v17562_v19, %v23498_v59  ;;  %v21191_v19 = vld [vmem:[%s23542_s3 + $0x220] ss:$8 sps:$4 sm:$0xff]   ;;  %s16381_s10 = sld [smem:[%s24751_s0 + %s22036_s7]]   ;;  %s22051_s7 = smov 33  }
 0x7d1   :  { %9105 = vmatpush1.bf16.msra.mxu0 %v21167_v50 }
 0x7d2   :  { %9106 = vmatprep.subr.bf16.mxu0 %v21175_v37 }
 0x7d5   :  { %9107 = vmatpush1.bf16.msra.mxu0 %v21173_v40 }
 0x7d6   :  { %9108 = vmatprep.subr.bf16.mxu0 %v21181_v5 }
 0x7d9   :  { %9109 = vmatpush1.bf16.msra.mxu0 %v21179_v28 }
 0x7da   :  { %9574 = vmatprep.subr.bf16.mxu0 %v21187_v11  ;;  %v21185_v11 = vld [vmem:[%s23542_s3 + $0x200] ss:$8 sps:$4 sm:$0xff]  }
 0x84f   :  { %v18547_v25 = vpop.f32.mrb[64].mxu0 }
 0x850   :  { %v18548_v10 = vpop.f32.mrb[65].mxu0 }
 0x851   :  { %v23755_v0 = vadd.f32 %v18548_v10, %v18547_v25  ;;  %v18550_v38 = vpop.f32.mrb[66].mxu0  ;;  %v21190_v10 = vld [vmem:[%s23542_s3 + $0x214] ss:$8 sps:$4 sm:$0xff]  }
 0x852   :  { %v18551_v62 = vpop.f32.mrb[67].mxu0  ;;  %v21188_v38 = vld [vmem:[%s23542_s3 + $0x210] ss:$8 sps:$4 sm:$0xff]  }
 0x853   :  { %v21193_v62 = vld [vmem:[%s23542_s3 + $0x224] ss:$8 sps:$4 sm:$0xff]  }
 0x86f   :  { %v8655_v23 = vpop.f32.mrb[68].mxu0 }
 0x870   :  { %v8656_v50 = vadd.f32 %v8655_v23, %v8534_v22  ;;  %v8657_v45 = vpop.f32.mrb[69].mxu0  ;;  %v21196_v22 = vld [vmem:[%s23542_s3 + $0x234] ss:$8 sps:$4 sm:$0xff]   ;;  %v21199_v23 = vld [vmem:[%s23542_s3 + $0x244] ss:$8 sps:$4 sm:$0xff]  }
 0x871   :  { %v8658_v37 = vadd.f32 %v8657_v45, %v8538_v3  ;;  %v8659_v2 = vpop.f32.mrb[70].mxu0  ;;  %v21194_v3 = vld [vmem:[%s23542_s3 + $0x230] ss:$8 sps:$4 sm:$0xff]   ;;  %v21202_v45 = vld [vmem:[%s23542_s3 + $0x254] ss:$8 sps:$4 sm:$0xff]  }
 0x872   :  { %vm8662_vm10 = vcmp.ge.f32.partialorder %v8656_v50, 0.0  ;;  %v8664_v40 = vmul.f32 0.01, %v8656_v50  ;;  %v8660_v41 = vpop.f32.mrb[71].mxu0  ;;  %v21205_v2 = vld [vmem:[%s23542_s3 + $0x264] ss:$8 sps:$4 sm:$0xff]  }
 0x873   :  { %vm8663_vm11 = vcmp.ge.f32.partialorder %v8658_v37, 0.0  ;;  %v8665_v5 = vmul.f32 0.01, %v8658_v37  ;;  %v21208_v41 = vld [vmem:[%s23542_s3 + $0x274] ss:$8 sps:$4 sm:$0xff]  }
 0x874   :  { %v8666_v20 = vsel %vm8662_vm10, %v8656_v50, %v8664_v40  ;;  %v21197_v50 = vld [vmem:[%s23542_s3 + $0x240] ss:$8 sps:$4 sm:$0xff]  }
 0x875   :  { %v8667_v28 = vsel %vm8663_vm11, %v8658_v37, %v8665_v5  ;;  %v8668_v25 = vpack.c.bf16 %v8666_v20, %v8666_v20  ;;  %v21200_v37 = vld [vmem:[%s23542_s3 + $0x250] ss:$8 sps:$4 sm:$0xff]   ;;  %v21203_v40 = vld [vmem:[%s23542_s3 + $0x260] ss:$8 sps:$4 sm:$0xff]   ;;  %v21211_v20 = vld [vmem:[%s23542_s3 + $0x284] ss:$8 sps:$4 sm:$0xff]  }
 0x876   :  { %v8669_v61 = vpack.c.bf16 %v8667_v28, %v8667_v28  ;;  %v21206_v5 = vld [vmem:[%s23542_s3 + $0x270] ss:$8 sps:$4 sm:$0xff]   ;;  %v21209_v28 = vld [vmem:[%s23542_s3 + $0x280] ss:$8 sps:$4 sm:$0xff]  }
 0x878   :  { %9110 = vmatprep.mubr.bf16.mxu0 %v8669_v61  ;;  %9151 = vmatprep.mubr.bf16.mxu1 %v8669_v61  ;;  %v21214_v61 = vld [vmem:[%s23542_s3 + $0x294] ss:$8 sps:$4 sm:$0xff]  }
 0x879   :  { %9111 = vmatmul.mubr.bf16.vlgmr.msra.gmra.mrb[72].mxu0 %v8668_v25  ;;  %9152 = vmatmul.mubr.bf16.vlgmr.msra.gmra.mrb[72].mxu1 %v8668_v25  ;;  %v21217_v25 = vld [vmem:[%s23542_s3 + $0x2a4] ss:$8 sps:$4 sm:$0xff]  }
 0x87a   :  { %9575 = vmatpush1.bf16.msra.mxu0 %v21185_v11  ;;  %v21212_v11 = vld [vmem:[%s23542_s3 + $0x290] ss:$8 sps:$4 sm:$0xff]  }
 0x87b   :  { %9576 = vmatprep.subr.bf16.mxu0 %v21190_v10  ;;  %v21215_v10 = vld [vmem:[%s23542_s3 + $0x2a0] ss:$8 sps:$4 sm:$0xff]  }
 0x87e   :  { %9577 = vmatpush1.bf16.msra.mxu0 %v21188_v38  ;;  %v21220_v38 = vld [vmem:[%s23542_s3 + $0x2b4] ss:$8 sps:$4 sm:$0xff]  }
 0x87f   :  { %9578 = vmatprep.subr.bf16.mxu0 %v21193_v62  ;;  %v21218_v62 = vld [vmem:[%s23542_s3 + $0x2b0] ss:$8 sps:$4 sm:$0xff]  }
 0x882   :  { %9579 = vmatpush1.bf16.msra.mxu0 %v21191_v19  ;;  %v21223_v19 = vld [vmem:[%s23542_s3 + $0x2c4] ss:$8 sps:$4 sm:$0xff]  }
 0x883   :  { %9580 = vmatprep.subr.bf16.mxu0 %v21196_v22  ;;  %v21221_v22 = vld [vmem:[%s23542_s3 + $0x2c0] ss:$8 sps:$4 sm:$0xff]  }
 0x886   :  { %9581 = vmatpush1.bf16.msra.mxu0 %v21194_v3  ;;  %v21226_v3 = vld [vmem:[%s23542_s3 + $0x2d4] ss:$8 sps:$4 sm:$0xff]  }
 0x887   :  { %9582 = vmatprep.subr.bf16.mxu0 %v21199_v23  ;;  %v21224_v23 = vld [vmem:[%s23542_s3 + $0x2d0] ss:$8 sps:$4 sm:$0xff]  }
 0x88a   :  { %9583 = vmatpush1.bf16.msra.mxu0 %v21197_v50  ;;  %v21229_v50 = vld [vmem:[%s23542_s3 + $0x2e4] ss:$8 sps:$4 sm:$0xff]  }
 0x88b   :  { %9584 = vmatprep.subr.bf16.mxu0 %v21202_v45  ;;  %v21227_v45 = vld [vmem:[%s23542_s3 + $0x2e0] ss:$8 sps:$4 sm:$0xff]  }
 0x88e   :  { %9585 = vmatpush1.bf16.msra.mxu0 %v21200_v37  ;;  %v21232_v37 = vld [vmem:[%s23542_s3 + $0x2f4] ss:$8 sps:$4 sm:$0xff]  }
 0x88f   :  { %9586 = vmatprep.subr.bf16.mxu0 %v21205_v2  ;;  %v21230_v2 = vld [vmem:[%s23542_s3 + $0x2f0] ss:$8 sps:$4 sm:$0xff]  }
 0x892   :  { %9587 = vmatpush1.bf16.msra.mxu0 %v21203_v40  ;;  %v21235_v40 = vld [vmem:[%s23542_s3 + $0x304] ss:$8 sps:$4 sm:$0xff]  }
 0x893   :  { %9588 = vmatprep.subr.bf16.mxu0 %v21208_v41  ;;  %v21281_v41 = vld [vmem:[%s23588_s11 + $0xc0] sm:$0xff]  }
 0x894   :  { %18553 = vmatprep.subr.bf16.mxu1 %v21281_v41 }
 0x896   :  { %9589 = vmatpush1.bf16.msra.mxu0 %v21206_v5  ;;  %v21282_v5 = vld [vmem:[%s23588_s11 + $0x80] sm:$0xff]  }
 0x897   :  { %9590 = vmatprep.subr.bf16.mxu0 %v21211_v20  ;;  %v21283_v20 = vld [vmem:[%s23588_s11 + $0xc8] sm:$0xff]   ;;  %18554 = vmatpush3.bf16.msra.mxu1 %v21282_v5 }
 0x898   :  { %18555 = vmatprep.subr.bf16.mxu1 %v21283_v20 }
 0x89a   :  { %9591 = vmatpush1.bf16.msra.mxu0 %v21209_v28  ;;  %v21284_v28 = vld [vmem:[%s23588_s11 + $0x88] sm:$0xff]  }
 0x89b   :  { %9592 = vmatprep.subr.bf16.mxu0 %v21214_v61  ;;  %v21285_v61 = vld [vmem:[%s23588_s11 + $0xd0] sm:$0xff]   ;;  %18556 = vmatpush3.bf16.msra.mxu1 %v21284_v28 }
 0x89c   :  { %18557 = vmatprep.subr.bf16.mxu1 %v21285_v61 }
 0x89e   :  { %9593 = vmatpush1.bf16.msra.mxu0 %v21212_v11  ;;  %v21286_v11 = vld [vmem:[%s23588_s11 + $0x90] sm:$0xff]  }
 0x89f   :  { %9594 = vmatprep.subr.bf16.mxu0 %v21217_v25  ;;  %v21287_v25 = vld [vmem:[%s23588_s11 + $0xd8] sm:$0xff]   ;;  %18558 = vmatpush3.bf16.msra.mxu1 %v21286_v11 }
 0x8a0   :  { %18559 = vmatprep.subr.bf16.mxu1 %v21287_v25 }
 0x8a2   :  { %9595 = vmatpush1.bf16.msra.mxu0 %v21215_v10  ;;  %v21288_v10 = vld [vmem:[%s23588_s11 + $0x98] sm:$0xff]  }
 0x8a3   :  { %9596 = vmatprep.subr.bf16.mxu0 %v21220_v38  ;;  %v21289_v38 = vld [vmem:[%s23588_s11 + $0xe0] sm:$0xff]   ;;  %18560 = vmatpush3.bf16.msra.mxu1 %v21288_v10 }
 0x8a4   :  { %18561 = vmatprep.subr.bf16.mxu1 %v21289_v38 }
 0x8a6   :  { %9597 = vmatpush1.bf16.msra.mxu0 %v21218_v62  ;;  %v21290_v62 = vld [vmem:[%s23588_s11 + $0xa0] sm:$0xff]  }
 0x8a7   :  { %9598 = vmatprep.subr.bf16.mxu0 %v21223_v19  ;;  %v21291_v19 = vld [vmem:[%s23588_s11 + $0xe8] sm:$0xff]   ;;  %18562 = vmatpush3.bf16.msra.mxu1 %v21290_v62 }
 0x8a8   :  { %18563 = vmatprep.subr.bf16.mxu1 %v21291_v19 }
 0x8aa   :  { %9599 = vmatpush1.bf16.msra.mxu0 %v21221_v22  ;;  %v21292_v22 = vld [vmem:[%s23588_s11 + $0xa8] sm:$0xff]  }
 0x8ab   :  { %9600 = vmatprep.subr.bf16.mxu0 %v21226_v3  ;;  %18564 = vmatpush3.bf16.msra.mxu1 %v21292_v22  ;;  %v23805_v3 = vld [vmem:[%s23605_s15 + $0x4] sm:$0xf]  ;;  %s22038_s15 = smov 31  }
 0x8ac   :  { %s16396_s19 = sld [smem:[%s24751_s0 + %s22038_s15]]   ;;  %s22053_s15 = smov 32  }
 0x8ae   :  { %9601 = vmatpush1.bf16.msra.mxu0 %v21224_v23  ;;  %v8741_v23 = vrot.slane %v23805_v3, %v23495_v14 }
 0x8af   :  { %9602 = vmatprep.subr.bf16.mxu0 %v21229_v50  ;;  %v8745_v50 = vrot.slane %v23805_v3, %v23498_v59 }
 0x8b2   :  { %9603 = vmatpush1.bf16.msra.mxu0 %v21227_v45  ;;  %v8753_v45 = vrot.slane %v23805_v3, %v23611_v15 }
 0x8b3   :  { %9604 = vmatprep.subr.bf16.mxu0 %v21232_v37 }
 0x8b6   :  { %9605 = vmatpush1.bf16.msra.mxu0 %v21230_v2 }
 0x8b7   :  { %9615 = vmatprep.subr.bf16.mxu0 %v21235_v40 }
 0x94c   :  { %v9112_v37 = vpop.f32.mrb[72].mxu0  ;;  %v23813_v2 = vpop.f32.mrb[72].mxu1 }
 0x94d   :  { %v9113_v40 = vadd.f32 %v9112_v37, %v8741_v23  ;;  %v9114_v41 = vpop.f32.mrb[73].mxu0  ;;  %v9155_v5 = vpop.f32.mrb[73].mxu1 }
 0x94e   :  { %v9115_v20 = vadd.f32 %v9114_v41, %v8745_v50  ;;  %v9156_v28 = vadd.f32 %v9155_v5, %v8753_v45  ;;  %v9116_v61 = vpop.f32.mrb[74].mxu0  ;;  %v9157_v11 = vpop.f32.mrb[74].mxu1  ;;  %v21233_v45 = vld [vmem:[%s23542_s3 + $0x300] ss:$8 sps:$4 sm:$0xff]   ;;  %v21238_v5 = vld [vmem:[%s23542_s3 + $0x314] ss:$8 sps:$4 sm:$0xff]  }
 0x94f   :  { %vm9160_vm12 = vcmp.ge.f32.partialorder %v9113_v40, 0.0  ;;  %v9164_v25 = vmul.f32 0.01, %v9113_v40  ;;  %v9117_v19 = vpop.f32.mrb[75].mxu0  ;;  %v9158_v22 = vpop.f32.mrb[75].mxu1 }
 0x950   :  { %vm9161_vm13 = vcmp.ge.f32.partialorder %v9115_v20, 0.0  ;;  %v9165_v10 = vmul.f32 0.01, %v9115_v20  ;;  %vm9163_vm14 = vcmp.ge.f32.partialorder %v9156_v28, 0.0  ;;  %v9167_v38 = vmul.f32 0.01, %v9156_v28 }
 0x951   :  { %v9168_v62 = vsel %vm9160_vm12, %v9113_v40, %v9164_v25  ;;  %v21236_v40 = vld [vmem:[%s23542_s3 + $0x310] ss:$8 sps:$4 sm:$0xff]   ;;  %v21241_v11 = vld [vmem:[%s23542_s3 + $0x324] ss:$8 sps:$4 sm:$0xff]  }
 0x952   :  { %v9169_v23 = vsel %vm9161_vm13, %v9115_v20, %v9165_v10  ;;  %v9171_v37 = vsel %vm9163_vm14, %v9156_v28, %v9167_v38  ;;  %v9172_v41 = vpack.c.bf16 %v9168_v62, %v9168_v62  ;;  %v21239_v20 = vld [vmem:[%s23542_s3 + $0x320] ss:$8 sps:$4 sm:$0xff]   ;;  %v21244_v28 = vld [vmem:[%s23542_s3 + $0x334] ss:$8 sps:$4 sm:$0xff]   ;;  %v21242_v25 = vld [vmem:[%s23542_s3 + $0x330] ss:$8 sps:$4 sm:$0xff]  }
 0x953   :  { %v9173_v50 = vpack.c.bf16 %v9169_v23, %v9169_v23  ;;  %v9175_v61 = vpack.c.bf16 %v9171_v37, %v9171_v37  ;;  %v21247_v10 = vld [vmem:[%s23542_s3 + $0x344] ss:$8 sps:$4 sm:$0xff]   ;;  %v21245_v38 = vld [vmem:[%s23542_s3 + $0x340] ss:$8 sps:$4 sm:$0xff]   ;;  %v21250_v62 = vld [vmem:[%s23542_s3 + $0x354] ss:$8 sps:$4 sm:$0xff]  }
 0x954   :  { %v21248_v19 = vld [vmem:[%s23542_s3 + $0x350] ss:$8 sps:$4 sm:$0xff]   ;;  %v21253_v22 = vld [vmem:[%s23542_s3 + $0x364] ss:$8 sps:$4 sm:$0xff]   ;;  %v21251_v23 = vld [vmem:[%s23542_s3 + $0x360] ss:$8 sps:$4 sm:$0xff]  }
 0x955   :  { %9606 = vmatprep.mubr.bf16.mxu0 %v9173_v50  ;;  %v21256_v37 = vld [vmem:[%s23542_s3 + $0x374] ss:$8 sps:$4 sm:$0xff]   ;;  %v21254_v50 = vld [vmem:[%s23542_s3 + $0x370] ss:$8 sps:$4 sm:$0xff]  }
 0x956   :  { %9607 = vmatmul.mubr.bf16.vlgmr.msra.gmra.mrb[76].mxu0 %v9172_v41  ;;  %v21257_v41 = vld [vmem:[%s23542_s3 + $0x380] ss:$8 sps:$4 sm:$0xff]  }
 0x957   :  { %9616 = vmatpush1.bf16.msra.mxu0 %v21233_v45  ;;  %9647 = vmatprep.mubr.bf16.mxu0 %v9175_v61  ;;  %v21259_v45 = vld [vmem:[%s23542_s3 + $0x384] ss:$8 sps:$4 sm:$0xff]   ;;  %v21260_v61 = vld [vmem:[%s23542_s3 + $0x390] ss:$8 sps:$4 sm:$0xff]  }
 0x958   :  { %9617 = vmatprep.subr.bf16.mxu0 %v21238_v5  ;;  %v21262_v5 = vld [vmem:[%s23542_s3 + $0x394] ss:$8 sps:$4 sm:$0xff]  }
 0x95b   :  { %9618 = vmatpush1.bf16.msra.mxu0 %v21236_v40  ;;  %v21265_v40 = vld [vmem:[%s23542_s3 + $0x3a4] ss:$8 sps:$4 sm:$0xff]  }
 0x95c   :  { %9619 = vmatprep.subr.bf16.mxu0 %v21241_v11  ;;  %v21263_v11 = vld [vmem:[%s23542_s3 + $0x3a0] ss:$8 sps:$4 sm:$0xff]  }
 0x95f   :  { %9620 = vmatpush1.bf16.msra.mxu0 %v21239_v20  ;;  %v21268_v20 = vld [vmem:[%s23542_s3 + $0x3b4] ss:$8 sps:$4 sm:$0xff]  }
 0x960   :  { %9621 = vmatprep.subr.bf16.mxu0 %v21244_v28  ;;  %v21266_v28 = vld [vmem:[%s23542_s3 + $0x3b0] ss:$8 sps:$4 sm:$0xff]  }
 0x963   :  { %9622 = vmatpush1.bf16.msra.mxu0 %v21242_v25  ;;  %v21271_v25 = vld [vmem:[%s23542_s3 + $0x3c4] ss:$8 sps:$4 sm:$0xff]  }
 0x964   :  { %9623 = vmatprep.subr.bf16.mxu0 %v21247_v10  ;;  %v21269_v10 = vld [vmem:[%s23542_s3 + $0x3c0] ss:$8 sps:$4 sm:$0xff]  }
 0x967   :  { %9624 = vmatpush1.bf16.msra.mxu0 %v21245_v38  ;;  %v21274_v38 = vld [vmem:[%s23542_s3 + $0x3d4] ss:$8 sps:$4 sm:$0xff]  }
 0x968   :  { %9625 = vmatprep.subr.bf16.mxu0 %v21250_v62  ;;  %v8749_v62 = vrot.slane %v23805_v3, %v23646_v34 }
 0x96b   :  { %9626 = vmatpush1.bf16.msra.mxu0 %v21248_v19  ;;  %v21272_v19 = vld [vmem:[%s23542_s3 + $0x3d0] ss:$8 sps:$4 sm:$0xff]  }
 0x96c   :  { %9627 = vmatprep.subr.bf16.mxu0 %v21253_v22  ;;  %v21277_v22 = vld [vmem:[%s23542_s3 + $0x3e4] ss:$8 sps:$4 sm:$0xff]  }
 0x96f   :  { %9628 = vmatpush1.bf16.msra.mxu0 %v21251_v23  ;;  %v9154_v23 = vadd.f32 %v23813_v2, %v8749_v62  ;;  %v21293_v2 = vld [vmem:[%s23588_s11 + $0xf0] sm:$0xff]  }
 0x970   :  { %9629 = vmatprep.subr.bf16.mxu0 %v21256_v37  ;;  %v21275_v37 = vld [vmem:[%s23542_s3 + $0x3e0] ss:$8 sps:$4 sm:$0xff]   ;;  %18565 = vmatprep.subr.bf16.mxu1 %v21293_v2 }
 0x971   :  { %vm9162_vm15 = vcmp.ge.f32.partialorder %v9154_v23, 0.0 }
 0x973   :  { %9630 = vmatpush1.bf16.msra.mxu0 %v21254_v50  ;;  %v21280_v50 = vld [vmem:[%s23542_s3 + $0x3f4] ss:$8 sps:$4 sm:$0xff]  }
 0x974   :  { %9631 = vmatprep.subr.bf16.mxu0 %v21259_v45  ;;  %v9166_v45 = vmul.f32 0.01, %v9154_v23 }
 0x976   :  { %v9170_v3 = vsel %vm9162_vm15, %v9154_v23, %v9166_v45 }
 0x977   :  { %9632 = vmatpush1.bf16.msra.mxu0 %v21257_v41  ;;  %v21278_v41 = vld [vmem:[%s23542_s3 + $0x3f0] ss:$8 sps:$4 sm:$0xff]   ;;  %s22035_s3 = smov 18  }
 0x978   :  { %9633 = vmatprep.subr.bf16.mxu0 %v21262_v5  ;;  %v9174_v5 = vpack.c.bf16 %v9170_v3, %v9170_v3  ;;  %s23892_s6 = sld [smem:[%s24751_s0 + %s22035_s3]]   ;;  %s22050_s3 = smov 29  }
 0x97b   :  { %9634 = vmatpush1.bf16.msra.mxu0 %v21260_v61  ;;  %v21294_v61 = vld [vmem:[%s23588_s11 + $0xb0] sm:$0xff]  }
 0x97c   :  { %9635 = vmatprep.subr.bf16.mxu0 %v21265_v40  ;;  %18566 = vmatpush3.bf16.msra.mxu1 %v21294_v61  ;;  %v21295_v40 = vld [vmem:[%s23588_s11 + $0xf8] sm:$0xff]   ;;  %v21298_v61 = vld [vmem:[%s23858_s24 + $0x8] sm:$0xff]  }
 0x97d   :  { %18567 = vmatprep.subr.bf16.mxu1 %v21295_v40  ;;  %v21299_v40 = vld [vmem:[%s23858_s24 + $0x10] sm:$0xff]  }
 0x97f   :  { %9636 = vmatpush1.bf16.msra.mxu0 %v21263_v11  ;;  %v21296_v11 = vld [vmem:[%s23588_s11 + $0xb8] sm:$0xff]   ;;  %s22037_s11 = smov 30  }
 0x980   :  { %9637 = vmatprep.subr.bf16.mxu0 %v21268_v20  ;;  %18568 = vmatpush3.bf16.msra.mxu1 %v21296_v11  ;;  %v22030_v20 = vmov 0.0   ;;  %v21300_v11 = vld [vmem:[%s23858_s24 + $0x18] sm:$0xff]   ;;  %s16395_s14 = sld [smem:[%s24751_s0 + %s22037_s11]]   ;;  %s22052_s11 = smov 3  }
 0x981   :  { %19249 = vmatprep.subr.bf16.mxu1 %v22030_v20 }
 0x983   :  { %9638 = vmatpush1.bf16.msra.mxu0 %v21266_v28  ;;  %v17772_v28 = vld [vmem:[%s23678_s20 + $0x2] sm:$0x3]  ;;  %s22039_s20 = smov 2  }
 0x984   :  { %9639 = vmatprep.subr.bf16.mxu0 %v21271_v25  ;;  %v9251_v25 = vrot.slane %v17772_v28, %v23498_v59  ;;  %s16367_s23 = sld [smem:[%s24751_s0 + %s22039_s20]]   ;;  %s22054_s20 = smov 34  }
 0x987   :  { %9640 = vmatpush1.bf16.msra.mxu0 %v21269_v10 }
 0x988   :  { %9641 = vmatprep.subr.bf16.mxu0 %v21274_v38 }
 0x98b   :  { %9642 = vmatpush1.bf16.msra.mxu0 %v21272_v19 }
 0x98c   :  { %9643 = vmatprep.subr.bf16.mxu0 %v21277_v22 }
 0x98f   :  { %9644 = vmatpush1.bf16.msra.mxu0 %v21275_v37 }
 0x990   :  { %9645 = vmatprep.subr.bf16.mxu0 %v21280_v50 }
 0x993   :  { %9646 = vmatpush1.bf16.msra.mxu0 %v21278_v41 }
 0x996   :  { %9648 = vmatmul.mubr.bf16.vlgmr.msra.gmra.mrb[76].mxu0 %v9174_v5  ;;  %v21297_v5 = vld [vmem:[%s23858_s24] sm:$0xff]  }
 0x997   :  { %13750 = vmatprep.mubr.bf16.mxu0 %v22136_v55  ;;  %v9247_v55 = vrot.slane %v17772_v28, %v23495_v14  ;;  %v21301_v28 = vld [vmem:[%s23858_s24 + $0x20] sm:$0xff]  }
 0xa69   :  { %v9649_v10 = vpop.f32.mrb[76].mxu0 }
 0xa6a   :  { %v19331_v38 = vadd.f32 %v9649_v10, %v9247_v55  ;;  %v9651_v62 = vpop.f32.mrb[77].mxu0  ;;  %v21302_v55 = vld [vmem:[%s23858_s24 + $0x28] sm:$0xff]   ;;  %v21304_v10 = vld [vmem:[%s23858_s24 + $0x38] sm:$0xff]  }
 0xa6b   :  { %v19332_v19 = vadd.f32 %v9651_v62, %v9251_v25  ;;  %v9653_v22 = vpop.f32.mrb[78].mxu0  ;;  %v21303_v25 = vld [vmem:[%s23858_s24 + $0x30] sm:$0xff]   ;;  %v21305_v62 = vld [vmem:[%s23887_s2 + $0x40] sm:$0xff]   ;;  %s24709_s24 = sld [smem:[%s24751_s0 + %s22047_s22]]  }
 0xa6c   :  { %vm9656_vm0 = vcmp.ge.f32.partialorder %v19331_v38, 0.0  ;;  %v9658_v23 = vmul.f32 0.01, %v19331_v38  ;;  %v9654_v37 = vpop.f32.mrb[79].mxu0  ;;  %18593 = vmatprep.subr.bf16.mxu0 %v21305_v62  ;;  %v21308_v22 = vld [vmem:[%s23887_s2 + $0x48] sm:$0xff]  }
 0xa6d   :  { %vm9657_vm1 = vcmp.ge.f32.partialorder %v19332_v19, 0.0  ;;  %v9659_v50 = vmul.f32 0.01, %v19332_v19  ;;  %v21309_v37 = vld [vmem:[%s23887_s2 + $0x8] sm:$0xff]  }
 0xa6e   :  { %v9660_v45 = vsel %vm9656_vm0, %v19331_v38, %v9658_v23  ;;  %v17529_v38 = vld [vmem:[%s16379_s28] ss:$0 sm:$0xff]  ;;  %v21310_v62 = vld [vmem:[%s23892_s6 + $0x8] sm:$0xff]  }
 0xa6f   :  { %v9661_v41 = vsel %vm9657_vm1, %v19332_v19, %v9659_v50  ;;  %v9662_v2 = vpack.c.bf16 %v9660_v45, %v9660_v45  ;;  %v21306_v19 = vld [vmem:[%s23887_s2] sm:$0xff]   ;;  %v8502_v23 = vadd.f32 %v23755_v0, %v17529_v38  ;;  %v21311_v50 = vld [vmem:[%s23887_s2 + $0x50] sm:$0xff]  }
 0xa70   :  { %v9663_v3 = vpack.c.bf16 %v9661_v41, %v9661_v41  ;;  %18594 = vmatpush3.bf16.msra.mxu0 %v21306_v19  ;;  %v21312_v45 = vld [vmem:[%s23887_s2 + $0x10] sm:$0xff]  }
 0xa71   :  { %18595 = vmatprep.subr.bf16.mxu0 %v21308_v22  ;;  %v8508_v41 = vmul.f32 0.01, %v8502_v23  ;;  %vm8507_vm3 = vcmp.ge.f32.partialorder %v8502_v23, 0.0  ;;  %v21313_v19 = vld [vmem:[%s23892_s6 + $0x10] sm:$0xff]   ;;  %v21314_v22 = vld [vmem:[%s23887_s2 + $0x58] sm:$0xff]  }
 0xa72   :  { %9833 = vmatprep.mubr.bf16.mxu1 %v9663_v3  ;;  %v17870_v3 = vld [vmem:[%s16379_s28 + $0x1] ss:$0 sm:$0xff]  ;;  %s16390_s28 = sld [smem:[%s24751_s0 + %s22048_s25]]  }
 0xa73   :  { %9834 = vmatmul.mubr.bf16.vlgmr.msra.gmra.mrb[76].mxu1 %v9662_v2 }
 0xa74   :  { %19250 = vmatpush3.bf16.msra.mxu1 %v21297_v5  ;;  %19265 = vmatprep.mubr.msk.bf16.mxu1 %vm22033_vm2, %v22030_v20 }
 0xa75   :  { %19251 = vmatprep.subr.bf16.mxu1 %v22030_v20  ;;  %18596 = vmatpush3.bf16.msra.mxu0 %v21309_v37  ;;  %v21316_v37 = vld [vmem:[%s23892_s6 + $0x18] sm:$0xff]  }
 0xa76   :  { %18597 = vmatprep.subr.bf16.mxu0 %v21311_v50  ;;  %v21317_v50 = vld [vmem:[%s23887_s2 + $0x60] sm:$0xff]  }
 0xa78   :  { %19252 = vmatpush3.bf16.msra.mxu1 %v21298_v61 }
 0xa79   :  { %19253 = vmatprep.subr.bf16.mxu1 %v22030_v20  ;;  %18598 = vmatpush3.bf16.msra.mxu0 %v21312_v45  ;;  %v21318_v45 = vld [vmem:[%s23887_s2 + $0x20] sm:$0xff]  }
 0xa7a   :  { %18599 = vmatprep.subr.bf16.mxu0 %v21314_v22  ;;  %v21339_v22 = vld [vmem:[%s23887_s2 + $0x150] sm:$0xff]  }
 0xa7c   :  { %19254 = vmatpush3.bf16.msra.mxu1 %v21299_v40 }
 0xa7d   :  { %19255 = vmatprep.subr.bf16.mxu1 %v22030_v20 }
 0xa80   :  { %19256 = vmatpush3.bf16.msra.mxu1 %v21300_v11 }
 0xa81   :  { %19257 = vmatprep.subr.bf16.mxu1 %v22030_v20 }
 0xa84   :  { %19258 = vmatpush3.bf16.msra.mxu1 %v21301_v28 }
 0xa85   :  { %19259 = vmatprep.subr.bf16.mxu1 %v22030_v20 }
 0xa88   :  { %19260 = vmatpush3.bf16.msra.mxu1 %v21302_v55  ;;  %v21307_v55 = vld [vmem:[%s23892_s6] sm:$0xff]  }
 0xa89   :  { %19261 = vmatprep.subr.bf16.mxu1 %v22030_v20 }
 0xa8c   :  { %19262 = vmatpush3.bf16.msra.mxu1 %v21303_v25  ;;  %v8509_v25 = vsel %vm8507_vm3, %v8502_v23, %v8508_v41  ;;  %v21315_v23 = vld [vmem:[%s23887_s2 + $0x18] sm:$0xff]   ;;  %v21319_v41 = vld [vmem:[%s23892_s6 + $0x20] sm:$0xff]  }
 0xa8d   :  { %19263 = vmatprep.subr.bf16.mxu1 %v22030_v20  ;;  %18600 = vmatpush3.bf16.msra.mxu0 %v21315_v23  ;;  %v21344_v23 = vld [vmem:[%s23887_s2 + $0x118] sm:$0xff]  }
 0xa8e   :  { %18601 = vmatprep.subr.bf16.mxu0 %v21317_v50  ;;  %v21348_v50 = vld [vmem:[%s23887_s2 + $0x120] sm:$0xff]  }
 0xa90   :  { %19264 = vmatpush3.bf16.msra.mxu1 %v21304_v10 }
 0xa91   :  { %19269 = vmatprep.subr.bf16.mxu1 %v22030_v20  ;;  %18602 = vmatpush3.bf16.msra.mxu0 %v21318_v45  ;;  %v21351_v45 = vld [vmem:[%s23887_s2 + $0x168] sm:$0xff]  }
 0xb46   :  { %v18569_v5 = vpop.f32.mrb[76].mxu1 }
 0xb47   :  { %v18570_v2 = vpop.f32.mrb[77].mxu1 }
 0xb48   :  { %v18571_v61 = vadd.f32 %v18570_v2, %v18569_v5  ;;  %v18572_v40 = vpop.f32.mrb[78].mxu1  ;;  %v21321_v5 = vld [vmem:[%s23887_s2 + $0x28] sm:$0xff]  }
 0xb49   :  { %v18573_v11 = vpop.f32.mrb[79].mxu1  ;;  %v21322_v2 = vld [vmem:[%s23892_s6 + $0x28] sm:$0xff]   ;;  %v21324_v40 = vld [vmem:[%s23887_s2 + $0x30] sm:$0xff]  }
 0xb4a   :  { %v9836_v0 = vadd.f32 %v18571_v61, %v17870_v3  ;;  %v21320_v3 = vld [vmem:[%s23887_s2 + $0x68] sm:$0xff]   ;;  %v21323_v61 = vld [vmem:[%s23887_s2 + $0x70] sm:$0xff]  }
 0xb4b   :  { %18603 = vmatprep.subr.bf16.mxu0 %v21320_v3  ;;  %v21325_v11 = vld [vmem:[%s23892_s6 + $0x30] sm:$0xff]  }
 0xb4c   :  { %vm9841_vm4 = vcmp.ge.f32.partialorder %v9836_v0, 0.0  ;;  %v9842_v28 = vmul.f32 0.01, %v9836_v0  ;;  %18604 = vmatpush3.bf16.msra.mxu0 %v21321_v5  ;;  %v21355_v3 = vld [vmem:[%s23887_s2 + $0x170] sm:$0xff]  }
 0xb4d   :  { %18605 = vmatprep.subr.bf16.mxu0 %v21323_v61  ;;  %v21356_v5 = vld [vmem:[%s23887_s2 + $0x130] sm:$0xff]   ;;  %v21360_v61 = vld [vmem:[%s23887_s2 + $0x138] sm:$0xff]  }
 0xb4e   :  { %v9843_v10 = vsel %vm9841_vm4, %v9836_v0, %v9842_v28  ;;  %v21326_v0 = vld [vmem:[%s23887_s2 + $0x78] sm:$0xff]  }
 0xb4f   :  { %v9844_v38 = vpack.c.bf16 %v9843_v10, %v8509_v25  ;;  %v21327_v28 = vld [vmem:[%s23887_s2 + $0x38] sm:$0xff]   ;;  %v21329_v25 = vld [vmem:[%s23887_s2 + $0xc0] sm:$0xff]  }
 0xb50   :  { %18606 = vmatpush3.bf16.msra.mxu0 %v21324_v40  ;;  %v21331_v10 = vld [vmem:[%s23887_s2 + $0x140] sm:$0xff]  }
 0xb51   :  { %19266 = vmatmul.mubr.bf16.vlgmr.msra.gmra.mrb[80].mxu1 %v9844_v38  ;;  %18607 = vmatprep.subr.bf16.mxu0 %v21326_v0  ;;  %v21332_v38 = vld [vmem:[%s23887_s2 + $0x100] sm:$0xff]   ;;  %v21367_v0 = vld [vmem:[%s23887_s2 + $0x248] sm:$0xff]  }
 0xb52   :  { %19270 = vmatpush3.bf16.msra.mxu1 %v21307_v55  ;;  %19285 = vmatprep.mubr.msk.bf16.mxu1 %vm22033_vm2, %v22030_v20  ;;  %v21328_v55 = vld [vmem:[%s23892_s6 + $0x38] sm:$0xff]   ;;  %v21363_v40 = vld [vmem:[%s23887_s2 + $0x240] sm:$0xff]   ;;  %s16394_s6 = sld [smem:[%s24751_s0 + %s22050_s3]]  }
 0xb53   :  { %19271 = vmatprep.subr.bf16.mxu1 %v22030_v20 }
 0xb54   :  { %18608 = vmatpush3.bf16.msra.mxu0 %v21327_v28  ;;  %v21368_v28 = vld [vmem:[%s23887_s2 + $0x208] sm:$0xff]  }
 0xb55   :  { %18637 = vmatprep.subr.bf16.mxu0 %v21331_v10  ;;  %v21375_v10 = vld [vmem:[%s23887_s2 + $0x258] sm:$0xff]  }
 0xb56   :  { %19272 = vmatpush3.bf16.msra.mxu1 %v21310_v62  ;;  %v21335_v62 = vld [vmem:[%s23887_s2 + $0x148] sm:$0xff]  }
 0xb57   :  { %19273 = vmatprep.subr.bf16.mxu1 %v22030_v20  ;;  %13751 = vmatmul.mubr.bf16.vlgmr.msra.gmra.mrb[80].mxu0 %v22188_v36  ;;  %v21340_v36 = vld [vmem:[%s23887_s2 + $0x110] sm:$0xff]  }
 0xb58   :  { %13830 = vmatprep.mubr.bf16.mxu0 %v22201_v43  ;;  %18638 = vmatpush3.bf16.msra.mxu0 %v21332_v38  ;;  %v21343_v43 = vld [vmem:[%s23887_s2 + $0x158] sm:$0xff]   ;;  %v21379_v38 = vld [vmem:[%s23887_s2 + $0x260] sm:$0xff]  }
 0xb59   :  { %18639 = vmatprep.subr.bf16.mxu0 %v21335_v62  ;;  %v21383_v62 = vld [vmem:[%s23887_s2 + $0x268] sm:$0xff]  }
 0xb5a   :  { %19274 = vmatpush3.bf16.msra.mxu1 %v21313_v19  ;;  %v21336_v19 = vld [vmem:[%s23887_s2 + $0x108] sm:$0xff]  }
 0xb5b   :  { %19275 = vmatprep.subr.bf16.mxu1 %v22030_v20 }
 0xb5c   :  { %18640 = vmatpush3.bf16.msra.mxu0 %v21336_v19  ;;  %v21384_v19 = vld [vmem:[%s23887_s2 + $0x228] sm:$0xff]  }
 0xb5d   :  { %18641 = vmatprep.subr.bf16.mxu0 %v21339_v22  ;;  %v21387_v22 = vld [vmem:[%s23887_s2 + $0x270] sm:$0xff]  }
 0xb5e   :  { %19276 = vmatpush3.bf16.msra.mxu1 %v21316_v37  ;;  %v21347_v37 = vld [vmem:[%s23887_s2 + $0x160] sm:$0xff]  }
 0xb5f   :  { %19277 = vmatprep.subr.bf16.mxu1 %v22030_v20 }
 0xb60   :  { %18642 = vmatpush3.bf16.msra.mxu0 %v21340_v36  ;;  %v21388_v36 = vld [vmem:[%s23887_s2 + $0x230] sm:$0xff]  }
 0xb61   :  { %18643 = vmatprep.subr.bf16.mxu0 %v21343_v43  ;;  %v21391_v43 = vld [vmem:[%s23887_s2 + $0x278] sm:$0xff]  }
 0xb62   :  { %19278 = vmatpush3.bf16.msra.mxu1 %v21319_v41  ;;  %v21352_v41 = vld [vmem:[%s23887_s2 + $0x128] sm:$0xff]  }
 0xb63   :  { %19279 = vmatprep.subr.bf16.mxu1 %v22030_v20 }
 0xb64   :  { %18644 = vmatpush3.bf16.msra.mxu0 %v21344_v23  ;;  %v21392_v23 = vld [vmem:[%s23887_s2 + $0x238] sm:$0xff]  }
 0xb65   :  { %18645 = vmatprep.subr.bf16.mxu0 %v21347_v37  ;;  %v21395_v37 = vld [vmem:[%s23887_s2 + $0x340] sm:$0xff]  }
 0xb66   :  { %19280 = vmatpush3.bf16.msra.mxu1 %v21322_v2  ;;  %v21359_v2 = vld [vmem:[%s23887_s2 + $0x178] sm:$0xff]  }
 0xb67   :  { %19281 = vmatprep.subr.bf16.mxu1 %v22030_v20 }
 0xb68   :  { %18646 = vmatpush3.bf16.msra.mxu0 %v21348_v50  ;;  %v21396_v50 = vld [vmem:[%s23887_s2 + $0x300] sm:$0xff]  }
 0xb69   :  { %18647 = vmatprep.subr.bf16.mxu0 %v21351_v45  ;;  %v21399_v45 = vld [vmem:[%s23887_s2 + $0x348] sm:$0xff]  }
 0xb6a   :  { %19282 = vmatpush3.bf16.msra.mxu1 %v21325_v11  ;;  %v21364_v11 = vld [vmem:[%s23887_s2 + $0x200] sm:$0xff]  }
 0xb6b   :  { %19283 = vmatprep.subr.bf16.mxu1 %v22030_v20 }
 0xb6c   :  { %18648 = vmatpush3.bf16.msra.mxu0 %v21352_v41  ;;  %v21400_v41 = vld [vmem:[%s23887_s2 + $0x308] sm:$0xff]  }
 0xb6d   :  { %18649 = vmatprep.subr.bf16.mxu0 %v21355_v3  ;;  %v21403_v3 = vld [vmem:[%s23887_s2 + $0x350] sm:$0xff]  }
 0xb6e   :  { %19284 = vmatpush3.bf16.msra.mxu1 %v21328_v55  ;;  %v21371_v55 = vld [vmem:[%s23887_s2 + $0x250] sm:$0xff]  }
 0xb6f   :  { %18615 = vmatprep.subr.bf16.mxu1 %v21329_v25  ;;  %v21372_v25 = vld [vmem:[%s23887_s2 + $0x210] sm:$0xff]  }
 0xb70   :  { %18650 = vmatpush3.bf16.msra.mxu0 %v21356_v5  ;;  %v21404_v5 = vld [vmem:[%s23887_s2 + $0x310] sm:$0xff]  }
 0xb71   :  { %18651 = vmatprep.subr.bf16.mxu0 %v21359_v2  ;;  %v21407_v2 = vld [vmem:[%s23887_s2 + $0x358] sm:$0xff]  }
 0xb74   :  { %18652 = vmatpush3.bf16.msra.mxu0 %v21360_v61  ;;  %v21411_v61 = vld [vmem:[%s23887_s2 + $0x360] sm:$0xff]  }
 0xb75   :  { %18681 = vmatprep.subr.bf16.mxu0 %v21363_v40  ;;  %v21415_v40 = vld [vmem:[%s23887_s2 + $0x368] sm:$0xff]  }
 0xb77   :  { %13831 = vmatmul.mubr.bf16.vlgmr.msra.gmra.mrb[84].mxu0 %v22289_v53  ;;  %v21376_v53 = vld [vmem:[%s23887_s2 + $0x218] sm:$0xff]  }
 0xb78   :  { %18682 = vmatpush3.bf16.msra.mxu0 %v21364_v11  ;;  %13910 = vmatprep.mubr.bf16.mxu0 %v22294_v56  ;;  %v21380_v56 = vld [vmem:[%s23887_s2 + $0x220] sm:$0xff]   ;;  %v21416_v11 = vld [vmem:[%s23887_s2 + $0x328] sm:$0xff]  }
 0xb79   :  { %18683 = vmatprep.subr.bf16.mxu0 %v21367_v0  ;;  %v21419_v0 = vld [vmem:[%s23887_s2 + $0x370] sm:$0xff]  }
 0xb7c   :  { %18684 = vmatpush3.bf16.msra.mxu0 %v21368_v28  ;;  %v21420_v28 = vld [vmem:[%s23887_s2 + $0x330] sm:$0xff]  }
 0xb7d   :  { %18685 = vmatprep.subr.bf16.mxu0 %v21371_v55  ;;  %v21423_v55 = vld [vmem:[%s23887_s2 + $0x378] sm:$0xff]  }
 0xb80   :  { %18686 = vmatpush3.bf16.msra.mxu0 %v21372_v25  ;;  %v21424_v25 = vld [vmem:[%s23887_s2 + $0x338] sm:$0xff]  }
 0xb81   :  { %18687 = vmatprep.subr.bf16.mxu0 %v21375_v10  ;;  %v21427_v10 = vld [vmem:[%s23887_s2 + $0x440] sm:$0xff]  }
 0xb84   :  { %18688 = vmatpush3.bf16.msra.mxu0 %v21376_v53  ;;  %v21428_v53 = vld [vmem:[%s23887_s2 + $0x400] sm:$0xff]  }
 0xb85   :  { %18689 = vmatprep.subr.bf16.mxu0 %v21379_v38  ;;  %v21431_v38 = vld [vmem:[%s23887_s2 + $0x448] sm:$0xff]  }
 0xb88   :  { %18690 = vmatpush3.bf16.msra.mxu0 %v21380_v56  ;;  %v21432_v56 = vld [vmem:[%s23887_s2 + $0x408] sm:$0xff]  }
 0xb89   :  { %18691 = vmatprep.subr.bf16.mxu0 %v21383_v62  ;;  %v17887_v62 = vld [vmem:[%s16381_s10] ss:$0 sm:$0xff]  ;;  %s16398_s10 = sld [smem:[%s24751_s0 + %s22051_s7]]  }
 0xb8c   :  { %18692 = vmatpush3.bf16.msra.mxu0 %v21384_v19  ;;  %v21435_v19 = vld [vmem:[%s23887_s2 + $0x450] sm:$0xff]  }
 0xb8d   :  { %18693 = vmatprep.subr.bf16.mxu0 %v21387_v22 }
 0xb90   :  { %18694 = vmatpush3.bf16.msra.mxu0 %v21388_v36 }
 0xb91   :  { %18695 = vmatprep.subr.bf16.mxu0 %v21391_v43  ;;  %v21436_v43 = vld [vmem:[%s23887_s2 + $0x410] sm:$0xff]  }
 0xb94   :  { %18696 = vmatpush3.bf16.msra.mxu0 %v21392_v23 }
 0xb95   :  { %18725 = vmatprep.subr.bf16.mxu0 %v21395_v37 }
 0xb97   :  { %13911 = vmatmul.mubr.bf16.vlgmr.msra.gmra.mrb[88].mxu0 %v22379_v9  ;;  %v21408_v9 = vld [vmem:[%s23887_s2 + $0x318] sm:$0xff]  }
 0xb98   :  { %18726 = vmatpush3.bf16.msra.mxu0 %v21396_v50  ;;  %13990 = vmatprep.mubr.bf16.mxu0 %v22385_v12  ;;  %v21412_v12 = vld [vmem:[%s23887_s2 + $0x320] sm:$0xff]  }
 0xb99   :  { %18727 = vmatprep.subr.bf16.mxu0 %v21399_v45  ;;  %v21439_v45 = vld [vmem:[%s23887_s2 + $0x458] sm:$0xff]  }
 0xb9c   :  { %18728 = vmatpush3.bf16.msra.mxu0 %v21400_v41 }
 0xb9d   :  { %18729 = vmatprep.subr.bf16.mxu0 %v21403_v3  ;;  %v21440_v3 = vld [vmem:[%s23887_s2 + $0x418] sm:$0xff]  }
 0xba0   :  { %18730 = vmatpush3.bf16.msra.mxu0 %v21404_v5  ;;  %v21443_v5 = vld [vmem:[%s23887_s2 + $0x460] sm:$0xff]  }
 0xba1   :  { %18731 = vmatprep.subr.bf16.mxu0 %v21407_v2  ;;  %v21444_v2 = vld [vmem:[%s23887_s2 + $0x420] sm:$0xff]  }
 0xba4   :  { %18732 = vmatpush3.bf16.msra.mxu0 %v21408_v9  ;;  %v21447_v9 = vld [vmem:[%s23887_s2 + $0x468] sm:$0xff]  }
 0xba5   :  { %18733 = vmatprep.subr.bf16.mxu0 %v21411_v61  ;;  %v21448_v61 = vld [vmem:[%s23887_s2 + $0x428] sm:$0xff]  }
 0xba8   :  { %18734 = vmatpush3.bf16.msra.mxu0 %v21412_v12  ;;  %v9959_v12 = vld [vmem:[%s16367_s23] sm:$0xff]  ;;  %s16399_s23 = sld [smem:[%s24751_s0 + %s22054_s20]]  }
 0xba9   :  { %18735 = vmatprep.subr.bf16.mxu0 %v21415_v40  ;;  %v21451_v40 = vld [vmem:[%s23887_s2 + $0x470] sm:$0xff]  }
 0xbac   :  { %18736 = vmatpush3.bf16.msra.mxu0 %v21416_v11 }
 0xbad   :  { %18737 = vmatprep.subr.bf16.mxu0 %v21419_v0  ;;  %v21452_v0 = vld [vmem:[%s23887_s2 + $0x430] sm:$0xff]  }
 0xbb0   :  { %18738 = vmatpush3.bf16.msra.mxu0 %v21420_v28 }
 0xbb1   :  { %18739 = vmatprep.subr.bf16.mxu0 %v21423_v55  ;;  %v21330_v55 = vld [vmem:[%s23887_s2 + $0x80] sm:$0xff]  }
 0xbb4   :  { %18740 = vmatpush3.bf16.msra.mxu0 %v21424_v25 }
 0xbb5   :  { %18769 = vmatprep.subr.bf16.mxu0 %v21427_v10  ;;  %v21455_v10 = vld [vmem:[%s23887_s2 + $0x478] sm:$0xff]  }
 0xbb7   :  { %13991 = vmatmul.mubr.bf16.vlgmr.msra.gmra.mrb[92].mxu0 %v22473_v42 }
 0xbb8   :  { %18770 = vmatpush3.bf16.msra.mxu0 %v21428_v53  ;;  %14070 = vmatprep.mubr.bf16.mxu0 %v22478_v47  ;;  %v21456_v53 = vld [vmem:[%s23887_s2 + $0x438] sm:$0xff]  }
 0xbb9   :  { %18771 = vmatprep.subr.bf16.mxu0 %v21431_v38 }
 0xbbc   :  { %18772 = vmatpush3.bf16.msra.mxu0 %v21432_v56  ;;  %v21333_v56 = vld [vmem:[%s23887_s2 + $0xc8] sm:$0xff]  }
 0xbbd   :  { %18773 = vmatprep.subr.bf16.mxu0 %v21435_v19  ;;  %v21460_v19 = vld [vmem:[%s23887_s2 + $0x500] sm:$0xff]  }
 0xbc0   :  { %18774 = vmatpush3.bf16.msra.mxu0 %v21436_v43  ;;  %v21338_v43 = vld [vmem:[%s23887_s2 + $0x90] sm:$0xff]  }
 0xbc1   :  { %18775 = vmatprep.subr.bf16.mxu0 %v21439_v45  ;;  %v21346_v45 = vld [vmem:[%s23887_s2 + $0xa0] sm:$0xff]  }
 0xbc4   :  { %18776 = vmatpush3.bf16.msra.mxu0 %v21440_v3  ;;  %v21349_v3 = vld [vmem:[%s23887_s2 + $0xe8] sm:$0xff]  }
 0xbc5   :  { %18777 = vmatprep.subr.bf16.mxu0 %v21443_v5  ;;  %v21475_v5 = vld [vmem:[%s23887_s2 + $0x560] sm:$0xff]  }
 0xbc8   :  { %18778 = vmatpush3.bf16.msra.mxu0 %v21444_v2  ;;  %v21350_v2 = vld [vmem:[%s23887_s2 + $0xa8] sm:$0xff]  }
 0xbc9   :  { %18779 = vmatprep.subr.bf16.mxu0 %v21447_v9  ;;  %v21476_v9 = vld [vmem:[%s23887_s2 + $0x520] sm:$0xff]  }
 0xbcc   :  { %18780 = vmatpush3.bf16.msra.mxu0 %v21448_v61  ;;  %v21353_v61 = vld [vmem:[%s23887_s2 + $0xf0] sm:$0xff]  }
 0xbcd   :  { %18781 = vmatprep.subr.bf16.mxu0 %v21451_v40  ;;  %v21354_v40 = vld [vmem:[%s23887_s2 + $0xb0] sm:$0xff]  }
 0xbd0   :  { %18782 = vmatpush3.bf16.msra.mxu0 %v21452_v0  ;;  %v21357_v0 = vld [vmem:[%s23887_s2 + $0xf8] sm:$0xff]  }
 0xbd1   :  { %18783 = vmatprep.subr.bf16.mxu0 %v21455_v10  ;;  %v21361_v10 = vld [vmem:[%s23887_s2 + $0x1c0] sm:$0xff]  }
 0xbd4   :  { %18784 = vmatpush3.bf16.msra.mxu0 %v21456_v53  ;;  %v21487_v53 = vld [vmem:[%s23887_s2 + $0x578] sm:$0xff]  }
 0xbd7   :  { %14071 = vmatmul.mubr.bf16.vlgmr.msra.gmra.mrb[96].mxu0 %v22569_v33  ;;  %v21342_v33 = vld [vmem:[%s23887_s2 + $0x98] sm:$0xff]  }
 0xbd8   :  { %14150 = vmatprep.mubr.bf16.mxu0 %v22574_v35  ;;  %v21345_v35 = vld [vmem:[%s23887_s2 + $0xe0] sm:$0xff]  }
 0xc24   :  { %v9950_v42 = vpop.f32.mrb[80].mxu1 }
 0xc25   :  { %v9951_v22 = vadd.f32 %v17887_v62, %v9950_v42  ;;  %v19267_v36 = vpop.f32.mrb[81].mxu1  ;;  %v21334_v42 = vld [vmem:[%s23887_s2 + $0x88] sm:$0xff]  }
 0xc26   :  { %v9953_v23 = vpop.f32.mrb[82].mxu1  ;;  %v21463_v36 = vld [vmem:[%s23887_s2 + $0x548] sm:$0xff]  }
 0xc27   :  { %9957 = vst [vmem:[%s16395_s14] sm:$0xff] %v9951_v22  ;;  %v9960_v47 = vmul.f32 0.5, %v9951_v22  ;;  %v9954_v37 = vadd.f32 %v17887_v62, %v9953_v23  ;;  %v19268_v50 = vpop.f32.mrb[83].mxu1  ;;  %v21459_v62 = vld [vmem:[%s23887_s2 + $0x540] sm:$0xff]   ;;  %v21464_v23 = vld [vmem:[%s23887_s2 + $0x508] sm:$0xff]   ;;  %s16368_s14 = sld [smem:[%s24751_s0 + %s22052_s11]]  }
 0xc28   :  { %18813 = vmatprep.subr.bf16.mxu0 %v21459_v62  ;;  %v21471_v50 = vld [vmem:[%s23887_s2 + $0x558] sm:$0xff]   ;;  %v21365_v62 = vld [vmem:[%s23887_s2 + $0x1c8] sm:$0xff]  }
 0xc29   :  { %v9961_v41 = vmul.f32 1.442695, %v9960_v47  ;;  %9958 = vst [vmem:[%s16396_s19] sm:$0xff] %v9954_v37  ;;  %18814 = vmatpush3.bf16.msra.mxu0 %v21460_v19  ;;  %v21467_v47 = vld [vmem:[%s23887_s2 + $0x550] sm:$0xff]   ;;  %v21366_v19 = vld [vmem:[%s23887_s2 + $0x188] sm:$0xff]   ;;  %s16397_s19 = sld [smem:[%s24751_s0 + %s22053_s15]]  }
 0xc2a   :  { %18815 = vmatprep.subr.bf16.mxu0 %v21463_v36  ;;  %v21468_v37 = vld [vmem:[%s23887_s2 + $0x510] sm:$0xff]  }
 0xc2b   :  { %22009 = vpow2.f32 %v9961_v41  ;;  %v21472_v41 = vld [vmem:[%s23887_s2 + $0x518] sm:$0xff]   ;;  %v21369_v36 = vld [vmem:[%s23887_s2 + $0x1d0] sm:$0xff]  }
 0xc2d   :  { %18816 = vmatpush3.bf16.msra.mxu0 %v21464_v23  ;;  %v21496_v23 = vld [vmem:[%s23887_s2 + $0x608] sm:$0xff]  }
 0xc2e   :  { %18817 = vmatprep.subr.bf16.mxu0 %v21467_v47  ;;  %v21500_v47 = vld [vmem:[%s23887_s2 + $0x610] sm:$0xff]  }
 0xc31   :  { %18818 = vmatpush3.bf16.msra.mxu0 %v21468_v37  ;;  %v21378_v37 = vld [vmem:[%s23887_s2 + $0x1a0] sm:$0xff]  }
 0xc32   :  { %18819 = vmatprep.subr.bf16.mxu0 %v21471_v50  ;;  %v21381_v50 = vld [vmem:[%s23887_s2 + $0x1e8] sm:$0xff]  }
 0xc35   :  { %v22010_v11 = vpop.eup %22009  ;;  %18820 = vmatpush3.bf16.msra.mxu0 %v21472_v41  ;;  %v21382_v41 = vld [vmem:[%s23887_s2 + $0x1a8] sm:$0xff]  }
 0xc36   :  { %v9963_v28 = vmul.f32 %v22010_v11, %v9959_v12  ;;  %18821 = vmatprep.subr.bf16.mxu0 %v21475_v5  ;;  %v21479_v12 = vld [vmem:[%s23887_s2 + $0x568] sm:$0xff]   ;;  %v21385_v5 = vld [vmem:[%s23887_s2 + $0x1f0] sm:$0xff]  }
 0xc37   :  { %v21480_v11 = vld [vmem:[%s23887_s2 + $0x528] sm:$0xff]  }
 0xc38   :  { %v9964_v25 = vadd.f32 %v9963_v28, %v9951_v22  ;;  %v21337_v22 = vld [vmem:[%s23887_s2 + $0xd0] sm:$0xff]  }
 0xc39   :  { %18822 = vmatpush3.bf16.msra.mxu0 %v21476_v9  ;;  %v21483_v28 = vld [vmem:[%s23887_s2 + $0x570] sm:$0xff]  }
 0xc3a   :  { %v10877_v38 = vpack.c.bf16 %v9964_v25, %v9964_v25  ;;  %18823 = vmatprep.subr.bf16.mxu0 %v21479_v12  ;;  %v21484_v25 = vld [vmem:[%s23887_s2 + $0x530] sm:$0xff]   ;;  %v21389_v12 = vld [vmem:[%s23887_s2 + $0x1f8] sm:$0xff]  }
 0xc3b   :  { %v21386_v9 = vld [vmem:[%s23887_s2 + $0x1b0] sm:$0xff]  }
 0xc3c   :  { %19286 = vmatmul.mubr.bf16.vlgmr.msra.gmra.mrb[84].mxu1 %v10877_v38  ;;  %v21362_v38 = vld [vmem:[%s23887_s2 + $0x180] sm:$0xff]  }
 0xc3d   :  { %18616 = vmatpush3.bf16.msra.mxu1 %v21330_v55  ;;  %13790 = vmatprep.mubr.bf16.mxu1 %v22142_v60  ;;  %v21341_v60 = vld [vmem:[%s23887_s2 + $0xd8] sm:$0xff]  }
 0xc3e   :  { %18617 = vmatprep.subr.bf16.mxu1 %v21333_v56  ;;  %18824 = vmatpush3.bf16.msra.mxu0 %v21480_v11  ;;  %v21358_v55 = vld [vmem:[%s23887_s2 + $0xb8] sm:$0xff]  }
 0xc3f   :  { %18825 = vmatprep.subr.bf16.mxu0 %v21483_v28  ;;  %v21488_v56 = vld [vmem:[%s23887_s2 + $0x538] sm:$0xff]   ;;  %v21393_v28 = vld [vmem:[%s23887_s2 + $0x2c0] sm:$0xff]  }
 0xc40   :  { %v21390_v11 = vld [vmem:[%s23887_s2 + $0x1b8] sm:$0xff]  }
 0xc41   :  { %18618 = vmatpush3.bf16.msra.mxu1 %v21334_v42  ;;  %v21491_v42 = vld [vmem:[%s23887_s2 + $0x640] sm:$0xff]  }
 0xc42   :  { %18619 = vmatprep.subr.bf16.mxu1 %v21337_v22  ;;  %18826 = vmatpush3.bf16.msra.mxu0 %v21484_v25  ;;  %v21492_v22 = vld [vmem:[%s23887_s2 + $0x600] sm:$0xff]  }
 0xc43   :  { %18827 = vmatprep.subr.bf16.mxu0 %v21487_v53  ;;  %v21394_v25 = vld [vmem:[%s23887_s2 + $0x280] sm:$0xff]   ;;  %v21397_v53 = vld [vmem:[%s23887_s2 + $0x2c8] sm:$0xff]  }
 0xc45   :  { %18620 = vmatpush3.bf16.msra.mxu1 %v21338_v43  ;;  %v21370_v43 = vld [vmem:[%s23887_s2 + $0x190] sm:$0xff]  }
 0xc46   :  { %18621 = vmatprep.subr.bf16.mxu1 %v21341_v60  ;;  %18828 = vmatpush3.bf16.msra.mxu0 %v21488_v56  ;;  %v21499_v60 = vld [vmem:[%s23887_s2 + $0x650] sm:$0xff]   ;;  %v21398_v56 = vld [vmem:[%s23887_s2 + $0x288] sm:$0xff]  }
 0xc47   :  { %18857 = vmatprep.subr.bf16.mxu0 %v21491_v42  ;;  %v21401_v42 = vld [vmem:[%s23887_s2 + $0x2d0] sm:$0xff]  }
 0xc49   :  { %18622 = vmatpush3.bf16.msra.mxu1 %v21342_v33  ;;  %14151 = vmatmul.mubr.bf16.vlgmr.msra.gmra.mrb[100].mxu0 %v22665_v44  ;;  %v21374_v44 = vld [vmem:[%s23887_s2 + $0x198] sm:$0xff]  }
 0xc4a   :  { %18623 = vmatprep.subr.bf16.mxu1 %v21345_v35  ;;  %18858 = vmatpush3.bf16.msra.mxu0 %v21492_v22  ;;  %v21503_v33 = vld [vmem:[%s23887_s2 + $0x658] sm:$0xff]   ;;  %v21528_v22 = vld [vmem:[%s23887_s2 + $0x708] sm:$0xff]  }
 0xc4b   :  { %14230 = vmatprep.mubr.bf16.mxu0 %v22670_v49  ;;  %v21377_v49 = vld [vmem:[%s23887_s2 + $0x1e0] sm:$0xff]   ;;  %v21504_v35 = vld [vmem:[%s23887_s2 + $0x618] sm:$0xff]  }
 0xc4d   :  { %18624 = vmatpush3.bf16.msra.mxu1 %v21346_v45  ;;  %v21507_v45 = vld [vmem:[%s23887_s2 + $0x660] sm:$0xff]  }
 0xc4e   :  { %18625 = vmatprep.subr.bf16.mxu1 %v21349_v3  ;;  %v21508_v3 = vld [vmem:[%s23887_s2 + $0x620] sm:$0xff]  }
 0xc51   :  { %18626 = vmatpush3.bf16.msra.mxu1 %v21350_v2  ;;  %v21511_v2 = vld [vmem:[%s23887_s2 + $0x668] sm:$0xff]  }
 0xc52   :  { %18627 = vmatprep.subr.bf16.mxu1 %v21353_v61  ;;  %v21512_v61 = vld [vmem:[%s23887_s2 + $0x628] sm:$0xff]  }
 0xc55   :  { %18628 = vmatpush3.bf16.msra.mxu1 %v21354_v40  ;;  %v21515_v40 = vld [vmem:[%s23887_s2 + $0x670] sm:$0xff]  }
 0xc56   :  { %18629 = vmatprep.subr.bf16.mxu1 %v21357_v0  ;;  %v21516_v0 = vld [vmem:[%s23887_s2 + $0x630] sm:$0xff]  }
 0xc59   :  { %18630 = vmatpush3.bf16.msra.mxu1 %v21358_v55  ;;  %v21519_v55 = vld [vmem:[%s23887_s2 + $0x678] sm:$0xff]  }
 0xc5a   :  { %18659 = vmatprep.subr.bf16.mxu1 %v21361_v10  ;;  %v21520_v10 = vld [vmem:[%s23887_s2 + $0x638] sm:$0xff]  }
 0xc5c   :  { %13791 = vmatmul.mubr.bf16.vlgmr.msra.gmra.mrb[88].mxu1 %v22164_v16  ;;  %v21495_v16 = vld [vmem:[%s23887_s2 + $0x648] sm:$0xff]  }
 0xc5d   :  { %18660 = vmatpush3.bf16.msra.mxu1 %v21362_v38  ;;  %13870 = vmatprep.mubr.bf16.mxu1 %v22209_v46  ;;  %v21373_v46 = vld [vmem:[%s23887_s2 + $0x1d8] sm:$0xff]   ;;  %v21523_v38 = vld [vmem:[%s23887_s2 + $0x740] sm:$0xff]  }
 0xc5e   :  { %18661 = vmatprep.subr.bf16.mxu1 %v21365_v62  ;;  %18859 = vmatprep.subr.bf16.mxu0 %v21495_v16  ;;  %v21524_v62 = vld [vmem:[%s23887_s2 + $0x700] sm:$0xff]   ;;  %v21532_v16 = vld [vmem:[%s23887_s2 + $0x710] sm:$0xff]  }
 0xc5f   :  { %18860 = vmatpush3.bf16.msra.mxu0 %v21496_v23  ;;  %v21410_v23 = vld [vmem:[%s23887_s2 + $0x2a0] sm:$0xff]  }
 0xc60   :  { %18861 = vmatprep.subr.bf16.mxu0 %v21499_v60  ;;  %v21413_v60 = vld [vmem:[%s23887_s2 + $0x2e8] sm:$0xff]  }
 0xc61   :  { %18662 = vmatpush3.bf16.msra.mxu1 %v21366_v19  ;;  %v21402_v19 = vld [vmem:[%s23887_s2 + $0x290] sm:$0xff]  }
 0xc62   :  { %18663 = vmatprep.subr.bf16.mxu1 %v21369_v36  ;;  %v21531_v36 = vld [vmem:[%s23887_s2 + $0x750] sm:$0xff]  }
 0xc63   :  { %18862 = vmatpush3.bf16.msra.mxu0 %v21500_v47  ;;  %v21414_v47 = vld [vmem:[%s23887_s2 + $0x2a8] sm:$0xff]  }
 0xc64   :  { %18863 = vmatprep.subr.bf16.mxu0 %v21503_v33  ;;  %v21540_v33 = vld [vmem:[%s23887_s2 + $0x720] sm:$0xff]  }
 0xc65   :  { %18664 = vmatpush3.bf16.msra.mxu1 %v21370_v43  ;;  %v21535_v43 = vld [vmem:[%s23887_s2 + $0x758] sm:$0xff]  }
 0xc66   :  { %18665 = vmatprep.subr.bf16.mxu1 %v21373_v46  ;;  %v21536_v46 = vld [vmem:[%s23887_s2 + $0x718] sm:$0xff]  }
 0xc67   :  { %18864 = vmatpush3.bf16.msra.mxu0 %v21504_v35 }
 0xc68   :  { %18865 = vmatprep.subr.bf16.mxu0 %v21507_v45 }
 0xc69   :  { %18666 = vmatpush3.bf16.msra.mxu1 %v21374_v44  ;;  %v21539_v44 = vld [vmem:[%s23887_s2 + $0x760] sm:$0xff]  }
 0xc6a   :  { %18667 = vmatprep.subr.bf16.mxu1 %v21377_v49  ;;  %v18609_v49 = vpop.f32.mrb[80].mxu0 }
 0xc6b   :  { %18866 = vmatpush3.bf16.msra.mxu0 %v21508_v3  ;;  %v18610_v35 = vpop.f32.mrb[81].mxu0 }
 0xc6c   :  { %18867 = vmatprep.subr.bf16.mxu0 %v21511_v2  ;;  %v18612_v45 = vpop.f32.mrb[82].mxu0  ;;  %v21544_v2 = vld [vmem:[%s23887_s2 + $0x728] sm:$0xff]  }
 0xc6d   :  { %18668 = vmatpush3.bf16.msra.mxu1 %v21378_v37  ;;  %v21417_v37 = vld [vmem:[%s23887_s2 + $0x2f0] sm:$0xff]   ;;  %v18613_v3 = vpop.f32.mrb[83].mxu0 }
 0xc6e   :  { %18669 = vmatprep.subr.bf16.mxu1 %v21381_v50  ;;  %v24110_v50 = vadd.f32 %v18610_v35, %v18609_v49  ;;  %v21453_v49 = vld [vmem:[%s23887_s2 + $0x3f8] sm:$0xff]  }
 0xc6f   :  { %18868 = vmatpush3.bf16.msra.mxu0 %v21512_v61  ;;  %v21547_v61 = vld [vmem:[%s23887_s2 + $0x770] sm:$0xff]   ;;  %v21454_v3 = vld [vmem:[%s23887_s2 + $0x3b8] sm:$0xff]  }
 0xc70   :  { %18869 = vmatprep.subr.bf16.mxu0 %v21515_v40  ;;  %v21548_v40 = vld [vmem:[%s23887_s2 + $0x730] sm:$0xff]  }
 0xc71   :  { %18670 = vmatpush3.bf16.msra.mxu1 %v21382_v41  ;;  %v21543_v41 = vld [vmem:[%s23887_s2 + $0x768] sm:$0xff]  }
 0xc72   :  { %18671 = vmatprep.subr.bf16.mxu1 %v21385_v5  ;;  %v21418_v5 = vld [vmem:[%s23887_s2 + $0x2b0] sm:$0xff]  }
 0xc73   :  { %18870 = vmatpush3.bf16.msra.mxu0 %v21516_v0  ;;  %v21551_v0 = vld [vmem:[%s23887_s2 + $0x778] sm:$0xff]  }
 0xc74   :  { %18871 = vmatprep.subr.bf16.mxu0 %v21519_v55  ;;  %v21552_v55 = vld [vmem:[%s23887_s2 + $0x738] sm:$0xff]  }
 0xc75   :  { %18672 = vmatpush3.bf16.msra.mxu1 %v21386_v9  ;;  %v21421_v9 = vld [vmem:[%s23887_s2 + $0x2f8] sm:$0xff]  }
 0xc76   :  { %18673 = vmatprep.subr.bf16.mxu1 %v21389_v12  ;;  %v21422_v12 = vld [vmem:[%s23887_s2 + $0x2b8] sm:$0xff]  }
 0xc77   :  { %18872 = vmatpush3.bf16.msra.mxu0 %v21520_v10  ;;  %v21555_v10 = vld [vmem:[%s23887_s2 + $0x840] sm:$0xff]  }
 0xc78   :  { %18901 = vmatprep.subr.bf16.mxu0 %v21523_v38  ;;  %v21556_v38 = vld [vmem:[%s23887_s2 + $0x800] sm:$0xff]  }
 0xc79   :  { %18674 = vmatpush3.bf16.msra.mxu1 %v21390_v11  ;;  %v21425_v11 = vld [vmem:[%s23887_s2 + $0x3c0] sm:$0xff]  }
 0xc7a   :  { %18703 = vmatprep.subr.bf16.mxu1 %v21393_v28  ;;  %14231 = vmatmul.mubr.bf16.vlgmr.msra.gmra.mrb[104].mxu0 %v22761_v58  ;;  %v21406_v58 = vld [vmem:[%s23887_s2 + $0x298] sm:$0xff]   ;;  %v21426_v28 = vld [vmem:[%s23887_s2 + $0x380] sm:$0xff]  }
 0xc7b   :  { %18902 = vmatpush3.bf16.msra.mxu0 %v21524_v62  ;;  %14310 = vmatprep.mubr.bf16.mxu0 %v22766_v1  ;;  %v21409_v1 = vld [vmem:[%s23887_s2 + $0x2e0] sm:$0xff]   ;;  %v21434_v62 = vld [vmem:[%s23887_s2 + $0x390] sm:$0xff]  }
 0xc7c   :  { %13871 = vmatmul.mubr.bf16.vlgmr.msra.gmra.mrb[92].mxu1 %v22254_v26  ;;  %v21527_v26 = vld [vmem:[%s23887_s2 + $0x748] sm:$0xff]  }
 0xc7d   :  { %18704 = vmatpush3.bf16.msra.mxu1 %v21394_v25  ;;  %13950 = vmatprep.mubr.bf16.mxu1 %v22266_v32  ;;  %v21405_v32 = vld [vmem:[%s23887_s2 + $0x2d8] sm:$0xff]   ;;  %v21429_v25 = vld [vmem:[%s23887_s2 + $0x3c8] sm:$0xff]  }
 0xc7e   :  { %18705 = vmatprep.subr.bf16.mxu1 %v21397_v53  ;;  %18903 = vmatprep.subr.bf16.mxu0 %v21527_v26  ;;  %v21430_v53 = vld [vmem:[%s23887_s2 + $0x388] sm:$0xff]   ;;  %v21563_v26 = vld [vmem:[%s23887_s2 + $0x850] sm:$0xff]  }
 0xc7f   :  { %18904 = vmatpush3.bf16.msra.mxu0 %v21528_v22  ;;  %v21567_v22 = vld [vmem:[%s23887_s2 + $0x858] sm:$0xff]  }
 0xc80   :  { %18905 = vmatprep.subr.bf16.mxu0 %v21531_v36  ;;  %v21568_v36 = vld [vmem:[%s23887_s2 + $0x818] sm:$0xff]  }
 0xc81   :  { %18706 = vmatpush3.bf16.msra.mxu1 %v21398_v56  ;;  %v21433_v56 = vld [vmem:[%s23887_s2 + $0x3d0] sm:$0xff]  }
 0xc82   :  { %18707 = vmatprep.subr.bf16.mxu1 %v21401_v42  ;;  %v21560_v42 = vld [vmem:[%s23887_s2 + $0x808] sm:$0xff]  }
 0xc83   :  { %18906 = vmatpush3.bf16.msra.mxu0 %v21532_v16  ;;  %v21571_v16 = vld [vmem:[%s23887_s2 + $0x860] sm:$0xff]  }
 0xc84   :  { %18907 = vmatprep.subr.bf16.mxu0 %v21535_v43  ;;  %v21572_v43 = vld [vmem:[%s23887_s2 + $0x820] sm:$0xff]  }
 0xc85   :  { %18708 = vmatpush3.bf16.msra.mxu1 %v21402_v19  ;;  %v21564_v19 = vld [vmem:[%s23887_s2 + $0x810] sm:$0xff]  }
 0xc86   :  { %18709 = vmatprep.subr.bf16.mxu1 %v21405_v32  ;;  %v21442_v32 = vld [vmem:[%s23887_s2 + $0x3a0] sm:$0xff]  }
 0xc87   :  { %18908 = vmatpush3.bf16.msra.mxu0 %v21536_v46  ;;  %v21575_v46 = vld [vmem:[%s23887_s2 + $0x868] sm:$0xff]  }
 0xc88   :  { %18909 = vmatprep.subr.bf16.mxu0 %v21539_v44  ;;  %v18653_v44 = vpop.f32.mrb[84].mxu0 }
 0xc89   :  { %18710 = vmatpush3.bf16.msra.mxu1 %v21406_v58  ;;  %v21445_v58 = vld [vmem:[%s23887_s2 + $0x3e8] sm:$0xff]  }
 0xc8a   :  { %18711 = vmatprep.subr.bf16.mxu1 %v21409_v1  ;;  %v21446_v1 = vld [vmem:[%s23887_s2 + $0x3a8] sm:$0xff]  }
 0xc8b   :  { %18910 = vmatpush3.bf16.msra.mxu0 %v21540_v33  ;;  %v18654_v33 = vpop.f32.mrb[85].mxu0 }
 0xc8c   :  { %18911 = vmatprep.subr.bf16.mxu0 %v21543_v41  ;;  %v18656_v35 = vpop.f32.mrb[86].mxu0  ;;  %v21579_v41 = vld [vmem:[%s23887_s2 + $0x870] sm:$0xff]  }
 0xc8d   :  { %18712 = vmatpush3.bf16.msra.mxu1 %v21410_v23  ;;  %v21449_v23 = vld [vmem:[%s23887_s2 + $0x3f0] sm:$0xff]   ;;  %v18657_v45 = vpop.f32.mrb[87].mxu0  ;;  %v21616_v35 = vld [vmem:[%s23887_s2 + $0x938] sm:$0xff]  }
 0xc8e   :  { %18713 = vmatprep.subr.bf16.mxu1 %v21413_v60  ;;  %v21450_v60 = vld [vmem:[%s23887_s2 + $0x3b0] sm:$0xff]   ;;  %v21493_v45 = vld [vmem:[%s23887_s2 + $0x5c8] sm:$0xff]  }
 0xc8f   :  { %18912 = vmatpush3.bf16.msra.mxu0 %v21544_v2  ;;  %v21457_v2 = vld [vmem:[%s23887_s2 + $0x4c0] sm:$0xff]  }
 0xc90   :  { %18913 = vmatprep.subr.bf16.mxu0 %v21547_v61  ;;  %v21458_v61 = vld [vmem:[%s23887_s2 + $0x480] sm:$0xff]  }
 0xc91   :  { %18714 = vmatpush3.bf16.msra.mxu1 %v21414_v47  ;;  %v21576_v47 = vld [vmem:[%s23887_s2 + $0x828] sm:$0xff]  }
 0xc92   :  { %18715 = vmatprep.subr.bf16.mxu1 %v21417_v37  ;;  %v24152_v37 = vadd.f32 %v18654_v33, %v18653_v44  ;;  %v21612_v44 = vld [vmem:[%s23887_s2 + $0x930] sm:$0xff]   ;;  %v21490_v33 = vld [vmem:[%s23887_s2 + $0x580] sm:$0xff]  }
 0xc93   :  { %18914 = vmatpush3.bf16.msra.mxu0 %v21548_v40  ;;  %v21461_v40 = vld [vmem:[%s23887_s2 + $0x4c8] sm:$0xff]  }
 0xc94   :  { %18915 = vmatprep.subr.bf16.mxu0 %v21551_v0  ;;  %v21462_v0 = vld [vmem:[%s23887_s2 + $0x488] sm:$0xff]  }
 0xc95   :  { %18716 = vmatpush3.bf16.msra.mxu1 %v21418_v5  ;;  %v21580_v5 = vld [vmem:[%s23887_s2 + $0x830] sm:$0xff]  }
 0xc96   :  { %18717 = vmatprep.subr.bf16.mxu1 %v21421_v9  ;;  %v21583_v9 = vld [vmem:[%s23887_s2 + $0x878] sm:$0xff]  }
 0xc97   :  { %18916 = vmatpush3.bf16.msra.mxu0 %v21552_v55  ;;  %v21465_v55 = vld [vmem:[%s23887_s2 + $0x4d0] sm:$0xff]  }
 0xc98   :  { %18945 = vmatprep.subr.bf16.mxu0 %v21555_v10  ;;  %v21592_v10 = vld [vmem:[%s23887_s2 + $0x908] sm:$0xff]  }
 0xc99   :  { %18718 = vmatpush3.bf16.msra.mxu1 %v21422_v12  ;;  %v21584_v12 = vld [vmem:[%s23887_s2 + $0x838] sm:$0xff]  }
 0xc9a   :  { %18747 = vmatprep.subr.bf16.mxu1 %v21425_v11  ;;  %14311 = vmatmul.mubr.bf16.vlgmr.msra.gmra.mrb[108].mxu0 %v22857_v39  ;;  %v21438_v39 = vld [vmem:[%s23887_s2 + $0x398] sm:$0xff]   ;;  %v21587_v11 = vld [vmem:[%s23887_s2 + $0x940] sm:$0xff]  }
 0xc9b   :  { %18946 = vmatpush3.bf16.msra.mxu0 %v21556_v38  ;;  %14390 = vmatprep.mubr.bf16.mxu0 %v22862_v7  ;;  %v21441_v7 = vld [vmem:[%s23887_s2 + $0x3e0] sm:$0xff]   ;;  %v21596_v38 = vld [vmem:[%s23887_s2 + $0x910] sm:$0xff]  }
 0xc9c   :  { %13951 = vmatmul.mubr.bf16.vlgmr.msra.gmra.mrb[96].mxu1 %v22348_v48  ;;  %v21559_v48 = vld [vmem:[%s23887_s2 + $0x848] sm:$0xff]  }
 0xc9d   :  { %18748 = vmatpush3.bf16.msra.mxu1 %v21426_v28  ;;  %14030 = vmatprep.mubr.bf16.mxu1 %v22354_v52  ;;  %v21437_v52 = vld [vmem:[%s23887_s2 + $0x3d8] sm:$0xff]   ;;  %v21588_v28 = vld [vmem:[%s23887_s2 + $0x900] sm:$0xff]  }
 0xc9e   :  { %18749 = vmatprep.subr.bf16.mxu1 %v21429_v25  ;;  %18947 = vmatprep.subr.bf16.mxu0 %v21559_v48  ;;  %v21466_v25 = vld [vmem:[%s23887_s2 + $0x490] sm:$0xff]   ;;  %v21474_v48 = vld [vmem:[%s23887_s2 + $0x4a0] sm:$0xff]  }
 0xc9f   :  { %18948 = vmatpush3.bf16.msra.mxu0 %v21560_v42  ;;  %v21477_v42 = vld [vmem:[%s23887_s2 + $0x4e8] sm:$0xff]  }
 0xca0   :  { %18949 = vmatprep.subr.bf16.mxu0 %v21563_v26  ;;  %v21478_v26 = vld [vmem:[%s23887_s2 + $0x4a8] sm:$0xff]  }
 0xca1   :  { %18750 = vmatpush3.bf16.msra.mxu1 %v21430_v53  ;;  %v21595_v53 = vld [vmem:[%s23887_s2 + $0x950] sm:$0xff]  }
 0xca2   :  { %18751 = vmatprep.subr.bf16.mxu1 %v21433_v56  ;;  %v21599_v56 = vld [vmem:[%s23887_s2 + $0x958] sm:$0xff]  }
 0xca3   :  { %18950 = vmatpush3.bf16.msra.mxu0 %v21564_v19  ;;  %v21481_v19 = vld [vmem:[%s23887_s2 + $0x4f0] sm:$0xff]  }
 0xca4   :  { %18951 = vmatprep.subr.bf16.mxu0 %v21567_v22  ;;  %v21482_v22 = vld [vmem:[%s23887_s2 + $0x4b0] sm:$0xff]  }
 0xca5   :  { %18752 = vmatpush3.bf16.msra.mxu1 %v21434_v62  ;;  %v21600_v62 = vld [vmem:[%s23887_s2 + $0x918] sm:$0xff]  }
 0xca6   :  { %18753 = vmatprep.subr.bf16.mxu1 %v21437_v52  ;;  %v21603_v52 = vld [vmem:[%s23887_s2 + $0x960] sm:$0xff]  }
 0xca7   :  { %18952 = vmatpush3.bf16.msra.mxu0 %v21568_v36  ;;  %v21608_v36 = vld [vmem:[%s23887_s2 + $0x928] sm:$0xff]  }
 0xca8   :  { %18953 = vmatprep.subr.bf16.mxu0 %v21571_v16 }
 0xca9   :  { %18754 = vmatpush3.bf16.msra.mxu1 %v21438_v39  ;;  %v21604_v39 = vld [vmem:[%s23887_s2 + $0x920] sm:$0xff]  }
 0xcaa   :  { %18755 = vmatprep.subr.bf16.mxu1 %v21441_v7  ;;  %v21607_v7 = vld [vmem:[%s23887_s2 + $0x968] sm:$0xff]  }
 0xcab   :  { %18954 = vmatpush3.bf16.msra.mxu0 %v21572_v43 }
 0xcac   :  { %18955 = vmatprep.subr.bf16.mxu0 %v21575_v46  ;;  %v21611_v46 = vld [vmem:[%s23887_s2 + $0x970] sm:$0xff]  }
 0xcad   :  { %18756 = vmatpush3.bf16.msra.mxu1 %v21442_v32  ;;  %v18697_v32 = vpop.f32.mrb[88].mxu0 }
 0xcae   :  { %18757 = vmatprep.subr.bf16.mxu1 %v21445_v58  ;;  %v21485_v58 = vld [vmem:[%s23887_s2 + $0x4f8] sm:$0xff]   ;;  %v18698_v16 = vpop.f32.mrb[89].mxu0 }
 0xcaf   :  { %18956 = vmatpush3.bf16.msra.mxu0 %v21576_v47  ;;  %v18700_v43 = vpop.f32.mrb[90].mxu0  ;;  %v21489_v47 = vld [vmem:[%s23887_s2 + $0x5c0] sm:$0xff]  }
 0xcb0   :  { %18957 = vmatprep.subr.bf16.mxu0 %v21579_v41  ;;  %v21619_v41 = vld [vmem:[%s23887_s2 + $0xa40] sm:$0xff]   ;;  %v21526_v43 = vld [vmem:[%s23887_s2 + $0x688] sm:$0xff]  }
 0xcb1   :  { %18758 = vmatpush3.bf16.msra.mxu1 %v21446_v1  ;;  %v24190_v1 = vadd.f32 %v18698_v16, %v18697_v32  ;;  %v21522_v32 = vld [vmem:[%s23887_s2 + $0x680] sm:$0xff]  }
 0xcb2   :  { %18759 = vmatprep.subr.bf16.mxu1 %v21449_v23  ;;  %v18701_v23 = vpop.f32.mrb[91].mxu0  ;;  %v21651_v16 = vld [vmem:[%s23887_s2 + $0xb40] sm:$0xff]  }
 0xcb3   :  { %18958 = vmatpush3.bf16.msra.mxu0 %v21580_v5  ;;  %v21620_v5 = vld [vmem:[%s23887_s2 + $0xa00] sm:$0xff]  }
 0xcb4   :  { %18959 = vmatprep.subr.bf16.mxu0 %v21583_v9  ;;  %v21498_v9 = vld [vmem:[%s23887_s2 + $0x590] sm:$0xff]   ;;  %v21652_v23 = vld [vmem:[%s23887_s2 + $0xb00] sm:$0xff]  }
 0xcb5   :  { %18760 = vmatpush3.bf16.msra.mxu1 %v21450_v60  ;;  %v21486_v60 = vld [vmem:[%s23887_s2 + $0x4b8] sm:$0xff]  }
 0xcb6   :  { %18761 = vmatprep.subr.bf16.mxu1 %v21453_v49  ;;  %v21615_v49 = vld [vmem:[%s23887_s2 + $0x978] sm:$0xff]  }
 0xcb7   :  { %18960 = vmatpush3.bf16.msra.mxu0 %v21584_v12  ;;  %v21627_v12 = vld [vmem:[%s23887_s2 + $0xa50] sm:$0xff]  }
 0xcb8   :  { %18989 = vmatprep.subr.bf16.mxu0 %v21587_v11  ;;  %v21631_v11 = vld [vmem:[%s23887_s2 + $0xa58] sm:$0xff]  }
 0xcb9   :  { %18762 = vmatpush3.bf16.msra.mxu1 %v21454_v3  ;;  %v21494_v3 = vld [vmem:[%s23887_s2 + $0x588] sm:$0xff]  }
 0xcba   :  { %18791 = vmatprep.subr.bf16.mxu1 %v21457_v2  ;;  %14391 = vmatmul.mubr.bf16.vlgmr.msra.gmra.mrb[112].mxu0 %v22953_v30  ;;  %v21470_v30 = vld [vmem:[%s23887_s2 + $0x498] sm:$0xff]   ;;  %v21497_v2 = vld [vmem:[%s23887_s2 + $0x5d0] sm:$0xff]  }
 0xcbb   :  { %18990 = vmatpush3.bf16.msra.mxu0 %v21588_v28  ;;  %14470 = vmatprep.mubr.bf16.mxu0 %v22958_v63  ;;  %v21473_v63 = vld [vmem:[%s23887_s2 + $0x4e0] sm:$0xff]   ;;  %v21632_v28 = vld [vmem:[%s23887_s2 + $0xa18] sm:$0xff]  }
 0xcbc   :  { %14031 = vmatmul.mubr.bf16.vlgmr.msra.gmra.mrb[100].mxu1 %v22442_v51  ;;  %v21591_v51 = vld [vmem:[%s23887_s2 + $0x948] sm:$0xff]  }
 0xcbd   :  { %18792 = vmatpush3.bf16.msra.mxu1 %v21458_v61  ;;  %14110 = vmatprep.mubr.bf16.mxu1 %v22448_v18  ;;  %v21469_v18 = vld [vmem:[%s23887_s2 + $0x4d8] sm:$0xff]   ;;  %v21624_v61 = vld [vmem:[%s23887_s2 + $0xa08] sm:$0xff]  }
 0xcbe   :  { %18793 = vmatprep.subr.bf16.mxu1 %v21461_v40  ;;  %18991 = vmatprep.subr.bf16.mxu0 %v21591_v51  ;;  %v21628_v40 = vld [vmem:[%s23887_s2 + $0xa10] sm:$0xff]   ;;  %v21635_v51 = vld [vmem:[%s23887_s2 + $0xa60] sm:$0xff]  }
 0xcbf   :  { %18992 = vmatpush3.bf16.msra.mxu0 %v21592_v10  ;;  %v21636_v10 = vld [vmem:[%s23887_s2 + $0xa20] sm:$0xff]  }
 0xcc0   :  { %18993 = vmatprep.subr.bf16.mxu0 %v21595_v53  ;;  %v21639_v53 = vld [vmem:[%s23887_s2 + $0xa68] sm:$0xff]  }
 0xcc1   :  { %18794 = vmatpush3.bf16.msra.mxu1 %v21462_v0  ;;  %v21506_v0 = vld [vmem:[%s23887_s2 + $0x5a0] sm:$0xff]  }
 0xcc2   :  { %18795 = vmatprep.subr.bf16.mxu1 %v21465_v55  ;;  %v21509_v55 = vld [vmem:[%s23887_s2 + $0x5e8] sm:$0xff]  }
 0xcc3   :  { %18994 = vmatpush3.bf16.msra.mxu0 %v21596_v38  ;;  %v18741_v38 = vpop.f32.mrb[92].mxu0 }
 0xcc4   :  { %18995 = vmatprep.subr.bf16.mxu0 %v21599_v56  ;;  %v21517_v56 = vld [vmem:[%s23887_s2 + $0x5f8] sm:$0xff]  }
 0xcc5   :  { %18796 = vmatpush3.bf16.msra.mxu1 %v21466_v25  ;;  %v21510_v25 = vld [vmem:[%s23887_s2 + $0x5a8] sm:$0xff]  }
 0xcc6   :  { %18797 = vmatprep.subr.bf16.mxu1 %v21469_v18  ;;  %v21513_v18 = vld [vmem:[%s23887_s2 + $0x5f0] sm:$0xff]  }
 0xcc7   :  { %18996 = vmatpush3.bf16.msra.mxu0 %v21600_v62 }
 0xcc8   :  { %18997 = vmatprep.subr.bf16.mxu0 %v21603_v52 }
 0xcc9   :  { %18798 = vmatpush3.bf16.msra.mxu1 %v21470_v30  ;;  %v21514_v30 = vld [vmem:[%s23887_s2 + $0x5b0] sm:$0xff]  }
 0xcca   :  { %18799 = vmatprep.subr.bf16.mxu1 %v21473_v63  ;;  %v21640_v63 = vld [vmem:[%s23887_s2 + $0xa28] sm:$0xff]  }
 0xccb   :  { %18998 = vmatpush3.bf16.msra.mxu0 %v21604_v39  ;;  %v21518_v39 = vld [vmem:[%s23887_s2 + $0x5b8] sm:$0xff]  }
 0xccc   :  { %18999 = vmatprep.subr.bf16.mxu0 %v21607_v7  ;;  %v21521_v7 = vld [vmem:[%s23887_s2 + $0x6c0] sm:$0xff]  }
 0xccd   :  { %18800 = vmatpush3.bf16.msra.mxu1 %v21474_v48  ;;  %v18742_v48 = vpop.f32.mrb[93].mxu0 }
 0xcce   :  { %18801 = vmatprep.subr.bf16.mxu1 %v21477_v42  ;;  %v24228_v62 = vadd.f32 %v18742_v48, %v18741_v38  ;;  %v18744_v42 = vpop.f32.mrb[94].mxu0  ;;  %v21679_v38 = vld [vmem:[%s23887_s2 + $0xb78] sm:$0xff]   ;;  %v21557_v48 = vld [vmem:[%s23887_s2 + $0x7c8] sm:$0xff]  }
 0xccf   :  { %19000 = vmatpush3.bf16.msra.mxu0 %v21608_v36  ;;  %v18745_v52 = vpop.f32.mrb[95].mxu0  ;;  %v21648_v36 = vld [vmem:[%s23887_s2 + $0xa38] sm:$0xff]   ;;  %v21683_v42 = vld [vmem:[%s23887_s2 + $0xc40] sm:$0xff]  }
 0xcd0   :  { %19001 = vmatprep.subr.bf16.mxu0 %v21611_v46  ;;  %v21529_v46 = vld [vmem:[%s23887_s2 + $0x6d0] sm:$0xff]   ;;  %v21558_v52 = vld [vmem:[%s23887_s2 + $0x788] sm:$0xff]  }
 0xcd1   :  { %18802 = vmatpush3.bf16.msra.mxu1 %v21478_v26  ;;  %v21643_v26 = vld [vmem:[%s23887_s2 + $0xa70] sm:$0xff]  }
 0xcd2   :  { %18803 = vmatprep.subr.bf16.mxu1 %v21481_v19  ;;  %v21644_v19 = vld [vmem:[%s23887_s2 + $0xa30] sm:$0xff]  }
 0xcd3   :  { %19002 = vmatpush3.bf16.msra.mxu0 %v21612_v44  ;;  %v21656_v44 = vld [vmem:[%s23887_s2 + $0xb08] sm:$0xff]  }
 0xcd4   :  { %19003 = vmatprep.subr.bf16.mxu0 %v21615_v49  ;;  %v21660_v49 = vld [vmem:[%s23887_s2 + $0xb10] sm:$0xff]  }
 0xcd5   :  { %18804 = vmatpush3.bf16.msra.mxu1 %v21482_v22  ;;  %v21647_v22 = vld [vmem:[%s23887_s2 + $0xa78] sm:$0xff]  }
 0xcd6   :  { %18805 = vmatprep.subr.bf16.mxu1 %v21485_v58  ;;  %v21525_v58 = vld [vmem:[%s23887_s2 + $0x6c8] sm:$0xff]  }
 0xcd7   :  { %19004 = vmatpush3.bf16.msra.mxu0 %v21616_v35  ;;  %v21538_v35 = vld [vmem:[%s23887_s2 + $0x6a0] sm:$0xff]  }
 0xcd8   :  { %19033 = vmatprep.subr.bf16.mxu0 %v21619_v41  ;;  %v21541_v41 = vld [vmem:[%s23887_s2 + $0x6e8] sm:$0xff]  }
 0xcd9   :  { %18806 = vmatpush3.bf16.msra.mxu1 %v21486_v60  ;;  %v21530_v60 = vld [vmem:[%s23887_s2 + $0x690] sm:$0xff]  }
 0xcda   :  { %18835 = vmatprep.subr.bf16.mxu1 %v21489_v47  ;;  %14471 = vmatmul.mubr.bf16.vlgmr.msra.gmra.mrb[116].mxu0 %v23049_v17  ;;  %v21502_v17 = vld [vmem:[%s23887_s2 + $0x598] sm:$0xff]   ;;  %v21659_v47 = vld [vmem:[%s23887_s2 + $0xb50] sm:$0xff]  }
 0xcdb   :  { %19034 = vmatpush3.bf16.msra.mxu0 %v21620_v5  ;;  %14550 = vmatprep.mubr.bf16.mxu0 %v23054_v31  ;;  %v21505_v31 = vld [vmem:[%s23887_s2 + $0x5e0] sm:$0xff]   ;;  %v21542_v5 = vld [vmem:[%s23887_s2 + $0x6a8] sm:$0xff]  }
 0xcdc   :  { %14111 = vmatmul.mubr.bf16.vlgmr.msra.gmra.mrb[104].mxu1 %v22538_v4  ;;  %v21623_v4 = vld [vmem:[%s23887_s2 + $0xa48] sm:$0xff]  }
 0xcdd   :  { %18836 = vmatpush3.bf16.msra.mxu1 %v21490_v33  ;;  %14190 = vmatprep.mubr.bf16.mxu1 %v22544_v8  ;;  %v21501_v8 = vld [vmem:[%s23887_s2 + $0x5d8] sm:$0xff]  }
 0xcde   :  { %18837 = vmatprep.subr.bf16.mxu1 %v21493_v45  ;;  %19035 = vmatprep.subr.bf16.mxu0 %v21623_v4  ;;  %v21663_v33 = vld [vmem:[%s23887_s2 + $0xb58] sm:$0xff]   ;;  %v21545_v4 = vld [vmem:[%s23887_s2 + $0x6f0] sm:$0xff]  }
 0xcdf   :  { %19036 = vmatpush3.bf16.msra.mxu0 %v21624_v61  ;;  %v21664_v45 = vld [vmem:[%s23887_s2 + $0xb18] sm:$0xff]  }
 0xce0   :  { %19037 = vmatprep.subr.bf16.mxu0 %v21627_v12  ;;  %v21671_v12 = vld [vmem:[%s23887_s2 + $0xb68] sm:$0xff]  }
 0xce1   :  { %18838 = vmatpush3.bf16.msra.mxu1 %v21494_v3  ;;  %v21667_v3 = vld [vmem:[%s23887_s2 + $0xb60] sm:$0xff]  }
 0xce2   :  { %18839 = vmatprep.subr.bf16.mxu1 %v21497_v2  ;;  %v21668_v2 = vld [vmem:[%s23887_s2 + $0xb20] sm:$0xff]  }
 0xce3   :  { %19038 = vmatpush3.bf16.msra.mxu0 %v21628_v40  ;;  %v21546_v40 = vld [vmem:[%s23887_s2 + $0x6b0] sm:$0xff]  }
 0xce4   :  { %19039 = vmatprep.subr.bf16.mxu0 %v21631_v11  ;;  %v21672_v11 = vld [vmem:[%s23887_s2 + $0xb28] sm:$0xff]  }
 0xce5   :  { %18840 = vmatpush3.bf16.msra.mxu1 %v21498_v9 }
 0xce6   :  { %18841 = vmatprep.subr.bf16.mxu1 %v21501_v8 }
 0xce7   :  { %19040 = vmatpush3.bf16.msra.mxu0 %v21632_v28  ;;  %v21549_v28 = vld [vmem:[%s23887_s2 + $0x6f8] sm:$0xff]  }
 0xce8   :  { %19041 = vmatprep.subr.bf16.mxu0 %v21635_v51 }
 0xce9   :  { %18842 = vmatpush3.bf16.msra.mxu1 %v21502_v17 }
 0xcea   :  { %18843 = vmatprep.subr.bf16.mxu1 %v21505_v31  ;;  %v18785_v31 = vpop.f32.mrb[96].mxu0 }
 0xceb   :  { %19042 = vmatpush3.bf16.msra.mxu0 %v21636_v10  ;;  %v21675_v10 = vld [vmem:[%s23887_s2 + $0xb70] sm:$0xff]  }
 0xcec   :  { %19043 = vmatprep.subr.bf16.mxu0 %v21639_v53  ;;  %v21676_v53 = vld [vmem:[%s23887_s2 + $0xb30] sm:$0xff]  }
 0xced   :  { %18844 = vmatpush3.bf16.msra.mxu1 %v21506_v0 }
 0xcee   :  { %18845 = vmatprep.subr.bf16.mxu1 %v21509_v55  ;;  %v18786_v55 = vpop.f32.mrb[97].mxu0 }
 0xcef   :  { %19044 = vmatpush3.bf16.msra.mxu0 %v21640_v63  ;;  %v18788_v51 = vpop.f32.mrb[98].mxu0  ;;  %v21554_v63 = vld [vmem:[%s23887_s2 + $0x780] sm:$0xff]  }
 0xcf0   :  { %19045 = vmatprep.subr.bf16.mxu0 %v21643_v26  ;;  %v21684_v26 = vld [vmem:[%s23887_s2 + $0xc00] sm:$0xff]  }
 0xcf1   :  { %18846 = vmatpush3.bf16.msra.mxu1 %v21510_v25  ;;  %v18789_v25 = vpop.f32.mrb[99].mxu0  ;;  %v24790_v51 = vld [vmem:[#allocation2_spill] sm:$0xff] }
 0xcf2   :  { %18847 = vmatprep.subr.bf16.mxu1 %v21513_v18  ;;  %v21550_v18 = vld [vmem:[%s23887_s2 + $0x6b8] sm:$0xff]   ;;  %v21715_v25 = vld [vmem:[%s23887_s2 + $0xd40] sm:$0xff]  }
 0xcf3   :  { %19046 = vmatpush3.bf16.msra.mxu0 %v21644_v19  ;;  %v24789_v19 = vld [vmem:[#allocation12_spill] sm:$0xff] }
 0xcf4   :  { %19047 = vmatprep.subr.bf16.mxu0 %v21647_v22  ;;  %v21688_v22 = vld [vmem:[%s23887_s2 + $0xc08] sm:$0xff]  }
 0xcf5   :  { %18848 = vmatpush3.bf16.msra.mxu1 %v21514_v30  ;;  %v21553_v30 = vld [vmem:[%s23887_s2 + $0x7c0] sm:$0xff]  }
 0xcf6   :  { %18849 = vmatprep.subr.bf16.mxu1 %v21517_v56  ;;  %v21680_v56 = vld [vmem:[%s23887_s2 + $0xb38] sm:$0xff]  }
 0xcf7   :  { %19048 = vmatpush3.bf16.msra.mxu0 %v21648_v36  ;;  %v21692_v36 = vld [vmem:[%s23887_s2 + $0xc10] sm:$0xff]  }
 0xcf8   :  { %19077 = vmatprep.subr.bf16.mxu0 %v21651_v16  ;;  %v21695_v16 = vld [vmem:[%s23887_s2 + $0xc58] sm:$0xff]  }
 0xcf9   :  { %18850 = vmatpush3.bf16.msra.mxu1 %v21518_v39  ;;  %v21561_v39 = vld [vmem:[%s23887_s2 + $0x7d0] sm:$0xff]  }
 0xcfa   :  { %18879 = vmatprep.subr.bf16.mxu1 %v21521_v7  ;;  %14551 = vmatmul.mubr.bf16.vlgmr.msra.gmra.mrb[120].mxu0 %v23145_v27  ;;  %v21534_v27 = vld [vmem:[%s23887_s2 + $0x698] sm:$0xff]   ;;  %v21562_v7 = vld [vmem:[%s23887_s2 + $0x790] sm:$0xff]  }
 0xcfb   :  { %19078 = vmatpush3.bf16.msra.mxu0 %v21652_v23  ;;  %14630 = vmatprep.mubr.bf16.mxu0 %v23150_v57  ;;  %v21537_v57 = vld [vmem:[%s23887_s2 + $0x6e0] sm:$0xff]   ;;  %v21696_v23 = vld [vmem:[%s23887_s2 + $0xc18] sm:$0xff]  }
 0xcfc   :  { %14191 = vmatmul.mubr.bf16.vlgmr.msra.gmra.mrb[108].mxu1 %v22634_v6  ;;  %v21655_v6 = vld [vmem:[%s23887_s2 + $0xb48] sm:$0xff]  }
 0xcfd   :  { %18880 = vmatpush3.bf16.msra.mxu1 %v21522_v32  ;;  %14270 = vmatprep.mubr.bf16.mxu1 %v22640_v13  ;;  %v21533_v13 = vld [vmem:[%s23887_s2 + $0x6d8] sm:$0xff]   ;;  %v21691_v32 = vld [vmem:[%s23887_s2 + $0xc50] sm:$0xff]  }
 0xcfe   :  { %18881 = vmatprep.subr.bf16.mxu1 %v21525_v58  ;;  %19079 = vmatprep.subr.bf16.mxu0 %v21655_v6  ;;  %v21569_v58 = vld [vmem:[%s23887_s2 + $0x7e0] sm:$0xff]  }
 0xcff   :  { %19080 = vmatpush3.bf16.msra.mxu0 %v21656_v44  ;;  %v21699_v6 = vld [vmem:[%s23887_s2 + $0xc60] sm:$0xff]  }
 0xd00   :  { %19081 = vmatprep.subr.bf16.mxu0 %v21659_v47  ;;  %v21700_v44 = vld [vmem:[%s23887_s2 + $0xc20] sm:$0xff]  }
 0xd01   :  { %18882 = vmatpush3.bf16.msra.mxu1 %v21526_v43  ;;  %v21570_v43 = vld [vmem:[%s23887_s2 + $0x7a0] sm:$0xff]  }
 0xd02   :  { %18883 = vmatprep.subr.bf16.mxu1 %v21529_v46  ;;  %v21573_v46 = vld [vmem:[%s23887_s2 + $0x7e8] sm:$0xff]  }
 0xd03   :  { %19082 = vmatpush3.bf16.msra.mxu0 %v21660_v49  ;;  %v21703_v49 = vld [vmem:[%s23887_s2 + $0xc68] sm:$0xff]  }
 0xd04   :  { %19083 = vmatprep.subr.bf16.mxu0 %v21663_v33 }
 0xd05   :  { %18884 = vmatpush3.bf16.msra.mxu1 %v21530_v60  ;;  %v21574_v60 = vld [vmem:[%s23887_s2 + $0x7a8] sm:$0xff]  }
 0xd06   :  { %18885 = vmatprep.subr.bf16.mxu1 %v21533_v13  ;;  %v21577_v13 = vld [vmem:[%s23887_s2 + $0x7f0] sm:$0xff]  }
 0xd07   :  { %19084 = vmatpush3.bf16.msra.mxu0 %v21664_v45  ;;  %v21704_v45 = vld [vmem:[%s23887_s2 + $0xc28] sm:$0xff]  }
 0xd08   :  { %19085 = vmatprep.subr.bf16.mxu0 %v21667_v3  ;;  %v21581_v3 = vld [vmem:[%s23887_s2 + $0x7f8] sm:$0xff]  }
 0xd09   :  { %18886 = vmatpush3.bf16.msra.mxu1 %v21534_v27 }
 0xd0a   :  { %18887 = vmatprep.subr.bf16.mxu1 %v21537_v57 }
 0xd0b   :  { %19086 = vmatpush3.bf16.msra.mxu0 %v21668_v2 }
 0xd0c   :  { %19087 = vmatprep.subr.bf16.mxu0 %v21671_v12  ;;  %v21707_v12 = vld [vmem:[%s23887_s2 + $0xc70] sm:$0xff]  }
 0xd0d   :  { %18888 = vmatpush3.bf16.msra.mxu1 %v21538_v35  ;;  %v21578_v35 = vld [vmem:[%s23887_s2 + $0x7b0] sm:$0xff]  }
 0xd0e   :  { %18889 = vmatprep.subr.bf16.mxu1 %v21541_v41 }
 0xd0f   :  { %v10976_v9 = vpop.f32.mrb[84].mxu1  ;;  %19088 = vmatpush3.bf16.msra.mxu0 %v21672_v11  ;;  %v21708_v11 = vld [vmem:[%s23887_s2 + $0xc30] sm:$0xff]  }
 0xd10   :  { %v24263_v61 = vadd.f32 %v24110_v50, %v10976_v9  ;;  %v19287_v8 = vpop.f32.mrb[85].mxu1  ;;  %v24269_v50 = vadd.f32 %v18786_v55, %v18785_v31  ;;  %19089 = vmatprep.subr.bf16.mxu0 %v21675_v10  ;;  %v21712_v55 = vld [vmem:[%s23887_s2 + $0xc38] sm:$0xff]   ;;  %v21590_v10 = vld [vmem:[%s23887_s2 + $0x888] sm:$0xff]  }
 0xd11   :  { %18890 = vmatpush3.bf16.msra.mxu1 %v21542_v5  ;;  %v10979_v17 = vpop.f32.mrb[86].mxu1 }
 0xd12   :  { %v19288_v0 = vpop.f32.mrb[87].mxu1  ;;  %18891 = vmatprep.subr.bf16.mxu1 %v21545_v4 }
 0xd13   :  { %19090 = vmatpush3.bf16.msra.mxu0 %v21676_v53  ;;  %v21711_v0 = vld [vmem:[%s23887_s2 + $0xc78] sm:$0xff]   ;;  %v21716_v53 = vld [vmem:[%s23887_s2 + $0xd00] sm:$0xff]  }
 0xd14   :  { %19091 = vmatprep.subr.bf16.mxu0 %v21679_v38  ;;  %v24792_v38 = vld [vmem:[#allocation15_spill] sm:$0xff] }
 0xd15   :  { %18892 = vmatpush3.bf16.msra.mxu1 %v21546_v40  ;;  %v21582_v40 = vld [vmem:[%s23887_s2 + $0x7b8] sm:$0xff]  }
 0xd16   :  { %18893 = vmatprep.subr.bf16.mxu1 %v21549_v28  ;;  %v21586_v28 = vld [vmem:[%s23887_s2 + $0x880] sm:$0xff]  }
 0xd17   :  { %19092 = vmatpush3.bf16.msra.mxu0 %v21680_v56  ;;  %v24793_v56 = vld [vmem:[#allocation16_spill] sm:$0xff] }
 0xd18   :  { %19121 = vmatprep.subr.bf16.mxu0 %v21683_v42  ;;  %v21720_v42 = vld [vmem:[%s23887_s2 + $0xd08] sm:$0xff]  }
 0xd19   :  { %18894 = vmatpush3.bf16.msra.mxu1 %v21550_v18  ;;  %v24791_v18 = vld [vmem:[#allocation3_spill] sm:$0xff] }
 0xd1a   :  { %18923 = vmatprep.subr.bf16.mxu1 %v21553_v30  ;;  %14631 = vmatmul.mubr.bf16.vlgmr.msra.gmra.mrb[124].mxu0 %v23241_v29  ;;  %v21566_v29 = vld [vmem:[%s23887_s2 + $0x798] sm:$0xff]   ;;  %v21593_v30 = vld [vmem:[%s23887_s2 + $0x8d0] sm:$0xff]  }
 0xd1b   :  { %19122 = vmatpush3.bf16.msra.mxu0 %v21684_v26  ;;  %14710 = vmatprep.mubr.bf16.mxu0 %v24789_v19  ;;  %v21723_v26 = vld [vmem:[%s23887_s2 + $0xd50] sm:$0xff]   ;;  %v21601_v19 = vld [vmem:[%s23887_s2 + $0x8e0] sm:$0xff]  }
 0xd1c   :  { %14271 = vmatmul.mubr.bf16.vlgmr.msra.gmra.mrb[112].mxu1 %v22730_v21  ;;  %v21687_v21 = vld [vmem:[%s23887_s2 + $0xc48] sm:$0xff]   ;;  %v18829_v5 = vpop.f32.mrb[100].mxu0 }
 0xd1d   :  { %18924 = vmatpush3.bf16.msra.mxu1 %v21554_v63  ;;  %14350 = vmatprep.mubr.bf16.mxu1 %v22736_v24  ;;  %v21565_v24 = vld [vmem:[%s23887_s2 + $0x7d8] sm:$0xff]   ;;  %v18830_v4 = vpop.f32.mrb[101].mxu0  ;;  %v21719_v63 = vld [vmem:[%s23887_s2 + $0xd48] sm:$0xff]  }
 0xd1e   :  { %18925 = vmatprep.subr.bf16.mxu1 %v21557_v48  ;;  %19123 = vmatprep.subr.bf16.mxu0 %v21687_v21  ;;  %v24308_v9 = vadd.f32 %v18830_v4, %v18829_v5  ;;  %v18832_v8 = vpop.f32.mrb[102].mxu0  ;;  %v21594_v48 = vld [vmem:[%s23887_s2 + $0x890] sm:$0xff]   ;;  %v21614_v5 = vld [vmem:[%s23887_s2 + $0x8b8] sm:$0xff]  }
 0xd1f   :  { %19124 = vmatpush3.bf16.msra.mxu0 %v21688_v22  ;;  %v18833_v31 = vpop.f32.mrb[103].mxu0  ;;  %v21724_v21 = vld [vmem:[%s23887_s2 + $0xd10] sm:$0xff]   ;;  %v21602_v22 = vld [vmem:[%s23887_s2 + $0x8a0] sm:$0xff]  }
 0xd20   :  { %19125 = vmatprep.subr.bf16.mxu0 %v21691_v32  ;;  %v21605_v32 = vld [vmem:[%s23887_s2 + $0x8e8] sm:$0xff]   ;;  %v21740_v4 = vld [vmem:[%s23887_s2 + $0xd30] sm:$0xff]   ;;  %v21617_v8 = vld [vmem:[%s23887_s2 + $0x9c0] sm:$0xff]  }
 0xd21   :  { %18926 = vmatpush3.bf16.msra.mxu1 %v21558_v52  ;;  %v21597_v52 = vld [vmem:[%s23887_s2 + $0x8d8] sm:$0xff]   ;;  %v21621_v31 = vld [vmem:[%s23887_s2 + $0x9c8] sm:$0xff]  }
 0xd22   :  { %18927 = vmatprep.subr.bf16.mxu1 %v21561_v39  ;;  %v21598_v39 = vld [vmem:[%s23887_s2 + $0x898] sm:$0xff]  }
 0xd23   :  { %19126 = vmatpush3.bf16.msra.mxu0 %v21692_v36  ;;  %v21606_v36 = vld [vmem:[%s23887_s2 + $0x8a8] sm:$0xff]  }
 0xd24   :  { %19127 = vmatprep.subr.bf16.mxu0 %v21695_v16  ;;  %v21609_v16 = vld [vmem:[%s23887_s2 + $0x8f0] sm:$0xff]  }
 0xd25   :  { %18928 = vmatpush3.bf16.msra.mxu1 %v21562_v7  ;;  %v21727_v7 = vld [vmem:[%s23887_s2 + $0xd58] sm:$0xff]  }
 0xd26   :  { %18929 = vmatprep.subr.bf16.mxu1 %v21565_v24  ;;  %v21728_v24 = vld [vmem:[%s23887_s2 + $0xd18] sm:$0xff]  }
 0xd27   :  { %19128 = vmatpush3.bf16.msra.mxu0 %v21696_v23 }
 0xd28   :  { %19129 = vmatprep.subr.bf16.mxu0 %v21699_v6 }
 0xd29   :  { %18930 = vmatpush3.bf16.msra.mxu1 %v21566_v29  ;;  %v21731_v29 = vld [vmem:[%s23887_s2 + $0xd60] sm:$0xff]  }
 0xd2a   :  { %18931 = vmatprep.subr.bf16.mxu1 %v21569_v58  ;;  %v21732_v58 = vld [vmem:[%s23887_s2 + $0xd20] sm:$0xff]  }
 0xd2b   :  { %19130 = vmatpush3.bf16.msra.mxu0 %v21700_v44  ;;  %v21610_v44 = vld [vmem:[%s23887_s2 + $0x8b0] sm:$0xff]  }
 0xd2c   :  { %19131 = vmatprep.subr.bf16.mxu0 %v21703_v49 }
 0xd2d   :  { %18932 = vmatpush3.bf16.msra.mxu1 %v21570_v43 }
 0xd2e   :  { %18933 = vmatprep.subr.bf16.mxu1 %v21573_v46  ;;  %v21735_v46 = vld [vmem:[%s23887_s2 + $0xd68] sm:$0xff]  }
 0xd2f   :  { %v18631_v47 = vpop.f32.mrb[88].mxu1  ;;  %19132 = vmatpush3.bf16.msra.mxu0 %v21704_v45 }
 0xd30   :  { %v18632_v27 = vpop.f32.mrb[89].mxu1  ;;  %19133 = vmatprep.subr.bf16.mxu0 %v21707_v12  ;;  %v21743_v12 = vld [vmem:[%s23887_s2 + $0xd78] sm:$0xff]  }
 0xd31   :  { %v18633_v57 = vadd.f32 %v18632_v27, %v18631_v47  ;;  %v18634_v33 = vpop.f32.mrb[90].mxu1  ;;  %18934 = vmatpush3.bf16.msra.mxu1 %v21574_v60  ;;  %v21613_v27 = vld [vmem:[%s23887_s2 + $0x8f8] sm:$0xff]  }
 0xd32   :  { %v18635_v41 = vpop.f32.mrb[91].mxu1  ;;  %18935 = vmatprep.subr.bf16.mxu1 %v21577_v13  ;;  %v21736_v13 = vld [vmem:[%s23887_s2 + $0xd28] sm:$0xff]  }
 0xd33   :  { %v13793_v2 = vadd.f32 %v18633_v57, %v24263_v61  ;;  %v21585_v61 = vld [vmem:[%s23887_s2 + $0x8c0] sm:$0xff]   ;;  %19134 = vmatpush3.bf16.msra.mxu0 %v21708_v11  ;;  %v21739_v41 = vld [vmem:[%s23887_s2 + $0xd70] sm:$0xff]   ;;  %v21622_v11 = vld [vmem:[%s23887_s2 + $0x988] sm:$0xff]  }
 0xd34   :  { %19135 = vmatprep.subr.bf16.mxu0 %v21711_v0  ;;  %v21747_v0 = vld [vmem:[%s23887_s2 + $0xe00] sm:$0xff]  }
 0xd35   :  { %v24312_v17 = vadd.f32 %v24152_v37, %v13793_v2  ;;  %18936 = vmatpush3.bf16.msra.mxu1 %v21578_v35  ;;  %v21589_v37 = vld [vmem:[%s23887_s2 + $0x8c8] sm:$0xff]  }
 0xd36   :  { %18937 = vmatprep.subr.bf16.mxu1 %v21581_v3 }
 0xd37   :  { %19136 = vmatpush3.bf16.msra.mxu0 %v21712_v55  ;;  %v24796_v55 = vld [vmem:[#allocation18_spill] sm:$0xff] }
 0xd38   :  { %19165 = vmatprep.subr.bf16.mxu0 %v21715_v25  ;;  %v21629_v25 = vld [vmem:[%s23887_s2 + $0x9d8] sm:$0xff]  }
 0xd39   :  { %18938 = vmatpush3.bf16.msra.mxu1 %v21582_v40  ;;  %v21744_v40 = vld [vmem:[%s23887_s2 + $0xd38] sm:$0xff]  }
 0xd3a   :  { %18967 = vmatprep.subr.bf16.mxu1 %v21585_v61  ;;  %14711 = vmatmul.mubr.bf16.vlgmr.msra.gmra.mrb[128].mxu0 %v24792_v38  ;;  %v24795_v61 = vld [vmem:[#allocation5_spill] sm:$0xff] }
 0xd3b   :  { %19166 = vmatpush3.bf16.msra.mxu0 %v21716_v53  ;;  %14790 = vmatprep.mubr.bf16.mxu0 %v24793_v56  ;;  %v21633_v53 = vld [vmem:[%s23887_s2 + $0x9e0] sm:$0xff]   ;;  %v21756_v38 = vld [vmem:[%s23887_s2 + $0xe18] sm:$0xff]   ;;  %v21638_v56 = vld [vmem:[%s23887_s2 + $0x9a8] sm:$0xff]  }
 0xd3c   :  { %14351 = vmatmul.mubr.bf16.vlgmr.msra.gmra.mrb[116].mxu1 %v24790_v51  ;;  %19167 = vmatprep.subr.bf16.mxu0 %v21719_v63  ;;  %v21750_v51 = vld [vmem:[%s23887_s2 + $0xe08] sm:$0xff]  }
 0xd3d   :  { %18968 = vmatpush3.bf16.msra.mxu1 %v21586_v28  ;;  %14430 = vmatprep.mubr.bf16.mxu1 %v24791_v18  ;;  %v21625_v28 = vld [vmem:[%s23887_s2 + $0x9d0] sm:$0xff]   ;;  %v21637_v63 = vld [vmem:[%s23887_s2 + $0x9e8] sm:$0xff]  }
 0xd3e   :  { %18969 = vmatprep.subr.bf16.mxu1 %v21589_v37  ;;  %v21626_v37 = vld [vmem:[%s23887_s2 + $0x990] sm:$0xff]  }
 0xd3f   :  { %19168 = vmatpush3.bf16.msra.mxu0 %v21720_v42  ;;  %v21753_v18 = vld [vmem:[%s23887_s2 + $0xe10] sm:$0xff]  }
 0xd40   :  { %19169 = vmatprep.subr.bf16.mxu0 %v21723_v26  ;;  %v21641_v42 = vld [vmem:[%s23887_s2 + $0x9f0] sm:$0xff]  }
 0xd41   :  { %18970 = vmatpush3.bf16.msra.mxu1 %v21590_v10  ;;  %v21630_v10 = vld [vmem:[%s23887_s2 + $0x998] sm:$0xff]  }
 0xd42   :  { %18971 = vmatprep.subr.bf16.mxu1 %v21593_v30  ;;  %v21634_v30 = vld [vmem:[%s23887_s2 + $0x9a0] sm:$0xff]  }
 0xd43   :  { %19170 = vmatpush3.bf16.msra.mxu0 %v21724_v21 }
 0xd44   :  { %19171 = vmatprep.subr.bf16.mxu0 %v21727_v7  ;;  %v21762_v7 = vld [vmem:[%s23887_s2 + $0xe28] sm:$0xff]  }
 0xd45   :  { %18972 = vmatpush3.bf16.msra.mxu1 %v21594_v48  ;;  %v21759_v48 = vld [vmem:[%s23887_s2 + $0xe20] sm:$0xff]  }
 0xd46   :  { %18973 = vmatprep.subr.bf16.mxu1 %v21597_v52 }
 0xd47   :  { %19172 = vmatpush3.bf16.msra.mxu0 %v21728_v24  ;;  %v21645_v24 = vld [vmem:[%s23887_s2 + $0x9f8] sm:$0xff]  }
 0xd48   :  { %19173 = vmatprep.subr.bf16.mxu0 %v21731_v29 }
 0xd49   :  { %18974 = vmatpush3.bf16.msra.mxu1 %v21598_v39 }
 0xd4a   :  { %18975 = vmatprep.subr.bf16.mxu1 %v21601_v19  ;;  %v21642_v19 = vld [vmem:[%s23887_s2 + $0x9b0] sm:$0xff]  }
 0xd4b   :  { %19174 = vmatpush3.bf16.msra.mxu0 %v21732_v58 }
 0xd4c   :  { %19175 = vmatprep.subr.bf16.mxu0 %v21735_v46 }
 0xd4d   :  { %18976 = vmatpush3.bf16.msra.mxu1 %v21602_v22  ;;  %v18873_v49 = vpop.f32.mrb[104].mxu0 }
 0xd4e   :  { %18977 = vmatprep.subr.bf16.mxu1 %v21605_v32  ;;  %v18874_v33 = vpop.f32.mrb[105].mxu0 }
 0xd4f   :  { %v18675_v43 = vpop.f32.mrb[92].mxu1  ;;  %v24350_v35 = vadd.f32 %v18874_v33, %v18873_v49  ;;  %19176 = vmatpush3.bf16.msra.mxu0 %v21736_v13  ;;  %v18876_v45 = vpop.f32.mrb[106].mxu0  ;;  %v21768_v13 = vld [vmem:[%s23887_s2 + $0xe38] sm:$0xff]   ;;  %v24798_v49 = vld [vmem:[#allocation7_spill] sm:$0xff]  ;;  %v22017_v33 = vld [vmem:[%s22121_s17 + $0xe0] ss:$0 sps:$4 sm:$0xff]  }
 0xd50   :  { %v18676_v23 = vpop.f32.mrb[93].mxu1  ;;  %v18877_v2 = vpop.f32.mrb[107].mxu0  ;;  %19177 = vmatprep.subr.bf16.mxu0 %v21739_v41  ;;  %v21658_v45 = vld [vmem:[%s23887_s2 + $0xa90] sm:$0xff]   ;;  %v21661_v41 = vld [vmem:[%s23887_s2 + $0xad8] sm:$0xff]   ;;  %s22040_s17 = smov 20  }
 0xd51   :  { %v18677_v6 = vadd.f32 %v18676_v23, %v18675_v43  ;;  %v18678_v60 = vpop.f32.mrb[94].mxu1  ;;  %18978 = vmatpush3.bf16.msra.mxu1 %v21606_v36  ;;  %v21646_v23 = vld [vmem:[%s23887_s2 + $0x9b8] sm:$0xff]   ;;  %v21666_v2 = vld [vmem:[%s23887_s2 + $0xaa0] sm:$0xff]   ;;  %s24497_s26 = sld [smem:[%s24751_s0 + %s22040_s17]]  }
 0xd52   :  { %v18679_v47 = vpop.f32.mrb[95].mxu1  ;;  %18979 = vmatprep.subr.bf16.mxu1 %v21609_v16  ;;  %v21649_v60 = vld [vmem:[%s23887_s2 + $0xac0] sm:$0xff]  }
 0xd53   :  { %v13873_v57 = vadd.f32 %v18677_v6, %v24312_v17  ;;  %19178 = vmatpush3.bf16.msra.mxu0 %v21740_v4  ;;  %v21618_v17 = vld [vmem:[%s23887_s2 + $0x980] sm:$0xff]   ;;  %v21765_v6 = vld [vmem:[%s23887_s2 + $0xe30] sm:$0xff]   ;;  %v21669_v4 = vld [vmem:[%s23887_s2 + $0xae8] sm:$0xff]  }
 0xd54   :  { %19179 = vmatprep.subr.bf16.mxu0 %v21743_v12  ;;  %v24797_v47 = vld [vmem:[#allocation6_spill] sm:$0xff]  ;;  %v21673_v12 = vld [vmem:[%s23887_s2 + $0xaf0] sm:$0xff]  }
 0xd55   :  { %v24354_v3 = vadd.f32 %v24190_v1, %v13873_v57  ;;  %18980 = vmatpush3.bf16.msra.mxu1 %v21610_v44  ;;  %v24794_v1 = vld [vmem:[#allocation4_spill] sm:$0xff]  ;;  %v21650_v44 = vld [vmem:[%s23887_s2 + $0xa80] sm:$0xff]  }
 0xd56   :  { %18981 = vmatprep.subr.bf16.mxu1 %v21613_v27  ;;  %v21654_v27 = vld [vmem:[%s23887_s2 + $0xa88] sm:$0xff]   ;;  %v21657_v57 = vld [vmem:[%s23887_s2 + $0xad0] sm:$0xff]  }
 0xd57   :  { %19180 = vmatpush3.bf16.msra.mxu0 %v21744_v40 }
 0xd58   :  { %19289 = vmatprep.subr.bf16.mxu0 %v22030_v20 }
 0xd59   :  { %18982 = vmatpush3.bf16.msra.mxu1 %v21614_v5  ;;  %v21665_v5 = vld [vmem:[%s23887_s2 + $0xae0] sm:$0xff]  }
 0xd5a   :  { %19011 = vmatprep.subr.bf16.mxu1 %v21617_v8  ;;  %14791 = vmatmul.mubr.bf16.vlgmr.msra.gmra.mrb[132].mxu0 %v24796_v55  ;;  %v21670_v8 = vld [vmem:[%s23887_s2 + $0xaa8] sm:$0xff]  }
 0xd5b   :  { %19290 = vmatpush3.bf16.msra.mxu0 %v21747_v0  ;;  %19305 = vmatprep.mubr.msk.bf16.mxu0 %vm22033_vm2, %v22030_v20  ;;  %v21677_v0 = vld [vmem:[%s23887_s2 + $0xaf8] sm:$0xff]  }
 0xd5c   :  { %14431 = vmatmul.mubr.bf16.vlgmr.msra.gmra.mrb[120].mxu1 %v24794_v1  ;;  %19291 = vmatprep.subr.bf16.mxu0 %v22030_v20 }
 0xd5d   :  { %19012 = vmatpush3.bf16.msra.mxu1 %v21618_v17  ;;  %14510 = vmatprep.mubr.bf16.mxu1 %v24795_v61 }
 0xd5e   :  { %19013 = vmatprep.subr.bf16.mxu1 %v21621_v31 }
 0xd5f   :  { %19292 = vmatpush3.bf16.msra.mxu0 %v21750_v51 }
 0xd60   :  { %19293 = vmatprep.subr.bf16.mxu0 %v22030_v20 }
 0xd61   :  { %19014 = vmatpush3.bf16.msra.mxu1 %v21622_v11  ;;  %v21674_v11 = vld [vmem:[%s23887_s2 + $0xab0] sm:$0xff]  }
 0xd62   :  { %19015 = vmatprep.subr.bf16.mxu1 %v21625_v28 }
 0xd63   :  { %19294 = vmatpush3.bf16.msra.mxu0 %v21753_v18  ;;  %v21678_v18 = vld [vmem:[%s23887_s2 + $0xab8] sm:$0xff]  }
 0xd64   :  { %19295 = vmatprep.subr.bf16.mxu0 %v22030_v20 }
 0xd65   :  { %19016 = vmatpush3.bf16.msra.mxu1 %v21626_v37 }
 0xd66   :  { %19017 = vmatprep.subr.bf16.mxu1 %v21629_v25 }
 0xd67   :  { %19296 = vmatpush3.bf16.msra.mxu0 %v21756_v38  ;;  %v21682_v38 = vld [vmem:[%s23887_s2 + $0xb80] sm:$0xff]  }
 0xd68   :  { %19297 = vmatprep.subr.bf16.mxu0 %v22030_v20 }
 0xd69   :  { %19018 = vmatpush3.bf16.msra.mxu1 %v21630_v10 }
 0xd6a   :  { %19019 = vmatprep.subr.bf16.mxu1 %v21633_v53 }
 0xd6b   :  { %19298 = vmatpush3.bf16.msra.mxu0 %v21759_v48  ;;  %v21686_v48 = vld [vmem:[%s23887_s2 + $0xb88] sm:$0xff]  }
 0xd6c   :  { %19299 = vmatprep.subr.bf16.mxu0 %v22030_v20 }
 0xd6d   :  { %19020 = vmatpush3.bf16.msra.mxu1 %v21634_v30  ;;  %v18917_v32 = vpop.f32.mrb[108].mxu0  ;;  %v21681_v30 = vld [vmem:[%s23887_s2 + $0xbc0] sm:$0xff]  }
 0xd6e   :  { %19021 = vmatprep.subr.bf16.mxu1 %v21637_v63  ;;  %v18918_v36 = vpop.f32.mrb[109].mxu0  ;;  %v21685_v63 = vld [vmem:[%s23887_s2 + $0xbc8] sm:$0xff]  }
 0xd6f   :  { %v18719_v52 = vpop.f32.mrb[96].mxu1  ;;  %v24393_v58 = vadd.f32 %v18918_v36, %v18917_v32  ;;  %19300 = vmatpush3.bf16.msra.mxu0 %v21762_v7  ;;  %v18920_v16 = vpop.f32.mrb[110].mxu0  ;;  %v21701_v7 = vld [vmem:[%s23887_s2 + $0xbe8] sm:$0xff]  }
 0xd70   :  { %v18720_v26 = vpop.f32.mrb[97].mxu1  ;;  %v18921_v46 = vpop.f32.mrb[111].mxu0  ;;  %19301 = vmatprep.subr.bf16.mxu0 %v22030_v20 }
 0xd71   :  { %v18721_v39 = vadd.f32 %v18720_v26, %v18719_v52  ;;  %v18722_v21 = vpop.f32.mrb[98].mxu1  ;;  %19022 = vmatpush3.bf16.msra.mxu1 %v21638_v56  ;;  %v24799_v56 = vld [vmem:[#allocation8_spill] sm:$0xff]  ;;  %v21693_v26 = vld [vmem:[%s23887_s2 + $0xbd8] sm:$0xff]  }
 0xd72   :  { %v18723_v22 = vpop.f32.mrb[99].mxu1  ;;  %19023 = vmatprep.subr.bf16.mxu1 %v21641_v42  ;;  %v21689_v42 = vld [vmem:[%s23887_s2 + $0xbd0] sm:$0xff]   ;;  %v21697_v21 = vld [vmem:[%s23887_s2 + $0xbe0] sm:$0xff]   ;;  %v21709_v46 = vld [vmem:[%s23887_s2 + $0xbf8] sm:$0xff]  }
 0xd73   :  { %v13953_v29 = vadd.f32 %v18721_v39, %v24354_v3  ;;  %19302 = vmatpush3.bf16.msra.mxu0 %v21765_v6  ;;  %v21662_v3 = vld [vmem:[%s23887_s2 + $0xa98] sm:$0xff]   ;;  %v21690_v52 = vld [vmem:[%s23887_s2 + $0xb90] sm:$0xff]   ;;  %v21702_v22 = vld [vmem:[%s23887_s2 + $0xba8] sm:$0xff]  }
 0xd74   :  { %19303 = vmatprep.subr.bf16.mxu0 %v22030_v20  ;;  %v21694_v39 = vld [vmem:[%s23887_s2 + $0xb98] sm:$0xff]  }
 0xd75   :  { %v13993_v43 = vadd.f32 %v24228_v62, %v13953_v29  ;;  %19024 = vmatpush3.bf16.msra.mxu1 %v21642_v19  ;;  %v21653_v62 = vld [vmem:[%s23887_s2 + $0xac8] sm:$0xff]   ;;  %v21698_v19 = vld [vmem:[%s23887_s2 + $0xba0] sm:$0xff]  }
 0xd76   :  { %19025 = vmatprep.subr.bf16.mxu1 %v21645_v24  ;;  %v21705_v24 = vld [vmem:[%s23887_s2 + $0xbf0] sm:$0xff]  }
 0xd77   :  { %19304 = vmatpush3.bf16.msra.mxu0 %v21768_v13 }
 0xd79   :  { %19026 = vmatpush3.bf16.msra.mxu1 %v21646_v23 }
 0xd7a   :  { %19055 = vmatprep.subr.bf16.mxu1 %v21649_v60  ;;  %19306 = vmatmul.mubr.bf16.vlgmr.msra.gmra.mrb[136].mxu0 %v22017_v33  ;;  %v21714_v33 = vld [vmem:[%s23887_s2 + $0xc80] sm:$0xff]  }
 0xd7c   :  { %14511 = vmatmul.mubr.bf16.vlgmr.msra.gmra.mrb[124].mxu1 %v24797_v47 }
 0xd7d   :  { %19056 = vmatpush3.bf16.msra.mxu1 %v21650_v44  ;;  %14590 = vmatprep.mubr.bf16.mxu1 %v24798_v49 }
 0xd7e   :  { %19057 = vmatprep.subr.bf16.mxu1 %v21653_v62 }
 0xd81   :  { %19058 = vmatpush3.bf16.msra.mxu1 %v21654_v27  ;;  %v21710_v27 = vld [vmem:[%s23887_s2 + $0xbb8] sm:$0xff]  }
 0xd82   :  { %19059 = vmatprep.subr.bf16.mxu1 %v21657_v57  ;;  %v21713_v57 = vld [vmem:[%s23887_s2 + $0xcc0] sm:$0xff]  }
 0xd85   :  { %19060 = vmatpush3.bf16.msra.mxu1 %v21658_v45  ;;  %v21717_v45 = vld [vmem:[%s23887_s2 + $0xcc8] sm:$0xff]  }
 0xd86   :  { %19061 = vmatprep.subr.bf16.mxu1 %v21661_v41  ;;  %v24801_v41 = vld [vmem:[#allocation10_spill] sm:$0xff] }
 0xd89   :  { %19062 = vmatpush3.bf16.msra.mxu1 %v21662_v3  ;;  %v21718_v3 = vld [vmem:[%s23887_s2 + $0xc88] sm:$0xff]  }
 0xd8a   :  { %19063 = vmatprep.subr.bf16.mxu1 %v21665_v5  ;;  %v21721_v5 = vld [vmem:[%s23887_s2 + $0xcd0] sm:$0xff]  }
 0xd8d   :  { %19064 = vmatpush3.bf16.msra.mxu1 %v21666_v2  ;;  %v18961_v28 = vpop.f32.mrb[112].mxu0  ;;  %v21722_v2 = vld [vmem:[%s23887_s2 + $0xc90] sm:$0xff]  }
 0xd8e   :  { %19065 = vmatprep.subr.bf16.mxu1 %v21669_v4  ;;  %v18962_v37 = vpop.f32.mrb[113].mxu0  ;;  %v21725_v4 = vld [vmem:[%s23887_s2 + $0xcd8] sm:$0xff]  }
 0xd8f   :  { %v18763_v17 = vpop.f32.mrb[100].mxu1  ;;  %v24419_v51 = vadd.f32 %v18962_v37, %v18961_v28  ;;  %v18964_v25 = vpop.f32.mrb[114].mxu0 }
 0xd90   :  { %v18764_v40 = vpop.f32.mrb[101].mxu1  ;;  %v18965_v53 = vpop.f32.mrb[115].mxu0  ;;  %v21741_v25 = vld [vmem:[%s23887_s2 + $0xcf8] sm:$0xff]  }
 0xd91   :  { %v18765_v31 = vadd.f32 %v18764_v40, %v18763_v17  ;;  %v18766_v1 = vpop.f32.mrb[102].mxu1  ;;  %19066 = vmatpush3.bf16.msra.mxu1 %v21670_v8  ;;  %v21726_v8 = vld [vmem:[%s23887_s2 + $0xc98] sm:$0xff]   ;;  %v21730_v17 = vld [vmem:[%s23887_s2 + $0xca0] sm:$0xff]   ;;  %v21733_v40 = vld [vmem:[%s23887_s2 + $0xce8] sm:$0xff]  }
 0xd92   :  { %v18767_v61 = vpop.f32.mrb[103].mxu1  ;;  %19067 = vmatprep.subr.bf16.mxu1 %v21673_v12  ;;  %v21729_v12 = vld [vmem:[%s23887_s2 + $0xce0] sm:$0xff]   ;;  %v21737_v1 = vld [vmem:[%s23887_s2 + $0xcf0] sm:$0xff]  }
 0xd93   :  { %v14033_v55 = vadd.f32 %v18765_v31, %v13993_v43  ;;  %v21706_v43 = vld [vmem:[%s23887_s2 + $0xbb0] sm:$0xff]   ;;  %v21734_v31 = vld [vmem:[%s23887_s2 + $0xca8] sm:$0xff]  }
 0xd95   :  { %v14073_v10 = vadd.f32 %v24269_v50, %v14033_v55  ;;  %19068 = vmatpush3.bf16.msra.mxu1 %v21674_v11  ;;  %v24800_v50 = vld [vmem:[#allocation9_spill] sm:$0xff]  ;;  %v21738_v55 = vld [vmem:[%s23887_s2 + $0xcb0] sm:$0xff]  }
 0xd96   :  { %19069 = vmatprep.subr.bf16.mxu1 %v21677_v0 }
 0xd99   :  { %19070 = vmatpush3.bf16.msra.mxu1 %v21678_v18 }
 0xd9a   :  { %19099 = vmatprep.subr.bf16.mxu1 %v21681_v30 }
 0xd9c   :  { %14591 = vmatmul.mubr.bf16.vlgmr.msra.gmra.mrb[128].mxu1 %v24799_v56  ;;  %v21742_v56 = vld [vmem:[%s23887_s2 + $0xcb8] sm:$0xff]  }
 0xd9d   :  { %19100 = vmatpush3.bf16.msra.mxu1 %v21682_v38  ;;  %14670 = vmatprep.mubr.bf16.mxu1 %v24800_v50  ;;  %v21745_v50 = vld [vmem:[%s23887_s2 + $0xdc0] sm:$0xff]  }
 0xd9e   :  { %19101 = vmatprep.subr.bf16.mxu1 %v21685_v63 }
 0xda1   :  { %19102 = vmatpush3.bf16.msra.mxu1 %v21686_v48 }
 0xda2   :  { %19103 = vmatprep.subr.bf16.mxu1 %v21689_v42  ;;  %v21746_v42 = vld [vmem:[%s23887_s2 + $0xd80] sm:$0xff]  }
 0xda5   :  { %19104 = vmatpush3.bf16.msra.mxu1 %v21690_v52  ;;  %v21748_v52 = vld [vmem:[%s23887_s2 + $0xdc8] sm:$0xff]  }
 0xda6   :  { %19105 = vmatprep.subr.bf16.mxu1 %v21693_v26  ;;  %v24803_v26 = vld [vmem:[#allocation13_spill] sm:$0xff] }
 0xda9   :  { %19106 = vmatpush3.bf16.msra.mxu1 %v21694_v39  ;;  %v21749_v39 = vld [vmem:[%s23887_s2 + $0xd88] sm:$0xff]  }
 0xdaa   :  { %19107 = vmatprep.subr.bf16.mxu1 %v21697_v21  ;;  %v21751_v21 = vld [vmem:[%s23887_s2 + $0xdd0] sm:$0xff]  }
 0xdad   :  { %19108 = vmatpush3.bf16.msra.mxu1 %v21698_v19  ;;  %v19005_v6 = vpop.f32.mrb[116].mxu0  ;;  %v21752_v19 = vld [vmem:[%s23887_s2 + $0xd90] sm:$0xff]  }
 0xdae   :  { %19109 = vmatprep.subr.bf16.mxu1 %v21701_v7  ;;  %v19006_v44 = vpop.f32.mrb[117].mxu0  ;;  %v21754_v7 = vld [vmem:[%s23887_s2 + $0xdd8] sm:$0xff]  }
 0xdaf   :  { %v18807_v32 = vpop.f32.mrb[104].mxu1  ;;  %v24440_v13 = vadd.f32 %v19006_v44, %v19005_v6  ;;  %v19008_v62 = vpop.f32.mrb[118].mxu0 }
 0xdb0   :  { %v18808_v29 = vpop.f32.mrb[105].mxu1  ;;  %v19009_v49 = vpop.f32.mrb[119].mxu0  ;;  %v21766_v62 = vld [vmem:[%s23887_s2 + $0xdf8] sm:$0xff]  }
 0xdb1   :  { %v18809_v36 = vadd.f32 %v18808_v29, %v18807_v32  ;;  %v18810_v16 = vpop.f32.mrb[106].mxu1  ;;  %19110 = vmatpush3.bf16.msra.mxu1 %v21702_v22  ;;  %v21755_v22 = vld [vmem:[%s23887_s2 + $0xd98] sm:$0xff]   ;;  %v21758_v32 = vld [vmem:[%s23887_s2 + $0xda0] sm:$0xff]   ;;  %v21760_v29 = vld [vmem:[%s23887_s2 + $0xde8] sm:$0xff]  }
 0xdb2   :  { %v18811_v23 = vpop.f32.mrb[107].mxu1  ;;  %19111 = vmatprep.subr.bf16.mxu1 %v21705_v24  ;;  %v21757_v24 = vld [vmem:[%s23887_s2 + $0xde0] sm:$0xff]   ;;  %v21763_v16 = vld [vmem:[%s23887_s2 + $0xdf0] sm:$0xff]  }
 0xdb3   :  { %v14113_v60 = vadd.f32 %v18809_v36, %v14073_v10  ;;  %v21761_v36 = vld [vmem:[%s23887_s2 + $0xda8] sm:$0xff]  }
 0xdb5   :  { %v14153_v47 = vadd.f32 %v24308_v9, %v14113_v60  ;;  %19112 = vmatpush3.bf16.msra.mxu1 %v21706_v43  ;;  %v24802_v9 = vld [vmem:[#allocation11_spill] sm:$0xff]  ;;  %v21764_v60 = vld [vmem:[%s23887_s2 + $0xdb0] sm:$0xff]  }
 0xdb6   :  { %19113 = vmatprep.subr.bf16.mxu1 %v21709_v46 }
 0xdb9   :  { %19114 = vmatpush3.bf16.msra.mxu1 %v21710_v27 }
 0xdba   :  { %19143 = vmatprep.subr.bf16.mxu1 %v21713_v57 }
 0xdbc   :  { %14671 = vmatmul.mubr.bf16.vlgmr.msra.gmra.mrb[132].mxu1 %v24801_v41  ;;  %v21767_v41 = vld [vmem:[%s23887_s2 + $0xdb8] sm:$0xff]   ;;  %s16392_s2 = sld [smem:[%s24751_s0 + %s22049_s29]]  }
 0xdbd   :  { %19144 = vmatpush3.bf16.msra.mxu1 %v21714_v33  ;;  %14750 = vmatprep.mubr.bf16.mxu1 %v24802_v9  ;;  %v24805_v9 = vld [vmem:[#allocation17_spill] sm:$0xff] }
 0xdbe   :  { %19145 = vmatprep.subr.bf16.mxu1 %v21717_v45 }
 0xdc1   :  { %19146 = vmatpush3.bf16.msra.mxu1 %v21718_v3 }
 0xdc2   :  { %19147 = vmatprep.subr.bf16.mxu1 %v21721_v5 }
 0xdc5   :  { %19148 = vmatpush3.bf16.msra.mxu1 %v21722_v2 }
 0xdc6   :  { %19149 = vmatprep.subr.bf16.mxu1 %v21725_v4 }
 0xdc9   :  { %19150 = vmatpush3.bf16.msra.mxu1 %v21726_v8 }
 0xdca   :  { %19151 = vmatprep.subr.bf16.mxu1 %v21729_v12 }
 0xdcd   :  { %19152 = vmatpush3.bf16.msra.mxu1 %v21730_v17  ;;  %v19049_v10 = vpop.f32.mrb[120].mxu0 }
 0xdce   :  { %19153 = vmatprep.subr.bf16.mxu1 %v21733_v40  ;;  %v19050_v53 = vpop.f32.mrb[121].mxu0 }
 0xdcf   :  { %v18851_v11 = vpop.f32.mrb[108].mxu1  ;;  %v24461_v30 = vadd.f32 %v19050_v53, %v19049_v10  ;;  %v19052_v38 = vpop.f32.mrb[122].mxu0 }
 0xdd0   :  { %v18852_v61 = vpop.f32.mrb[109].mxu1  ;;  %v19053_v48 = vpop.f32.mrb[123].mxu0 }
 0xdd1   :  { %v18853_v0 = vadd.f32 %v18852_v61, %v18851_v11  ;;  %v18854_v28 = vpop.f32.mrb[110].mxu1  ;;  %19154 = vmatpush3.bf16.msra.mxu1 %v21734_v31  ;;  %v21771_v48 = vld [vmem:[%s24497_s26 + $0x4] ss:$8 sps:$4 sm:$0xff]  }
 0xdd2   :  { %v18855_v37 = vpop.f32.mrb[111].mxu1  ;;  %19155 = vmatprep.subr.bf16.mxu1 %v21737_v1 }
 0xdd3   :  { %v14193_v18 = vadd.f32 %v18853_v0, %v14153_v47 }
 0xdd5   :  { %v14233_v63 = vadd.f32 %v24350_v35, %v14193_v18  ;;  %19156 = vmatpush3.bf16.msra.mxu1 %v21738_v55  ;;  %v24804_v35 = vld [vmem:[#allocation14_spill] sm:$0xff] }
 0xdd6   :  { %19157 = vmatprep.subr.bf16.mxu1 %v21741_v25 }
 0xdd9   :  { %19158 = vmatpush3.bf16.msra.mxu1 %v21742_v56 }
 0xdda   :  { %19187 = vmatprep.subr.bf16.mxu1 %v21745_v50  ;;  %v21772_v50 = vld [vmem:[%s24497_s26 + $0x10] ss:$8 sps:$4 sm:$0xff]  }
 0xddc   :  { %14751 = vmatmul.mubr.bf16.vlgmr.msra.gmra.mrb[136].mxu1 %v24803_v26  ;;  %v21780_v26 = vld [vmem:[%s24497_s26 + $0x34] ss:$8 sps:$4 sm:$0xff]  }
 0xddd   :  { %19188 = vmatpush3.bf16.msra.mxu1 %v21746_v42  ;;  %14830 = vmatprep.mubr.bf16.mxu1 %v24804_v35  ;;  %v21777_v42 = vld [vmem:[%s24497_s26 + $0x24] ss:$8 sps:$4 sm:$0xff]  }
 0xdde   :  { %19189 = vmatprep.subr.bf16.mxu1 %v21748_v52  ;;  %v21775_v52 = vld [vmem:[%s24497_s26 + $0x20] ss:$8 sps:$4 sm:$0xff]   ;;  %v21783_v35 = vld [vmem:[%s24497_s26 + $0x44] ss:$8 sps:$4 sm:$0xff]  }
 0xde1   :  { %19190 = vmatpush3.bf16.msra.mxu1 %v21749_v39  ;;  %v21778_v39 = vld [vmem:[%s24497_s26 + $0x30] ss:$8 sps:$4 sm:$0xff]  }
 0xde2   :  { %19191 = vmatprep.subr.bf16.mxu1 %v21751_v21  ;;  %v21781_v21 = vld [vmem:[%s24497_s26 + $0x40] ss:$8 sps:$4 sm:$0xff]  }
 0xde5   :  { %19192 = vmatpush3.bf16.msra.mxu1 %v21752_v19 }
 0xde6   :  { %19193 = vmatprep.subr.bf16.mxu1 %v21754_v7 }
 0xde9   :  { %19194 = vmatpush3.bf16.msra.mxu1 %v21755_v22  ;;  %v21786_v22 = vld [vmem:[%s24497_s26 + $0x54] ss:$8 sps:$4 sm:$0xff]  }
 0xdea   :  { %19195 = vmatprep.subr.bf16.mxu1 %v21757_v24 }
 0xded   :  { %19196 = vmatpush3.bf16.msra.mxu1 %v21758_v32  ;;  %v19093_v47 = vpop.f32.mrb[124].mxu0 }
 0xdee   :  { %19197 = vmatprep.subr.bf16.mxu1 %v21760_v29  ;;  %v19094_v49 = vpop.f32.mrb[125].mxu0  ;;  %v21784_v29 = vld [vmem:[%s24497_s26 + $0x50] ss:$8 sps:$4 sm:$0xff]  }
 0xdef   :  { %v18895_v43 = vpop.f32.mrb[112].mxu1  ;;  %v24482_v57 = vadd.f32 %v19094_v49, %v19093_v47  ;;  %v19096_v33 = vpop.f32.mrb[126].mxu0  ;;  %v21792_v47 = vld [vmem:[%s24497_s26 + $0x74] ss:$8 sps:$4 sm:$0xff]  }
 0xdf0   :  { %v18896_v23 = vpop.f32.mrb[113].mxu1  ;;  %v19097_v3 = vpop.f32.mrb[127].mxu0  ;;  %v21795_v49 = vld [vmem:[%s24521_s30 + $0x4] ss:$16 sps:$4 sm:$0xff]   ;;  %v21798_v33 = vld [vmem:[%s24521_s30 + $0xc] ss:$16 sps:$4 sm:$0xff]  }
 0xdf1   :  { %v18897_v46 = vadd.f32 %v18896_v23, %v18895_v43  ;;  %v18898_v6 = vpop.f32.mrb[114].mxu1  ;;  %19198 = vmatpush3.bf16.msra.mxu1 %v21761_v36  ;;  %15453 = vmatprep.subr.bf16.mxu0 %v21795_v49  ;;  %v21807_v3 = vld [vmem:[%s24521_s30 + $0x44] ss:$16 sps:$4 sm:$0xff]  }
 0xdf2   :  { %v18899_v44 = vpop.f32.mrb[115].mxu1  ;;  %19199 = vmatprep.subr.bf16.mxu1 %v21763_v16  ;;  %v21789_v6 = vld [vmem:[%s24497_s26 + $0x64] ss:$8 sps:$4 sm:$0xff]  }
 0xdf3   :  { %v14273_v27 = vadd.f32 %v18897_v46, %v14233_v63 }
 0xdf5   :  { %v14313_v45 = vadd.f32 %v24393_v58, %v14273_v27  ;;  %19200 = vmatpush3.bf16.msra.mxu1 %v21764_v60  ;;  %v21790_v27 = vld [vmem:[%s24497_s26 + $0x70] ss:$8 sps:$4 sm:$0xff]  }
 0xdf6   :  { %19201 = vmatprep.subr.bf16.mxu1 %v21766_v62  ;;  %v21787_v62 = vld [vmem:[%s24497_s26 + $0x60] ss:$8 sps:$4 sm:$0xff]  }
 0xdf9   :  { %19202 = vmatpush3.bf16.msra.mxu1 %v21767_v41  ;;  %v21799_v41 = vld [vmem:[%s24521_s30 + $0x20] ss:$16 sps:$4 sm:$0xff]  }
 0xdfa   :  { %14998 = vmatprep.subr.bf16.mxu1 %v21771_v48 }
 0xdfc   :  { %14831 = vmatmul.mubr.bf16.vlgmr.msra.gmra.mrb[140].mxu1 %v24805_v9  ;;  %v21805_v9 = vld [vmem:[%s24521_s30 + $0x40] ss:$16 sps:$4 sm:$0xff]  }
 0xdfd   :  { %15030 = vmatprep.mubr.bf16.mxu1 %v24787_v54 }
 0xe0d   :  { %v19137_v17 = vpop.f32.mrb[128].mxu0 }
 0xe0e   :  { %v19138_v31 = vpop.f32.mrb[129].mxu0 }
 0xe0f   :  { %v18939_v5 = vpop.f32.mrb[116].mxu1  ;;  %v24488_v1 = vadd.f32 %v19138_v31, %v19137_v17  ;;  %v19140_v58 = vpop.f32.mrb[130].mxu0  ;;  %v21811_v17 = vld [vmem:[%s24521_s30 + $0x60] ss:$16 sps:$4 sm:$0xff]   ;;  %v21819_v31 = vld [vmem:[%s24521_s30 + $0x84] ss:$16 sps:$4 sm:$0xff]  }
 0xe10   :  { %v18940_v2 = vpop.f32.mrb[117].mxu1  ;;  %v19141_v61 = vpop.f32.mrb[131].mxu0 }
 0xe11   :  { %v18941_v4 = vadd.f32 %v18940_v2, %v18939_v5  ;;  %v18942_v8 = vpop.f32.mrb[118].mxu1  ;;  %v21813_v5 = vld [vmem:[%s24521_s30 + $0x64] ss:$16 sps:$4 sm:$0xff]   ;;  %v21817_v61 = vld [vmem:[%s24521_s30 + $0x80] ss:$16 sps:$4 sm:$0xff]  }
 0xe12   :  { %v18943_v12 = vpop.f32.mrb[119].mxu1 }
 0xe13   :  { %v14353_v40 = vadd.f32 %v18941_v4, %v14313_v45  ;;  %v21801_v45 = vld [vmem:[%s24521_s30 + $0x24] ss:$16 sps:$4 sm:$0xff]  }
 0xe15   :  { %v14393_v11 = vadd.f32 %v24419_v51, %v14353_v40  ;;  %v21769_v51 = vld [vmem:[%s24497_s26] ss:$8 sps:$4 sm:$0xff]  }
 0xe16   :  { %14999 = vmatpush1.bf16.msra.mxu1 %v21769_v51  ;;  %v21861_v51 = vld [vmem:[%s24521_s30 + $0x164] ss:$16 sps:$4 sm:$0xff]  }
 0xe2d   :  { %v19181_v54 = vpop.f32.mrb[132].mxu0 }
 0xe2e   :  { %v19182_v18 = vpop.f32.mrb[133].mxu0 }
 0xe2f   :  { %v18983_v0 = vpop.f32.mrb[120].mxu1  ;;  %v24491_v53 = vadd.f32 %v19182_v18, %v19181_v54  ;;  %v19184_v38 = vpop.f32.mrb[134].mxu0  ;;  %v21835_v54 = vld [vmem:[%s24521_s30 + $0xe0] ss:$16 sps:$4 sm:$0xff]   ;;  %v21849_v18 = vld [vmem:[%s24521_s30 + $0x124] ss:$16 sps:$4 sm:$0xff]  }
 0xe30   :  { %v18984_v28 = vpop.f32.mrb[121].mxu1  ;;  %v19185_v56 = vpop.f32.mrb[135].mxu0  ;;  %v21847_v38 = vld [vmem:[%s24521_s30 + $0x120] ss:$16 sps:$4 sm:$0xff]  }
 0xe31   :  { %v18985_v55 = vadd.f32 %v18984_v28, %v18983_v0  ;;  %v18986_v37 = vpop.f32.mrb[122].mxu1  ;;  %v21825_v0 = vld [vmem:[%s24521_s30 + $0xa4] ss:$16 sps:$4 sm:$0xff]   ;;  %v21823_v28 = vld [vmem:[%s24521_s30 + $0xa0] ss:$16 sps:$4 sm:$0xff]  }
 0xe32   :  { %v18987_v25 = vpop.f32.mrb[123].mxu1  ;;  %v21829_v37 = vld [vmem:[%s24521_s30 + $0xc0] ss:$16 sps:$4 sm:$0xff]  }
 0xe33   :  { %v14433_v10 = vadd.f32 %v18985_v55, %v14393_v11  ;;  %v21831_v55 = vld [vmem:[%s24521_s30 + $0xc4] ss:$16 sps:$4 sm:$0xff]   ;;  %v21853_v56 = vld [vmem:[%s24521_s30 + $0x140] ss:$16 sps:$4 sm:$0xff]  }
 0xe34   :  { %v21837_v25 = vld [vmem:[%s24521_s30 + $0xe4] ss:$16 sps:$4 sm:$0xff]  }
 0xe35   :  { %v14473_v63 = vadd.f32 %v24440_v13, %v14433_v10  ;;  %v21774_v13 = vld [vmem:[%s24497_s26 + $0x14] ss:$8 sps:$4 sm:$0xff]   ;;  %v21841_v10 = vld [vmem:[%s24521_s30 + $0x100] ss:$16 sps:$4 sm:$0xff]  }
 0xe36   :  { %15000 = vmatprep.subr.bf16.mxu1 %v21774_v13 }
 0xe37   :  { %15001 = vmatpush1.bf16.msra.mxu1 %v21772_v50 }
 0xe38   :  { %15002 = vmatprep.subr.bf16.mxu1 %v21777_v42 }
 0xe3b   :  { %15003 = vmatpush1.bf16.msra.mxu1 %v21775_v52  ;;  %v21859_v52 = vld [vmem:[%s24521_s30 + $0x160] ss:$16 sps:$4 sm:$0xff]  }
 0xe3c   :  { %15004 = vmatprep.subr.bf16.mxu1 %v21780_v26 }
 0xe3f   :  { %15005 = vmatpush1.bf16.msra.mxu1 %v21778_v39  ;;  %v21867_v39 = vld [vmem:[%s24521_s30 + $0x184] ss:$16 sps:$4 sm:$0xff]  }
 0xe40   :  { %15006 = vmatprep.subr.bf16.mxu1 %v21783_v35 }
 0xe43   :  { %15007 = vmatpush1.bf16.msra.mxu1 %v21781_v21 }
 0xe44   :  { %15008 = vmatprep.subr.bf16.mxu1 %v21786_v22  ;;  %v21871_v22 = vld [vmem:[%s24521_s30 + $0x1a0] ss:$16 sps:$4 sm:$0xff]  }
 0xe47   :  { %15009 = vmatpush1.bf16.msra.mxu1 %v21784_v29 }
 0xe48   :  { %15010 = vmatprep.subr.bf16.mxu1 %v21789_v6 }
 0xe4b   :  { %15011 = vmatpush1.bf16.msra.mxu1 %v21787_v62 }
 0xe4c   :  { %15012 = vmatprep.subr.bf16.mxu1 %v21792_v47 }
 0xe4d   :  { %v24511_v16 = vpop.f32.mrb[136].mxu0 }
 0xe4e   :  { %v19307_v23 = vpop.f32.mrb[137].mxu0 }
 0xe4f   :  { %v19027_v19 = vpop.f32.mrb[124].mxu1  ;;  %v14875_v46 = vpop.f32.mrb[138].mxu0  ;;  %15013 = vmatpush1.bf16.msra.mxu1 %v21790_v27  ;;  %v18360_v27 = vld [vmem:[%s16384_s4] ss:$0 sm:$0xff] }
 0xe50   :  { %v19028_v7 = vpop.f32.mrb[125].mxu1  ;;  %v19308_v44 = vpop.f32.mrb[139].mxu0  ;;  %15494 = vmatprep.subr.bf16.mxu1 %v21798_v33 }
 0xe51   :  { %v19029_v24 = vadd.f32 %v19028_v7, %v19027_v19  ;;  %v19030_v32 = vpop.f32.mrb[126].mxu1  ;;  %v21865_v19 = vld [vmem:[%s24521_s30 + $0x180] ss:$16 sps:$4 sm:$0xff]   ;;  %v21873_v7 = vld [vmem:[%s24521_s30 + $0x1a4] ss:$16 sps:$4 sm:$0xff]  }
 0xe52   :  { %v19031_v36 = vpop.f32.mrb[127].mxu1 }
 0xe53   :  { %v14513_v43 = vadd.f32 %v19029_v24, %v14473_v63  ;;  %v21855_v63 = vld [vmem:[%s24521_s30 + $0x144] ss:$16 sps:$4 sm:$0xff]  }
 0xe55   :  { %v14553_v60 = vadd.f32 %v24461_v30, %v14513_v43  ;;  %v21793_v30 = vld [vmem:[%s24521_s30] ss:$16 sps:$4 sm:$0xff]  }
 0xe56   :  { %15454 = vmatpush1.bf16.msra.mxu0 %v21793_v30 }
 0xe57   :  { %15455 = vmatprep.subr.bf16.mxu0 %v21801_v45  ;;  %v21796_v45 = vld [vmem:[%s24521_s30 + $0x8] ss:$16 sps:$4 sm:$0xff]  }
 0xe5a   :  { %15456 = vmatpush1.bf16.msra.mxu0 %v21799_v41 }
 0xe5b   :  { %15457 = vmatprep.subr.bf16.mxu0 %v21807_v3  ;;  %v21804_v3 = vld [vmem:[%s24521_s30 + $0x2c] ss:$16 sps:$4 sm:$0xff]  }
 0xe5e   :  { %15458 = vmatpush1.bf16.msra.mxu0 %v21805_v9  ;;  %v21802_v9 = vld [vmem:[%s24521_s30 + $0x28] ss:$16 sps:$4 sm:$0xff]  }
 0xe5f   :  { %15459 = vmatprep.subr.bf16.mxu0 %v21813_v5  ;;  %v21810_v5 = vld [vmem:[%s24521_s30 + $0x4c] ss:$16 sps:$4 sm:$0xff]  }
 0xe62   :  { %15460 = vmatpush1.bf16.msra.mxu0 %v21811_v17  ;;  %v21828_v17 = vld [vmem:[%s24521_s30 + $0xac] ss:$16 sps:$4 sm:$0xff]  }
 0xe63   :  { %15461 = vmatprep.subr.bf16.mxu0 %v21819_v31  ;;  %v21834_v31 = vld [vmem:[%s24521_s30 + $0xcc] ss:$16 sps:$4 sm:$0xff]  }
 0xe66   :  { %15462 = vmatpush1.bf16.msra.mxu0 %v21817_v61  ;;  %v21838_v61 = vld [vmem:[%s24521_s30 + $0xe8] ss:$16 sps:$4 sm:$0xff]  }
 0xe67   :  { %15463 = vmatprep.subr.bf16.mxu0 %v21825_v0  ;;  %v21846_v0 = vld [vmem:[%s24521_s30 + $0x10c] ss:$16 sps:$4 sm:$0xff]  }
 0xe6a   :  { %15464 = vmatpush1.bf16.msra.mxu0 %v21823_v28  ;;  %v21844_v28 = vld [vmem:[%s24521_s30 + $0x108] ss:$16 sps:$4 sm:$0xff]  }
 0xe6b   :  { %15465 = vmatprep.subr.bf16.mxu0 %v21831_v55  ;;  %v21852_v55 = vld [vmem:[%s24521_s30 + $0x12c] ss:$16 sps:$4 sm:$0xff]  }
 0xe6e   :  { %15466 = vmatpush1.bf16.msra.mxu0 %v21829_v37  ;;  %v21850_v37 = vld [vmem:[%s24521_s30 + $0x128] ss:$16 sps:$4 sm:$0xff]  }
 0xe6f   :  { %v19071_v2 = vpop.f32.mrb[128].mxu1  ;;  %15467 = vmatprep.subr.bf16.mxu0 %v21837_v25  ;;  %v21858_v25 = vld [vmem:[%s24521_s30 + $0x14c] ss:$16 sps:$4 sm:$0xff]  }
 0xe70   :  { %v19072_v4 = vpop.f32.mrb[129].mxu1 }
 0xe71   :  { %v19073_v8 = vadd.f32 %v19072_v4, %v19071_v2  ;;  %v19074_v12 = vpop.f32.mrb[130].mxu1  ;;  %v21816_v2 = vld [vmem:[%s24521_s30 + $0x6c] ss:$16 sps:$4 sm:$0xff]   ;;  %v21814_v4 = vld [vmem:[%s24521_s30 + $0x68] ss:$16 sps:$4 sm:$0xff]  }
 0xe72   :  { %v19075_v40 = vpop.f32.mrb[131].mxu1  ;;  %15468 = vmatpush1.bf16.msra.mxu0 %v21835_v54  ;;  %v21820_v12 = vld [vmem:[%s24521_s30 + $0x88] ss:$16 sps:$4 sm:$0xff]  }
 0xe73   :  { %v14593_v58 = vadd.f32 %v19073_v8, %v14553_v60  ;;  %v21822_v8 = vld [vmem:[%s24521_s30 + $0x8c] ss:$16 sps:$4 sm:$0xff]   ;;  %v21826_v40 = vld [vmem:[%s24521_s30 + $0xa8] ss:$16 sps:$4 sm:$0xff]  }
 0xe74   :  { %v21856_v54 = vld [vmem:[%s24521_s30 + $0x148] ss:$16 sps:$4 sm:$0xff]  }
 0xe75   :  { %v14633_v11 = vadd.f32 %v24482_v57, %v14593_v58  ;;  %v21843_v57 = vld [vmem:[%s24521_s30 + $0x104] ss:$16 sps:$4 sm:$0xff]   ;;  %v21832_v58 = vld [vmem:[%s24521_s30 + $0xc8] ss:$16 sps:$4 sm:$0xff]  }
 0xe76   :  { %15469 = vmatprep.subr.bf16.mxu0 %v21843_v57  ;;  %v21864_v57 = vld [vmem:[%s24521_s30 + $0x16c] ss:$16 sps:$4 sm:$0xff]  }
 0xe77   :  { %15470 = vmatpush1.bf16.msra.mxu0 %v21841_v10  ;;  %v21862_v10 = vld [vmem:[%s24521_s30 + $0x168] ss:$16 sps:$4 sm:$0xff]  }
 0xe78   :  { %15471 = vmatprep.subr.bf16.mxu0 %v21849_v18  ;;  %v21870_v18 = vld [vmem:[%s24521_s30 + $0x18c] ss:$16 sps:$4 sm:$0xff]  }
 0xe7b   :  { %15472 = vmatpush1.bf16.msra.mxu0 %v21847_v38  ;;  %v21868_v38 = vld [vmem:[%s24521_s30 + $0x188] ss:$16 sps:$4 sm:$0xff]  }
 0xe7c   :  { %15473 = vmatprep.subr.bf16.mxu0 %v21855_v63  ;;  %v21876_v63 = vld [vmem:[%s24521_s30 + $0x1ac] ss:$16 sps:$4 sm:$0xff]  }
 0xe7f   :  { %15474 = vmatpush1.bf16.msra.mxu0 %v21853_v56  ;;  %v21874_v56 = vld [vmem:[%s24521_s30 + $0x1a8] ss:$16 sps:$4 sm:$0xff]  }
 0xe80   :  { %15475 = vmatprep.subr.bf16.mxu0 %v21861_v51  ;;  %v21879_v51 = vld [vmem:[%s24521_s30 + $0x1c4] ss:$16 sps:$4 sm:$0xff]  }
 0xe83   :  { %15476 = vmatpush1.bf16.msra.mxu0 %v21859_v52  ;;  %v21888_v52 = vld [vmem:[%s24521_s30 + $0x1ec] ss:$16 sps:$4 sm:$0xff]  }
 0xe84   :  { %15477 = vmatprep.subr.bf16.mxu0 %v21867_v39  ;;  %v21886_v39 = vld [vmem:[%s24521_s30 + $0x1e8] ss:$16 sps:$4 sm:$0xff]  }
 0xe87   :  { %15478 = vmatpush1.bf16.msra.mxu0 %v21865_v19 }
 0xe88   :  { %15479 = vmatprep.subr.bf16.mxu0 %v21873_v7 }
 0xe8b   :  { %15480 = vmatpush1.bf16.msra.mxu0 %v21871_v22 }
 0xe8c   :  { %15481 = vmatprep.subr.bf16.mxu0 %v21879_v51  ;;  %v21988_v51 = vld [vmem:[%s24640_s16 + $0x8] sm:$0xff]  }
 0xe8f   :  { %v19115_v48 = vpop.f32.mrb[132].mxu1 }
 0xe90   :  { %v19116_v13 = vpop.f32.mrb[133].mxu1 }
 0xe91   :  { %v19117_v50 = vadd.f32 %v19116_v13, %v19115_v48  ;;  %v19118_v42 = vpop.f32.mrb[134].mxu1  ;;  %v21882_v48 = vld [vmem:[%s24521_s30 + $0x1cc] ss:$16 sps:$4 sm:$0xff]   ;;  %v21877_v13 = vld [vmem:[%s24521_s30 + $0x1c0] ss:$16 sps:$4 sm:$0xff]  }
 0xe92   :  { %v19119_v26 = vpop.f32.mrb[135].mxu1  ;;  %15482 = vmatpush1.bf16.msra.mxu0 %v21877_v13  ;;  %v21885_v42 = vld [vmem:[%s24521_s30 + $0x1e4] ss:$16 sps:$4 sm:$0xff]  }
 0xe93   :  { %v14673_v35 = vadd.f32 %v19117_v50, %v14633_v11  ;;  %v21840_v11 = vld [vmem:[%s24521_s30 + $0xec] ss:$16 sps:$4 sm:$0xff]   ;;  %v21880_v50 = vld [vmem:[%s24521_s30 + $0x1c8] ss:$16 sps:$4 sm:$0xff]   ;;  %v21883_v26 = vld [vmem:[%s24521_s30 + $0x1e0] ss:$16 sps:$4 sm:$0xff]   ;;  %15483 = vmatprep.subr.bf16.mxu0 %v21885_v42 }
 0xe94   :  { %v21990_v13 = vld [vmem:[%s24640_s16 + $0x10] sm:$0xff]   ;;  %v21992_v42 = vld [vmem:[%s24640_s16 + $0x18] sm:$0xff]  }
 0xe95   :  { %v14713_v21 = vadd.f32 %v24488_v1, %v14673_v35  ;;  %v21891_v35 = vld [vmem:[%s24597_s8 + $0x4] ss:$8 sps:$4 sm:$0xff]  }
 0xe96   :  { %15484 = vmatpush1.bf16.msra.mxu0 %v21883_v26  ;;  %v21994_v26 = vld [vmem:[%s24640_s16 + $0x20] sm:$0xff]  }
 0xe97   :  { %15947 = vmatprep.subr.bf16.mxu0 %v21891_v35  ;;  %v21996_v35 = vld [vmem:[%s24640_s16 + $0x28] sm:$0xff]  }
 0xeaf   :  { %v19159_v24 = vpop.f32.mrb[136].mxu1 }
 0xeb0   :  { %v19160_v32 = vpop.f32.mrb[137].mxu1 }
 0xeb1   :  { %v19161_v29 = vadd.f32 %v19160_v32, %v19159_v24  ;;  %v19162_v36 = vpop.f32.mrb[138].mxu1 }
 0xeb2   :  { %v19163_v43 = vpop.f32.mrb[139].mxu1 }
 0xeb3   :  { %v14753_v23 = vadd.f32 %v19161_v29, %v14713_v21  ;;  %v14906_v21 = vld [vmem:[%s16386_s12] sm:$0x3] }
 0xeb4   :  { %v14911_v19 = vrot.slane %v14906_v21, %v23495_v14  ;;  %v14915_v7 = vrot.slane %v14906_v21, %v23498_v59  ;;  %v24657_v21 = vld [vmem:[%s16388_s21] sm:$0xf] }
 0xeb5   :  { %v14793_v46 = vadd.f32 %v24491_v53, %v14753_v23 }
 0xecf   :  { %v19203_v1 = vpop.f32.mrb[140].mxu1 }
 0xed0   :  { %v19204_v6 = vpop.f32.mrb[141].mxu1 }
 0xed1   :  { %v19205_v60 = vadd.f32 %v19204_v6, %v19203_v1  ;;  %v19206_v44 = vpop.f32.mrb[142].mxu1 }
 0xed2   :  { %v19207_v62 = vpop.f32.mrb[143].mxu1  ;;  %v21889_v44 = vld [vmem:[%s24597_s8] ss:$8 sps:$4 sm:$0xff]  }
 0xed3   :  { %v14833_v47 = vadd.f32 %v19205_v60, %v14793_v46 }
 0xed5   :  { %v14873_v30 = vadd.f32 %v24511_v16, %v14833_v47  ;;  %v21808_v16 = vld [vmem:[%s24521_s30 + $0x48] ss:$16 sps:$4 sm:$0xff]   ;;  %v21894_v47 = vld [vmem:[%s24597_s8 + $0x14] ss:$8 sps:$4 sm:$0xff]  }
 0xed7   :  { %v14885_v53 = vadd.f32 %v18360_v27, %v14873_v30  ;;  %v21892_v27 = vld [vmem:[%s24597_s8 + $0x10] ss:$8 sps:$4 sm:$0xff]   ;;  %v21897_v30 = vld [vmem:[%s24597_s8 + $0x24] ss:$8 sps:$4 sm:$0xff]  }
 0xed9   :  { %vm14886_vm5 = vcmp.ge.f32.partialorder %v14885_v53, 0.0  ;;  %v14887_v49 = vmul.f32 0.01, %v14885_v53 }
 0xedb   :  { %v14888_v33 = vsel %vm14886_vm5, %v14885_v53, %v14887_v49  ;;  %v21895_v53 = vld [vmem:[%s24597_s8 + $0x20] ss:$8 sps:$4 sm:$0xff]   ;;  %v21900_v49 = vld [vmem:[%s24597_s8 + $0x34] ss:$8 sps:$4 sm:$0xff]  }
 0xedc   :  { %v14889_v41 = vpack.c.bf16 %v14888_v33, %v14888_v33  ;;  %v21898_v33 = vld [vmem:[%s24597_s8 + $0x30] ss:$8 sps:$4 sm:$0xff]  }
 0xede   :  { %15031 = vmatmul.mubr.bf16.vlgmr.msra.gmra.mrb[144].mxu1 %v14889_v41  ;;  %v21901_v41 = vld [vmem:[%s24597_s8 + $0x40] ss:$8 sps:$4 sm:$0xff]  }
 0xedf   :  { %15495 = vmatpush1.bf16.msra.mxu1 %v21796_v45  ;;  %v21903_v45 = vld [vmem:[%s24597_s8 + $0x44] ss:$8 sps:$4 sm:$0xff]  }
 0xee0   :  { %15496 = vmatprep.subr.bf16.mxu1 %v21804_v3  ;;  %v21906_v3 = vld [vmem:[%s24597_s8 + $0x54] ss:$8 sps:$4 sm:$0xff]  }
 0xee3   :  { %15497 = vmatpush1.bf16.msra.mxu1 %v21802_v9  ;;  %v21904_v9 = vld [vmem:[%s24597_s8 + $0x50] ss:$8 sps:$4 sm:$0xff]  }
 0xee4   :  { %15498 = vmatprep.subr.bf16.mxu1 %v21810_v5  ;;  %v21909_v5 = vld [vmem:[%s24597_s8 + $0x64] ss:$8 sps:$4 sm:$0xff]  }
 0xee7   :  { %15499 = vmatpush1.bf16.msra.mxu1 %v21808_v16  ;;  %v21907_v16 = vld [vmem:[%s24597_s8 + $0x60] ss:$8 sps:$4 sm:$0xff]  }
 0xee8   :  { %15500 = vmatprep.subr.bf16.mxu1 %v21816_v2  ;;  %v21912_v2 = vld [vmem:[%s24597_s8 + $0x74] ss:$8 sps:$4 sm:$0xff]  }
 0xeeb   :  { %15501 = vmatpush1.bf16.msra.mxu1 %v21814_v4  ;;  %v21910_v4 = vld [vmem:[%s24597_s8 + $0x70] ss:$8 sps:$4 sm:$0xff]  }
 0xeec   :  { %15502 = vmatprep.subr.bf16.mxu1 %v21822_v8  ;;  %v21915_v8 = vld [vmem:[%s24597_s8 + $0x84] ss:$8 sps:$4 sm:$0xff]  }
 0xeef   :  { %15503 = vmatpush1.bf16.msra.mxu1 %v21820_v12  ;;  %v21913_v12 = vld [vmem:[%s24597_s8 + $0x80] ss:$8 sps:$4 sm:$0xff]  }
 0xef0   :  { %15504 = vmatprep.subr.bf16.mxu1 %v21828_v17  ;;  %v21918_v17 = vld [vmem:[%s24597_s8 + $0x94] ss:$8 sps:$4 sm:$0xff]  }
 0xef3   :  { %15505 = vmatpush1.bf16.msra.mxu1 %v21826_v40  ;;  %v21916_v40 = vld [vmem:[%s24597_s8 + $0x90] ss:$8 sps:$4 sm:$0xff]  }
 0xef4   :  { %15506 = vmatprep.subr.bf16.mxu1 %v21834_v31  ;;  %v21921_v31 = vld [vmem:[%s24597_s8 + $0xa4] ss:$8 sps:$4 sm:$0xff]  }
 0xef7   :  { %15507 = vmatpush1.bf16.msra.mxu1 %v21832_v58  ;;  %v21919_v58 = vld [vmem:[%s24597_s8 + $0xa0] ss:$8 sps:$4 sm:$0xff]  }
 0xef8   :  { %15508 = vmatprep.subr.bf16.mxu1 %v21840_v11  ;;  %v21924_v11 = vld [vmem:[%s24597_s8 + $0xb4] ss:$8 sps:$4 sm:$0xff]  }
 0xefb   :  { %15509 = vmatpush1.bf16.msra.mxu1 %v21838_v61  ;;  %v21922_v61 = vld [vmem:[%s24597_s8 + $0xb0] ss:$8 sps:$4 sm:$0xff]  }
 0xefc   :  { %15510 = vmatprep.subr.bf16.mxu1 %v21846_v0  ;;  %v21927_v0 = vld [vmem:[%s24597_s8 + $0xc4] ss:$8 sps:$4 sm:$0xff]  }
 0xeff   :  { %15511 = vmatpush1.bf16.msra.mxu1 %v21844_v28  ;;  %v21925_v28 = vld [vmem:[%s24597_s8 + $0xc0] ss:$8 sps:$4 sm:$0xff]  }
 0xf00   :  { %15512 = vmatprep.subr.bf16.mxu1 %v21852_v55  ;;  %v21930_v55 = vld [vmem:[%s24597_s8 + $0xd4] ss:$8 sps:$4 sm:$0xff]  }
 0xf03   :  { %15513 = vmatpush1.bf16.msra.mxu1 %v21850_v37  ;;  %v21928_v37 = vld [vmem:[%s24597_s8 + $0xd0] ss:$8 sps:$4 sm:$0xff]  }
 0xf04   :  { %15514 = vmatprep.subr.bf16.mxu1 %v21858_v25  ;;  %v21933_v25 = vld [vmem:[%s24597_s8 + $0xe4] ss:$8 sps:$4 sm:$0xff]  }
 0xf07   :  { %15515 = vmatpush1.bf16.msra.mxu1 %v21856_v54  ;;  %v21931_v54 = vld [vmem:[%s24597_s8 + $0xe0] ss:$8 sps:$4 sm:$0xff]  }
 0xf08   :  { %15516 = vmatprep.subr.bf16.mxu1 %v21864_v57  ;;  %v21936_v57 = vld [vmem:[%s24597_s8 + $0xf4] ss:$8 sps:$4 sm:$0xff]  }
 0xf0b   :  { %15517 = vmatpush1.bf16.msra.mxu1 %v21862_v10  ;;  %v21934_v10 = vld [vmem:[%s24597_s8 + $0xf0] ss:$8 sps:$4 sm:$0xff]  }
 0xf0c   :  { %15518 = vmatprep.subr.bf16.mxu1 %v21870_v18  ;;  %v21939_v18 = vld [vmem:[%s24597_s8 + $0x104] ss:$8 sps:$4 sm:$0xff]  }
 0xf0f   :  { %15519 = vmatpush1.bf16.msra.mxu1 %v21868_v38  ;;  %v21985_v38 = vld [vmem:[%s24640_s16 + $0x40] sm:$0xff]  }
 0xf10   :  { %15520 = vmatprep.subr.bf16.mxu1 %v21876_v63  ;;  %v21986_v63 = vld [vmem:[%s24640_s16] sm:$0xff]  }
 0xf13   :  { %15521 = vmatpush1.bf16.msra.mxu1 %v21874_v56  ;;  %v21987_v56 = vld [vmem:[%s24640_s16 + $0x48] sm:$0xff]  }
 0xf14   :  { %15522 = vmatprep.subr.bf16.mxu1 %v21882_v48  ;;  %v21989_v48 = vld [vmem:[%s24640_s16 + $0x50] sm:$0xff]  }
 0xf17   :  { %15523 = vmatpush1.bf16.msra.mxu1 %v21880_v50  ;;  %v21991_v50 = vld [vmem:[%s24640_s16 + $0x58] sm:$0xff]  }
 0xf18   :  { %15524 = vmatprep.subr.bf16.mxu1 %v21888_v52  ;;  %v21993_v52 = vld [vmem:[%s24640_s16 + $0x60] sm:$0xff]  }
 0xf1b   :  { %15525 = vmatpush1.bf16.msra.mxu1 %v21886_v39  ;;  %v21995_v39 = vld [vmem:[%s24640_s16 + $0x68] sm:$0xff]  }
 0xf1c   :  { %19218 = vmatprep.subr.bf16.mxu1 %v21985_v38  ;;  %v21973_v38 = vld [vmem:[%s24597_s8 + $0x1c0] ss:$8 sps:$4 sm:$0xff]  }
 0xfb1   :  { %v15032_v22 = vpop.f32.mrb[144].mxu1 }
 0xfb2   :  { %v15033_v24 = vadd.f32 %v15032_v22, %v14911_v19  ;;  %v15034_v32 = vpop.f32.mrb[145].mxu1  ;;  %v15116_v19 = vrot.slane %v24657_v21, %v23495_v14  ;;  %v15128_v22 = vrot.slane %v24657_v21, %v23611_v15 }
 0xfb3   :  { %v15035_v29 = vadd.f32 %v15034_v32, %v14915_v7  ;;  %v15036_v36 = vpop.f32.mrb[146].mxu1  ;;  %v15120_v7 = vrot.slane %v24657_v21, %v23498_v59 }
 0xfb4   :  { %vm15039_vm6 = vcmp.ge.f32.partialorder %v15033_v24, 0.0  ;;  %v15041_v43 = vmul.f32 0.01, %v15033_v24  ;;  %v15037_v23 = vpop.f32.mrb[147].mxu1 }
 0xfb5   :  { %vm15040_vm7 = vcmp.ge.f32.partialorder %v15035_v29, 0.0  ;;  %v15042_v46 = vmul.f32 0.01, %v15035_v29 }
 0xfb6   :  { %v15043_v1 = vsel %vm15039_vm6, %v15033_v24, %v15041_v43 }
 0xfb7   :  { %v15044_v6 = vsel %vm15040_vm7, %v15035_v29, %v15042_v46  ;;  %v15045_v62 = vpack.c.bf16 %v15043_v1, %v15043_v1 }
 0xfb8   :  { %v15046_v60 = vpack.c.bf16 %v15044_v6, %v15044_v6 }
 0xfba   :  { %15485 = vmatprep.mubr.bf16.mxu0 %v15046_v60  ;;  %15526 = vmatprep.mubr.bf16.mxu1 %v15046_v60 }
 0xfbb   :  { %15486 = vmatmul.mubr.bf16.vlgmr.msra.gmra.mrb[140].mxu0 %v15045_v62  ;;  %15527 = vmatmul.mubr.bf16.vlgmr.msra.gmra.mrb[148].mxu1 %v15045_v62 }
 0xfbc   :  { %15948 = vmatpush1.bf16.msra.mxu0 %v21889_v44  ;;  %19219 = vmatpush3.bf16.msra.mxu1 %v21986_v63  ;;  %v21978_v63 = vld [vmem:[%s24597_s8 + $0x1d4] ss:$8 sps:$4 sm:$0xff]  }
 0xfbd   :  { %15949 = vmatprep.subr.bf16.mxu0 %v21894_v47  ;;  %19220 = vmatprep.subr.bf16.mxu1 %v21987_v56  ;;  %v15124_v56 = vrot.slane %v24657_v21, %v23646_v34  ;;  %v21998_v21 = vld [vmem:[%s24640_s16 + $0x30] sm:$0xff]  }
 0xfc0   :  { %15950 = vmatpush1.bf16.msra.mxu0 %v21892_v27  ;;  %19221 = vmatpush3.bf16.msra.mxu1 %v21988_v51  ;;  %v21976_v51 = vld [vmem:[%s24597_s8 + $0x1d0] ss:$8 sps:$4 sm:$0xff]  }
 0xfc1   :  { %15951 = vmatprep.subr.bf16.mxu0 %v21897_v30  ;;  %19222 = vmatprep.subr.bf16.mxu1 %v21989_v48  ;;  %v21981_v48 = vld [vmem:[%s24597_s8 + $0x1e4] ss:$8 sps:$4 sm:$0xff]  }
 0xfc4   :  { %15952 = vmatpush1.bf16.msra.mxu0 %v21895_v53  ;;  %19223 = vmatpush3.bf16.msra.mxu1 %v21990_v13 }
 0xfc5   :  { %15953 = vmatprep.subr.bf16.mxu0 %v21900_v49  ;;  %19224 = vmatprep.subr.bf16.mxu1 %v21991_v50  ;;  %v21979_v50 = vld [vmem:[%s24597_s8 + $0x1e0] ss:$8 sps:$4 sm:$0xff]  }
 0xfc8   :  { %15954 = vmatpush1.bf16.msra.mxu0 %v21898_v33  ;;  %19225 = vmatpush3.bf16.msra.mxu1 %v21992_v42  ;;  %v21937_v33 = vld [vmem:[%s24597_s8 + $0x100] ss:$8 sps:$4 sm:$0xff]   ;;  %v21984_v42 = vld [vmem:[%s24597_s8 + $0x1f4] ss:$8 sps:$4 sm:$0xff]  }
 0xfc9   :  { %15955 = vmatprep.subr.bf16.mxu0 %v21903_v45  ;;  %19226 = vmatprep.subr.bf16.mxu1 %v21993_v52 }
 0xfcc   :  { %15956 = vmatpush1.bf16.msra.mxu0 %v21901_v41  ;;  %19227 = vmatpush3.bf16.msra.mxu1 %v21994_v26  ;;  %v21942_v41 = vld [vmem:[%s24597_s8 + $0x114] ss:$8 sps:$4 sm:$0xff]   ;;  %v21982_v26 = vld [vmem:[%s24597_s8 + $0x1f0] ss:$8 sps:$4 sm:$0xff]  }
 0xfcd   :  { %15957 = vmatprep.subr.bf16.mxu0 %v21906_v3  ;;  %19228 = vmatprep.subr.bf16.mxu1 %v21995_v39 }
 0xfd0   :  { %15958 = vmatpush1.bf16.msra.mxu0 %v21904_v9  ;;  %19229 = vmatpush3.bf16.msra.mxu1 %v21996_v35  ;;  %v21940_v9 = vld [vmem:[%s24597_s8 + $0x110] ss:$8 sps:$4 sm:$0xff]  }
 0xfd1   :  { %15959 = vmatprep.subr.bf16.mxu0 %v21909_v5  ;;  %v21945_v5 = vld [vmem:[%s24597_s8 + $0x124] ss:$8 sps:$4 sm:$0xff]   ;;  %v21997_v35 = vld [vmem:[%s24640_s16 + $0x70] sm:$0xff]  }
 0xfd2   :  { %19230 = vmatprep.subr.bf16.mxu1 %v21997_v35 }
 0xfd4   :  { %15960 = vmatpush1.bf16.msra.mxu0 %v21907_v16  ;;  %v21943_v16 = vld [vmem:[%s24597_s8 + $0x120] ss:$8 sps:$4 sm:$0xff]   ;;  %19231 = vmatpush3.bf16.msra.mxu1 %v21998_v21 }
 0xfd5   :  { %15961 = vmatprep.subr.bf16.mxu0 %v21912_v2  ;;  %v21948_v2 = vld [vmem:[%s24597_s8 + $0x134] ss:$8 sps:$4 sm:$0xff]  }
 0xfd8   :  { %15962 = vmatpush1.bf16.msra.mxu0 %v21910_v4  ;;  %v21946_v4 = vld [vmem:[%s24597_s8 + $0x130] ss:$8 sps:$4 sm:$0xff]  }
 0xfd9   :  { %15963 = vmatprep.subr.bf16.mxu0 %v21915_v8  ;;  %v21951_v8 = vld [vmem:[%s24597_s8 + $0x144] ss:$8 sps:$4 sm:$0xff]  }
 0xfdc   :  { %15964 = vmatpush1.bf16.msra.mxu0 %v21913_v12  ;;  %v21949_v12 = vld [vmem:[%s24597_s8 + $0x140] ss:$8 sps:$4 sm:$0xff]  }
 0xfdd   :  { %15965 = vmatprep.subr.bf16.mxu0 %v21918_v17  ;;  %v21954_v17 = vld [vmem:[%s24597_s8 + $0x154] ss:$8 sps:$4 sm:$0xff]  }
 0xfe0   :  { %15966 = vmatpush1.bf16.msra.mxu0 %v21916_v40  ;;  %v21952_v40 = vld [vmem:[%s24597_s8 + $0x150] ss:$8 sps:$4 sm:$0xff]  }
 0xfe1   :  { %15967 = vmatprep.subr.bf16.mxu0 %v21921_v31  ;;  %v21957_v31 = vld [vmem:[%s24597_s8 + $0x164] ss:$8 sps:$4 sm:$0xff]  }
 0xfe4   :  { %15968 = vmatpush1.bf16.msra.mxu0 %v21919_v58  ;;  %v21955_v58 = vld [vmem:[%s24597_s8 + $0x160] ss:$8 sps:$4 sm:$0xff]  }
 0xfe5   :  { %15969 = vmatprep.subr.bf16.mxu0 %v21924_v11  ;;  %v21960_v11 = vld [vmem:[%s24597_s8 + $0x174] ss:$8 sps:$4 sm:$0xff]  }
 0xfe8   :  { %15970 = vmatpush1.bf16.msra.mxu0 %v21922_v61  ;;  %v21958_v61 = vld [vmem:[%s24597_s8 + $0x170] ss:$8 sps:$4 sm:$0xff]  }
 0xfe9   :  { %15971 = vmatprep.subr.bf16.mxu0 %v21927_v0  ;;  %v21963_v0 = vld [vmem:[%s24597_s8 + $0x184] ss:$8 sps:$4 sm:$0xff]  }
 0xfec   :  { %15972 = vmatpush1.bf16.msra.mxu0 %v21925_v28  ;;  %v21961_v28 = vld [vmem:[%s24597_s8 + $0x180] ss:$8 sps:$4 sm:$0xff]  }
 0xfed   :  { %15973 = vmatprep.subr.bf16.mxu0 %v21930_v55  ;;  %v21966_v55 = vld [vmem:[%s24597_s8 + $0x194] ss:$8 sps:$4 sm:$0xff]  }
 0xff0   :  { %15974 = vmatpush1.bf16.msra.mxu0 %v21928_v37  ;;  %v21964_v37 = vld [vmem:[%s24597_s8 + $0x190] ss:$8 sps:$4 sm:$0xff]  }
 0xff1   :  { %15975 = vmatprep.subr.bf16.mxu0 %v21933_v25  ;;  %v21969_v25 = vld [vmem:[%s24597_s8 + $0x1a4] ss:$8 sps:$4 sm:$0xff]  }
 0xff4   :  { %15976 = vmatpush1.bf16.msra.mxu0 %v21931_v54  ;;  %v21967_v54 = vld [vmem:[%s24597_s8 + $0x1a0] ss:$8 sps:$4 sm:$0xff]  }
 0xff5   :  { %15977 = vmatprep.subr.bf16.mxu0 %v21936_v57  ;;  %v21972_v57 = vld [vmem:[%s24597_s8 + $0x1b4] ss:$8 sps:$4 sm:$0xff]  }
 0xff8   :  { %15978 = vmatpush1.bf16.msra.mxu0 %v21934_v10  ;;  %v21970_v10 = vld [vmem:[%s24597_s8 + $0x1b0] ss:$8 sps:$4 sm:$0xff]  }
 0xff9   :  { %15988 = vmatprep.subr.bf16.mxu0 %v21939_v18  ;;  %v21975_v18 = vld [vmem:[%s24597_s8 + $0x1c4] ss:$8 sps:$4 sm:$0xff]  }
0x108e   :  { %v15487_v24 = vpop.f32.mrb[140].mxu0  ;;  %v24665_v32 = vpop.f32.mrb[148].mxu1 }
0x108f   :  { %v15488_v29 = vadd.f32 %v15487_v24, %v15116_v19  ;;  %v15489_v36 = vpop.f32.mrb[141].mxu0  ;;  %v15530_v43 = vpop.f32.mrb[149].mxu1  ;;  %v15529_v13 = vadd.f32 %v24665_v32, %v15124_v56  ;;  %v21999_v19 = vld [vmem:[%s24640_s16 + $0x78] sm:$0xff]  }
0x1090   :  { %v15490_v23 = vadd.f32 %v15489_v36, %v15120_v7  ;;  %v15531_v46 = vadd.f32 %v15530_v43, %v15128_v22  ;;  %v15491_v1 = vpop.f32.mrb[142].mxu0  ;;  %v15532_v6 = vpop.f32.mrb[150].mxu1  ;;  %v22000_v7 = vld [vmem:[%s24640_s16 + $0x38] sm:$0xff]   ;;  %19232 = vmatprep.subr.bf16.mxu1 %v21999_v19  ;;  %v15615_v22 = vld [vmem:[%s16390_s28] sm:$0x3] }
0x1091   :  { %vm15535_vm8 = vcmp.ge.f32.partialorder %v15488_v29, 0.0  ;;  %v15539_v60 = vmul.f32 0.01, %v15488_v29  ;;  %v15492_v47 = vpop.f32.mrb[143].mxu0  ;;  %v15533_v27 = vpop.f32.mrb[151].mxu1  ;;  %vm15537_vm11 = vcmp.ge.f32.partialorder %v15529_v13, 0.0  ;;  %19233 = vmatpush3.bf16.msra.mxu1 %v22000_v7  ;;  %v15620_v24 = vrot.slane %v15615_v22, %v23495_v14 }
0x1092   :  { %vm15536_vm9 = vcmp.ge.f32.partialorder %v15490_v23, 0.0  ;;  %v15540_v44 = vmul.f32 0.01, %v15490_v23  ;;  %vm15538_vm10 = vcmp.ge.f32.partialorder %v15531_v46, 0.0  ;;  %v15542_v62 = vmul.f32 0.01, %v15531_v46  ;;  %19309 = vmatprep.subr.bf16.mxu1 %v22030_v20 }
0x1093   :  { %v15543_v15 = vsel %vm15535_vm8, %v15488_v29, %v15539_v60  ;;  %v15541_v52 = vmul.f32 0.01, %v15529_v13  ;;  %v15624_v32 = vrot.slane %v15615_v22, %v23498_v59  ;;  %v22001_v14 = vld [vmem:[%s24709_s24] sm:$0xff]   ;;  %v22002_v59 = vld [vmem:[%s24709_s24 + $0x8] sm:$0xff]   ;;  %v22003_v27 = vld [vmem:[%s24709_s24 + $0x10] sm:$0xff]  }
0x1094   :  { %v15544_v30 = vsel %vm15536_vm9, %v15490_v23, %v15540_v44  ;;  %v15546_v53 = vsel %vm15538_vm10, %v15531_v46, %v15542_v62  ;;  %v15547_v45 = vpack.c.bf16 %v15543_v15, %v15543_v15 }
0x1095   :  { %v15548_v49 = vpack.c.bf16 %v15544_v30, %v15544_v30  ;;  %v15550_v3 = vpack.c.bf16 %v15546_v53, %v15546_v53  ;;  %v15545_v34 = vsel %vm15537_vm11, %v15529_v13, %v15541_v52  ;;  %v22004_v30 = vld [vmem:[%s24709_s24 + $0x18] sm:$0xff]   ;;  %v22005_v53 = vld [vmem:[%s24709_s24 + $0x20] sm:$0xff]  }
0x1096   :  { %v15549_v39 = vpack.c.bf16 %v15545_v34, %v15545_v34 }
0x1097   :  { %15979 = vmatprep.mubr.bf16.mxu0 %v15548_v49  ;;  %v22006_v49 = vld [vmem:[%s24709_s24 + $0x28] sm:$0xff]  }
0x1098   :  { %15980 = vmatmul.mubr.bf16.vlgmr.msra.gmra.mrb[144].mxu0 %v15547_v45  ;;  %v22008_v45 = vld [vmem:[%s24709_s24 + $0x38] sm:$0xff]  }
0x1099   :  { %15989 = vmatpush1.bf16.msra.mxu0 %v21937_v33  ;;  %16020 = vmatprep.mubr.bf16.mxu0 %v15550_v3  ;;  %v22007_v33 = vld [vmem:[%s24709_s24 + $0x30] sm:$0xff]   ;;  %v18505_v3 = vld [vmem:[%s16392_s2] ss:$0 sm:$0xff] }
0x109a   :  { %15990 = vmatprep.subr.bf16.mxu0 %v21942_v41 }
0x109d   :  { %15991 = vmatpush1.bf16.msra.mxu0 %v21940_v9 }
0x109e   :  { %15992 = vmatprep.subr.bf16.mxu0 %v21945_v5 }
0x10a1   :  { %15993 = vmatpush1.bf16.msra.mxu0 %v21943_v16 }
0x10a2   :  { %15994 = vmatprep.subr.bf16.mxu0 %v21948_v2 }
0x10a5   :  { %15995 = vmatpush1.bf16.msra.mxu0 %v21946_v4 }
0x10a6   :  { %15996 = vmatprep.subr.bf16.mxu0 %v21951_v8 }
0x10a9   :  { %15997 = vmatpush1.bf16.msra.mxu0 %v21949_v12 }
0x10aa   :  { %15998 = vmatprep.subr.bf16.mxu0 %v21954_v17 }
0x10ad   :  { %15999 = vmatpush1.bf16.msra.mxu0 %v21952_v40 }
0x10ae   :  { %16000 = vmatprep.subr.bf16.mxu0 %v21957_v31 }
0x10b1   :  { %16001 = vmatpush1.bf16.msra.mxu0 %v21955_v58 }
0x10b2   :  { %16002 = vmatprep.subr.bf16.mxu0 %v21960_v11 }
0x10b5   :  { %16003 = vmatpush1.bf16.msra.mxu0 %v21958_v61 }
0x10b6   :  { %16004 = vmatprep.subr.bf16.mxu0 %v21963_v0 }
0x10b9   :  { %16005 = vmatpush1.bf16.msra.mxu0 %v21961_v28 }
0x10ba   :  { %16006 = vmatprep.subr.bf16.mxu0 %v21966_v55 }
0x10bd   :  { %16007 = vmatpush1.bf16.msra.mxu0 %v21964_v37 }
0x10be   :  { %16008 = vmatprep.subr.bf16.mxu0 %v21969_v25 }
0x10c1   :  { %16009 = vmatpush1.bf16.msra.mxu0 %v21967_v54 }
0x10c2   :  { %16010 = vmatprep.subr.bf16.mxu0 %v21972_v57 }
0x10c5   :  { %16011 = vmatpush1.bf16.msra.mxu0 %v21970_v10 }
0x10c6   :  { %16012 = vmatprep.subr.bf16.mxu0 %v21975_v18 }
0x10c9   :  { %16013 = vmatpush1.bf16.msra.mxu0 %v21973_v38 }
0x10ca   :  { %16014 = vmatprep.subr.bf16.mxu0 %v21978_v63  ;;  %v16339_v63 = vld [vmem:[%s16368_s14] sm:$0xff] }
0x10cd   :  { %16015 = vmatpush1.bf16.msra.mxu0 %v21976_v51 }
0x10ce   :  { %16016 = vmatprep.subr.bf16.mxu0 %v21981_v48 }
0x10d1   :  { %16017 = vmatpush1.bf16.msra.mxu0 %v21979_v50 }
0x10d2   :  { %16018 = vmatprep.subr.bf16.mxu0 %v21984_v42 }
0x10d5   :  { %16019 = vmatpush1.bf16.msra.mxu0 %v21982_v26 }
0x10d8   :  { %16021 = vmatmul.mubr.bf16.vlgmr.msra.gmra.mrb[144].mxu0 %v15549_v39 }
0x11ab   :  { %v16022_v29 = vpop.f32.mrb[144].mxu0 }
0x11ac   :  { %v19333_v36 = vadd.f32 %v16022_v29, %v15620_v24  ;;  %v16024_v43 = vpop.f32.mrb[145].mxu0 }
0x11ad   :  { %v19334_v23 = vadd.f32 %v16024_v43, %v15624_v32  ;;  %v16026_v46 = vpop.f32.mrb[146].mxu0 }
0x11ae   :  { %vm16029_vm12 = vcmp.ge.f32.partialorder %v19333_v36, 0.0  ;;  %v16031_v1 = vmul.f32 0.01, %v19333_v36  ;;  %v16027_v6 = vpop.f32.mrb[147].mxu0 }
0x11af   :  { %vm16030_vm13 = vcmp.ge.f32.partialorder %v19334_v23, 0.0  ;;  %v16032_v60 = vmul.f32 0.01, %v19334_v23 }
0x11b0   :  { %v16033_v44 = vsel %vm16029_vm12, %v19333_v36, %v16031_v1 }
0x11b1   :  { %v16034_v62 = vsel %vm16030_vm13, %v19334_v23, %v16032_v60  ;;  %v16035_v47 = vpack.c.bf16 %v16033_v44, %v16033_v44 }
0x11b2   :  { %v16036_v15 = vpack.c.bf16 %v16034_v62, %v16034_v62 }
0x11b4   :  { %16204 = vmatprep.mubr.bf16.mxu1 %v16036_v15 }
0x11b5   :  { %16205 = vmatmul.mubr.bf16.vlgmr.msra.gmra.mrb[152].mxu1 %v16035_v47 }
0x11b6   :  { %19310 = vmatpush3.bf16.msra.mxu1 %v22001_v14  ;;  %19325 = vmatprep.mubr.msk.bf16.mxu1 %vm22033_vm2, %v22030_v20 }
0x11b7   :  { %19311 = vmatprep.subr.bf16.mxu1 %v22030_v20 }
0x11ba   :  { %19312 = vmatpush3.bf16.msra.mxu1 %v22002_v59 }
0x11bb   :  { %19313 = vmatprep.subr.bf16.mxu1 %v22030_v20 }
0x11be   :  { %19314 = vmatpush3.bf16.msra.mxu1 %v22003_v27 }
0x11bf   :  { %19315 = vmatprep.subr.bf16.mxu1 %v22030_v20 }
0x11c2   :  { %19316 = vmatpush3.bf16.msra.mxu1 %v22004_v30 }
0x11c3   :  { %19317 = vmatprep.subr.bf16.mxu1 %v22030_v20 }
0x11c6   :  { %19318 = vmatpush3.bf16.msra.mxu1 %v22005_v53 }
0x11c7   :  { %19319 = vmatprep.subr.bf16.mxu1 %v22030_v20 }
0x11ca   :  { %19320 = vmatpush3.bf16.msra.mxu1 %v22006_v49 }
0x11cb   :  { %19321 = vmatprep.subr.bf16.mxu1 %v22030_v20 }
0x11ce   :  { %19322 = vmatpush3.bf16.msra.mxu1 %v22007_v33 }
0x11cf   :  { %19323 = vmatprep.subr.bf16.mxu1 %v22030_v20  ;;  %v18522_v20 = vld [vmem:[%s16394_s6] ss:$0 sm:$0xff] }
0x11d2   :  { %19324 = vmatpush3.bf16.msra.mxu1 %v22008_v45 }
0x1288   :  { %v19234_v41 = vpop.f32.mrb[152].mxu1 }
0x1289   :  { %v19235_v9 = vpop.f32.mrb[153].mxu1 }
0x128a   :  { %v19236_v5 = vadd.f32 %v19235_v9, %v19234_v41  ;;  %v19237_v16 = vpop.f32.mrb[154].mxu1 }
0x128b   :  { %v19238_v2 = vpop.f32.mrb[155].mxu1 }
0x128c   :  { %v16207_v4 = vadd.f32 %v19236_v5, %v18505_v3 }
0x128e   :  { %vm16212_vm14 = vcmp.ge.f32.partialorder %v16207_v4, 0.0  ;;  %v16213_v8 = vmul.f32 0.01, %v16207_v4 }
0x1290   :  { %v16214_v12 = vsel %vm16212_vm14, %v16207_v4, %v16213_v8 }
0x1291   :  { %v16215_v17 = vpack.c.bf16 %v16214_v12, %v16214_v12 }
0x1293   :  { %19326 = vmatmul.mubr.bf16.vlgmr.msra.gmra.mrb[156].mxu1 %v16215_v17 }
0x1366   :  { %v16321_v40 = vpop.f32.mrb[156].mxu1 }
0x1367   :  { %v16322_v31 = vadd.f32 %v18522_v20, %v16321_v40  ;;  %v19327_v58 = vpop.f32.mrb[157].mxu1 }
0x1368   :  { %v16324_v11 = vpop.f32.mrb[158].mxu1 }
0x1369   :  { %v16327_v61 = vsub.f32 0.0, %v16322_v31  ;;  %vm16333_vm15 = vcmp.ge.f32.partialorder %v16322_v31, 0.0  ;;  %v16334_v0 = vmul.f32 0.01, %v16322_v31  ;;  %v19328_v28 = vpop.f32.mrb[159].mxu1 }
0x136b   :  { %v16328_v55 = vmul.f32 1.442695, %v16327_v61  ;;  %v16335_v37 = vsel %vm16333_vm15, %v16322_v31, %v16334_v0 }
0x136c   :  { %v16336_v25 = vsub.f32 0.0, %v16335_v37 }
0x136d   :  { %22011 = vpow2.f32 %v16328_v55 }
0x136e   :  { %16338 = vst [vmem:[%s16398_s10] sm:$0xff] %v16336_v25  ;;  %v16340_v54 = vmul.f32 0.5, %v16336_v25 }
0x1370   :  { %v16341_v57 = vmul.f32 1.442695, %v16340_v54 }
0x1372   :  { %22013 = vpow2.f32 %v16341_v57 }
0x1377   :  { %v22012_v10 = vpop.eup %22011 }
0x1378   :  { %v16330_v18 = vadd.f32 1.0, %v22012_v10 }
0x137a   :  { %22015 = vrcp.f32 %v16330_v18 }
0x137c   :  { %v22014_v38 = vpop.eup %22013 }
0x137d   :  { %v16343_v56 = vmul.f32 %v22014_v38, %v16339_v63 }
0x1384   :  { %v22016_v51 = vpop.eup %22015 }
0x1385   :  { %16337 = vst [vmem:[%s16397_s19] sm:$0xff] %v22016_v51  ;;  %v16344_v48 = vadd.f32 %v22016_v51, %v16343_v56 }
0x1387   :  { %16345 = vst [vmem:[%s16399_s23] sm:$0xff] %v16344_v48 }

</bundles_post_ra>
